<compile_context>
chip_gen: v7x
topology: tpu7x:2x2x1
jax: 0.10.0
libtpu: 0.0.40
codegen_flags: <defaults>
</compile_context>

<pallas_src>
import jax
import jax.numpy as jnp
from jax import lax
from jax.experimental import pallas as pl
from jax.experimental.pallas import tpu as pltpu


# ---------------------------------------------------------------------------
# glue: banded im2col weights for the (w-rows, (h, channel)-lanes) layout
# ---------------------------------------------------------------------------
def _band_weight(w_hwio, p_in, p_out, step):
    """Pack a (3,3,Cin,Cout) HWIO kernel into a banded matmul weight.

    Wb[kw*(p_in*Cin) + pi*Cin + ci, po*Cout + co] =
        w[kh, kw, ci, co]  if pi == step*(po + kh) for some kh in {0,1,2}
        0                  otherwise
    so that (patch @ Wb) realizes the 3x3 conv when the patch stacks the three
    kw-shifted activation slabs along the lane axis.
    """
    kh_n, kw_n, cin, cout = w_hwio.shape
    pi = jnp.arange(p_in)
    po = jnp.arange(p_out)
    kh = jnp.arange(kh_n)
    sel = (pi[None, :, None] == step * (po[None, None, :] + kh[:, None, None]))
    sel = sel.astype(w_hwio.dtype)                                 # (kh, p_in, p_out)
    wb = jnp.einsum("kab,kwio->waibo", sel, w_hwio)                # (kw,p_in,ci,p_out,co)
    return wb.reshape(kw_n * p_in * cin, p_out * cout)


def _band_bias(b, p_out):
    return jnp.tile(b, p_out)[None, :]                             # (1, p_out*Cout)


# ---------------------------------------------------------------------------
# fused kernel
# ---------------------------------------------------------------------------
def _make_kernel(lr, bsz, W, R1, R2, R3, R4, R5, C2, LPOOL, nj4, hw):
    f32 = jnp.float32
    PREC = lax.Precision.HIGHEST     # explicit: no reliance on global config

    def kernel(xt_ref, tt_ref, a_ref,
               w1_ref, b1_ref, w2_ref, b2_ref, w3_ref, b3_ref,
               w4_ref, b4_ref, w5_ref, b5_ref, sel_ref, ups_ref, o_ref):
        # ---- gradient step, batched + transposed:
        #      zT = xT - lr * (tT - xT @ A^T) @ A     (rows = b*W + w, lanes = h)
        xt = xt_ref[...]                                            # (B*W, H)
        a = a_ref[...]                                              # (M, H)
        res = tt_ref[...] - lax.dot_general(
            xt, a, (((1,), (1,)), ((), ())),
            preferred_element_type=f32, precision=PREC)             # (B*W, M)
        zt = xt - lr * jnp.dot(res, a, preferred_element_type=f32,
                               precision=PREC)                      # (B*W, H)

        def band_conv(act, r_out, row_step, w_r, b_r):
            # one MXU matmul per conv: lanes hold (h, channel), rows hold w;
            # cross-sample boundary rows are garbage and never selected.
            patch = jnp.concatenate(
                [act[k * row_step:k * row_step + r_out, :] for k in range(3)],
                axis=1)
            y = jnp.dot(patch, w_r[...], preferred_element_type=f32,
                        precision=PREC) + b_r[...]
            return jnp.maximum(y, 0.0)

        act1 = band_conv(zt, R1, 1, w1_ref, b1_ref)                 # (R1, (H-2)*8)
        act2 = band_conv(act1, R2, 1, w2_ref, b2_ref)               # (R2, (H-4)*16)

        # ---- 2x2 max-pool, stride 2: adjacent-row max (W dir) + 16-lane
        #      shifted max (H dir); keep the sparse stride-2 pitch.
        vm = jnp.maximum(act2[0:R3, :], act2[1:R3 + 1, :])
        pool = jnp.maximum(vm[:, :LPOOL], vm[:, C2:])               # (R3, LPOOL)

        act3 = band_conv(pool, R4, 2, w3_ref, b3_ref)               # (R4, (nip-2)*32)
        act4 = band_conv(act3, R5, 2, w4_ref, b4_ref)               # (R5, (nip-4)*64)

        # ---- 1x1 conv5 (pre-bias), per-sample row pick, ReLU, nearest
        #      upsample via tiny 0/1 matmuls; lane-dense (B, Hout*Wout) store.
        act5 = jnp.dot(act4, w5_ref[...], preferred_element_type=f32,
                       precision=PREC)                              # (R5, ni4)
        out = jnp.zeros((bsz, hw), f32)
        for j in range(nj4):                                        # static, tiny
            u = jnp.dot(sel_ref[j], act5, preferred_element_type=f32,
                        precision=PREC)                             # (B, ni4)
            v = jnp.maximum(u + b5_ref[...], 0.0)
            out = out + jnp.dot(v, ups_ref[j], preferred_element_type=f32,
                                precision=PREC)                     # (B, hw)
        o_ref[...] = out

    return kernel


# ---------------------------------------------------------------------------
# wrapper
# ---------------------------------------------------------------------------
def forward_backward_layer(x_nchw, t_nchw, operator, lr, params, input_size,
                           max_block_batch=8):
    f32 = jnp.float32
    n, _, H, W = x_nchw.shape
    m = operator.shape[0]
    hout, wout = input_size
    hw = hout * wout

    C1 = params["w1"].shape[3]
    C2 = params["w2"].shape[3]
    C3 = params["w3"].shape[3]
    C4 = params["w4"].shape[3]

    # per-sample valid-conv geometry
    ni1, ni2 = H - 2, H - 4            # H direction (lives on lanes)
    nip = ni2 // 2
    ni3, ni4 = nip - 2, nip - 4
    njp = (W - 4) // 2                 # W direction (lives on sublanes)
    nj4 = njp - 4
    assert ni4 >= 1 and nj4 >= 1, "image too small for MiniUNet"
    # nearest upsample only matches jnp.repeat for integer factors:
    assert hout % ni4 == 0 and wout % nj4 == 0, "non-integer upsample factor"

    # batch blocking: B samples per grid step
    bsz = min(max_block_batch, n)
    g = -(-n // bsz)                   # cdiv
    npad = g * bsz

    # stacked-slab row counts per grid step (cross-sample rows are garbage
    # that flows through and is never selected).
    R5 = (bsz - 1) * W + 2 * nj4 - 1
    R4, R3 = R5 + 4, R5 + 8
    R2, R1 = R5 + 9, R5 + 11
    assert R1 + 2 <= bsz * W

    L1, L2 = ni1 * C1, ni2 * C2
    LPOOL = L2 - C2
    L3, L4 = ni3 * C3, ni4 * C4

    # ---- glue: banded conv weights, biases, selection / upsample matrices ----
    w1b = _band_weight(params["w1"].astype(f32), H, ni1, 1)         # (3*H,     L1)
    w2b = _band_weight(params["w2"].astype(f32), ni1, ni2, 1)       # (3*L1,    L2)
    w3b = _band_weight(params["w3"].astype(f32), ni2 - 1, ni3, 2)   # (3*LPOOL, L3)
    w4b = _band_weight(params["w4"].astype(f32), ni3, ni4, 1)       # (3*L3,    L4)
    b1b = _band_bias(params["b1"].astype(f32), ni1)
    b2b = _band_bias(params["b2"].astype(f32), ni2)
    b3b = _band_bias(params["b3"].astype(f32), ni3)
    b4b = _band_bias(params["b4"].astype(f32), ni4)
    w5v = params["w5"].reshape(-1).astype(f32)                      # (C4,)
    w5b = jnp.einsum("ab,i->aib", jnp.eye(ni4, dtype=f32),
                     w5v).reshape(L4, ni4)                          # (L4, ni4)
    b5b = _band_bias(params["b5"].astype(f32), ni4)                 # (1, ni4)

    # per-sample row picker: SEL[j, b, r] = 1  iff  r == b*W + 2*j
    r_idx = jnp.arange(R5)
    b_idx = jnp.arange(bsz)
    j_idx = jnp.arange(nj4)
    sel = (r_idx[None, None, :] ==
           (b_idx[None, :, None] * W + 2 * j_idx[:, None, None])).astype(f32)

    # nearest upsample placement: UPS[j, i, y*Wout+x] = 1 iff pre-upsample
    # pixel (row i, col j) is the source of output pixel (y, x).
    sy = (jnp.arange(hout) * ni4) // hout
    sx = (jnp.arange(wout) * nj4) // wout
    rsel = (sy[None, :] == jnp.arange(ni4)[:, None]).astype(f32)    # (ni4, hout)
    csel = (sx[None, :] == jnp.arange(nj4)[:, None]).astype(f32)    # (nj4, wout)
    ups = jnp.einsum("iy,jx->jiyx", rsel, csel).reshape(nj4, ni4, hw)

    # ---- inputs: transposed + batch-blocked (rows = b*W + w, lanes = h / m) --
    x = x_nchw[:, 0].astype(f32)                                    # (N, H, W)
    t = t_nchw[:, 0].astype(f32)                                    # (N, M, W)
    if npad != n:
        x = jnp.concatenate([x, jnp.zeros((npad - n, H, W), f32)], axis=0)
        t = jnp.concatenate([t, jnp.zeros((npad - n, m, W), f32)], axis=0)
    xt = jnp.transpose(x, (0, 2, 1)).reshape(g, bsz * W, H)
    tt = jnp.transpose(t, (0, 2, 1)).reshape(g, bsz * W, m)
    a = operator.astype(f32)                                        # (M, H)

    kernel = _make_kernel(lr, bsz, W, R1, R2, R3, R4, R5, C2, LPOOL, nj4, hw)

    const2 = lambda i: (0, 0)
    const3 = lambda i: (0, 0, 0)
    out = pl.pallas_call(
        kernel,
        out_shape=jax.ShapeDtypeStruct((g, bsz, hw), f32),
        grid=(g,),
        in_specs=[
            pl.BlockSpec((None, bsz * W, H), lambda i: (i, 0, 0)),   # xT slab
            pl.BlockSpec((None, bsz * W, m), lambda i: (i, 0, 0)),   # tT slab
            pl.BlockSpec(a.shape, const2),                           # operator A
            pl.BlockSpec(w1b.shape, const2), pl.BlockSpec(b1b.shape, const2),
            pl.BlockSpec(w2b.shape, const2), pl.BlockSpec(b2b.shape, const2),
            pl.BlockSpec(w3b.shape, const2), pl.BlockSpec(b3b.shape, const2),
            pl.BlockSpec(w4b.shape, const2), pl.BlockSpec(b4b.shape, const2),
            pl.BlockSpec(w5b.shape, const2), pl.BlockSpec(b5b.shape, const2),
            pl.BlockSpec(sel.shape, const3),
            pl.BlockSpec(ups.shape, const3),
        ],
        out_specs=pl.BlockSpec((None, bsz, hw), lambda i: (i, 0, 0)),
        compiler_params=pltpu.CompilerParams(
            dimension_semantics=("parallel",),
            vmem_limit_bytes=32 * 1024 * 1024),
    )(xt, tt, a, w1b, b1b, w2b, b2b, w3b, b3b, w4b, b4b, w5b, b5b, sel, ups)

    return out.reshape(npad, hw)[:n].reshape(n, 1, hout, wout)


# ---------------------------------------------------------------------------
# Parameter init (deterministic, synthetic)
# ---------------------------------------------------------------------------
def init_params(key):
    shapes = {
        "w1": (3, 3, 1, 8),
        "w2": (3, 3, 8, 16),
        "w3": (3, 3, 16, 32),
        "w4": (3, 3, 32, 64),
        "w5": (1, 1, 64, 1),
    }
    params = {}
    for name, shp in shapes.items():
        key, sub = jax.random.split(key)
        fan_in = shp[0] * shp[1] * shp[2]
        params[name] = jax.random.normal(sub, shp, jnp.float32) * (2.0 / fan_in) ** 0.5
        params["b" + name[1:]] = jnp.full((shp[3],), 0.01, jnp.float32)
    return params


# Pure-JAX reference (mirrors the PyTorch module) for validation.
def reference_forward(x_nchw, t_nchw, operator, lr, params, input_size):
    hp = lax.Precision.HIGHEST
    z = x_nchw - lr * jnp.matmul(
        operator.T, t_nchw - jnp.matmul(operator, x_nchw, precision=hp),
        precision=hp)
    h = jnp.transpose(z, (0, 2, 3, 1))
    dn = ("NHWC", "HWIO", "NHWC")

    def conv(v, w, b):
        out = lax.conv_general_dilated(
            v, w, (1, 1), "VALID", dimension_numbers=dn, precision=hp)
        return out + b.reshape(1, 1, 1, -1)

    h = jax.nn.relu(conv(h, params["w1"], params["b1"]))
    h = jax.nn.relu(conv(h, params["w2"], params["b2"]))
    h = lax.reduce_window(h, -jnp.inf, lax.max,
                          (1, 2, 2, 1), (1, 2, 2, 1), "VALID")
    h = jax.nn.relu(conv(h, params["w3"], params["b3"]))
    h = jax.nn.relu(conv(h, params["w4"], params["b4"]))
    hout, wout = input_size
    h = jnp.repeat(jnp.repeat(h, hout // h.shape[1], axis=1),
                   wout // h.shape[2], axis=2)
    h = jax.nn.relu(conv(h, params["w5"], params["b5"]))
    return jnp.transpose(h, (0, 3, 1, 2))


if __name__ == "__main__":
    key = jax.random.PRNGKey(0)
    k_x, k_t, k_a, k_p = jax.random.split(key, 4)

    N, H, W = 2, 16, 16               # input_batch: (N, 1, H, W), NCHW like PyTorch
    input_size = (H, W)
    learning_rate = 0.1

    x = jax.random.normal(k_x, (N, 1, H, W), jnp.float32)
    targets = jax.random.normal(k_t, (N, 1, H, W), jnp.float32)
    operator = jax.random.normal(k_a, (H, H), jnp.float32) / H
    params = init_params(k_p)

    out = forward_backward_layer(x, targets, operator, learning_rate, params, input_size)
    out = jax.block_until_ready(out)

    ref = reference_forward(x, targets, operator, learning_rate, params, input_size)
    assert out.shape == (N, 1, H, W) and out.dtype == jnp.float32
    err = float(jnp.max(jnp.abs(out - ref)))
    assert err < 1e-3, f"mismatch vs reference: {err}"

    print("KERNEL_OK")
</pallas_src>

<mosaic_0001>
module attributes {stable_mosaic.version = 11 : i64} {
  func.func @kernel(%arg0: i32, %arg1: memref<1x32x16xf32, #tpu.memory_space<vmem>>, %arg2: memref<1x32x16xf32, #tpu.memory_space<vmem>>, %arg3: memref<16x16xf32, #tpu.memory_space<vmem>>, %arg4: memref<48x112xf32, #tpu.memory_space<vmem>>, %arg5: memref<1x112xf32, #tpu.memory_space<vmem>>, %arg6: memref<336x192xf32, #tpu.memory_space<vmem>>, %arg7: memref<1x192xf32, #tpu.memory_space<vmem>>, %arg8: memref<528x128xf32, #tpu.memory_space<vmem>>, %arg9: memref<1x128xf32, #tpu.memory_space<vmem>>, %arg10: memref<384x128xf32, #tpu.memory_space<vmem>>, %arg11: memref<1x128xf32, #tpu.memory_space<vmem>>, %arg12: memref<128x2xf32, #tpu.memory_space<vmem>>, %arg13: memref<1x2xf32, #tpu.memory_space<vmem>>, %arg14: memref<2x2x19xf32, #tpu.memory_space<vmem>>, %arg15: memref<2x2x256xf32, #tpu.memory_space<vmem>>, %arg16: memref<1x2x256xf32, #tpu.memory_space<vmem>>) attributes {dimension_semantics = [#tpu.dimension_semantics<parallel>], iteration_bounds = array<i64: 1>, scalar_prefetch = 0 : i64, scratch_operands = 0 : i64, tpu.core_type = #tpu.core_type<tc>, window_params = [{transform_indices = @transform_0, window_bounds = array<i64: 1, 32, 16>}, {transform_indices = @transform_1, window_bounds = array<i64: 1, 32, 16>}, {pipeline_mode = #tpu.pipeline_mode<synchronous>, transform_indices = @transform_2, window_bounds = array<i64: 16, 16>}, {pipeline_mode = #tpu.pipeline_mode<synchronous>, transform_indices = @transform_3, window_bounds = array<i64: 48, 112>}, {pipeline_mode = #tpu.pipeline_mode<synchronous>, transform_indices = @transform_4, window_bounds = array<i64: 1, 112>}, {pipeline_mode = #tpu.pipeline_mode<synchronous>, transform_indices = @transform_5, window_bounds = array<i64: 336, 192>}, {pipeline_mode = #tpu.pipeline_mode<synchronous>, transform_indices = @transform_6, window_bounds = array<i64: 1, 192>}, {pipeline_mode = #tpu.pipeline_mode<synchronous>, transform_indices = @transform_7, window_bounds = array<i64: 528, 128>}, {pipeline_mode = #tpu.pipeline_mode<synchronous>, transform_indices = @transform_8, window_bounds = array<i64: 1, 128>}, {pipeline_mode = #tpu.pipeline_mode<synchronous>, transform_indices = @transform_9, window_bounds = array<i64: 384, 128>}, {pipeline_mode = #tpu.pipeline_mode<synchronous>, transform_indices = @transform_10, window_bounds = array<i64: 1, 128>}, {pipeline_mode = #tpu.pipeline_mode<synchronous>, transform_indices = @transform_11, window_bounds = array<i64: 128, 2>}, {pipeline_mode = #tpu.pipeline_mode<synchronous>, transform_indices = @transform_12, window_bounds = array<i64: 1, 2>}, {pipeline_mode = #tpu.pipeline_mode<synchronous>, transform_indices = @transform_13, window_bounds = array<i64: 2, 2, 19>}, {pipeline_mode = #tpu.pipeline_mode<synchronous>, transform_indices = @transform_14, window_bounds = array<i64: 2, 2, 256>}, {transform_indices = @transform_15, window_bounds = array<i64: 1, 2, 256>}]} {
    %c0 = arith.constant 0 : index
    %c0_0 = arith.constant 0 : index
    %c0_1 = arith.constant 0 : index
    %0 = vector.load %arg1[%c0, %c0_0, %c0_1] : memref<1x32x16xf32, #tpu.memory_space<vmem>>, vector<1x32x16xf32>
    %1 = vector.shape_cast %0 : vector<1x32x16xf32> to vector<32x16xf32>
    %c0_2 = arith.constant 0 : index
    %c0_3 = arith.constant 0 : index
    %2 = vector.load %arg3[%c0_2, %c0_3] : memref<16x16xf32, #tpu.memory_space<vmem>>, vector<16x16xf32>
    %c0_4 = arith.constant 0 : index
    %c0_5 = arith.constant 0 : index
    %c0_6 = arith.constant 0 : index
    %3 = vector.load %arg2[%c0_4, %c0_5, %c0_6] : memref<1x32x16xf32, #tpu.memory_space<vmem>>, vector<1x32x16xf32>
    %4 = vector.shape_cast %3 : vector<1x32x16xf32> to vector<32x16xf32>
    %cst = arith.constant dense<0.000000e+00> : vector<32x16xf32>
    %5 = tpu.matmul %1, %2, %cst {dimension_numbers = #tpu.dot_dimension_numbers<[1], [1], [0], [0], [0, 0, 1, 0], [], []>, precision = #tpu.contract_precision<fp32>} : vector<32x16xf32>, vector<16x16xf32>, vector<32x16xf32> -> vector<32x16xf32>
    %6 = arith.subf %4, %5 : vector<32x16xf32>
    %cst_7 = arith.constant dense<0.000000e+00> : vector<32x16xf32>
    %7 = tpu.matmul %6, %2, %cst_7 {dimension_numbers = #tpu.dot_dimension_numbers<[1], [0], [0], [1], [0, 0, 1, 1], [], []>, precision = #tpu.contract_precision<fp32>} : vector<32x16xf32>, vector<16x16xf32>, vector<32x16xf32> -> vector<32x16xf32>
    %cst_8 = arith.constant 1.000000e-01 : f32
    %8 = vector.broadcast %cst_8 : f32 to vector<32x16xf32>
    %9 = arith.mulf %8, %7 : vector<32x16xf32>
    %10 = arith.subf %1, %9 : vector<32x16xf32>
    %11 = vector.extract_strided_slice %10 {offsets = [0, 0], sizes = [30, 16], strides = [1, 1]} : vector<32x16xf32> to vector<30x16xf32>
    %12 = vector.extract_strided_slice %10 {offsets = [1, 0], sizes = [30, 16], strides = [1, 1]} : vector<32x16xf32> to vector<30x16xf32>
    %13 = vector.extract_strided_slice %10 {offsets = [2, 0], sizes = [30, 16], strides = [1, 1]} : vector<32x16xf32> to vector<30x16xf32>
    %14 = tpu.concatenate %11, %12, %13 in 1 : vector<30x16xf32>, vector<30x16xf32>, vector<30x16xf32> -> vector<30x48xf32>
    %c0_9 = arith.constant 0 : index
    %c0_10 = arith.constant 0 : index
    %15 = vector.load %arg4[%c0_9, %c0_10] : memref<48x112xf32, #tpu.memory_space<vmem>>, vector<48x112xf32>
    %cst_11 = arith.constant dense<0.000000e+00> : vector<30x112xf32>
    %16 = tpu.matmul %14, %15, %cst_11 {dimension_numbers = #tpu.dot_dimension_numbers<[1], [0], [0], [1], [0, 0, 1, 1], [], []>, precision = #tpu.contract_precision<fp32>} : vector<30x48xf32>, vector<48x112xf32>, vector<30x112xf32> -> vector<30x112xf32>
    %c0_12 = arith.constant 0 : index
    %c0_13 = arith.constant 0 : index
    %17 = vector.load %arg5[%c0_12, %c0_13] : memref<1x112xf32, #tpu.memory_space<vmem>>, vector<1x112xf32>
    %18 = vector.broadcast %17 : vector<1x112xf32> to vector<30x112xf32>
    %19 = arith.addf %16, %18 : vector<30x112xf32>
    %cst_14 = arith.constant 0.000000e+00 : f32
    %20 = vector.broadcast %cst_14 : f32 to vector<30x112xf32>
    %21 = arith.maximumf %19, %20 : vector<30x112xf32>
    %22 = vector.extract_strided_slice %21 {offsets = [0, 0], sizes = [28, 112], strides = [1, 1]} : vector<30x112xf32> to vector<28x112xf32>
    %23 = vector.extract_strided_slice %21 {offsets = [1, 0], sizes = [28, 112], strides = [1, 1]} : vector<30x112xf32> to vector<28x112xf32>
    %24 = vector.extract_strided_slice %21 {offsets = [2, 0], sizes = [28, 112], strides = [1, 1]} : vector<30x112xf32> to vector<28x112xf32>
    %25 = tpu.concatenate %22, %23, %24 in 1 : vector<28x112xf32>, vector<28x112xf32>, vector<28x112xf32> -> vector<28x336xf32>
    %c0_15 = arith.constant 0 : index
    %c0_16 = arith.constant 0 : index
    %26 = vector.load %arg6[%c0_15, %c0_16] : memref<336x192xf32, #tpu.memory_space<vmem>>, vector<336x192xf32>
    %cst_17 = arith.constant dense<0.000000e+00> : vector<28x192xf32>
    %27 = tpu.matmul %25, %26, %cst_17 {dimension_numbers = #tpu.dot_dimension_numbers<[1], [0], [0], [1], [0, 0, 1, 1], [], []>, precision = #tpu.contract_precision<fp32>} : vector<28x336xf32>, vector<336x192xf32>, vector<28x192xf32> -> vector<28x192xf32>
    %c0_18 = arith.constant 0 : index
    %c0_19 = arith.constant 0 : index
    %28 = vector.load %arg7[%c0_18, %c0_19] : memref<1x192xf32, #tpu.memory_space<vmem>>, vector<1x192xf32>
    %29 = vector.broadcast %28 : vector<1x192xf32> to vector<28x192xf32>
    %30 = arith.addf %27, %29 : vector<28x192xf32>
    %cst_20 = arith.constant 0.000000e+00 : f32
    %31 = vector.broadcast %cst_20 : f32 to vector<28x192xf32>
    %32 = arith.maximumf %30, %31 : vector<28x192xf32>
    %33 = vector.extract_strided_slice %32 {offsets = [0, 0], sizes = [27, 192], strides = [1, 1]} : vector<28x192xf32> to vector<27x192xf32>
    %34 = vector.extract_strided_slice %32 {offsets = [1, 0], sizes = [27, 192], strides = [1, 1]} : vector<28x192xf32> to vector<27x192xf32>
    %35 = arith.maximumf %33, %34 : vector<27x192xf32>
    %36 = vector.extract_strided_slice %35 {offsets = [0, 0], sizes = [27, 176], strides = [1, 1]} : vector<27x192xf32> to vector<27x176xf32>
    %37 = vector.extract_strided_slice %35 {offsets = [0, 16], sizes = [27, 176], strides = [1, 1]} : vector<27x192xf32> to vector<27x176xf32>
    %38 = arith.maximumf %36, %37 : vector<27x176xf32>
    %39 = vector.extract_strided_slice %38 {offsets = [0, 0], sizes = [23, 176], strides = [1, 1]} : vector<27x176xf32> to vector<23x176xf32>
    %40 = vector.extract_strided_slice %38 {offsets = [2, 0], sizes = [23, 176], strides = [1, 1]} : vector<27x176xf32> to vector<23x176xf32>
    %41 = vector.extract_strided_slice %38 {offsets = [4, 0], sizes = [23, 176], strides = [1, 1]} : vector<27x176xf32> to vector<23x176xf32>
    %42 = tpu.concatenate %39, %40, %41 in 1 : vector<23x176xf32>, vector<23x176xf32>, vector<23x176xf32> -> vector<23x528xf32>
    %c0_21 = arith.constant 0 : index
    %c0_22 = arith.constant 0 : index
    %43 = vector.load %arg8[%c0_21, %c0_22] : memref<528x128xf32, #tpu.memory_space<vmem>>, vector<528x128xf32>
    %cst_23 = arith.constant dense<0.000000e+00> : vector<23x128xf32>
    %44 = tpu.matmul %42, %43, %cst_23 {dimension_numbers = #tpu.dot_dimension_numbers<[1], [0], [0], [1], [0, 0, 1, 1], [], []>, precision = #tpu.contract_precision<fp32>} : vector<23x528xf32>, vector<528x128xf32>, vector<23x128xf32> -> vector<23x128xf32>
    %c0_24 = arith.constant 0 : index
    %c0_25 = arith.constant 0 : index
    %45 = vector.load %arg9[%c0_24, %c0_25] : memref<1x128xf32, #tpu.memory_space<vmem>>, vector<1x128xf32>
    %46 = vector.broadcast %45 : vector<1x128xf32> to vector<23x128xf32>
    %47 = arith.addf %44, %46 : vector<23x128xf32>
    %cst_26 = arith.constant 0.000000e+00 : f32
    %48 = vector.broadcast %cst_26 : f32 to vector<23x128xf32>
    %49 = arith.maximumf %47, %48 : vector<23x128xf32>
    %50 = vector.extract_strided_slice %49 {offsets = [0, 0], sizes = [19, 128], strides = [1, 1]} : vector<23x128xf32> to vector<19x128xf32>
    %51 = vector.extract_strided_slice %49 {offsets = [2, 0], sizes = [19, 128], strides = [1, 1]} : vector<23x128xf32> to vector<19x128xf32>
    %52 = vector.extract_strided_slice %49 {offsets = [4, 0], sizes = [19, 128], strides = [1, 1]} : vector<23x128xf32> to vector<19x128xf32>
    %53 = tpu.concatenate %50, %51, %52 in 1 : vector<19x128xf32>, vector<19x128xf32>, vector<19x128xf32> -> vector<19x384xf32>
    %c0_27 = arith.constant 0 : index
    %c0_28 = arith.constant 0 : index
    %54 = vector.load %arg10[%c0_27, %c0_28] : memref<384x128xf32, #tpu.memory_space<vmem>>, vector<384x128xf32>
    %cst_29 = arith.constant dense<0.000000e+00> : vector<19x128xf32>
    %55 = tpu.matmul %53, %54, %cst_29 {dimension_numbers = #tpu.dot_dimension_numbers<[1], [0], [0], [1], [0, 0, 1, 1], [], []>, precision = #tpu.contract_precision<fp32>} : vector<19x384xf32>, vector<384x128xf32>, vector<19x128xf32> -> vector<19x128xf32>
    %c0_30 = arith.constant 0 : index
    %c0_31 = arith.constant 0 : index
    %56 = vector.load %arg11[%c0_30, %c0_31] : memref<1x128xf32, #tpu.memory_space<vmem>>, vector<1x128xf32>
    %57 = vector.broadcast %56 : vector<1x128xf32> to vector<19x128xf32>
    %58 = arith.addf %55, %57 : vector<19x128xf32>
    %cst_32 = arith.constant 0.000000e+00 : f32
    %59 = vector.broadcast %cst_32 : f32 to vector<19x128xf32>
    %60 = arith.maximumf %58, %59 : vector<19x128xf32>
    %c0_33 = arith.constant 0 : index
    %c0_34 = arith.constant 0 : index
    %61 = vector.load %arg12[%c0_33, %c0_34] : memref<128x2xf32, #tpu.memory_space<vmem>>, vector<128x2xf32>
    %cst_35 = arith.constant dense<0.000000e+00> : vector<19x2xf32>
    %62 = tpu.matmul %60, %61, %cst_35 {dimension_numbers = #tpu.dot_dimension_numbers<[1], [0], [0], [1], [0, 0, 1, 1], [], []>, precision = #tpu.contract_precision<fp32>} : vector<19x128xf32>, vector<128x2xf32>, vector<19x2xf32> -> vector<19x2xf32>
    %cst_36 = arith.constant 0.000000e+00 : f32
    %63 = vector.broadcast %cst_36 : f32 to vector<2x256xf32>
    %c0_37 = arith.constant 0 : index
    %c0_38 = arith.constant 0 : index
    %c0_39 = arith.constant 0 : index
    %64 = vector.load %arg14[%c0_37, %c0_38, %c0_39] : memref<2x2x19xf32, #tpu.memory_space<vmem>>, vector<1x2x19xf32>
    %65 = vector.shape_cast %64 : vector<1x2x19xf32> to vector<2x19xf32>
    %cst_40 = arith.constant dense<0.000000e+00> : vector<2x2xf32>
    %66 = tpu.matmul %65, %62, %cst_40 {dimension_numbers = #tpu.dot_dimension_numbers<[1], [0], [0], [1], [0, 0, 1, 1], [], []>, precision = #tpu.contract_precision<fp32>} : vector<2x19xf32>, vector<19x2xf32>, vector<2x2xf32> -> vector<2x2xf32>
    %c0_41 = arith.constant 0 : index
    %c0_42 = arith.constant 0 : index
    %67 = vector.load %arg13[%c0_41, %c0_42] : memref<1x2xf32, #tpu.memory_space<vmem>>, vector<1x2xf32>
    %68 = vector.broadcast %67 : vector<1x2xf32> to vector<2x2xf32>
    %69 = arith.addf %66, %68 : vector<2x2xf32>
    %cst_43 = arith.constant 0.000000e+00 : f32
    %70 = vector.broadcast %cst_43 : f32 to vector<2x2xf32>
    %71 = arith.maximumf %69, %70 : vector<2x2xf32>
    %c0_44 = arith.constant 0 : index
    %c0_45 = arith.constant 0 : index
    %c0_46 = arith.constant 0 : index
    %72 = vector.load %arg15[%c0_44, %c0_45, %c0_46] : memref<2x2x256xf32, #tpu.memory_space<vmem>>, vector<1x2x256xf32>
    %73 = vector.shape_cast %72 : vector<1x2x256xf32> to vector<2x256xf32>
    %cst_47 = arith.constant dense<0.000000e+00> : vector<2x256xf32>
    %74 = tpu.matmul %71, %73, %cst_47 {dimension_numbers = #tpu.dot_dimension_numbers<[1], [0], [0], [1], [0, 0, 1, 1], [], []>, precision = #tpu.contract_precision<fp32>} : vector<2x2xf32>, vector<2x256xf32>, vector<2x256xf32> -> vector<2x256xf32>
    %75 = arith.addf %63, %74 : vector<2x256xf32>
    %c1 = arith.constant 1 : index
    %c0_48 = arith.constant 0 : index
    %c0_49 = arith.constant 0 : index
    %76 = vector.load %arg14[%c1, %c0_48, %c0_49] : memref<2x2x19xf32, #tpu.memory_space<vmem>>, vector<1x2x19xf32>
    %77 = vector.shape_cast %76 : vector<1x2x19xf32> to vector<2x19xf32>
    %cst_50 = arith.constant dense<0.000000e+00> : vector<2x2xf32>
    %78 = tpu.matmul %77, %62, %cst_50 {dimension_numbers = #tpu.dot_dimension_numbers<[1], [0], [0], [1], [0, 0, 1, 1], [], []>, precision = #tpu.contract_precision<fp32>} : vector<2x19xf32>, vector<19x2xf32>, vector<2x2xf32> -> vector<2x2xf32>
    %c0_51 = arith.constant 0 : index
    %c0_52 = arith.constant 0 : index
    %79 = vector.load %arg13[%c0_51, %c0_52] : memref<1x2xf32, #tpu.memory_space<vmem>>, vector<1x2xf32>
    %80 = vector.broadcast %79 : vector<1x2xf32> to vector<2x2xf32>
    %81 = arith.addf %78, %80 : vector<2x2xf32>
    %cst_53 = arith.constant 0.000000e+00 : f32
    %82 = vector.broadcast %cst_53 : f32 to vector<2x2xf32>
    %83 = arith.maximumf %81, %82 : vector<2x2xf32>
    %c1_54 = arith.constant 1 : index
    %c0_55 = arith.constant 0 : index
    %c0_56 = arith.constant 0 : index
    %84 = vector.load %arg15[%c1_54, %c0_55, %c0_56] : memref<2x2x256xf32, #tpu.memory_space<vmem>>, vector<1x2x256xf32>
    %85 = vector.shape_cast %84 : vector<1x2x256xf32> to vector<2x256xf32>
    %cst_57 = arith.constant dense<0.000000e+00> : vector<2x256xf32>
    %86 = tpu.matmul %83, %85, %cst_57 {dimension_numbers = #tpu.dot_dimension_numbers<[1], [0], [0], [1], [0, 0, 1, 1], [], []>, precision = #tpu.contract_precision<fp32>} : vector<2x2xf32>, vector<2x256xf32>, vector<2x256xf32> -> vector<2x256xf32>
    %87 = arith.addf %75, %86 : vector<2x256xf32>
    %c0_58 = arith.constant 0 : index
    %c0_59 = arith.constant 0 : index
    %c0_60 = arith.constant 0 : index
    %88 = vector.load %arg16[%c0_58, %c0_59, %c0_60] : memref<1x2x256xf32, #tpu.memory_space<vmem>>, vector<1x2x256xf32>
    %89 = vector.shape_cast %88 : vector<1x2x256xf32> to vector<2x256xf32>
    %90 = vector.shape_cast %87 : vector<2x256xf32> to vector<1x2x256xf32>
    tpu.vector_store %arg16[%c0_58, %c0_59, %c0_60], %90 {strides = array<i32>} : memref<1x2x256xf32, #tpu.memory_space<vmem>>, vector<1x2x256xf32>,
    return
  }
  func.func @transform_0(%arg0: i32) -> (i32, i32, i32) {
    %c0_i32 = arith.constant 0 : i32
    %c0_i32_0 = arith.constant 0 : i32
    %c0_i32_1 = arith.constant 0 : i32
    return %arg0, %c0_i32, %c0_i32_0 : i32, i32, i32
  }
  func.func @transform_1(%arg0: i32) -> (i32, i32, i32) {
    %c0_i32 = arith.constant 0 : i32
    %c0_i32_0 = arith.constant 0 : i32
    %c0_i32_1 = arith.constant 0 : i32
    return %arg0, %c0_i32, %c0_i32_0 : i32, i32, i32
  }
  func.func @transform_2(%arg0: i32) -> (i32, i32) {
    %c0_i32 = arith.constant 0 : i32
    %c0_i32_0 = arith.constant 0 : i32
    %c0_i32_1 = arith.constant 0 : i32
    return %c0_i32, %c0_i32_0 : i32, i32
  }
  func.func @transform_3(%arg0: i32) -> (i32, i32) {
    %c0_i32 = arith.constant 0 : i32
    %c0_i32_0 = arith.constant 0 : i32
    %c0_i32_1 = arith.constant 0 : i32
    return %c0_i32, %c0_i32_0 : i32, i32
  }
  func.func @transform_4(%arg0: i32) -> (i32, i32) {
    %c0_i32 = arith.constant 0 : i32
    %c0_i32_0 = arith.constant 0 : i32
    %c0_i32_1 = arith.constant 0 : i32
    return %c0_i32, %c0_i32_0 : i32, i32
  }
  func.func @transform_5(%arg0: i32) -> (i32, i32) {
    %c0_i32 = arith.constant 0 : i32
    %c0_i32_0 = arith.constant 0 : i32
    %c0_i32_1 = arith.constant 0 : i32
    return %c0_i32, %c0_i32_0 : i32, i32
  }
  func.func @transform_6(%arg0: i32) -> (i32, i32) {
    %c0_i32 = arith.constant 0 : i32
    %c0_i32_0 = arith.constant 0 : i32
    %c0_i32_1 = arith.constant 0 : i32
    return %c0_i32, %c0_i32_0 : i32, i32
  }
  func.func @transform_7(%arg0: i32) -> (i32, i32) {
    %c0_i32 = arith.constant 0 : i32
    %c0_i32_0 = arith.constant 0 : i32
    %c0_i32_1 = arith.constant 0 : i32
    return %c0_i32, %c0_i32_0 : i32, i32
  }
  func.func @transform_8(%arg0: i32) -> (i32, i32) {
    %c0_i32 = arith.constant 0 : i32
    %c0_i32_0 = arith.constant 0 : i32
    %c0_i32_1 = arith.constant 0 : i32
    return %c0_i32, %c0_i32_0 : i32, i32
  }
  func.func @transform_9(%arg0: i32) -> (i32, i32) {
    %c0_i32 = arith.constant 0 : i32
    %c0_i32_0 = arith.constant 0 : i32
    %c0_i32_1 = arith.constant 0 : i32
    return %c0_i32, %c0_i32_0 : i32, i32
  }
  func.func @transform_10(%arg0: i32) -> (i32, i32) {
    %c0_i32 = arith.constant 0 : i32
    %c0_i32_0 = arith.constant 0 : i32
    %c0_i32_1 = arith.constant 0 : i32
    return %c0_i32, %c0_i32_0 : i32, i32
  }
  func.func @transform_11(%arg0: i32) -> (i32, i32) {
    %c0_i32 = arith.constant 0 : i32
    %c0_i32_0 = arith.constant 0 : i32
    %c0_i32_1 = arith.constant 0 : i32
    return %c0_i32, %c0_i32_0 : i32, i32
  }
  func.func @transform_12(%arg0: i32) -> (i32, i32) {
    %c0_i32 = arith.constant 0 : i32
    %c0_i32_0 = arith.constant 0 : i32
    %c0_i32_1 = arith.constant 0 : i32
    return %c0_i32, %c0_i32_0 : i32, i32
  }
  func.func @transform_13(%arg0: i32) -> (i32, i32, i32) {
    %c0_i32 = arith.constant 0 : i32
    %c0_i32_0 = arith.constant 0 : i32
    %c0_i32_1 = arith.constant 0 : i32
    %c0_i32_2 = arith.constant 0 : i32
    return %c0_i32, %c0_i32_0, %c0_i32_1 : i32, i32, i32
  }
  func.func @transform_14(%arg0: i32) -> (i32, i32, i32) {
    %c0_i32 = arith.constant 0 : i32
    %c0_i32_0 = arith.constant 0 : i32
    %c0_i32_1 = arith.constant 0 : i32
    %c0_i32_2 = arith.constant 0 : i32
    return %c0_i32, %c0_i32_0, %c0_i32_1 : i32, i32, i32
  }
  func.func @transform_15(%arg0: i32) -> (i32, i32, i32) {
    %c0_i32 = arith.constant 0 : i32
    %c0_i32_0 = arith.constant 0 : i32
    %c0_i32_1 = arith.constant 0 : i32
    return %arg0, %c0_i32, %c0_i32_0 : i32, i32, i32
  }
}

</mosaic_0001>

<bundles_post_ra>
// kernel: tpu_custom_call.1
= control target key start
LH: loop header
LB: loop body
LE: loop exit
PB: predicated region body
PF: predicated region fallthrough
CT: control target
= control target key end

     0   :  { %vm61_vm0 = vcmask 130048   ;;  %s21117_s0 = inlined_call_operand.vmem [shape: f32[1,32,16], index: 0, kind: input, shape index: {}]   ;;  %s21118_s1 = inlined_call_operand.vmem [shape: f32[1,32,16], index: 1, kind: input, shape index: {}]   ;;  %s21119_s2 = inlined_call_operand.vmem [shape: f32[16,16], index: 2, kind: input, shape index: {}]   ;;  %s21120_s3 = inlined_call_operand.vmem [shape: f32[48,112], index: 3, kind: input, shape index: {}]   ;;  %s21121_s4 = inlined_call_operand.vmem [shape: f32[1,112], index: 4, kind: input, shape index: {}]   ;;  %s21122_s5 = inlined_call_operand.vmem [shape: f32[336,192], index: 5, kind: input, shape index: {}]   ;;  %s21123_s6 = inlined_call_operand.vmem [shape: f32[1,192], index: 6, kind: input, shape index: {}]   ;;  %s21124_s7 = inlined_call_operand.vmem [shape: f32[528,128], index: 7, kind: input, shape index: {}]   ;;  %s21125_s8 = inlined_call_operand.vmem [shape: f32[1,128], index: 8, kind: input, shape index: {}]   ;;  %s21126_s9 = inlined_call_operand.vmem [shape: f32[384,128], index: 9, kind: input, shape index: {}]   ;;  %s21127_s10 = inlined_call_operand.vmem [shape: f32[1,128], index: 10, kind: input, shape index: {}]   ;;  %s21128_s11 = inlined_call_operand.vmem [shape: f32[128,2], index: 11, kind: input, shape index: {}]   ;;  %s21129_s12 = inlined_call_operand.vmem [shape: f32[1,2], index: 12, kind: input, shape index: {}]   ;;  %s21130_s13 = inlined_call_operand.vmem [shape: f32[2,2,19], index: 13, kind: input, shape index: {}]   ;;  %s21131_s14 = inlined_call_operand.vmem [shape: f32[2,2,256], index: 14, kind: input, shape index: {}]   ;;  %s21132_s15 = inlined_call_operand.hbm [shape: f32[1,2,256], index: 15, kind: output, shape index: {}]  }
   0x1   :  { %v15765_v0 = vld [vmem:[%s21119_s2] sm:$0xff]  ;;  %v15770_v1 = vld [vmem:[%s21119_s2 + $0x8] sm:$0xff]  ;;  %v15791_v8 = vld [vmem:[%s21117_s0 + $0x10] sm:$0xff] }
   0x2   :  { %v15775_v2 = vld [vmem:[%s21117_s0] sm:$0xff]  ;;  %v75_v3 = vsel %vm61_vm0, %v15765_v0, 0  ;;  %v78_v4 = vsel %vm61_vm0, %v15770_v1, 0  ;;  %v685_v5 = vand.u32 4294901760, %v15765_v0  ;;  %v688_v6 = vand.u32 4294901760, %v15770_v1  ;;  %v15786_v7 = vld [vmem:[%s21117_s0 + $0x8] sm:$0xff] }
   0x3   :  { %v81_v9 = vand.u32 4294901760, %v75_v3  ;;  %v84_v10 = vand.u32 4294901760, %v78_v4  ;;  %v63_v11 = vsel %vm61_vm0, %v15775_v2, 0  ;;  %v66_v12 = vsel %vm61_vm0, %v15786_v7, 0  ;;  %v15800_v13 = vld [vmem:[%s21117_s0 + $0x18] sm:$0xff] }
   0x4   :  { %v15802_v14 = vand.u32 4294901760, %v63_v11  ;;  %v15804_v15 = vand.u32 4294901760, %v66_v12  ;;  %v69_v16 = vsel %vm61_vm0, %v15791_v8, 0 }
   0x5   :  { %20 = vsyncpa [#allocation3], 0  ;;  %v13798_v17 = vpack.c.bf16 %v84_v10, %v81_v9  ;;  %v189_v18 = vsub.f32 %v75_v3, %v81_v9  ;;  %v196_v19 = vsub.f32 %v78_v4, %v84_v10  ;;  %v15812_v20 = vpack.c.bf16 %v688_v6, %v685_v5  ;;  %v57_v4 = vld [vmem:[%s21118_s1] sm:$0xff]  ;;  %s15674_s30 = smov 16   ;;  %s15675_s0 = smov 96  }
   0x6   :  { %12906 = vmatprep.mubr.f32.mxu0 %v15802_v14  ;;  %v158_v21 = vsub.f32 %v66_v12, %v15804_v15  ;;  %v167_v22 = vand.u32 4294901760, %v69_v16  ;;  %v72_v23 = vsel %vm61_vm0, %v15800_v13, 0  ;;  %v148_v24 = vsub.f32 %v63_v11, %v15802_v14  ;;  %v60_v11 = vld [vmem:[%s21118_s1 + $0x18] sm:$0xff]  ;;  %s15676_s29 = smov 112   ;;  %s15678_s19 = smov 48  }
   0x7   :  { %v190_v25 = vand.u32 4294901760, %v189_v18  ;;  %v197_v26 = vand.u32 4294901760, %v196_v19  ;;  %v177_v27 = vand.u32 4294901760, %v72_v23  ;;  %13799 = vmatprep.subr.bf16.mxu1 %v13798_v17  ;;  %v13806_v44 = vpack.c.bf16 %v196_v19, %v189_v18 }
   0x8   :  { %v168_v28 = vsub.f32 %v69_v16, %v167_v22  ;;  %v149_v29 = vand.u32 4294901760, %v148_v24  ;;  %v159_v30 = vand.u32 4294901760, %v158_v21  ;;  %13801 = vmatpush3.bf16.xpose.msra.mxu1 %v13798_v17  ;;  %v793_v49 = vsub.f32 %v15765_v0, %v685_v5  ;;  %v58_v0 = vld [vmem:[%s21118_s1 + $0x8] sm:$0xff]  ;;  %v59_v16 = vld [vmem:[%s21118_s1 + $0x10] sm:$0xff] }
   0x9   :  { %v191_v31 = vsub.f32 %v189_v18, %v190_v25  ;;  %v198_v32 = vsub.f32 %v196_v19, %v197_v26  ;;  %v178_v33 = vsub.f32 %v72_v23, %v177_v27  ;;  %13823 = vmatprep.subr.bf16.mxu1 %v15812_v20  ;;  %v13814_v48 = vpack.c.bf16 %v197_v26, %v190_v25 }
   0xa   :  { %v169_v34 = vand.u32 4294901760, %v168_v28  ;;  %v150_v35 = vsub.f32 %v148_v24, %v149_v29  ;;  %v160_v36 = vsub.f32 %v158_v21, %v159_v30  ;;  %v800_v50 = vsub.f32 %v15770_v1, %v688_v6 }
   0xb   :  { %v192_v37 = vand.u32 4294901760, %v191_v31  ;;  %v199_v38 = vand.u32 4294901760, %v198_v32  ;;  %v179_v39 = vand.u32 4294901760, %v178_v33  ;;  %v794_v51 = vand.u32 4294901760, %v793_v49 }
   0xc   :  { %v151_v40 = vand.u32 4294901760, %v150_v35  ;;  %v161_v41 = vand.u32 4294901760, %v160_v36  ;;  %v170_v42 = vsub.f32 %v168_v28, %v169_v34  ;;  %v801_v52 = vand.u32 4294901760, %v800_v50 }
   0xd   :  { %v13802_v43 = vpack.c.bf16 %v199_v38, %v192_v37  ;;  %v180_v45 = vsub.f32 %v178_v33, %v179_v39  ;;  %v795_v53 = vsub.f32 %v793_v49, %v794_v51  ;;  %v13830_v58 = vpack.c.bf16 %v800_v50, %v793_v49 }
   0xe   :  { %12896 = vmatprep.mubr.f32.mxu1 %v151_v40  ;;  %v171_v46 = vand.u32 4294901760, %v170_v42  ;;  %v802_v54 = vsub.f32 %v800_v50, %v801_v52  ;;  %v15832_v59 = vpack.c.bf16 %v801_v52, %v794_v51  ;;  %v1336_v50 = vld [vmem:[%s21120_s3 + $0x18] sm:$0xff]  ;;  %vm1304_vm1 = vcmask 1045504  }
   0xf   :  { %13803 = vmatprep.subr.bf16.mxu0 %v13802_v43  ;;  %12897 = vmatmul.mubr.f32.vlgmr.msra.gmra.mrb[0].mxu1 %v161_v41  ;;  %v181_v47 = vand.u32 4294901760, %v180_v45  ;;  %v796_v55 = vand.u32 4294901760, %v795_v53  ;;  %v1333_v45 = vld [vmem:[%s21120_s3] sm:$0xff]  ;;  %v1369_v53 = vand.u32 4294901760, %v1336_v50  ;;  %vm1284_vm2 = vcmask 1046528  }
  0x10   :  { %13805 = vmatpush3.bf16.xpose.msra.mxu0 %v13802_v43  ;;  %12899 = vmatprep.mubr.f32.mxu1 %v171_v46  ;;  %v803_v56 = vand.u32 4294901760, %v802_v54  ;;  %v1334_v46 = vld [vmem:[%s21120_s3 + $0x8] sm:$0xff]  ;;  %vm1328_vm3 = vcmask 261120   ;;  %vm1346_vm4 = vcmask 392192   ;;  %vm2045_vm5 = vcmask 916480  }
  0x11   :  { %13807 = vmatprep.subr.bf16.mxu0 %v13806_v44  ;;  %13825 = vmatpush3.bf16.msra.mxu1 %v15812_v20  ;;  %vm2050_vm6 = vcmask 785408   ;;  %vm2151_vm7 = vcmask 654336   ;;  %vm4609_vm8 = vcmask 1043456   ;;  %vm15680_vm9 = vmmov 0  }
  0x12   :  { %v13826_v57 = vpack.c.bf16 %v803_v56, %v796_v55  ;;  %vm9755_vm10 = vcmask 154624   ;;  %vm9759_vm11 = vcmask 1042432   ;;  %vm10730_vm12 = vcmask 1041408  }
  0x13   :  { %12900 = vmatmul.mubr.f32.gmra.mrb[2].mxu1 %v181_v47  ;;  %v1360_v47 = vand.u32 4294901760, %v1333_v45  ;;  %vm10726_vm13 = vcmask 15360  }
  0x14   :  { %13827 = vmatprep.subr.bf16.mxu1 %v13826_v57 }
  0x17   :  { %12907 = vmatmul.mubr.f32.vlgmr.msra.gmra.mrb[0].mxu0 %v15804_v15 }
  0x18   :  { %13809 = vmatpush3.bf16.xpose.msra.mxu0 %v13806_v44  ;;  %12909 = vmatprep.mubr.f32.mxu0 %v167_v22 }
  0x19   :  { %13811 = vmatprep.subr.bf16.mxu0 %v13798_v17 }
  0x1b   :  { %12910 = vmatmul.mubr.f32.gmra.mrb[2].mxu0 %v177_v27 }
  0x1c   :  { %12916 = vmatprep.mubr.f32.mxu0 %v148_v24 }
  0x1f   :  { %12917 = vmatmul.mubr.f32.vlgmr.msra.gmra.mrb[0].mxu0 %v158_v21 }
  0x20   :  { %13813 = vmatpush3.bf16.xpose.msra.mxu0 %v13798_v17  ;;  %12919 = vmatprep.mubr.f32.mxu0 %v168_v28 }
  0x21   :  { %13815 = vmatprep.subr.bf16.mxu0 %v13814_v48 }
  0x23   :  { %12920 = vmatmul.mubr.f32.gmra.mrb[2].mxu0 %v178_v33 }
  0x24   :  { %12926 = vmatprep.mubr.f32.mxu0 %v149_v29 }
  0x27   :  { %12927 = vmatmul.mubr.f32.vlgmr.msra.gmra.mrb[0].mxu0 %v159_v30 }
  0x28   :  { %13817 = vmatpush3.bf16.xpose.msra.mxu0 %v13814_v48  ;;  %12929 = vmatprep.mubr.f32.mxu0 %v169_v34  ;;  %v1363_v48 = vand.u32 4294901760, %v1334_v46 }
  0x29   :  { %13819 = vmatprep.subr.bf16.mxu0 %v13798_v17 }
  0x2a   :  { %v15862_v49 = vpack.c.bf16 %v1363_v48, %v1360_v47 }
  0x2b   :  { %12930 = vmatmul.mubr.f32.gmra.mrb[2].mxu0 %v179_v39 }
  0x2c   :  { %12936 = vmatprep.mubr.f32.mxu0 %v15802_v14 }
  0x2f   :  { %12937 = vmatmul.mubr.f32.vlgmr.msra.gmra.mrb[0].mxu0 %v15804_v15 }
  0x30   :  { %13821 = vmatpush3.bf16.xpose.msra.mxu0 %v13798_v17  ;;  %12939 = vmatprep.mubr.f32.mxu0 %v167_v22 }
  0x33   :  { %12940 = vmatmul.mubr.f32.gmra.mrb[2].mxu0 %v177_v27 }
  0x34   :  { %12946 = vmatprep.mubr.f32.mxu0 %v15802_v14 }
  0x37   :  { %12947 = vmatmul.mubr.f32.vlgmr.msra.gmra.mrb[0].mxu0 %v15804_v15 }
  0x38   :  { %12949 = vmatprep.mubr.f32.mxu0 %v167_v22 }
  0x3b   :  { %12950 = vmatmul.mubr.f32.gmra.mrb[2].mxu0 %v177_v27 }
  0xe2   :  { %v12898_v60 = vpop.f32.mrb[0].mxu1 }
  0xe3   :  { %v153_v61 = vpop.f32.mrb[1].mxu1 }
  0xe6   :  { %v12901_v62 = vpop.f32.mrb[2].mxu1 }
  0xe7   :  { %v173_v63 = vpop.f32.mrb[3].mxu1 }
 0x10a   :  { %v12948_v1 = vpop.f32.mrb[0].mxu0 }
 0x10b   :  { %v15340_v3 = vadd.f32 %v12948_v1, %v12898_v60  ;;  %v646_v5 = vpop.f32.mrb[1].mxu0 }
 0x10c   :  { %v15341_v6 = vadd.f32 %v646_v5, %v153_v61  ;;  %v1337_v61 = vld [vmem:[%s21120_s3 + $0x20] sm:$0xff] }
 0x10d   :  { %v669_v9 = vsub.f32 %v58_v0, %v15340_v3  ;;  %v1372_v1 = vand.u32 4294901760, %v1337_v61 }
 0x10e   :  { %v668_v10 = vsub.f32 %v57_v4, %v15341_v6  ;;  %v12951_v12 = vpop.f32.mrb[2].mxu0 }
 0x10f   :  { %v676_v14 = vsel %vm61_vm0, %v669_v9, 0  ;;  %v15342_v15 = vadd.f32 %v12951_v12, %v12901_v62  ;;  %v658_v17 = vpop.f32.mrb[3].mxu0  ;;  %v1338_v62 = vld [vmem:[%s21120_s3 + $0x28] sm:$0xff] }
 0x110   :  { %v761_v18 = vand.u32 4294901760, %v676_v14  ;;  %v673_v19 = vsel %vm61_vm0, %v668_v10, 0  ;;  %v15343_v21 = vadd.f32 %v658_v17, %v173_v63  ;;  %v1375_v3 = vand.u32 4294901760, %v1338_v62 }
 0x111   :  { %v751_v22 = vand.u32 4294901760, %v673_v19  ;;  %v671_v23 = vsub.f32 %v60_v11, %v15342_v15 }
 0x112   :  { %v762_v24 = vsub.f32 %v676_v14, %v761_v18  ;;  %v670_v25 = vsub.f32 %v59_v16, %v15343_v21  ;;  %v15898_v14 = vpack.c.bf16 %v1375_v3, %v1372_v1 }
 0x113   :  { %v752_v26 = vsub.f32 %v673_v19, %v751_v22  ;;  %v682_v27 = vsel %vm61_vm0, %v671_v23, 0  ;;  %v1493_v23 = vsub.f32 %v1336_v50, %v1369_v53 }
 0x114   :  { %v763_v28 = vand.u32 4294901760, %v762_v24  ;;  %v781_v29 = vand.u32 4294901760, %v682_v27  ;;  %v679_v30 = vsel %vm61_vm0, %v670_v25, 0 }
 0x115   :  { %v771_v31 = vand.u32 4294901760, %v679_v30  ;;  %v753_v32 = vand.u32 4294901760, %v752_v26 }
 0x116   :  { %v764_v33 = vsub.f32 %v762_v24, %v763_v28  ;;  %v782_v34 = vsub.f32 %v682_v27, %v781_v29  ;;  %v1494_v27 = vand.u32 4294901760, %v1493_v23 }
 0x117   :  { %v772_v35 = vsub.f32 %v679_v30, %v771_v31  ;;  %v754_v36 = vsub.f32 %v752_v26, %v753_v32  ;;  %v1507_v30 = vsub.f32 %v1338_v62, %v1375_v3 }
 0x118   :  { %v783_v37 = vand.u32 4294901760, %v782_v34  ;;  %v765_v40 = vand.u32 4294901760, %v764_v33 }
 0x119   :  { %v755_v38 = vand.u32 4294901760, %v754_v36  ;;  %v773_v39 = vand.u32 4294901760, %v772_v35 }
 0x11a   :  { %v784_v41 = vsub.f32 %v782_v34, %v783_v37 }
 0x11b   :  { %12956 = vmatprep.mubr.f32.mxu1 %v755_v38  ;;  %v774_v42 = vsub.f32 %v772_v35, %v773_v39 }
 0x11c   :  { %12957 = vmatmul.mubr.f32.vlgmr.msra.gmra.mrb[4].mxu1 %v765_v40  ;;  %v785_v44 = vand.u32 4294901760, %v784_v41 }
 0x11d   :  { %v775_v43 = vand.u32 4294901760, %v774_v42  ;;  %13829 = vmatpush3.bf16.msra.mxu1 %v13826_v57 }
 0x11e   :  { %13831 = vmatprep.subr.bf16.mxu1 %v13830_v58 }
 0x11f   :  { %12959 = vmatprep.mubr.f32.mxu1 %v775_v43 }
 0x120   :  { %12960 = vmatmul.mubr.f32.gmra.mrb[6].mxu1 %v785_v44 }
 0x121   :  { %12966 = vmatprep.mubr.f32.mxu1 %v751_v22 }
 0x124   :  { %12967 = vmatmul.mubr.f32.vlgmr.msra.gmra.mrb[4].mxu1 %v761_v18 }
 0x125   :  { %12969 = vmatprep.mubr.f32.mxu1 %v771_v31  ;;  %13833 = vmatpush3.bf16.msra.mxu1 %v13830_v58  ;;  %v15874_v58 = vsub.f32 %v1333_v45, %v1360_v47 }
 0x126   :  { %13835 = vmatprep.subr.bf16.mxu1 %v15812_v20 }
 0x128   :  { %12970 = vmatmul.mubr.f32.gmra.mrb[6].mxu1 %v781_v29 }
 0x129   :  { %12976 = vmatprep.mubr.f32.mxu1 %v752_v26 }
 0x12c   :  { %12977 = vmatmul.mubr.f32.vlgmr.msra.gmra.mrb[4].mxu1 %v762_v24 }
 0x12d   :  { %12979 = vmatprep.mubr.f32.mxu1 %v772_v35  ;;  %13837 = vmatpush3.bf16.msra.mxu1 %v15812_v20  ;;  %v1495_v35 = vsub.f32 %v1493_v23, %v1494_v27 }
 0x12e   :  { %13839 = vmatprep.subr.bf16.mxu1 %v15832_v59 }
 0x130   :  { %12980 = vmatmul.mubr.f32.gmra.mrb[6].mxu1 %v782_v34 }
 0x131   :  { %12986 = vmatprep.mubr.f32.mxu1 %v753_v32 }
 0x134   :  { %12987 = vmatmul.mubr.f32.vlgmr.msra.gmra.mrb[4].mxu1 %v763_v28 }
 0x135   :  { %12989 = vmatprep.mubr.f32.mxu1 %v773_v39  ;;  %13841 = vmatpush3.bf16.msra.mxu1 %v15832_v59  ;;  %v15876_v59 = vsub.f32 %v1334_v46, %v1363_v48  ;;  %v1496_v39 = vand.u32 4294901760, %v1495_v35 }
 0x136   :  { %13843 = vmatprep.subr.bf16.mxu1 %v15812_v20 }
 0x137   :  { %v1480_v10 = vand.u32 4294901760, %v15876_v59 }
 0x138   :  { %12990 = vmatmul.mubr.f32.gmra.mrb[6].mxu1 %v783_v37  ;;  %v1508_v37 = vand.u32 4294901760, %v1507_v30 }
 0x139   :  { %12996 = vmatprep.mubr.f32.mxu1 %v751_v22  ;;  %v1481_v17 = vsub.f32 %v15876_v59, %v1480_v10 }
 0x13a   :  { %v1509_v41 = vsub.f32 %v1507_v30, %v1508_v37 }
 0x13b   :  { %v1482_v24 = vand.u32 4294901760, %v1481_v17 }
 0x13c   :  { %12997 = vmatmul.mubr.f32.vlgmr.msra.gmra.mrb[4].mxu1 %v761_v18  ;;  %v1510_v46 = vand.u32 4294901760, %v1509_v41 }
 0x13d   :  { %12999 = vmatprep.mubr.f32.mxu1 %v771_v31  ;;  %13845 = vmatpush3.bf16.msra.mxu1 %v15812_v20  ;;  %v1335_v20 = vld [vmem:[%s21120_s3 + $0x10] sm:$0xff]  ;;  %s15673_s3 = smov 32  }
 0x13e   :  { %13847 = vmatprep.subr.bf16.mxu1 %v15862_v49  ;;  %v1366_v52 = vand.u32 4294901760, %v1335_v20 }
 0x140   :  { %13000 = vmatmul.mubr.f32.gmra.mrb[6].mxu1 %v781_v29  ;;  %v15872_v57 = vpack.c.bf16 %v1369_v53, %v1366_v52 }
 0x141   :  { %13006 = vmatprep.mubr.f32.mxu1 %v751_v22 }
 0x144   :  { %13007 = vmatmul.mubr.f32.vlgmr.msra.gmra.mrb[4].mxu1 %v761_v18  ;;  %v1486_v18 = vsub.f32 %v1335_v20, %v1366_v52  ;;  %v13870_v20 = vpack.c.bf16 %v15876_v59, %v15874_v58 }
 0x145   :  { %13009 = vmatprep.mubr.f32.mxu1 %v771_v31  ;;  %13849 = vmatpush3.bf16.msra.mxu1 %v15862_v49 }
 0x146   :  { %13851 = vmatprep.subr.bf16.mxu1 %v15872_v57  ;;  %v13874_v50 = vpack.c.bf16 %v1493_v23, %v1486_v18 }
 0x148   :  { %13010 = vmatmul.mubr.f32.gmra.mrb[6].mxu1 %v781_v29  ;;  %v1500_v29 = vsub.f32 %v1337_v61, %v1372_v1 }
 0x149   :  { %13853 = vmatpush3.bf16.msra.mxu1 %v15872_v57 }
 0x14a   :  { %13855 = vmatprep.subr.bf16.mxu1 %v15898_v14  ;;  %v1501_v36 = vand.u32 4294901760, %v1500_v29 }
 0x14c   :  { %v1502_v40 = vsub.f32 %v1500_v29, %v1501_v36 }
 0x14d   :  { %13857 = vmatpush3.bf16.msra.mxu1 %v15898_v14 }
 0x14e   :  { %v1503_v45 = vand.u32 4294901760, %v1502_v40 }
 0x150   :  { %v13866_v47 = vpack.c.bf16 %v1510_v46, %v1503_v45  ;;  %v2064_v45 = vld [vmem:[%s21122_s5 + $0x48] sm:$0xff] }
 0x217   :  { %v13008_v51 = vpop.f32.mrb[4].mxu1 }
 0x218   :  { %v1273_v54 = vmul.f32 0.1, %v13008_v51  ;;  %v1250_v55 = vpop.f32.mrb[5].mxu1  ;;  %v15929_v51 = vpack.c.bf16 %v1507_v30, %v1500_v29 }
 0x219   :  { %v1272_v56 = vmul.f32 0.1, %v1250_v55 }
 0x21a   :  { %v15879_v60 = vsub.f32 %v15786_v7, %v1273_v54  ;;  %v1473_v7 = vand.u32 4294901760, %v15874_v58  ;;  %v15935_v54 = vpack.c.bf16 %v1508_v37, %v1501_v36 }
 0x21b   :  { %v15888_v63 = vsub.f32 %v15775_v2, %v1272_v56  ;;  %v13011_v0 = vpop.f32.mrb[6].mxu1 }
 0x21c   :  { %v1275_v4 = vmul.f32 0.1, %v13011_v0  ;;  %v1262_v5 = vpop.f32.mrb[7].mxu1  ;;  %v1306_v6 = vrot.slane %v15879_v60, 2  ;;  %v1286_v9 = vrot.slane %v15879_v60, 1  ;;  %v1474_v16 = vsub.f32 %v15874_v58, %v1473_v7 }
 0x21d   :  { %v1274_v11 = vmul.f32 0.1, %v1262_v5  ;;  %v1305_v2 = vrot.slane %v15888_v63, 2  ;;  %v1285_v12 = vrot.slane %v15888_v63, 1  ;;  %v15931_v52 = vpack.c.bf16 %v1480_v10, %v1473_v7 }
 0x21e   :  { %v15901_v15 = vsub.f32 %v15800_v13, %v1275_v4  ;;  %v1475_v13 = vand.u32 4294901760, %v1474_v16 }
 0x21f   :  { %v15906_v19 = vsub.f32 %v15791_v8, %v1274_v11  ;;  %v1307_v21 = vsel %vm1304_vm1, %v1305_v2, %v1306_v6  ;;  %v1287_v22 = vsel %vm1284_vm2, %v1285_v12, %v1286_v9  ;;  %v1487_v8 = vand.u32 4294901760, %v1486_v18 }
 0x220   :  { %1312 = vrot.lane.b32.xlu1 %v1307_v21, %s15673_s3  ;;  %1292 = vrot.lane.b32.xlu0 %v1287_v22, %s15674_s30  ;;  %v15915_v28 = vpack.c.bf16 %v1482_v24, %v1475_v13  ;;  %v1290_v33 = vrot.slane %v15901_v15, 1  ;;  %v1310_v43 = vrot.slane %v15901_v15, 2 }
 0x221   :  { %v1308_v25 = vrot.slane %v15906_v19, 2  ;;  %v1288_v26 = vrot.slane %v15906_v19, 1  ;;  %v1488_v34 = vsub.f32 %v1486_v18, %v1487_v8  ;;  %v15933_v53 = vpack.c.bf16 %v1494_v27, %v1487_v8 }
 0x222   :  { %13859 = vmatprep.subr.bf16.mxu1 %v15915_v28 }
 0x223   :  { %v1309_v31 = vsel %vm1304_vm1, %v1306_v6, %v1308_v25  ;;  %v1289_v32 = vsel %vm1284_vm2, %v1286_v9, %v1288_v26  ;;  %v1489_v38 = vand.u32 4294901760, %v1488_v34  ;;  %v1291_v42 = vsel %vm1284_vm2, %v1288_v26, %v1290_v33 }
 0x224   :  { %1314 = vrot.lane.b32.xlu1 %v1309_v31, %s15673_s3  ;;  %1294 = vrot.lane.b32.xlu0 %v1289_v32, %s15674_s30  ;;  %v1311_v48 = vsel %vm1304_vm1, %v1308_v25, %v1310_v43 }
 0x225   :  { %v13862_v44 = vpack.c.bf16 %v1496_v39, %v1489_v38  ;;  %v2060_v38 = vld [vmem:[%s21122_s5 + $0x28] sm:$0xff]  ;;  %v2062_v39 = vld [vmem:[%s21122_s5 + $0x38] sm:$0xff] }
 0x226   :  { %v2168_v41 = vand.u32 4294901760, %v2060_v38 }
 0x228   :  { %1298 = vrot.lane.b32.xlu1 %v1290_v33, %s15674_s30  ;;  %1296 = vrot.lane.b32.xlu0 %v1291_v42, %s15674_s30  ;;  %v2172_v42 = vand.u32 4294901760, %v2062_v39 }
 0x22c   :  { %1318 = vrot.lane.b32.xlu1 %v1310_v43, %s15673_s3  ;;  %1316 = vrot.lane.b32.xlu0 %v1311_v48, %s15673_s3  ;;  %v2059_v43 = vld [vmem:[%s21122_s5 + $0x20] sm:$0xff] }
 0x292   :  { %v1313_v55 = vpop.permute.xlu1 %1312  ;;  %v1293_v56 = vpop.permute.xlu0 %1292 }
 0x293   :  { %v1324_v61 = vsel %vm61_vm0, %v15888_v63, %v1293_v56  ;;  %v16036_v56 = vsub.f32 %v2060_v38, %v2168_v41 }
 0x294   :  { %v1329_v62 = vsel %vm1328_vm3, %v1324_v61, %v1313_v55  ;;  %v16034_v55 = vpack.c.bf16 %v2172_v42, %v2168_v41  ;;  %v2068_v61 = vld [vmem:[%s21122_s5 + $0x68] sm:$0xff]  ;;  %v2081_v41 = vld [vmem:[%s21122_s5 + $0xd0] sm:$0xff] }
 0x295   :  { %v1348_v58 = vsel %vm1346_vm4, %v1329_v62, 0  ;;  %v16042_v62 = vsub.f32 %v2062_v39, %v2172_v42 }
 0x296   :  { %v15941_v59 = vand.u32 4294901760, %v1348_v58  ;;  %v1315_v0 = vpop.permute.xlu1 %1314  ;;  %v1295_v1 = vpop.permute.xlu0 %1294  ;;  %21672 = vst [vmem:[#allocation9_spill] sm:$0xff] %v16034_v55 }
 0x297   :  { %v1325_v3 = vsel %vm61_vm0, %v15879_v60, %v1295_v1  ;;  %v2070_v1 = vld [vmem:[%s21122_s5 + $0x78] sm:$0xff] }
 0x298   :  { %v1431_v7 = vsub.f32 %v1348_v58, %v15941_v59  ;;  %v1330_v4 = vsel %vm1328_vm3, %v1325_v3, %v1315_v0  ;;  %v2170_v58 = vand.u32 4294901760, %v2059_v43  ;;  %v2176_v0 = vand.u32 4294901760, %v2064_v45 }
 0x299   :  { %v1351_v5 = vsel %vm1346_vm4, %v1330_v4, 0 }
 0x29a   :  { %v15948_v6 = vand.u32 4294901760, %v1351_v5  ;;  %v1299_v63 = vpop.permute.xlu1 %1298  ;;  %v1297_v9 = vpop.permute.xlu0 %1296  ;;  %v1432_v10 = vand.u32 4294901760, %v1431_v7 }
 0x29b   :  { %v1327_v16 = vsel %vm61_vm0, %v15901_v15, %v1299_v63  ;;  %v1326_v60 = vsel %vm61_vm0, %v15906_v19, %v1297_v9  ;;  %v2069_v63 = vld [vmem:[%s21122_s5 + $0x70] sm:$0xff] }
 0x29c   :  { %v1441_v11 = vsub.f32 %v1351_v5, %v15948_v6  ;;  %v1433_v2 = vsub.f32 %v1431_v7, %v1432_v10  ;;  %v2184_v5 = vand.u32 4294901760, %v2068_v61 }
 0x29e   :  { %v1442_v12 = vand.u32 4294901760, %v1441_v11  ;;  %v1319_v17 = vpop.permute.xlu1 %1318  ;;  %v1317_v18 = vpop.permute.xlu0 %1316  ;;  %v1434_v21 = vand.u32 4294901760, %v1433_v2  ;;  %v16061_v2 = vsub.f32 %v2064_v45, %v2176_v0 }
 0x29f   :  { %v1332_v22 = vsel %vm1328_vm3, %v1327_v16, %v1319_v17  ;;  %v1331_v23 = vsel %vm1328_vm3, %v1326_v60, %v1317_v18  ;;  %v2074_v16 = vld [vmem:[%s21122_s5 + $0x98] sm:$0xff]  ;;  %v2071_v60 = vld [vmem:[%s21122_s5 + $0x80] sm:$0xff] }
 0x2a0   :  { %v1443_v13 = vsub.f32 %v1441_v11, %v1442_v12  ;;  %v1357_v24 = vsel %vm1346_vm4, %v1332_v22, 0  ;;  %v1354_v25 = vsel %vm1346_vm4, %v1331_v23, 0  ;;  %13024 = vmatprep.mubr.f32.mxu1 %v1434_v21  ;;  %v2073_v23 = vld [vmem:[%s21122_s5 + $0x90] sm:$0xff] }
 0x2a1   :  { %v1460_v26 = vand.u32 4294901760, %v1357_v24  ;;  %v1450_v8 = vand.u32 4294901760, %v1354_v25 }
 0x2a2   :  { %v1444_v27 = vand.u32 4294901760, %v1443_v13 }
 0x2a3   :  { %v1461_v15 = vsub.f32 %v1357_v24, %v1460_v26  ;;  %v1451_v29 = vsub.f32 %v1354_v25, %v1450_v8  ;;  %v2188_v24 = vand.u32 4294901760, %v2070_v1  ;;  %v16085_v25 = vsub.f32 %v2068_v61, %v2184_v5 }
 0x2a4   :  { %13025 = vmatmul.mubr.f32.vlgmr.msra.gmra.mrb[8].mxu1 %v1444_v27 }
 0x2a5   :  { %13861 = vmatpush3.bf16.msra.mxu1 %v15915_v28  ;;  %v1452_v19 = vand.u32 4294901760, %v1451_v29  ;;  %v1462_v30 = vand.u32 4294901760, %v1461_v15  ;;  %v2056_v28 = vld [vmem:[%s21122_s5 + $0x8] sm:$0xff]  ;;  %21676 = vst [vmem:[#allocation13_spill] sm:$0xff] %v16085_v25 }
 0x2a6   :  { %13863 = vmatprep.subr.bf16.mxu1 %v13862_v44  ;;  %v2160_v35 = vand.u32 4294901760, %v2056_v28 }
 0x2a7   :  { %v1453_v31 = vsub.f32 %v1451_v29, %v1452_v19  ;;  %v1463_v32 = vsub.f32 %v1461_v15, %v1462_v30 }
 0x2a9   :  { %13865 = vmatpush3.bf16.msra.mxu1 %v13862_v44  ;;  %v1454_v33 = vand.u32 4294901760, %v1453_v31  ;;  %v1464_v34 = vand.u32 4294901760, %v1463_v32  ;;  %v2061_v44 = vld [vmem:[%s21122_s5 + $0x30] sm:$0xff]  ;;  %v2198_v32 = vand.u32 4294901760, %v2073_v23 }
 0x2aa   :  { %13867 = vmatprep.subr.bf16.mxu1 %v13866_v47 }
 0x2ab   :  { %13027 = vmatprep.mubr.f32.mxu1 %v1454_v33  ;;  %v2076_v33 = vld [vmem:[%s21122_s5 + $0xa8] sm:$0xff]  ;;  %v16121_v39 = vsub.f32 %v2073_v23, %v2198_v32 }
 0x2ac   :  { %13028 = vmatmul.mubr.f32.gmra.mrb[10].mxu1 %v1464_v34  ;;  %v2078_v34 = vld [vmem:[%s21122_s5 + $0xb8] sm:$0xff] }
 0x2ad   :  { %13869 = vmatpush3.bf16.msra.mxu1 %v13866_v47  ;;  %13042 = vmatprep.mubr.f32.mxu1 %v15941_v59  ;;  %v16015_v47 = vsub.f32 %v2056_v28, %v2160_v35  ;;  %v2075_v28 = vld [vmem:[%s21122_s5 + $0xa0] sm:$0xff]  ;;  %21682 = vst [vmem:[#allocation19_spill] sm:$0xff] %v16121_v39  ;;  %v2204_v45 = vand.u32 4294901760, %v2078_v34 }
 0x2ae   :  { %13871 = vmatprep.subr.bf16.mxu1 %v13870_v20 }
 0x2af   :  { %21669 = vst [vmem:[#allocation6_spill] sm:$0xff] %v16015_v47 }
 0x2b0   :  { %13043 = vmatmul.mubr.f32.vlgmr.msra.gmra.mrb[8].mxu1 %v15948_v6 }
 0x2b1   :  { %13873 = vmatpush3.bf16.msra.mxu1 %v13870_v20  ;;  %13045 = vmatprep.mubr.f32.mxu1 %v1450_v8 }
 0x2b2   :  { %13875 = vmatprep.subr.bf16.mxu1 %v13874_v50 }
 0x2b4   :  { %13046 = vmatmul.mubr.f32.gmra.mrb[10].mxu1 %v1460_v26 }
 0x2b5   :  { %13877 = vmatpush3.bf16.msra.mxu1 %v13874_v50  ;;  %13060 = vmatprep.mubr.f32.mxu1 %v1431_v7  ;;  %v2066_v50 = vld [vmem:[%s21122_s5 + $0x58] sm:$0xff] }
 0x2b6   :  { %13879 = vmatprep.subr.bf16.mxu1 %v15929_v51  ;;  %v2180_v3 = vand.u32 4294901760, %v2066_v50 }
 0x2b8   :  { %v16072_v17 = vpack.c.bf16 %v2180_v3, %v2176_v0  ;;  %v16074_v18 = vsub.f32 %v2066_v50, %v2180_v3  ;;  %v2202_v50 = vand.u32 4294901760, %v2075_v28  ;;  %v16145_v3 = vld [vmem:[%s21122_s5 + $0xe8] sm:$0xff] }
 0x2b9   :  { %13881 = vmatpush3.bf16.msra.mxu1 %v15929_v51  ;;  %v2063_v51 = vld [vmem:[%s21122_s5 + $0x40] sm:$0xff] }
 0x2ba   :  { %13883 = vmatprep.subr.bf16.mxu1 %v15862_v49  ;;  %v2178_v7 = vand.u32 4294901760, %v2063_v51  ;;  %21674 = vst [vmem:[#allocation11_spill] sm:$0xff] %v16072_v17 }
 0x2bc   :  { %13061 = vmatmul.mubr.f32.vlgmr.msra.gmra.mrb[8].mxu1 %v1441_v11  ;;  %v16078_v22 = vsub.f32 %v2063_v51, %v2178_v7 }
 0x2bd   :  { %13063 = vmatprep.mubr.f32.mxu1 %v1451_v29  ;;  %13885 = vmatpush3.bf16.msra.mxu1 %v15862_v49  ;;  %v2194_v29 = vand.u32 4294901760, %v2071_v60 }
 0x2be   :  { %13887 = vmatprep.subr.bf16.mxu1 %v15872_v57 }
 0x2bf   :  { %v16119_v38 = vsub.f32 %v2071_v60, %v2194_v29  ;;  %v16174_v60 = vld [vmem:[%s21122_s5 + $0x118] sm:$0xff]  ;;  %v16177_v23 = vpack.c.bf16 %v2198_v32, %v2194_v29  ;;  %v2216_v32 = vand.u32 4294901760, %v16145_v3 }
 0x2c0   :  { %13064 = vmatmul.mubr.f32.gmra.mrb[10].mxu1 %v1461_v15  ;;  %v2196_v15 = vand.u32 4294901760, %v2074_v16 }
 0x2c1   :  { %13889 = vmatpush3.bf16.msra.mxu1 %v15872_v57  ;;  %13078 = vmatprep.mubr.f32.mxu1 %v1432_v10  ;;  %v16057_v10 = vsub.f32 %v2059_v43, %v2170_v58  ;;  %21681 = vst [vmem:[#allocation18_spill] sm:$0xff] %v16119_v38  ;;  %21687 = vst [vmem:[#allocation24_spill] sm:$0xff] %v16177_v23 }
 0x2c2   :  { %13891 = vmatprep.subr.bf16.mxu1 %v15898_v14 }
 0x2c5   :  { %13893 = vmatpush3.bf16.msra.mxu1 %v15898_v14 }
 0x2c6   :  { %13895 = vmatprep.subr.bf16.mxu1 %v15931_v52 }
 0x2c8   :  { %13079 = vmatmul.mubr.f32.vlgmr.msra.gmra.mrb[8].mxu1 %v1442_v12  ;;  %v2072_v12 = vld [vmem:[%s21122_s5 + $0x88] sm:$0xff] }
 0x2c9   :  { %13081 = vmatprep.mubr.f32.mxu1 %v1452_v19  ;;  %13897 = vmatpush3.bf16.msra.mxu1 %v15931_v52  ;;  %v2065_v52 = vld [vmem:[%s21122_s5 + $0x50] sm:$0xff]  ;;  %v2192_v27 = vand.u32 4294901760, %v2072_v12  ;;  %v16089_v19 = vpack.c.bf16 %v2188_v24, %v2184_v5  ;;  %v16155_v5 = vsub.f32 %v2075_v28, %v2202_v50 }
 0x2ca   :  { %13899 = vmatprep.subr.bf16.mxu1 %v15933_v53  ;;  %v2182_v4 = vand.u32 4294901760, %v2065_v52 }
 0x2cb   :  { %21677 = vst [vmem:[#allocation14_spill] sm:$0xff] %v16089_v19  ;;  %v16134_v43 = vpack.c.bf16 %v2196_v15, %v2192_v27 }
 0x2cc   :  { %13082 = vmatmul.mubr.f32.gmra.mrb[10].mxu1 %v1462_v30  ;;  %v16076_v21 = vpack.c.bf16 %v2182_v4, %v2178_v7  ;;  %v16083_v13 = vsub.f32 %v2065_v52, %v2182_v4  ;;  %v16091_v30 = vsub.f32 %v2070_v1, %v2188_v24  ;;  %v2214_v1 = vand.u32 4294901760, %v2081_v41  ;;  %v2086_v7 = vld [vmem:[%s21122_s5 + $0xf8] sm:$0xff]  ;;  %v16153_v4 = vld [vmem:[%s21122_s5 + $0xe0] sm:$0xff] }
 0x2cd   :  { %13901 = vmatpush3.bf16.msra.mxu1 %v15933_v53  ;;  %13096 = vmatprep.mubr.f32.mxu1 %v15941_v59  ;;  %21684 = vst [vmem:[#allocation21_spill] sm:$0xff] %v16134_v43 }
 0x2ce   :  { %13903 = vmatprep.subr.bf16.mxu1 %v15935_v54  ;;  %21675 = vst [vmem:[#allocation12_spill] sm:$0xff] %v16076_v21  ;;  %21678 = vst [vmem:[#allocation15_spill] sm:$0xff] %v16091_v30 }
 0x2d1   :  { %13905 = vmatpush3.bf16.msra.mxu1 %v15935_v54 }
 0x2d2   :  { %13907 = vmatprep.subr.bf16.mxu1 %v15862_v49 }
 0x2d4   :  { %13097 = vmatmul.mubr.f32.vlgmr.msra.gmra.mrb[8].mxu1 %v15948_v6 }
 0x2d5   :  { %13099 = vmatprep.mubr.f32.mxu1 %v1450_v8  ;;  %13909 = vmatpush3.bf16.msra.mxu1 %v15862_v49  ;;  %v2058_v49 = vld [vmem:[%s21122_s5 + $0x18] sm:$0xff] }
 0x2d6   :  { %13911 = vmatprep.subr.bf16.mxu1 %v15872_v57  ;;  %v2164_v36 = vand.u32 4294901760, %v2058_v49 }
 0x2d8   :  { %13100 = vmatmul.mubr.f32.gmra.mrb[10].mxu1 %v1460_v26  ;;  %v16013_v46 = vpack.c.bf16 %v2164_v36, %v2160_v35  ;;  %v16017_v48 = vsub.f32 %v2058_v49, %v2164_v36  ;;  %v2077_v35 = vld [vmem:[%s21122_s5 + $0xb0] sm:$0xff]  ;;  %v2080_v36 = vld [vmem:[%s21122_s5 + $0xc8] sm:$0xff] }
 0x2d9   :  { %13913 = vmatpush3.bf16.msra.mxu1 %v15872_v57  ;;  %13114 = vmatprep.mubr.f32.mxu1 %v15941_v59  ;;  %v2055_v57 = vld [vmem:[%s21122_s5] sm:$0xff]  ;;  %v2174_v59 = vand.u32 4294901760, %v2061_v44  ;;  %v2206_v51 = vand.u32 4294901760, %v2077_v35  ;;  %v2208_v52 = vand.u32 4294901760, %v2080_v36 }
 0x2da   :  { %13915 = vmatprep.subr.bf16.mxu1 %v15898_v14  ;;  %v2162_v37 = vand.u32 4294901760, %v2055_v57  ;;  %21668 = vst [vmem:[#allocation5_spill] sm:$0xff] %v16013_v46  ;;  %21670 = vst [vmem:[#allocation7_spill] sm:$0xff] %v16017_v48  ;;  %13919 = vmatprep.subr.bf16.mxu0 %v16013_v46 }
 0x2db   :  { %v16055_v9 = vpack.c.bf16 %v2174_v59, %v2170_v58  ;;  %v16059_v11 = vsub.f32 %v2061_v44, %v2174_v59  ;;  %v2200_v44 = vand.u32 4294901760, %v2076_v33  ;;  %v16139_v59 = vsub.f32 %v2078_v34, %v2204_v45 }
 0x2dc   :  { %v16019_v20 = vsub.f32 %v2055_v57, %v2162_v37  ;;  %v16106_v57 = vsub.f32 %v2072_v12, %v2192_v27  ;;  %v16164_v12 = vld [vmem:[%s21122_s5 + $0xf0] sm:$0xff]  ;;  %v16189_v27 = vld [vmem:[%s21122_s5 + $0x100] sm:$0xff]  ;;  %v2218_v34 = vand.u32 4294901760, %v16153_v4 }
 0x2dd   :  { %13917 = vmatpush3.bf16.msra.mxu1 %v15898_v14  ;;  %v2057_v14 = vld [vmem:[%s21122_s5 + $0x10] sm:$0xff]  ;;  %21673 = vst [vmem:[#allocation10_spill] sm:$0xff] %v16055_v9  ;;  %v16137_v58 = vsub.f32 %v2076_v33, %v2200_v44  ;;  %21686 = vst [vmem:[#allocation23_spill] sm:$0xff] %v16139_v59  ;;  %v16197_v29 = vpack.c.bf16 %v2204_v45, %v2200_v44  ;;  %v2220_v33 = vand.u32 4294901760, %v2086_v7  ;;  %v2222_v28 = vand.u32 4294901760, %v16164_v12  ;;  %v16214_v45 = vld [vmem:[%s21122_s5 + $0x128] sm:$0xff] }
 0x2de   :  { %v2166_v40 = vand.u32 4294901760, %v2057_v14  ;;  %v16230_v44 = vsub.f32 %v16153_v4, %v2218_v34 }
 0x2df   :  { %21685 = vst [vmem:[#allocation22_spill] sm:$0xff] %v16137_v58  ;;  %21691 = vst [vmem:[#allocation28_spill] sm:$0xff] %v16197_v29 }
 0x2e0   :  { %13115 = vmatmul.mubr.f32.vlgmr.msra.gmra.mrb[8].mxu1 %v15948_v6  ;;  %v16030_v53 = vpack.c.bf16 %v2166_v40, %v2162_v37  ;;  %v16032_v54 = vsub.f32 %v2057_v14, %v2166_v40  ;;  %v2067_v6 = vld [vmem:[%s21122_s5 + $0x60] sm:$0xff]  ;;  %v2082_v14 = vld [vmem:[%s21122_s5 + $0xd8] sm:$0xff]  ;;  %v16117_v37 = vsub.f32 %v2074_v16, %v2196_v15  ;;  %v16169_v16 = vld [vmem:[%s21122_s5 + $0x108] sm:$0xff]  ;;  %21695 = vst [vmem:[#allocation32_spill] sm:$0xff] %v16230_v44 }
 0x2e1   :  { %13117 = vmatprep.mubr.f32.mxu1 %v1450_v8  ;;  %v2190_v8 = vand.u32 4294901760, %v2069_v63  ;;  %v16126_v40 = vld [vmem:[%s21122_s5 + $0xc0] sm:$0xff]  ;;  %v2212_v61 = vand.u32 4294901760, %v2082_v14  ;;  %v16194_v15 = vld [vmem:[%s21122_s5 + $0x110] sm:$0xff] }
 0x2e2   :  { %21671 = vst [vmem:[#allocation8_spill] sm:$0xff] %v16030_v53  ;;  %13921 = vmatpush1.bf16.msra.mxu0 %v16030_v53  ;;  %v2210_v0 = vand.u32 4294901760, %v16126_v40 }
 0x2e3   :  { %13923 = vmatprep.subr.bf16.mxu0 %v16034_v55  ;;  %v16104_v49 = vsub.f32 %v2069_v63, %v2190_v8  ;;  %v16159_v63 = vsub.f32 %v2080_v36, %v2208_v52  ;;  %v16179_v24 = vsub.f32 %v2082_v14, %v2212_v61  ;;  %v2228_v36 = vand.u32 4294901760, %v16174_v60 }
 0x2e4   :  { %13118 = vmatmul.mubr.f32.gmra.mrb[10].mxu1 %v1460_v26  ;;  %v2186_v26 = vand.u32 4294901760, %v2067_v6  ;;  %v16205_v14 = vsub.f32 %v16145_v3, %v2216_v32  ;;  %v16224_v3 = vld [vmem:[%s21122_s5 + $0x120] sm:$0xff] }
 0x2e5   :  { %21680 = vst [vmem:[#allocation17_spill] sm:$0xff] %v16104_v49  ;;  %21688 = vst [vmem:[#allocation25_spill] sm:$0xff] %v16179_v24  ;;  %v16257_v4 = vsub.f32 %v16174_v60, %v2228_v36  ;;  %v2232_v60 = vand.u32 4294901760, %v16214_v45 }
 0x2e6   :  { %13925 = vmatpush1.bf16.msra.mxu0 %v16055_v9  ;;  %v16093_v31 = vsub.f32 %v2067_v6, %v2186_v26  ;;  %v16132_v42 = vpack.c.bf16 %v2190_v8, %v2186_v26  ;;  %v16157_v6 = vsub.f32 %v2077_v35, %v2206_v51  ;;  %v16182_v26 = vsub.f32 %v16126_v40, %v2210_v0  ;;  %v16272_v9 = vld [vmem:[%s21122_s5 + $0x140] sm:$0xff] }
 0x2e7   :  { %13927 = vmatprep.subr.bf16.mxu0 %v16072_v17  ;;  %v16184_v8 = vsub.f32 %v2081_v41, %v2214_v1  ;;  %v2224_v35 = vand.u32 4294901760, %v16169_v16  ;;  %21692 = vst [vmem:[#allocation29_spill] sm:$0xff] %v16205_v14  ;;  %v16207_v40 = vsub.f32 %v2086_v7, %v2220_v33  ;;  %v16227_v7 = vpack.c.bf16 %v2206_v51, %v2202_v50  ;;  %v16251_v50 = vld [vmem:[%s21122_s5 + $0x158] sm:$0xff] }
 0x2e8   :  { %21679 = vst [vmem:[#allocation16_spill] sm:$0xff] %v16093_v31  ;;  %21683 = vst [vmem:[#allocation20_spill] sm:$0xff] %v16132_v42  ;;  %v16233_v41 = vsub.f32 %v16164_v12, %v2222_v28  ;;  %v16254_v51 = vpack.c.bf16 %v2212_v61, %v2208_v52  ;;  %v21700_v12 = vand.u32 4294901760, %v16189_v27  ;;  %v16277_v52 = vld [vmem:[%s21122_s5 + $0x150] sm:$0xff]  ;;  %v16279_v61 = vpack.c.bf16 %v2214_v1, %v2210_v0 }
 0x2e9   :  { %21689 = vst [vmem:[#allocation26_spill] sm:$0xff] %v16182_v26  ;;  %21690 = vst [vmem:[#allocation27_spill] sm:$0xff] %v16184_v8  ;;  %v2244_v53 = vand.u32 4294901760, %v16251_v50  ;;  %v16289_v46 = vsub.f32 %v16214_v45, %v2232_v60  ;;  %v2242_v1 = vand.u32 4294901760, %v16272_v9  ;;  %v2099_v45 = vld [vmem:[%s21122_s5 + $0x160] sm:$0xff] }
 0x2ea   :  { %13929 = vmatpush1.bf16.msra.mxu0 %v16076_v21  ;;  %21693 = vst [vmem:[#allocation30_spill] sm:$0xff] %v16207_v40  ;;  %21694 = vst [vmem:[#allocation31_spill] sm:$0xff] %v16227_v7  ;;  %v21702_v21 = vand.u32 4294901760, %v16194_v15 }
 0x2eb   :  { %13931 = vmatprep.subr.bf16.mxu0 %v16089_v19  ;;  %21696 = vst [vmem:[#allocation33_spill] sm:$0xff] %v16233_v41  ;;  %v16241_v19 = vld [vmem:[%s21122_s5 + $0x130] sm:$0xff]  ;;  %21698 = vst [vmem:[#allocation35_spill] sm:$0xff] %v16254_v51  ;;  %v2104_v41 = vld [vmem:[%s21122_s5 + $0x188] sm:$0xff] }
 0x2ec   :  { %21699 = vst [vmem:[#allocation36_spill] sm:$0xff] %v16257_v4  ;;  %v16267_v17 = vsub.f32 %v16194_v15, %v21702_v21  ;;  %21704 = vst [vmem:[#allocation39_spill] sm:$0xff] %v16279_v61  ;;  %v2238_v21 = vand.u32 4294901760, %v16241_v19  ;;  %v2102_v4 = vld [vmem:[%s21122_s5 + $0x178] sm:$0xff] }
 0x2ed   :  { %21705 = vst [vmem:[#allocation40_spill] sm:$0xff] %v16289_v46 }
 0x2ee   :  { %13933 = vmatpush1.bf16.msra.mxu0 %v16132_v42  ;;  %v16236_v42 = vsub.f32 %v16169_v16, %v2224_v35  ;;  %v16262_v16 = vsub.f32 %v16189_v27, %v21700_v12  ;;  %21703 = vst [vmem:[#allocation38_spill] sm:$0xff] %v16267_v17  ;;  %v2246_v17 = vand.u32 4294901760, %v16277_v52 }
 0x2ef   :  { %13935 = vmatprep.subr.bf16.mxu0 %v16134_v43  ;;  %v16219_v43 = vld [vmem:[%s21122_s5 + $0x138] sm:$0xff] }
 0x2f0   :  { %21697 = vst [vmem:[#allocation34_spill] sm:$0xff] %v16236_v42  ;;  %21701 = vst [vmem:[#allocation37_spill] sm:$0xff] %v16262_v16  ;;  %v2236_v12 = vand.u32 4294901760, %v16219_v43  ;;  %v2100_v16 = vld [vmem:[%s21122_s5 + $0x168] sm:$0xff]  ;;  %v2101_v42 = vld [vmem:[%s21122_s5 + $0x170] sm:$0xff] }
 0x2f2   :  { %13937 = vmatpush1.bf16.msra.mxu0 %v16177_v23  ;;  %v16246_v23 = vld [vmem:[%s21122_s5 + $0x148] sm:$0xff]  ;;  %v16292_v0 = vsub.f32 %v16219_v43, %v2236_v12  ;;  %v16306_v43 = vpack.c.bf16 %v2220_v33, %v2216_v32  ;;  %v2106_v32 = vld [vmem:[%s21122_s5 + $0x198] sm:$0xff]  ;;  %v16327_v33 = vsub.f32 %v16251_v50, %v2244_v53  ;;  %v2248_v50 = vand.u32 4294901760, %v2100_v16 }
 0x2f3   :  { %13939 = vmatprep.subr.bf16.mxu0 %v16197_v29  ;;  %v2234_v29 = vand.u32 4294901760, %v16224_v3  ;;  %v2240_v55 = vand.u32 4294901760, %v16246_v23 }
 0x2f4   :  { %21706 = vst [vmem:[#allocation41_spill] sm:$0xff] %v16292_v0  ;;  %21707 = vst [vmem:[#allocation42_spill] sm:$0xff] %v16306_v43  ;;  %v16312_v0 = vsub.f32 %v16241_v19, %v2238_v21  ;;  %v16330_v19 = vsub.f32 %v16272_v9, %v2242_v1  ;;  %v2250_v9 = vand.u32 4294901760, %v2099_v45 }
 0x2f5   :  { %v16315_v46 = vsub.f32 %v16246_v23, %v2240_v55  ;;  %21711 = vst [vmem:[#allocation46_spill] sm:$0xff] %v16327_v33  ;;  %v16333_v23 = vsub.f32 %v16277_v52, %v2246_v17  ;;  %v2252_v33 = vand.u32 4294901760, %v2102_v4  ;;  %v2256_v52 = vand.u32 4294901760, %v2104_v41 }
 0x2f6   :  { %13941 = vmatpush1.bf16.msra.mxu0 %v16227_v7  ;;  %v16309_v7 = vsub.f32 %v16224_v3, %v2234_v29  ;;  %21709 = vst [vmem:[#allocation44_spill] sm:$0xff] %v16312_v0  ;;  %21712 = vst [vmem:[#allocation47_spill] sm:$0xff] %v16330_v19  ;;  %v2103_v3 = vld [vmem:[%s21122_s5 + $0x180] sm:$0xff]  ;;  %v16343_v0 = vpack.c.bf16 %v2228_v36, %v2224_v35  ;;  %v2254_v19 = vand.u32 4294901760, %v2101_v42 }
 0x2f7   :  { %13943 = vmatprep.subr.bf16.mxu0 %v16254_v51  ;;  %21710 = vst [vmem:[#allocation45_spill] sm:$0xff] %v16315_v46  ;;  %21713 = vst [vmem:[#allocation48_spill] sm:$0xff] %v16333_v23  ;;  %v2105_v51 = vld [vmem:[%s21122_s5 + $0x190] sm:$0xff]  ;;  %v16341_v46 = vpack.c.bf16 %v2222_v28, %v2218_v34  ;;  %v2260_v23 = vand.u32 4294901760, %v2106_v32  ;;  %v16349_v44 = vsub.f32 %v2102_v4, %v2252_v33  ;;  %v2258_v40 = vand.u32 4294901760, %v2103_v3  ;;  %v2108_v34 = vld [vmem:[%s21122_s5 + $0x1a8] sm:$0xff] }
 0x2f8   :  { %21708 = vst [vmem:[#allocation43_spill] sm:$0xff] %v16309_v7  ;;  %21715 = vst [vmem:[#allocation50_spill] sm:$0xff] %v16343_v0  ;;  %v16347_v7 = vsub.f32 %v2100_v16, %v2248_v50  ;;  %v2262_v14 = vand.u32 4294901760, %v2105_v51  ;;  %v2110_v28 = vld [vmem:[%s21122_s5 + $0x1b8] sm:$0xff]  ;;  %v16357_v35 = vsub.f32 %v2099_v45, %v2250_v9  ;;  %v16359_v36 = vsub.f32 %v2101_v42, %v2254_v19 }
 0x2f9   :  { %21714 = vst [vmem:[#allocation49_spill] sm:$0xff] %v16341_v46  ;;  %21717 = vst [vmem:[#allocation52_spill] sm:$0xff] %v16349_v44  ;;  %v16363_v16 = vsub.f32 %v2106_v32, %v2260_v23  ;;  %v16365_v4 = vsub.f32 %v2103_v3, %v2258_v40  ;;  %v21724_v44 = vand.u32 4294901760, %v16189_v27  ;;  %v2264_v45 = vand.u32 4294901760, %v2108_v34  ;;  %v2113_v3 = vld [vmem:[%s21122_s5 + $0x1d0] sm:$0xff] }
 0x2fa   :  { %13945 = vmatpush1.bf16.msra.mxu0 %v16279_v61  ;;  %21716 = vst [vmem:[#allocation51_spill] sm:$0xff] %v16347_v7  ;;  %21718 = vst [vmem:[#allocation53_spill] sm:$0xff] %v16357_v35  ;;  %v16361_v61 = vsub.f32 %v2104_v41, %v2256_v52  ;;  %v21725_v7 = vand.u32 4294901760, %v16194_v15  ;;  %v2268_v35 = vand.u32 4294901760, %v2110_v28  ;;  %v16377_v42 = vpack.c.bf16 %v2236_v12, %v2232_v60  ;;  %v2109_v60 = vld [vmem:[%s21122_s5 + $0x1b0] sm:$0xff] }
 0x2fb   :  { %13947 = vmatprep.subr.bf16.mxu0 %v16306_v43  ;;  %21719 = vst [vmem:[#allocation54_spill] sm:$0xff] %v16359_v36  ;;  %21721 = vst [vmem:[#allocation56_spill] sm:$0xff] %v16363_v16  ;;  %v16367_v43 = vsub.f32 %v2105_v51, %v2262_v14  ;;  %v16379_v41 = vsub.f32 %v2108_v34, %v2264_v45  ;;  %v16384_v51 = vpack.c.bf16 %v2238_v21, %v2234_v29  ;;  %v11707_v34 = vld [vmem:[%s21121_s4] ss:$0 sm:$0xff] }
 0x2fc   :  { %21720 = vst [vmem:[#allocation55_spill] sm:$0xff] %v16361_v61  ;;  %21722 = vst [vmem:[#allocation57_spill] sm:$0xff] %v16365_v4  ;;  %v16374_v8 = vpack.c.bf16 %v21725_v7, %v21724_v44  ;;  %v16381_v32 = vsub.f32 %v2110_v28, %v2268_v35  ;;  %v16387_v27 = vpack.c.bf16 %v2244_v53, %v2240_v55  ;;  %v2270_v21 = vand.u32 4294901760, %v2109_v60 }
 0x2fd   :  { %21723 = vst [vmem:[#allocation58_spill] sm:$0xff] %v16367_v43  ;;  %21727 = vst [vmem:[#allocation60_spill] sm:$0xff] %v16377_v42  ;;  %v16390_v15 = vpack.c.bf16 %v2246_v17, %v2242_v1  ;;  %v16393_v44 = vpack.c.bf16 %v2252_v33, %v2248_v50  ;;  %v16396_v7 = vpack.c.bf16 %v2254_v19, %v2250_v9  ;;  %v2107_v17 = vld [vmem:[%s21122_s5 + $0x1a0] sm:$0xff]  ;;  %v2114_v1 = vld [vmem:[%s21122_s5 + $0x1d8] sm:$0xff] }
 0x2fe   :  { %13949 = vmatpush1.bf16.msra.mxu0 %v16341_v46  ;;  %21726 = vst [vmem:[#allocation59_spill] sm:$0xff] %v16374_v8  ;;  %21728 = vst [vmem:[#allocation61_spill] sm:$0xff] %v16379_v41  ;;  %v16399_v29 = vpack.c.bf16 %v2260_v23, %v2256_v52  ;;  %v16402_v53 = vpack.c.bf16 %v2262_v14, %v2258_v40  ;;  %v16405_v55 = vpack.c.bf16 %v2268_v35, %v2264_v45  ;;  %v2112_v40 = vld [vmem:[%s21122_s5 + $0x1c8] sm:$0xff]  ;;  %v2111_v23 = vld [vmem:[%s21122_s5 + $0x1c0] sm:$0xff] }
 0x2ff   :  { %13951 = vmatprep.subr.bf16.mxu0 %v16343_v0  ;;  %21729 = vst [vmem:[#allocation62_spill] sm:$0xff] %v16381_v32  ;;  %21730 = vst [vmem:[#allocation63_spill] sm:$0xff] %v16384_v51  ;;  %v2266_v12 = vand.u32 4294901760, %v2107_v17  ;;  %v2272_v33 = vand.u32 4294901760, %v2112_v40  ;;  %v2276_v19 = vand.u32 4294901760, %v2114_v1  ;;  %v2274_v9 = vand.u32 4294901760, %v2111_v23 }
 0x300   :  { %21731 = vst [vmem:[#allocation64_spill] sm:$0xff] %v16387_v27  ;;  %21732 = vst [vmem:[#allocation65_spill] sm:$0xff] %v16390_v15  ;;  %v2278_v52 = vand.u32 4294901760, %v2113_v3  ;;  %v2116_v35 = vld [vmem:[%s21122_s5 + $0x1e8] sm:$0xff]  ;;  %v2118_v45 = vld [vmem:[%s21122_s5 + $0x1f8] sm:$0xff] }
 0x301   :  { %21733 = vst [vmem:[#allocation66_spill] sm:$0xff] %v16393_v44  ;;  %21734 = vst [vmem:[#allocation67_spill] sm:$0xff] %v16396_v7  ;;  %v16415_v14 = vpack.c.bf16 %v2270_v21, %v2266_v12  ;;  %v16430_v50 = vpack.c.bf16 %v2276_v19, %v2272_v33  ;;  %v16470_v61 = vsub.f32 %v2107_v17, %v2266_v12 }
 0x302   :  { %13953 = vmatpush1.bf16.msra.mxu0 %v16374_v8  ;;  %21735 = vst [vmem:[#allocation68_spill] sm:$0xff] %v16399_v29  ;;  %21736 = vst [vmem:[#allocation69_spill] sm:$0xff] %v16402_v53  ;;  %v16436_v28 = vpack.c.bf16 %v2278_v52, %v2274_v9  ;;  %v16483_v26 = vsub.f32 %v2111_v23, %v2274_v9 }
 0x303   :  { %13955 = vmatprep.subr.bf16.mxu0 %v16377_v42  ;;  %21737 = vst [vmem:[#allocation70_spill] sm:$0xff] %v16405_v55  ;;  %21738 = vst [vmem:[#allocation71_spill] sm:$0xff] %v16415_v14  ;;  %v21225_v42 = vand.u32 4294901760, %v16017_v48 }
 0x304   :  { %21739 = vst [vmem:[#allocation72_spill] sm:$0xff] %v16430_v50  ;;  %21740 = vst [vmem:[#allocation73_spill] sm:$0xff] %v16436_v28 }
 0x305   :  { %21743 = vst [vmem:[#allocation76_spill] sm:$0xff] %v16470_v61  ;;  %21747 = vst [vmem:[#allocation80_spill] sm:$0xff] %v16483_v26 }
 0x306   :  { %13957 = vmatpush1.bf16.msra.mxu0 %v16384_v51 }
 0x307   :  { %13959 = vmatprep.subr.bf16.mxu0 %v16387_v27 }
 0x30a   :  { %13961 = vmatpush1.bf16.msra.mxu0 %v16390_v15 }
 0x30b   :  { %13963 = vmatprep.subr.bf16.mxu0 %v16393_v44 }
 0x30e   :  { %13965 = vmatpush1.bf16.msra.mxu0 %v16396_v7  ;;  %v21222_v7 = vand.u32 4294901760, %v16015_v47 }
 0x30f   :  { %13967 = vmatprep.subr.bf16.mxu0 %v16399_v29  ;;  %v2115_v29 = vld [vmem:[%s21122_s5 + $0x1e0] sm:$0xff] }
 0x310   :  { %v2282_v27 = vand.u32 4294901760, %v2115_v29 }
 0x312   :  { %13969 = vmatpush1.bf16.msra.mxu0 %v16402_v53  ;;  %v2284_v53 = vand.u32 4294901760, %v2118_v45 }
 0x313   :  { %13971 = vmatprep.subr.bf16.mxu0 %v16405_v55  ;;  %v2280_v55 = vand.u32 4294901760, %v2116_v35 }
 0x315   :  { %v16453_v0 = vpack.c.bf16 %v2284_v53, %v2280_v55 }
 0x316   :  { %13973 = vmatpush1.bf16.msra.mxu0 %v16415_v14 }
 0x317   :  { %13975 = vmatprep.subr.bf16.mxu0 %v16430_v50  ;;  %v2117_v50 = vld [vmem:[%s21122_s5 + $0x1f0] sm:$0xff]  ;;  %21741 = vst [vmem:[#allocation74_spill] sm:$0xff] %v16453_v0 }
 0x318   :  { %v2286_v51 = vand.u32 4294901760, %v2117_v50 }
 0x31a   :  { %13977 = vmatpush1.bf16.msra.mxu0 %v16436_v28  ;;  %v16457_v32 = vpack.c.bf16 %v2286_v51, %v2282_v27  ;;  %v2368_v28 = vsub.f32 %v16017_v48, %v21225_v42  ;;  %v16479_v42 = vsub.f32 %v2112_v40, %v2272_v33  ;;  %v16481_v48 = vsub.f32 %v2114_v1, %v2276_v19 }
 0x31b   :  { %13979 = vmatprep.subr.bf16.mxu0 %v16453_v0  ;;  %v16501_v40 = vsub.f32 %v2117_v50, %v2286_v51 }
 0x31c   :  { %21742 = vst [vmem:[#allocation75_spill] sm:$0xff] %v16457_v32  ;;  %21745 = vst [vmem:[#allocation78_spill] sm:$0xff] %v16479_v42  ;;  %v2369_v1 = vand.u32 4294901760, %v2368_v28 }
 0x31d   :  { %21746 = vst [vmem:[#allocation79_spill] sm:$0xff] %v16481_v48  ;;  %21752 = vst [vmem:[#allocation85_spill] sm:$0xff] %v16501_v40 }
 0x31e   :  { %13981 = vmatpush1.bf16.msra.mxu0 %v16457_v32  ;;  %v16489_v32 = vsub.f32 %v2113_v3, %v2278_v52  ;;  %v21234_v3 = vand.u32 4294901760, %v16057_v10 }
 0x320   :  { %21748 = vst [vmem:[#allocation81_spill] sm:$0xff] %v16489_v32  ;;  %v2386_v50 = vsub.f32 %v16057_v10, %v21234_v3 }
 0x322   :  { %v2387_v52 = vand.u32 4294901760, %v2386_v50 }
 0x3b3   :  { %v13116_v14 = vpop.f32.mrb[8].mxu1 }
 0x3b4   :  { %v15344_v44 = vadd.f32 %v13116_v14, %v11707_v34  ;;  %v1977_v15 = vpop.f32.mrb[9].mxu1  ;;  %v2356_v14 = vsub.f32 %v16015_v47, %v21222_v7  ;;  %v16475_v7 = vsub.f32 %v2109_v60, %v2270_v21 }
 0x3b5   :  { %v15345_v8 = vadd.f32 %v11707_v34, %v1977_v15 }
 0x3b6   :  { %v16455_v46 = vmax.f32 %v15344_v44, 0.0  ;;  %21744 = vst [vmem:[#allocation77_spill] sm:$0xff] %v16475_v7  ;;  %v2357_v60 = vand.u32 4294901760, %v2356_v14  ;;  %v21239_v14 = vand.u32 4294901760, %v16032_v54 }
 0x3b7   :  { %v16459_v41 = vmax.f32 %v15345_v8, 0.0  ;;  %v13119_v43 = vpop.f32.mrb[10].mxu1 }
 0x3b8   :  { %v2008_v15 = vrot.slane %v16455_v46, 1  ;;  %v2027_v44 = vrot.slane %v16455_v46, 2  ;;  %v15346_v4 = vadd.f32 %v13119_v43, %v11707_v34  ;;  %v1989_v16 = vpop.f32.mrb[11].mxu1 }
 0x3b9   :  { %v2007_v8 = vrot.slane %v16459_v41, 1  ;;  %v2026_v0 = vrot.slane %v16459_v41, 2  ;;  %v15347_v36 = vadd.f32 %v11707_v34, %v1989_v16  ;;  %v16493_v16 = vsub.f32 %v2116_v35, %v2280_v55 }
 0x3ba   :  { %v16477_v47 = vmax.f32 %v15346_v4, 0.0  ;;  %v16495_v4 = vsub.f32 %v2118_v45, %v2284_v53  ;;  %v13982_v53 = vpack.c.bf16 %v2369_v1, %v2357_v60  ;;  %v21241_v45 = vand.u32 4294901760, %v16019_v20 }
 0x3bb   :  { %v16485_v43 = vmax.f32 %v15347_v36, 0.0  ;;  %v2028_v17 = vsel %vm1304_vm1, %v2026_v0, %v2027_v44  ;;  %v2009_v12 = vsel %vm1284_vm2, %v2007_v8, %v2008_v15  ;;  %21749 = vst [vmem:[#allocation82_spill] sm:$0xff] %v16493_v16  ;;  %v16499_v0 = vsub.f32 %v2115_v29, %v2282_v27 }
 0x3bc   :  { %2033 = vrot.lane.b32.xlu1 %v2028_v17, %s15675_s0  ;;  %2014 = vrot.lane.b32.xlu0 %v2009_v12, %s15676_s29  ;;  %21750 = vst [vmem:[#allocation83_spill] sm:$0xff] %v16495_v4  ;;  %v2012_v33 = vrot.slane %v16477_v47, 1  ;;  %v2031_v19 = vrot.slane %v16477_v47, 2  ;;  %v21233_v27 = vand.u32 4294901760, %v16059_v11  ;;  %v21231_v8 = vand.u32 4294901760, %v16061_v2 }
 0x3bd   :  { %v2010_v36 = vrot.slane %v16485_v43, 1  ;;  %v2029_v21 = vrot.slane %v16485_v43, 2  ;;  %21751 = vst [vmem:[#allocation84_spill] sm:$0xff] %v16499_v0  ;;  %13983 = vmatprep.subr.bf16.mxu0 %v13982_v53  ;;  %v21232_v17 = vand.u32 4294901760, %v16074_v18  ;;  %v2362_v12 = vsub.f32 %v16019_v20, %v21241_v45 }
 0x3be   :  { %v2398_v9 = vsub.f32 %v16059_v11, %v21233_v27  ;;  %v2374_v60 = vsub.f32 %v16032_v54, %v21239_v14  ;;  %v2404_v1 = vsub.f32 %v16061_v2, %v21231_v8 }
 0x3bf   :  { %v2030_v23 = vsel %vm1304_vm1, %v2027_v44, %v2029_v21  ;;  %v2011_v55 = vsel %vm1284_vm2, %v2008_v15, %v2010_v36  ;;  %v2032_v51 = vsel %vm1304_vm1, %v2029_v21, %v2031_v19  ;;  %v2013_v29 = vsel %vm1284_vm2, %v2010_v36, %v2012_v33 }
 0x3c0   :  { %2035 = vrot.lane.b32.xlu1 %v2030_v23, %s15675_s0  ;;  %2016 = vrot.lane.b32.xlu0 %v2011_v55, %s15676_s29  ;;  %v2399_v34 = vand.u32 4294901760, %v2398_v9  ;;  %v21238_v15 = vand.u32 4294901760, %v16036_v56  ;;  %v21237_v44 = vand.u32 4294901760, %v16042_v62  ;;  %v21235_v23 = vand.u32 4294901760, %v16083_v13 }
 0x3c1   :  { %v21240_v55 = vand.u32 4294901760, %v16085_v25  ;;  %v2363_v53 = vand.u32 4294901760, %v2362_v12 }
 0x3c2   :  { %v16521_v28 = vpack.c.bf16 %v2399_v34, %v2387_v52  ;;  %v2380_v36 = vsub.f32 %v16036_v56, %v21238_v15  ;;  %v2392_v21 = vsub.f32 %v16042_v62, %v21237_v44  ;;  %v2405_v34 = vand.u32 4294901760, %v2404_v1 }
 0x3c3   :  { %v2422_v12 = vsub.f32 %v16083_v13, %v21235_v23 }
 0x3c4   :  { %2037 = vrot.lane.b32.xlu1 %v2032_v51, %s15675_s0  ;;  %2018 = vrot.lane.b32.xlu0 %v2013_v29, %s15676_s29  ;;  %v2375_v51 = vand.u32 4294901760, %v2374_v60  ;;  %v2381_v9 = vand.u32 4294901760, %v2380_v36  ;;  %v2393_v52 = vand.u32 4294901760, %v2392_v21  ;;  %v16573_v21 = vsub.f32 %v16085_v25, %v21240_v55 }
 0x3c5   :  { %v2423_v45 = vand.u32 4294901760, %v2422_v12 }
 0x3c6   :  { %v16575_v1 = vpack.c.bf16 %v2375_v51, %v2363_v53  ;;  %v13986_v15 = vpack.c.bf16 %v2393_v52, %v2381_v9 }
 0x3c8   :  { %2039 = vrot.lane.b32.xlu1 %v2031_v19, %s15675_s0  ;;  %2020 = vrot.lane.b32.xlu0 %v2012_v33, %s15676_s29  ;;  %v21236_v33 = vand.u32 4294901760, %v16078_v22  ;;  %v2416_v19 = vsub.f32 %v16074_v18, %v21232_v17 }
 0x3ca   :  { %v2410_v8 = vsub.f32 %v16078_v22, %v21236_v33  ;;  %v2417_v3 = vand.u32 4294901760, %v2416_v19 }
 0x3cc   :  { %v2411_v14 = vand.u32 4294901760, %v2410_v8  ;;  %v16591_v51 = vpack.c.bf16 %v2417_v3, %v2405_v34  ;;  %v21762_v3 = vand.u32 4294901760, %v16093_v31 }
 0x42e   :  { %v16554_v29 = vpop.permute.xlu1 %2033  ;;  %v2015_v50 = vpop.permute.xlu0 %2014 }
 0x42f   :  { %21753 = vst [vmem:[#allocation86_spill] sm:$0xff] %v16554_v29  ;;  %v2046_v17 = vsel %vm2045_vm5, %v16459_v41, %v2015_v50  ;;  %v2051_v27 = vsel %vm2050_vm6, %v2015_v50, %v16554_v29  ;;  %v21767_v29 = vand.u32 4294901760, %v16104_v49 }
 0x430   :  { %v16566_v60 = vand.u32 4294901760, %v2051_v27  ;;  %v16568_v36 = vand.u32 4294901760, %v2046_v17 }
 0x432   :  { %21754 = vst [vmem:[#allocation87_spill] sm:$0xff] %v16566_v60  ;;  %21755 = vst [vmem:[#allocation88_spill] sm:$0xff] %v16568_v36  ;;  %v16580_v19 = vsub.f32 %v2051_v27, %v16566_v60  ;;  %v16583_v23 = vsub.f32 %v2046_v17, %v16568_v36  ;;  %v16585_v33 = vpop.permute.xlu1 %2035  ;;  %v2017_v44 = vpop.permute.xlu0 %2016 }
 0x433   :  { %21758 = vst [vmem:[#allocation91_spill] sm:$0xff] %v16585_v33  ;;  %v2047_v55 = vsel %vm2045_vm5, %v16455_v46, %v2017_v44  ;;  %v2052_v53 = vsel %vm2050_vm6, %v2017_v44, %v16585_v33  ;;  %v21761_v46 = vand.u32 4294901760, %v16091_v30  ;;  %v16609_v44 = vsub.f32 %v16093_v31, %v21762_v3 }
 0x434   :  { %21756 = vst [vmem:[#allocation89_spill] sm:$0xff] %v16580_v19  ;;  %21757 = vst [vmem:[#allocation90_spill] sm:$0xff] %v16583_v23  ;;  %v21243_v27 = vand.u32 4294901760, %v16583_v23  ;;  %v16594_v35 = vand.u32 4294901760, %v2052_v53  ;;  %v16598_v41 = vand.u32 4294901760, %v2047_v55 }
 0x435   :  { %v16604_v9 = vsub.f32 %v16091_v30, %v21761_v46 }
 0x436   :  { %21759 = vst [vmem:[#allocation92_spill] sm:$0xff] %v16594_v35  ;;  %21760 = vst [vmem:[#allocation93_spill] sm:$0xff] %v16598_v41  ;;  %v2297_v52 = vsub.f32 %v16583_v23, %v21243_v27  ;;  %v16615_v34 = vsub.f32 %v2052_v53, %v16594_v35  ;;  %v16617_v12 = vpop.permute.xlu1 %2037  ;;  %v2019_v17 = vpop.permute.xlu0 %2018  ;;  %v16622_v50 = vsub.f32 %v2047_v55, %v16598_v41  ;;  %v2435_v55 = vand.u32 4294901760, %v16609_v44 }
 0x437   :  { %21764 = vst [vmem:[#allocation95_spill] sm:$0xff] %v16617_v12  ;;  %v2048_v3 = vsel %vm2045_vm5, %v16485_v43, %v2019_v17  ;;  %v2053_v33 = vsel %vm2050_vm6, %v2019_v17, %v16617_v12  ;;  %v16628_v27 = vpack.c.bf16 %v2423_v45, %v2411_v14  ;;  %v16635_v23 = vsub.f32 %v16104_v49, %v21767_v29 }
 0x438   :  { %21763 = vst [vmem:[#allocation94_spill] sm:$0xff] %v16615_v34  ;;  %21765 = vst [vmem:[#allocation96_spill] sm:$0xff] %v16622_v50  ;;  %v16630_v53 = vand.u32 4294901760, %v2053_v33  ;;  %v16639_v8 = vand.u32 4294901760, %v2048_v3  ;;  %v21769_v43 = vand.u32 4294901760, %v16580_v19  ;;  %v21259_v45 = vand.u32 4294901760, %v16615_v34 }
 0x439   :  { %v2298_v17 = vand.u32 4294901760, %v2297_v52  ;;  %v2441_v46 = vand.u32 4294901760, %v16604_v9 }
 0x43a   :  { %21766 = vst [vmem:[#allocation97_spill] sm:$0xff] %v16630_v53  ;;  %21768 = vst [vmem:[#allocation98_spill] sm:$0xff] %v16639_v8  ;;  %v2291_v31 = vsub.f32 %v16580_v19, %v21769_v43  ;;  %v16647_v12 = vsub.f32 %v2053_v33, %v16630_v53  ;;  %v16649_v29 = vpop.permute.xlu1 %2039  ;;  %v2021_v49 = vpop.permute.xlu0 %2020  ;;  %v16654_v30 = vsub.f32 %v2048_v3, %v16639_v8 }
 0x43b   :  { %21771 = vst [vmem:[#allocation100_spill] sm:$0xff] %v16649_v29  ;;  %v2049_v43 = vsel %vm2045_vm5, %v16477_v47, %v2021_v49  ;;  %v2054_v33 = vsel %vm2050_vm6, %v2021_v49, %v16649_v29  ;;  %v2307_v9 = vsub.f32 %v16615_v34, %v21259_v45  ;;  %v21777_v45 = vand.u32 4294901760, %v16106_v57 }
 0x43c   :  { %21770 = vst [vmem:[#allocation99_spill] sm:$0xff] %v16647_v12  ;;  %21772 = vst [vmem:[#allocation101_spill] sm:$0xff] %v16654_v30  ;;  %v2292_v25 = vand.u32 4294901760, %v2291_v31  ;;  %v16661_v52 = vand.u32 4294901760, %v2049_v43  ;;  %v16667_v3 = vand.u32 4294901760, %v2054_v33  ;;  %v21775_v31 = vand.u32 4294901760, %v16622_v50 }
 0x43d   :  { %v21266_v14 = vand.u32 4294901760, %v16647_v12  ;;  %v21269_v19 = vand.u32 4294901760, %v16654_v30  ;;  %v2308_v29 = vand.u32 4294901760, %v2307_v9  ;;  %v2452_v44 = vsub.f32 %v16106_v57, %v21777_v45 }
 0x43e   :  { %21773 = vst [vmem:[#allocation102_spill] sm:$0xff] %v16661_v52  ;;  %2293 = vmatprep.mubr.f32.mxu0 %v2292_v25  ;;  %21774 = vst [vmem:[#allocation103_spill] sm:$0xff] %v16667_v3  ;;  %v2313_v47 = vsub.f32 %v16622_v50, %v21775_v31  ;;  %v16675_v49 = vsub.f32 %v2049_v43, %v16661_v52  ;;  %v21778_v25 = vand.u32 4294901760, %v16117_v37  ;;  %v2447_v9 = vand.u32 4294901760, %v16635_v23 }
 0x43f   :  { %2299 = vmatmul.mubr.f32.vlgmr.msra.gmra.mrb[4].mxu0 %v2298_v17  ;;  %v16684_v8 = vsub.f32 %v2054_v33, %v16667_v3  ;;  %v2323_v43 = vsub.f32 %v16647_v12, %v21266_v14  ;;  %v2329_v17 = vsub.f32 %v16654_v30, %v21269_v19  ;;  %v21780_v33 = vand.u32 4294901760, %v16119_v38 }
 0x440   :  { %21776 = vst [vmem:[#allocation104_spill] sm:$0xff] %v16675_v49  ;;  %v2464_v34 = vsub.f32 %v16117_v37, %v21778_v25  ;;  %13985 = vmatpush1.bf16.msra.mxu0 %v16575_v1  ;;  %v2314_v31 = vand.u32 4294901760, %v2313_v47  ;;  %2309 = vmatprep.mubr.f32.mxu0 %v2308_v29  ;;  %v21274_v45 = vand.u32 4294901760, %v16675_v49  ;;  %v21781_v1 = vand.u32 4294901760, %v16121_v39 }
 0x441   :  { %21779 = vst [vmem:[#allocation105_spill] sm:$0xff] %v16684_v8  ;;  %13987 = vmatprep.subr.bf16.mxu0 %v13986_v15  ;;  %v2458_v25 = vsub.f32 %v16119_v38, %v21780_v33  ;;  %v2324_v50 = vand.u32 4294901760, %v2323_v43  ;;  %v21283_v14 = vand.u32 4294901760, %v16684_v8  ;;  %v21782_v12 = vand.u32 4294901760, %v16137_v58 }
 0x442   :  { %v2470_v47 = vsub.f32 %v16121_v39, %v21781_v1  ;;  %v21783_v15 = vand.u32 4294901760, %v16139_v59  ;;  %v2330_v23 = vand.u32 4294901760, %v2329_v17  ;;  %v2345_v33 = vsub.f32 %v16675_v49, %v21274_v45  ;;  %v21786_v39 = vld [vmem:[#allocation27_spill] sm:$0xff] }
 0x443   :  { %v2476_v29 = vsub.f32 %v16137_v58, %v21782_v12  ;;  %2315 = vmatmul.mubr.f32.gmra.mrb[6].mxu0 %v2314_v31  ;;  %v2339_v12 = vsub.f32 %v16684_v8, %v21283_v14  ;;  %v21784_v1 = vand.u32 4294901760, %v16573_v21  ;;  %v2453_v31 = vand.u32 4294901760, %v2452_v44 }
 0x444   :  { %v2488_v19 = vsub.f32 %v16139_v59, %v21783_v15  ;;  %13989 = vmatpush1.bf16.msra.mxu0 %v16521_v28  ;;  %2325 = vmatprep.mubr.f32.mxu0 %v2324_v50  ;;  %v2465_v17 = vand.u32 4294901760, %v2464_v34  ;;  %v2459_v59 = vand.u32 4294901760, %v2458_v25  ;;  %v2471_v45 = vand.u32 4294901760, %v2470_v47  ;;  %v21785_v50 = vld [vmem:[#allocation26_spill] sm:$0xff] }
 0x445   :  { %v13994_v15 = vpack.c.bf16 %v2441_v46, %v21784_v1  ;;  %13991 = vmatprep.subr.bf16.mxu0 %v16591_v51  ;;  %v21285_v30 = vand.u32 4294901760, %v16159_v63  ;;  %v21284_v43 = vand.u32 4294901760, %v16179_v24  ;;  %v2340_v49 = vand.u32 4294901760, %v2339_v12  ;;  %v21790_v12 = vld [vmem:[#allocation30_spill] sm:$0xff] }
 0x446   :  { %v2477_v28 = vand.u32 4294901760, %v2476_v29  ;;  %v21286_v58 = vand.u32 4294901760, %v21785_v50  ;;  %v21290_v38 = vand.u32 4294901760, %v21786_v39  ;;  %v2346_v14 = vand.u32 4294901760, %v2345_v33  ;;  %v21794_v33 = vld [vmem:[#allocation36_spill] sm:$0xff] }
 0x447   :  { %2331 = vmatmul.mubr.f32.gmra.mrb[8].mxu0 %v2330_v23  ;;  %v2489_v21 = vand.u32 4294901760, %v2488_v19  ;;  %v21787_v46 = vand.u32 4294901760, %v16155_v5  ;;  %v21788_v51 = vand.u32 4294901760, %v16157_v6  ;;  %v13996_v25 = vpack.c.bf16 %v2447_v9, %v2435_v55  ;;  %v21789_v23 = vld [vmem:[#allocation29_spill] sm:$0xff] }
 0x448   :  { %13993 = vmatpush1.bf16.msra.mxu0 %v16628_v27  ;;  %2341 = vmatprep.mubr.f32.mxu0 %v2340_v49  ;;  %v13998_v47 = vpack.c.bf16 %v2465_v17, %v2453_v31  ;;  %v2500_v29 = vsub.f32 %v16159_v63, %v21285_v30  ;;  %v2512_v19 = vsub.f32 %v16179_v24, %v21284_v43  ;;  %v21791_v17 = vld [vmem:[#allocation32_spill] sm:$0xff]  ;;  %v21793_v30 = vld [vmem:[#allocation34_spill] sm:$0xff]  ;;  %v21804_v43 = vand.u32 4294901760, %v21794_v33 }
 0x449   :  { %v2482_v34 = vsub.f32 %v16155_v5, %v21787_v46  ;;  %v2494_v44 = vsub.f32 %v16157_v6, %v21788_v51  ;;  %13995 = vmatprep.subr.bf16.mxu0 %v13994_v15  ;;  %v2506_v27 = vsub.f32 %v21785_v50, %v21286_v58  ;;  %v2518_v55 = vsub.f32 %v21786_v39, %v21290_v38  ;;  %v21792_v51 = vld [vmem:[#allocation33_spill] sm:$0xff]  ;;  %v21798_v38 = vld [vmem:[#allocation38_spill] sm:$0xff]  ;;  %v21799_v46 = vld [vmem:[#allocation40_spill] sm:$0xff] }
 0x44a   :  { %v14000_v49 = vpack.c.bf16 %v2471_v45, %v2459_v59  ;;  %v14002_v9 = vpack.c.bf16 %v2489_v21, %v2477_v28  ;;  %v2501_v8 = vand.u32 4294901760, %v2500_v29  ;;  %v2513_v50 = vand.u32 4294901760, %v2512_v19 }
 0x44b   :  { %2347 = vmatmul.mubr.f32.gmra.mrb[10].mxu0 %v2346_v14  ;;  %v2483_v15 = vand.u32 4294901760, %v2482_v34  ;;  %v2495_v31 = vand.u32 4294901760, %v2494_v44  ;;  %v21795_v14 = vand.u32 4294901760, %v21789_v23  ;;  %v21796_v45 = vand.u32 4294901760, %v21790_v12  ;;  %v21797_v44 = vld [vmem:[#allocation37_spill] sm:$0xff] }
 0x44c   :  { %13997 = vmatpush1.bf16.msra.mxu0 %v13996_v25  ;;  %2738 = vmatprep.mubr.f32.mxu0 %v16566_v60  ;;  %v2507_v21 = vand.u32 4294901760, %v2506_v27  ;;  %v2519_v34 = vand.u32 4294901760, %v2518_v55  ;;  %v21296_v25 = vand.u32 4294901760, %v21797_v44  ;;  %v21801_v19 = vand.u32 4294901760, %v21791_v17 }
 0x44d   :  { %13999 = vmatprep.subr.bf16.mxu0 %v13998_v47  ;;  %v2524_v59 = vsub.f32 %v21789_v23, %v21795_v14  ;;  %v2536_v28 = vsub.f32 %v21790_v12, %v21796_v45  ;;  %v14004_v1 = vpack.c.bf16 %v2495_v31, %v2483_v15  ;;  %v21800_v47 = vld [vmem:[#allocation41_spill] sm:$0xff]  ;;  %v21802_v60 = vand.u32 4294901760, %v21792_v51  ;;  %v21812_v23 = vld [vmem:[#allocation47_spill] sm:$0xff] }
 0x44e   :  { %v2530_v14 = vsub.f32 %v21791_v17, %v21801_v19  ;;  %v21803_v27 = vand.u32 4294901760, %v21793_v30  ;;  %v2560_v15 = vsub.f32 %v21794_v33, %v21804_v43  ;;  %v14006_v31 = vpack.c.bf16 %v2513_v50, %v2501_v8  ;;  %v21808_v8 = vld [vmem:[#allocation43_spill] sm:$0xff]  ;;  %v21811_v33 = vld [vmem:[#allocation46_spill] sm:$0xff] }
 0x44f   :  { %v2542_v45 = vsub.f32 %v21792_v51, %v21802_v60  ;;  %v2525_v29 = vand.u32 4294901760, %v2524_v59  ;;  %v14008_v58 = vpack.c.bf16 %v2519_v34, %v2507_v21  ;;  %v2554_v19 = vsub.f32 %v21797_v44, %v21296_v25 }
 0x450   :  { %14001 = vmatpush1.bf16.msra.mxu0 %v14000_v49  ;;  %v2548_v55 = vsub.f32 %v21793_v30, %v21803_v27  ;;  %v2537_v49 = vand.u32 4294901760, %v2536_v28  ;;  %v21805_v17 = vand.u32 4294901760, %v21798_v38  ;;  %v21806_v51 = vand.u32 4294901760, %v21799_v46 }
 0x451   :  { %14003 = vmatprep.subr.bf16.mxu0 %v14002_v9  ;;  %v21807_v30 = vand.u32 4294901760, %v21800_v47  ;;  %v21809_v9 = vld [vmem:[#allocation44_spill] sm:$0xff]  ;;  %v2531_v28 = vand.u32 4294901760, %v2530_v14  ;;  %v2543_v21 = vand.u32 4294901760, %v2542_v45  ;;  %v2561_v25 = vand.u32 4294901760, %v2560_v15 }
 0x452   :  { %v2566_v60 = vsub.f32 %v21798_v38, %v21805_v17  ;;  %v2572_v27 = vsub.f32 %v21799_v46, %v21806_v51  ;;  %v21309_v59 = vand.u32 4294901760, %v21809_v9  ;;  %v2549_v34 = vand.u32 4294901760, %v2548_v55  ;;  %v21810_v17 = vld [vmem:[#allocation45_spill] sm:$0xff] }
 0x453   :  { %v2584_v43 = vsub.f32 %v21800_v47, %v21807_v30  ;;  %v14010_v44 = vpack.c.bf16 %v2537_v49, %v2525_v29  ;;  %v21308_v38 = vand.u32 4294901760, %v21810_v17  ;;  %v21307_v12 = vand.u32 4294901760, %v21811_v33  ;;  %v21813_v30 = vld [vmem:[#allocation48_spill] sm:$0xff]  ;;  %v21815_v49 = vld [vmem:[#allocation51_spill] sm:$0xff] }
 0x454   :  { %14005 = vmatpush1.bf16.msra.mxu0 %v14004_v1  ;;  %v2555_v51 = vand.u32 4294901760, %v2554_v19  ;;  %v2567_v46 = vand.u32 4294901760, %v2566_v60  ;;  %v21312_v39 = vand.u32 4294901760, %v21812_v23  ;;  %v21314_v47 = vand.u32 4294901760, %v21813_v30  ;;  %v21816_v60 = vld [vmem:[#allocation52_spill] sm:$0xff] }
 0x455   :  { %14007 = vmatprep.subr.bf16.mxu0 %v14006_v31  ;;  %v2573_v50 = vand.u32 4294901760, %v2572_v27  ;;  %v2585_v24 = vand.u32 4294901760, %v2584_v43  ;;  %v21814_v1 = vand.u32 4294901760, %v21808_v8  ;;  %v2590_v29 = vsub.f32 %v21809_v9, %v21309_v59  ;;  %v21819_v59 = vld [vmem:[#allocation55_spill] sm:$0xff]  ;;  %v21820_v27 = vld [vmem:[#allocation56_spill] sm:$0xff] }
 0x456   :  { %v14012_v45 = vpack.c.bf16 %v2543_v21, %v2531_v28  ;;  %v14014_v55 = vpack.c.bf16 %v2561_v25, %v2549_v34  ;;  %v2596_v15 = vsub.f32 %v21810_v17, %v21308_v38  ;;  %v2608_v31 = vsub.f32 %v21811_v33, %v21307_v12  ;;  %v21817_v34 = vld [vmem:[#allocation53_spill] sm:$0xff]  ;;  %v21818_v12 = vld [vmem:[#allocation54_spill] sm:$0xff] }
 0x457   :  { %v2578_v14 = vsub.f32 %v21808_v8, %v21814_v1  ;;  %v2602_v43 = vsub.f32 %v21812_v23, %v21312_v39  ;;  %v14018_v25 = vpack.c.bf16 %v2585_v24, %v2573_v50  ;;  %v2591_v21 = vand.u32 4294901760, %v2590_v29  ;;  %v21825_v1 = vld [vmem:[#allocation61_spill] sm:$0xff] }
 0x458   :  { %14009 = vmatpush1.bf16.msra.mxu0 %v14008_v58  ;;  %v2614_v58 = vsub.f32 %v21813_v30, %v21314_v47  ;;  %v2597_v17 = vand.u32 4294901760, %v2596_v15  ;;  %v2609_v39 = vand.u32 4294901760, %v2608_v31  ;;  %v21821_v23 = vand.u32 4294901760, %v21815_v49 }
 0x459   :  { %14011 = vmatprep.subr.bf16.mxu0 %v14010_v44  ;;  %v14016_v44 = vpack.c.bf16 %v2567_v46, %v2555_v51  ;;  %v2579_v28 = vand.u32 4294901760, %v2578_v14  ;;  %v21822_v24 = vand.u32 4294901760, %v21816_v60  ;;  %v2603_v50 = vand.u32 4294901760, %v2602_v43  ;;  %v21823_v14 = vld [vmem:[#allocation57_spill] sm:$0xff] }
 0x45a   :  { %v2620_v47 = vsub.f32 %v21815_v49, %v21821_v23  ;;  %v2615_v51 = vand.u32 4294901760, %v2614_v58  ;;  %v21319_v29 = vand.u32 4294901760, %v21823_v14  ;;  %v21827_v31 = vand.u32 4294901760, %v21817_v34 }
 0x45b   :  { %v2632_v46 = vsub.f32 %v21816_v60, %v21822_v24  ;;  %v14020_v19 = vpack.c.bf16 %v2591_v21, %v2579_v28  ;;  %v21828_v49 = vand.u32 4294901760, %v21818_v12  ;;  %v21829_v43 = vand.u32 4294901760, %v21819_v59 }
 0x45c   :  { %14013 = vmatpush1.bf16.msra.mxu0 %v14012_v45  ;;  %v21824_v45 = vld [vmem:[#allocation58_spill] sm:$0xff]  ;;  %v2626_v23 = vsub.f32 %v21817_v34, %v21827_v31  ;;  %v21830_v38 = vand.u32 4294901760, %v21820_v27  ;;  %v14022_v21 = vpack.c.bf16 %v2609_v39, %v2597_v17  ;;  %v2621_v15 = vand.u32 4294901760, %v2620_v47 }
 0x45d   :  { %14015 = vmatprep.subr.bf16.mxu0 %v14014_v55  ;;  %v21826_v55 = vld [vmem:[#allocation62_spill] sm:$0xff]  ;;  %v2638_v24 = vsub.f32 %v21818_v12, %v21828_v49  ;;  %v2644_v58 = vsub.f32 %v21819_v59, %v21829_v43  ;;  %v14024_v33 = vpack.c.bf16 %v2615_v51, %v2603_v50  ;;  %v2650_v31 = vsub.f32 %v21823_v14, %v21319_v29 }
 0x45e   :  { %v2656_v28 = vsub.f32 %v21820_v27, %v21830_v38  ;;  %v21831_v34 = vand.u32 4294901760, %v21824_v45  ;;  %v21832_v12 = vand.u32 4294901760, %v21825_v1  ;;  %v21833_v59 = vand.u32 4294901760, %v21826_v55 }
 0x45f   :  { %v21332_v39 = vand.u32 4294901760, %v16470_v61  ;;  %v21331_v47 = vand.u32 4294901760, %v16475_v7  ;;  %v2627_v17 = vand.u32 4294901760, %v2626_v23  ;;  %v21323_v29 = vand.u32 4294901760, %v16481_v48 }
 0x460   :  { %14017 = vmatpush1.bf16.msra.mxu0 %v14016_v44  ;;  %v2633_v44 = vand.u32 4294901760, %v2632_v46  ;;  %v2662_v49 = vsub.f32 %v21824_v45, %v21831_v34  ;;  %v2668_v43 = vsub.f32 %v21825_v1, %v21832_v12  ;;  %v2680_v38 = vsub.f32 %v21826_v55, %v21833_v59 }
 0x461   :  { %14019 = vmatprep.subr.bf16.mxu0 %v14018_v25  ;;  %v2639_v25 = vand.u32 4294901760, %v2638_v24  ;;  %v2645_v46 = vand.u32 4294901760, %v2644_v58  ;;  %v2657_v50 = vand.u32 4294901760, %v2656_v28  ;;  %v21330_v34 = vand.u32 4294901760, %v16479_v42 }
 0x462   :  { %v14026_v51 = vpack.c.bf16 %v2633_v44, %v2621_v15  ;;  %v2651_v12 = vand.u32 4294901760, %v2650_v31  ;;  %v2663_v1 = vand.u32 4294901760, %v2662_v49  ;;  %v2669_v45 = vand.u32 4294901760, %v2668_v43 }
 0x463   :  { %v2681_v14 = vand.u32 4294901760, %v2680_v38  ;;  %v2674_v59 = vsub.f32 %v16470_v61, %v21332_v39  ;;  %v14028_v23 = vpack.c.bf16 %v2639_v25, %v2627_v17  ;;  %v14030_v24 = vpack.c.bf16 %v2657_v50, %v2645_v46  ;;  %v21855_v39 = vld [vmem:[#allocation36_spill] sm:$0xff] }
 0x464   :  { %14021 = vmatpush1.bf16.msra.mxu0 %v14020_v19  ;;  %v2686_v19 = vsub.f32 %v16475_v7, %v21331_v47  ;;  %v21329_v15 = vand.u32 4294901760, %v16483_v26  ;;  %v21325_v58 = vand.u32 4294901760, %v16489_v32  ;;  %v2692_v28 = vsub.f32 %v16479_v42, %v21330_v34  ;;  %v21853_v34 = vld [vmem:[#allocation33_spill] sm:$0xff] }
 0x465   :  { %14023 = vmatprep.subr.bf16.mxu0 %v14022_v21  ;;  %v2704_v21 = vsub.f32 %v16481_v48, %v21323_v29  ;;  %v21324_v44 = vand.u32 4294901760, %v16493_v16  ;;  %v21326_v31 = vand.u32 4294901760, %v16495_v4  ;;  %v14034_v49 = vpack.c.bf16 %v2681_v14, %v2669_v45 }
 0x466   :  { %v2675_v43 = vand.u32 4294901760, %v2674_v59  ;;  %v2687_v38 = vand.u32 4294901760, %v2686_v19  ;;  %v2698_v17 = vsub.f32 %v16483_v26, %v21329_v15  ;;  %v2710_v25 = vsub.f32 %v16489_v32, %v21325_v58 }
 0x467   :  { %v21328_v46 = vand.u32 4294901760, %v16499_v0  ;;  %v21327_v50 = vand.u32 4294901760, %v16501_v40  ;;  %v2705_v29 = vand.u32 4294901760, %v2704_v21  ;;  %v2728_v14 = vsub.f32 %v16495_v4, %v21326_v31 }
 0x468   :  { %14025 = vmatpush1.bf16.msra.mxu0 %v14024_v33  ;;  %v14032_v33 = vpack.c.bf16 %v2663_v1, %v2651_v12  ;;  %v2716_v1 = vsub.f32 %v16493_v16, %v21324_v44  ;;  %v14036_v45 = vpack.c.bf16 %v2687_v38, %v2675_v43  ;;  %v2699_v12 = vand.u32 4294901760, %v2698_v17  ;;  %v21834_v38 = vld [vmem:[#allocation6_spill] sm:$0xff]  ;;  %v21835_v17 = vld [vmem:[#allocation7_spill] sm:$0xff] }
 0x469   :  { %14027 = vmatprep.subr.bf16.mxu0 %v14026_v51  ;;  %v2693_v51 = vand.u32 4294901760, %v2692_v28  ;;  %v2711_v59 = vand.u32 4294901760, %v2710_v25  ;;  %v2722_v19 = vsub.f32 %v16499_v0, %v21328_v46  ;;  %v2729_v21 = vand.u32 4294901760, %v2728_v14  ;;  %v21840_v14 = vld [vmem:[#allocation16_spill] sm:$0xff]  ;;  %v21851_v46 = vld [vmem:[#allocation30_spill] sm:$0xff] }
 0x46a   :  { %v2717_v28 = vand.u32 4294901760, %v2716_v1  ;;  %v14046_v25 = vpack.c.bf16 %v21835_v17, %v21834_v38 }
 0x46b   :  { %v14040_v44 = vpack.c.bf16 %v2711_v59, %v2699_v12  ;;  %v2723_v58 = vand.u32 4294901760, %v2722_v19  ;;  %v14062_v59 = vpack.c.bf16 %v16117_v37, %v16106_v57  ;;  %v21842_v19 = vld [vmem:[#allocation89_spill] sm:$0xff] }
 0x46c   :  { %14029 = vmatpush1.bf16.msra.mxu0 %v14028_v23  ;;  %v2734_v23 = vsub.f32 %v16501_v40, %v21327_v50  ;;  %v14048_v50 = vpack.c.bf16 %v16032_v54, %v16019_v20 }
 0x46d   :  { %14031 = vmatprep.subr.bf16.mxu0 %v14030_v24  ;;  %v14038_v24 = vpack.c.bf16 %v2705_v29, %v2693_v51  ;;  %v14050_v29 = vpack.c.bf16 %v16042_v62, %v16036_v56  ;;  %v21838_v51 = vld [vmem:[#allocation15_spill] sm:$0xff] }
 0x46e   :  { %v2735_v31 = vand.u32 4294901760, %v2734_v23  ;;  %v21843_v23 = vld [vmem:[#allocation18_spill] sm:$0xff] }
 0x470   :  { %14033 = vmatpush1.bf16.msra.mxu0 %v14032_v33  ;;  %v14042_v33 = vpack.c.bf16 %v2729_v21, %v2717_v28  ;;  %v14044_v43 = vpack.c.bf16 %v2735_v31, %v2723_v58  ;;  %v14054_v58 = vpack.c.bf16 %v16074_v18, %v16061_v2  ;;  %v14056_v31 = vpack.c.bf16 %v16083_v13, %v16078_v22  ;;  %v21845_v21 = vld [vmem:[#allocation22_spill] sm:$0xff] }
 0x471   :  { %14035 = vmatprep.subr.bf16.mxu0 %v14034_v49  ;;  %v21837_v49 = vld [vmem:[#allocation13_spill] sm:$0xff] }
 0x472   :  { %v14058_v1 = vpack.c.bf16 %v21838_v51, %v21837_v49 }
 0x474   :  { %14037 = vmatpush1.bf16.msra.mxu0 %v14036_v45  ;;  %v21841_v45 = vld [vmem:[#allocation17_spill] sm:$0xff] }
 0x475   :  { %14039 = vmatprep.subr.bf16.mxu0 %v14038_v24  ;;  %v14060_v12 = vpack.c.bf16 %v21841_v45, %v21840_v14  ;;  %v21844_v24 = vld [vmem:[#allocation19_spill] sm:$0xff] }
 0x476   :  { %v14064_v28 = vpack.c.bf16 %v21844_v24, %v21843_v23 }
 0x478   :  { %14041 = vmatpush1.bf16.msra.mxu0 %v14040_v44  ;;  %v21836_v44 = vpack.c.bf16 %v16059_v11, %v16057_v10 }
 0x479   :  { %14043 = vmatprep.subr.bf16.mxu0 %v14042_v33  ;;  %v21846_v33 = vld [vmem:[#allocation23_spill] sm:$0xff] }
 0x47c   :  { %14045 = vmatpush1.bf16.msra.mxu0 %v14044_v43  ;;  %v14066_v43 = vpack.c.bf16 %v21846_v33, %v21845_v21 }
 0x47d   :  { %14047 = vmatprep.subr.bf16.mxu0 %v14046_v25  ;;  %v14068_v25 = vpack.c.bf16 %v16157_v6, %v16155_v5 }
 0x47f   :  { %2740 = vmatmul.mubr.f32.vlgmr.msra.gmra.mrb[4].mxu0 %v16568_v36 }
 0x480   :  { %2746 = vmatprep.mubr.f32.mxu0 %v16594_v35  ;;  %14049 = vmatpush1.bf16.msra.mxu0 %v14048_v50  ;;  %v21839_v50 = vld [vmem:[#allocation98_spill] sm:$0xff] }
 0x481   :  { %14051 = vmatprep.subr.bf16.mxu0 %v14050_v29  ;;  %v21847_v29 = vld [vmem:[#allocation25_spill] sm:$0xff]  ;;  %v21861_v35 = vld [vmem:[#allocation46_spill] sm:$0xff] }
 0x483   :  { %2748 = vmatmul.mubr.f32.gmra.mrb[6].mxu0 %v16598_v41 }
 0x484   :  { %2754 = vmatprep.mubr.f32.mxu0 %v16630_v53  ;;  %14053 = vmatpush1.bf16.msra.mxu0 %v21836_v44  ;;  %v21848_v44 = vld [vmem:[#allocation26_spill] sm:$0xff]  ;;  %v21859_v53 = vld [vmem:[#allocation41_spill] sm:$0xff] }
 0x485   :  { %14055 = vmatprep.subr.bf16.mxu0 %v14054_v58  ;;  %v14070_v58 = vpack.c.bf16 %v21847_v29, %v16159_v63 }
 0x487   :  { %2756 = vmatmul.mubr.f32.gmra.mrb[8].mxu0 %v21839_v50 }
 0x488   :  { %2762 = vmatprep.mubr.f32.mxu0 %v16667_v3  ;;  %14057 = vmatpush1.bf16.msra.mxu0 %v14056_v31  ;;  %v21849_v31 = vld [vmem:[#allocation27_spill] sm:$0xff]  ;;  %v21857_v3 = vld [vmem:[#allocation38_spill] sm:$0xff] }
 0x489   :  { %14059 = vmatprep.subr.bf16.mxu0 %v14058_v1  ;;  %v14072_v1 = vpack.c.bf16 %v21849_v31, %v21848_v44 }
 0x48b   :  { %2764 = vmatmul.mubr.f32.gmra.mrb[10].mxu0 %v16661_v52 }
 0x48c   :  { %14061 = vmatpush1.bf16.msra.mxu0 %v14060_v12  ;;  %2964 = vmatprep.mubr.f32.mxu0 %v21842_v19  ;;  %v21850_v12 = vld [vmem:[#allocation29_spill] sm:$0xff] }
 0x48d   :  { %14063 = vmatprep.subr.bf16.mxu0 %v14062_v59  ;;  %v14074_v15 = vpack.c.bf16 %v21851_v46, %v21850_v12  ;;  %v21852_v59 = vld [vmem:[#allocation32_spill] sm:$0xff] }
 0x48e   :  { %v14076_v47 = vpack.c.bf16 %v21853_v34, %v21852_v59 }
 0x490   :  { %14065 = vmatpush1.bf16.msra.mxu0 %v14064_v28  ;;  %v21854_v28 = vld [vmem:[#allocation34_spill] sm:$0xff] }
 0x491   :  { %14067 = vmatprep.subr.bf16.mxu0 %v14066_v43  ;;  %v14078_v52 = vpack.c.bf16 %v21855_v39, %v21854_v28  ;;  %v21856_v43 = vld [vmem:[#allocation37_spill] sm:$0xff] }
 0x492   :  { %v14080_v50 = vpack.c.bf16 %v21857_v3, %v21856_v43  ;;  %v21865_v43 = vld [vmem:[#allocation54_spill] sm:$0xff] }
 0x494   :  { %14069 = vmatpush1.bf16.msra.mxu0 %v14068_v25  ;;  %v21858_v25 = vld [vmem:[#allocation40_spill] sm:$0xff] }
 0x495   :  { %14071 = vmatprep.subr.bf16.mxu0 %v14070_v58  ;;  %v14082_v41 = vpack.c.bf16 %v21859_v53, %v21858_v25  ;;  %v14084_v58 = vpack.c.bf16 %v21809_v9, %v21808_v8  ;;  %v21868_v8 = vld [vmem:[#allocation58_spill] sm:$0xff] }
 0x498   :  { %14073 = vmatpush1.bf16.msra.mxu0 %v14072_v1  ;;  %v21860_v1 = vld [vmem:[#allocation45_spill] sm:$0xff] }
 0x499   :  { %14075 = vmatprep.subr.bf16.mxu0 %v14074_v15  ;;  %v14086_v36 = vpack.c.bf16 %v21861_v35, %v21860_v1  ;;  %v21862_v15 = vld [vmem:[#allocation47_spill] sm:$0xff] }
 0x49a   :  { %v14088_v39 = vpack.c.bf16 %v21813_v30, %v21862_v15 }
 0x49c   :  { %14077 = vmatpush1.bf16.msra.mxu0 %v14076_v47  ;;  %v21863_v47 = vld [vmem:[#allocation51_spill] sm:$0xff] }
 0x49d   :  { %14079 = vmatprep.subr.bf16.mxu0 %v14078_v52  ;;  %v14090_v3 = vpack.c.bf16 %v21816_v60, %v21863_v47  ;;  %v21864_v52 = vld [vmem:[#allocation53_spill] sm:$0xff] }
 0x49e   :  { %v14092_v53 = vpack.c.bf16 %v21865_v43, %v21864_v52 }
 0x4a0   :  { %14081 = vmatpush1.bf16.msra.mxu0 %v14080_v50  ;;  %v21866_v50 = vld [vmem:[#allocation55_spill] sm:$0xff] }
 0x4a1   :  { %14083 = vmatprep.subr.bf16.mxu0 %v14082_v41  ;;  %v14094_v9 = vpack.c.bf16 %v21820_v27, %v21866_v50  ;;  %v21867_v41 = vld [vmem:[#allocation57_spill] sm:$0xff] }
 0x4a2   :  { %v14096_v35 = vpack.c.bf16 %v21868_v8, %v21867_v41 }
 0x4a4   :  { %14085 = vmatpush1.bf16.msra.mxu0 %v14084_v58  ;;  %v21869_v58 = vld [vmem:[#allocation61_spill] sm:$0xff] }
 0x4a5   :  { %14087 = vmatprep.subr.bf16.mxu0 %v14086_v36  ;;  %v14098_v30 = vpack.c.bf16 %v21826_v55, %v21869_v58  ;;  %v14100_v36 = vpack.c.bf16 %v16475_v7, %v16470_v61  ;;  %v21872_v7 = vld [vmem:[#allocation94_spill] sm:$0xff]  ;;  %v21893_v61 = vld [vmem:[#allocation49_spill] sm:$0xff] }
 0x4a8   :  { %14089 = vmatpush1.bf16.msra.mxu0 %v14088_v39  ;;  %v14102_v39 = vpack.c.bf16 %v16481_v48, %v16479_v42  ;;  %v21874_v48 = vld [vmem:[#allocation9_spill] sm:$0xff]  ;;  %v21890_v42 = vld [vmem:[#allocation35_spill] sm:$0xff] }
 0x4a9   :  { %14091 = vmatprep.subr.bf16.mxu0 %v14090_v3  ;;  %v14104_v3 = vpack.c.bf16 %v16489_v32, %v16483_v26  ;;  %v21876_v32 = vld [vmem:[#allocation99_spill] sm:$0xff] }
 0x4aa   :  { %v21889_v26 = vld [vmem:[#allocation31_spill] sm:$0xff] }
 0x4ac   :  { %14093 = vmatpush1.bf16.msra.mxu0 %v14092_v53  ;;  %v14106_v53 = vpack.c.bf16 %v16495_v4, %v16493_v16  ;;  %v21878_v4 = vld [vmem:[#allocation11_spill] sm:$0xff]  ;;  %v21886_v16 = vld [vmem:[#allocation21_spill] sm:$0xff] }
 0x4ad   :  { %14095 = vmatprep.subr.bf16.mxu0 %v14094_v9  ;;  %v14108_v9 = vpack.c.bf16 %v16501_v40, %v16499_v0  ;;  %v21882_v40 = vld [vmem:[#allocation14_spill] sm:$0xff]  ;;  %v21883_v0 = vld [vmem:[#allocation104_spill] sm:$0xff] }
 0x4b0   :  { %14097 = vmatpush1.bf16.msra.mxu0 %v14096_v35  ;;  %v21870_v35 = vld [vmem:[#allocation5_spill] sm:$0xff] }
 0x4b1   :  { %14099 = vmatprep.subr.bf16.mxu0 %v14098_v30  ;;  %v21871_v30 = vld [vmem:[#allocation90_spill] sm:$0xff] }
 0x4b4   :  { %14101 = vmatpush1.bf16.msra.mxu0 %v14100_v36  ;;  %v21873_v36 = vld [vmem:[#allocation8_spill] sm:$0xff] }
 0x4b5   :  { %14103 = vmatprep.subr.bf16.mxu0 %v14102_v39  ;;  %v21875_v39 = vld [vmem:[#allocation96_spill] sm:$0xff] }
 0x4b8   :  { %14105 = vmatpush1.bf16.msra.mxu0 %v14104_v3  ;;  %v21877_v3 = vld [vmem:[#allocation10_spill] sm:$0xff] }
 0x4b9   :  { %14107 = vmatprep.subr.bf16.mxu0 %v14106_v53  ;;  %v21879_v53 = vld [vmem:[#allocation101_spill] sm:$0xff] }
 0x4bc   :  { %14109 = vmatpush1.bf16.msra.mxu0 %v14108_v9  ;;  %v21880_v9 = vld [vmem:[#allocation105_spill] sm:$0xff] }
 0x4bd   :  { %14111 = vmatprep.subr.bf16.mxu0 %v21870_v35  ;;  %v21881_v35 = vld [vmem:[#allocation12_spill] sm:$0xff] }
 0x4bf   :  { %2967 = vmatmul.mubr.f32.vlgmr.msra.gmra.mrb[4].mxu0 %v21871_v30 }
 0x4c0   :  { %2974 = vmatprep.mubr.f32.mxu0 %v21872_v7  ;;  %14113 = vmatpush1.bf16.msra.mxu0 %v21873_v36  ;;  %v21884_v36 = vld [vmem:[#allocation20_spill] sm:$0xff] }
 0x4c1   :  { %14115 = vmatprep.subr.bf16.mxu0 %v21874_v48  ;;  %v21885_v48 = vand.u32 4294901760, %v21842_v19  ;;  %v21895_v19 = vld [vmem:[#allocation59_spill] sm:$0xff] }
 0x4c3   :  { %2977 = vmatmul.mubr.f32.gmra.mrb[6].mxu0 %v21875_v39 }
 0x4c4   :  { %2984 = vmatprep.mubr.f32.mxu0 %v21876_v32  ;;  %14117 = vmatpush1.bf16.msra.mxu0 %v21877_v3  ;;  %v21887_v3 = vld [vmem:[#allocation24_spill] sm:$0xff] }
 0x4c5   :  { %14119 = vmatprep.subr.bf16.mxu0 %v21878_v4  ;;  %v21888_v4 = vld [vmem:[#allocation28_spill] sm:$0xff] }
 0x4c7   :  { %2987 = vmatmul.mubr.f32.gmra.mrb[8].mxu0 %v21879_v53 }
 0x4c8   :  { %2994 = vmatprep.mubr.f32.mxu0 %v21880_v9  ;;  %14121 = vmatpush1.bf16.msra.mxu0 %v21881_v35  ;;  %v21891_v35 = vld [vmem:[#allocation39_spill] sm:$0xff] }
 0x4c9   :  { %14123 = vmatprep.subr.bf16.mxu0 %v21882_v40  ;;  %v21892_v40 = vld [vmem:[#allocation42_spill] sm:$0xff] }
 0x4cb   :  { %2997 = vmatmul.mubr.f32.gmra.mrb[10].mxu0 %v21883_v0 }
 0x4cc   :  { %14125 = vmatpush1.bf16.msra.mxu0 %v21884_v36  ;;  %3134 = vmatprep.mubr.f32.mxu0 %v21885_v48  ;;  %v21894_v36 = vld [vmem:[#allocation50_spill] sm:$0xff]  ;;  %v21896_v48 = vld [vmem:[#allocation60_spill] sm:$0xff] }
 0x4cd   :  { %14127 = vmatprep.subr.bf16.mxu0 %v21886_v16  ;;  %v21897_v16 = vld [vmem:[#allocation63_spill] sm:$0xff] }
 0x4d0   :  { %14129 = vmatpush1.bf16.msra.mxu0 %v21887_v3  ;;  %v21898_v3 = vld [vmem:[#allocation64_spill] sm:$0xff] }
 0x4d1   :  { %14131 = vmatprep.subr.bf16.mxu0 %v21888_v4  ;;  %v21899_v4 = vld [vmem:[#allocation65_spill] sm:$0xff] }
 0x4d4   :  { %14133 = vmatpush1.bf16.msra.mxu0 %v21889_v26  ;;  %v21900_v26 = vld [vmem:[#allocation66_spill] sm:$0xff] }
 0x4d5   :  { %14135 = vmatprep.subr.bf16.mxu0 %v21890_v42  ;;  %v21901_v42 = vld [vmem:[#allocation67_spill] sm:$0xff] }
 0x4d8   :  { %14137 = vmatpush1.bf16.msra.mxu0 %v21891_v35  ;;  %v21902_v35 = vld [vmem:[#allocation68_spill] sm:$0xff] }
 0x4d9   :  { %14139 = vmatprep.subr.bf16.mxu0 %v21892_v40  ;;  %v21903_v40 = vld [vmem:[#allocation69_spill] sm:$0xff] }
 0x4dc   :  { %14141 = vmatpush1.bf16.msra.mxu0 %v21893_v61  ;;  %v21904_v61 = vld [vmem:[#allocation70_spill] sm:$0xff] }
 0x4dd   :  { %14143 = vmatprep.subr.bf16.mxu0 %v21894_v36  ;;  %v21905_v36 = vld [vmem:[#allocation71_spill] sm:$0xff] }
 0x4e0   :  { %14145 = vmatpush1.bf16.msra.mxu0 %v21895_v19  ;;  %v21906_v19 = vld [vmem:[#allocation72_spill] sm:$0xff] }
 0x4e1   :  { %14147 = vmatprep.subr.bf16.mxu0 %v21896_v48  ;;  %v21907_v48 = vld [vmem:[#allocation73_spill] sm:$0xff] }
 0x4e4   :  { %14149 = vmatpush1.bf16.msra.mxu0 %v21897_v16  ;;  %v21908_v16 = vld [vmem:[#allocation74_spill] sm:$0xff] }
 0x4e5   :  { %14151 = vmatprep.subr.bf16.mxu0 %v21898_v3 }
 0x4e8   :  { %14153 = vmatpush1.bf16.msra.mxu0 %v21899_v4  ;;  %v21909_v4 = vand.u32 4294901760, %v21834_v38  ;;  %v21917_v38 = vand.u32 4294901760, %v21872_v7 }
 0x4e9   :  { %14155 = vmatprep.subr.bf16.mxu0 %v21900_v26  ;;  %v21910_v26 = vand.u32 4294901760, %v21835_v17 }
 0x4eb   :  { %v14174_v3 = vpack.c.bf16 %v21910_v26, %v21909_v4  ;;  %v21918_v26 = vand.u32 4294901760, %v16057_v10  ;;  %v21925_v10 = vand.u32 4294901760, %v16083_v13  ;;  %v21932_v13 = vand.u32 4294901760, %v16106_v57 }
 0x4ec   :  { %14157 = vmatpush1.bf16.msra.mxu0 %v21901_v42  ;;  %v21911_v42 = vld [vmem:[#allocation75_spill] sm:$0xff] }
 0x4ed   :  { %14159 = vmatprep.subr.bf16.mxu0 %v21902_v35  ;;  %v21912_v35 = vand.u32 4294901760, %v16019_v20  ;;  %v21919_v20 = vand.u32 4294901760, %v16059_v11  ;;  %v21926_v11 = vand.u32 4294901760, %v21837_v49  ;;  %v21933_v49 = vand.u32 4294901760, %v16117_v37 }
 0x4ee   :  { %v21940_v37 = vand.u32 4294901760, %v16155_v5  ;;  %v21947_v5 = vand.u32 4294901760, %v21851_v46  ;;  %v21957_v46 = vand.u32 4294901760, %v21858_v25 }
 0x4ef   :  { %v14180_v4 = vpack.c.bf16 %v21919_v20, %v21918_v26 }
 0x4f0   :  { %14161 = vmatpush1.bf16.msra.mxu0 %v21903_v40  ;;  %v21913_v40 = vand.u32 4294901760, %v16032_v54  ;;  %v21920_v54 = vand.u32 4294901760, %v16061_v2  ;;  %v21927_v2 = vand.u32 4294901760, %v21838_v51  ;;  %v21934_v51 = vand.u32 4294901760, %v21883_v0 }
 0x4f1   :  { %14163 = vmatprep.subr.bf16.mxu0 %v21904_v61  ;;  %v21941_v0 = vand.u32 4294901760, %v16157_v6  ;;  %v21948_v6 = vand.u32 4294901760, %v21852_v59 }
 0x4f2   :  { %v14176_v61 = vpack.c.bf16 %v21913_v40, %v21912_v35  ;;  %v14186_v17 = vpack.c.bf16 %v21927_v2, %v21926_v11  ;;  %v21929_v35 = vand.u32 4294901760, %v21880_v9  ;;  %v21939_v9 = vand.u32 4294901760, %v21846_v33  ;;  %v21962_v11 = vld [vmem:[#allocation44_spill] sm:$0xff] }
 0x4f3   :  { %v21946_v33 = vand.u32 4294901760, %v21850_v12 }
 0x4f4   :  { %14165 = vmatpush1.bf16.msra.mxu0 %v21905_v36  ;;  %v21914_v36 = vand.u32 4294901760, %v16036_v56  ;;  %v21921_v56 = vand.u32 4294901760, %v16074_v18  ;;  %v21928_v18 = vand.u32 4294901760, %v21879_v53  ;;  %v21937_v53 = vand.u32 4294901760, %v21844_v24 }
 0x4f5   :  { %14167 = vmatprep.subr.bf16.mxu0 %v21906_v19  ;;  %v21915_v19 = vand.u32 4294901760, %v16042_v62  ;;  %v21922_v62 = vand.u32 4294901760, %v21875_v39  ;;  %v21935_v39 = vld [vmem:[#allocation87_spill] sm:$0xff]  ;;  %v21944_v24 = vand.u32 4294901760, %v21848_v44  ;;  %v14202_v20 = vpack.c.bf16 %v21947_v5, %v21946_v33 }
 0x4f6   :  { %v14182_v40 = vpack.c.bf16 %v21921_v56, %v21920_v54  ;;  %v21951_v54 = vld [vmem:[#allocation36_spill] sm:$0xff] }
 0x4f7   :  { %v21952_v44 = vand.u32 4294901760, %v21951_v54  ;;  %v21998_v54 = vld [vmem:[#allocation85_spill] sm:$0xff] }
 0x4f8   :  { %14169 = vmatpush1.bf16.msra.mxu0 %v21907_v48  ;;  %v14178_v48 = vpack.c.bf16 %v21915_v19, %v21914_v36  ;;  %v14190_v36 = vpack.c.bf16 %v21933_v49, %v21932_v13  ;;  %v14196_v19 = vpack.c.bf16 %v21941_v0, %v21940_v37  ;;  %v21970_v49 = vand.u32 4294901760, %v21863_v47 }
 0x4f9   :  { %14171 = vmatprep.subr.bf16.mxu0 %v21908_v16  ;;  %v21916_v16 = vand.u32 4294901760, %v21871_v30  ;;  %v21977_v47 = vand.u32 4294901760, %v21868_v8  ;;  %v21988_v8 = vld [vmem:[#allocation80_spill] sm:$0xff] }
 0x4fc   :  { %14173 = vmatpush1.bf16.msra.mxu0 %v21911_v42 }
 0x4fd   :  { %14175 = vmatprep.subr.bf16.mxu0 %v14174_v3  ;;  %v21936_v3 = vand.u32 4294901760, %v21843_v23  ;;  %v21943_v23 = vand.u32 4294901760, %v21847_v29  ;;  %v21950_v29 = vand.u32 4294901760, %v21854_v28  ;;  %v21963_v28 = vand.u32 4294901760, %v21962_v11  ;;  %v17171_v11 = vld [vmem:[%s21122_s5 + $0x210] sm:$0xff] }
 0x4ff   :  { %3138 = vmatmul.mubr.f32.vlgmr.msra.gmra.mrb[4].mxu0 %v21916_v16  ;;  %v21923_v16 = vand.u32 4294901760, %v21876_v32  ;;  %v21930_v32 = vand.u32 4294901760, %v21840_v14  ;;  %v14192_v14 = vpack.c.bf16 %v21937_v53, %v21936_v3  ;;  %v14206_v56 = vpack.c.bf16 %v21952_v44, %v21950_v29 }
 0x500   :  { %3146 = vmatprep.mubr.f32.mxu0 %v21917_v38  ;;  %14177 = vmatpush1.bf16.msra.mxu0 %v14176_v61  ;;  %v21924_v61 = vand.u32 4294901760, %v16078_v22  ;;  %v21931_v22 = vand.u32 4294901760, %v21841_v45  ;;  %v21938_v45 = vand.u32 4294901760, %v21845_v21  ;;  %v21945_v21 = vand.u32 4294901760, %v21849_v31  ;;  %v21953_v31 = vld [vmem:[#allocation37_spill] sm:$0xff] }
 0x501   :  { %14179 = vmatprep.subr.bf16.mxu0 %v14178_v48  ;;  %v21942_v48 = vand.u32 4294901760, %v16159_v63  ;;  %v21949_v63 = vand.u32 4294901760, %v21853_v34  ;;  %v21960_v34 = vld [vmem:[#allocation43_spill] sm:$0xff]  ;;  %v21972_v3 = vand.u32 4294901760, %v21864_v52  ;;  %v21979_v52 = vand.u32 4294901760, %v21826_v55  ;;  %v21992_v55 = vld [vmem:[#allocation82_spill] sm:$0xff] }
 0x502   :  { %v14184_v7 = vpack.c.bf16 %v21925_v10, %v21924_v61  ;;  %v14188_v30 = vpack.c.bf16 %v21931_v22, %v21930_v32  ;;  %v14194_v57 = vpack.c.bf16 %v21939_v9, %v21938_v45  ;;  %v14200_v26 = vpack.c.bf16 %v21945_v21, %v21944_v24  ;;  %v21958_v61 = vld [vmem:[#allocation41_spill] sm:$0xff] }
 0x503   :  { %3150 = vmatmul.mubr.f32.gmra.mrb[6].mxu0 %v21922_v62  ;;  %v14198_v38 = vpack.c.bf16 %v21943_v23, %v21942_v48  ;;  %v21955_v62 = vld [vmem:[#allocation38_spill] sm:$0xff]  ;;  %v21959_v59 = vand.u32 4294901760, %v21958_v61  ;;  %v21967_v22 = vand.u32 4294901760, %v21862_v15  ;;  %v21975_v15 = vand.u32 4294901760, %v21820_v27 }
 0x504   :  { %3158 = vmatprep.mubr.f32.mxu0 %v21923_v16  ;;  %14181 = vmatpush1.bf16.msra.mxu0 %v14180_v4  ;;  %v14204_v4 = vpack.c.bf16 %v21949_v63, %v21948_v6  ;;  %v21956_v12 = vand.u32 4294901760, %v21955_v62  ;;  %v21976_v9 = vand.u32 4294901760, %v21867_v41  ;;  %v21984_v27 = vld [vmem:[#allocation78_spill] sm:$0xff]  ;;  %v21989_v21 = vand.u32 4294901760, %v21988_v8  ;;  %v22002_v62 = vld [vmem:[#allocation92_spill] sm:$0xff] }
 0x505   :  { %14183 = vmatprep.subr.bf16.mxu0 %v14182_v40  ;;  %v21954_v40 = vand.u32 4294901760, %v21953_v31  ;;  %v14210_v10 = vpack.c.bf16 %v21959_v59, %v21957_v46  ;;  %v21985_v23 = vand.u32 4294901760, %v21984_v27  ;;  %v21993_v5 = vand.u32 4294901760, %v21992_v55  ;;  %v22000_v31 = vld [vmem:[#allocation5_spill] sm:$0xff]  ;;  %v17159_v59 = vld [vmem:[%s21122_s5 + $0x218] sm:$0xff] }
 0x506   :  { %v21999_v44 = vand.u32 4294901760, %v21998_v54  ;;  %v22005_v46 = vld [vmem:[#allocation93_spill] sm:$0xff]  ;;  %v22016_v54 = vld [vmem:[#allocation24_spill] sm:$0xff] }
 0x507   :  { %3162 = vmatmul.mubr.f32.gmra.mrb[8].mxu0 %v21928_v18  ;;  %v14208_v16 = vpack.c.bf16 %v21956_v12, %v21954_v40  ;;  %v21965_v18 = vld [vmem:[#allocation46_spill] sm:$0xff]  ;;  %v22001_v40 = vld [vmem:[#allocation88_spill] sm:$0xff] }
 0x508   :  { %3170 = vmatprep.mubr.f32.mxu0 %v21929_v35  ;;  %14185 = vmatpush1.bf16.msra.mxu0 %v14184_v7  ;;  %v21961_v7 = vand.u32 4294901760, %v21960_v34  ;;  %v21966_v35 = vand.u32 4294901760, %v21965_v18  ;;  %v22003_v12 = vld [vmem:[#allocation8_spill] sm:$0xff]  ;;  %v17154_v61 = vld [vmem:[%s21122_s5 + $0x208] sm:$0xff] }
 0x509   :  { %14187 = vmatprep.subr.bf16.mxu0 %v14186_v17  ;;  %v21964_v17 = vand.u32 4294901760, %v21860_v1  ;;  %v21973_v1 = vand.u32 4294901760, %v21865_v43  ;;  %v21980_v43 = vld [vmem:[#allocation76_spill] sm:$0xff]  ;;  %v22007_v34 = vld [vmem:[#allocation10_spill] sm:$0xff] }
 0x50a   :  { %v14212_v2 = vpack.c.bf16 %v21963_v28, %v21961_v7  ;;  %v21981_v0 = vand.u32 4294901760, %v21980_v43  ;;  %v17166_v7 = vld [vmem:[%s21122_s5 + $0x200] sm:$0xff]  ;;  %v22008_v28 = vld [vmem:[#allocation11_spill] sm:$0xff]  ;;  %v17179_v18 = vld [vmem:[%s21122_s5 + $0x228] sm:$0xff] }
 0x50b   :  { %3174 = vmatmul.mubr.f32.gmra.mrb[10].mxu0 %v21934_v51  ;;  %v14214_v32 = vpack.c.bf16 %v21966_v35, %v21964_v17  ;;  %v14220_v53 = vpack.c.bf16 %v21973_v1, %v21972_v3  ;;  %v21384_v17 = vand.u32 4294901760, %v17159_v59  ;;  %v17184_v35 = vld [vmem:[%s21122_s5 + $0x238] sm:$0xff]  ;;  %v22012_v1 = vld [vmem:[#allocation14_spill] sm:$0xff] }
 0x50c   :  { %14189 = vmatpush1.bf16.msra.mxu0 %v14188_v30  ;;  %3437 = vmatprep.mubr.f32.mxu0 %v21935_v39  ;;  %v21968_v30 = vld [vmem:[#allocation48_spill] sm:$0xff] }
 0x50d   :  { %14191 = vmatprep.subr.bf16.mxu0 %v14190_v36  ;;  %v21969_v25 = vand.u32 4294901760, %v21968_v30  ;;  %v21971_v36 = vand.u32 4294901760, %v21816_v60  ;;  %v21978_v60 = vand.u32 4294901760, %v21869_v58  ;;  %v21380_v30 = vand.u32 4294901760, %v17171_v11 }
 0x50e   :  { %v17209_v3 = vsub.f32 %v17159_v59, %v21384_v17 }
 0x50f   :  { %v14216_v13 = vpack.c.bf16 %v21969_v25, %v21967_v22  ;;  %v14218_v51 = vpack.c.bf16 %v21971_v36, %v21970_v49  ;;  %v14226_v37 = vpack.c.bf16 %v21979_v52, %v21978_v60  ;;  %v21382_v22 = vand.u32 4294901760, %v17166_v7  ;;  %v17192_v25 = vld [vmem:[%s21122_s5 + $0x220] sm:$0xff]  ;;  %v22010_v49 = vld [vmem:[#allocation103_spill] sm:$0xff]  ;;  %v22013_v52 = vld [vmem:[#allocation102_spill] sm:$0xff] }
 0x510   :  { %14193 = vmatpush1.bf16.msra.mxu0 %v14192_v14  ;;  %v21974_v14 = vand.u32 4294901760, %v21866_v50  ;;  %v22011_v36 = vld [vmem:[#allocation12_spill] sm:$0xff] }
 0x511   :  { %14195 = vmatprep.subr.bf16.mxu0 %v14194_v57  ;;  %v14224_v57 = vpack.c.bf16 %v21977_v47, %v21976_v9  ;;  %v17227_v9 = vld [vmem:[%s21122_s5 + $0x248] sm:$0xff]  ;;  %v17232_v47 = vld [vmem:[%s21122_s5 + $0x258] sm:$0xff] }
 0x512   :  { %v14222_v45 = vpack.c.bf16 %v21975_v15, %v21974_v14  ;;  %v17220_v14 = vsub.f32 %v17171_v11, %v21380_v30  ;;  %v21377_v15 = vand.u32 4294901760, %v17179_v18  ;;  %v22024_v30 = vld [vmem:[#allocation39_spill] sm:$0xff] }
 0x514   :  { %14197 = vmatpush1.bf16.msra.mxu0 %v14196_v19  ;;  %v21982_v19 = vld [vmem:[#allocation77_spill] sm:$0xff] }
 0x515   :  { %14199 = vmatprep.subr.bf16.mxu0 %v14198_v38  ;;  %v21983_v50 = vand.u32 4294901760, %v21982_v19  ;;  %v21986_v38 = vld [vmem:[#allocation79_spill] sm:$0xff] }
 0x516   :  { %v21987_v41 = vand.u32 4294901760, %v21986_v38  ;;  %v17255_v19 = vld [vmem:[%s21122_s5 + $0x250] sm:$0xff]  ;;  %v21364_v38 = vand.u32 4294901760, %v17232_v47 }
 0x517   :  { %v14228_v48 = vpack.c.bf16 %v21983_v50, %v21981_v0  ;;  %v17250_v0 = vld [vmem:[%s21122_s5 + $0x240] sm:$0xff]  ;;  %v21362_v55 = vand.u32 4294901760, %v17255_v19 }
 0x518   :  { %14201 = vmatpush1.bf16.msra.mxu0 %v14200_v26  ;;  %v14230_v24 = vpack.c.bf16 %v21987_v41, %v21985_v23  ;;  %v21990_v26 = vld [vmem:[#allocation81_spill] sm:$0xff]  ;;  %v22014_v50 = vld [vmem:[#allocation20_spill] sm:$0xff]  ;;  %v21367_v23 = vand.u32 4294901760, %v17227_v9 }
 0x519   :  { %14203 = vmatprep.subr.bf16.mxu0 %v14202_v20  ;;  %v21991_v58 = vand.u32 4294901760, %v21990_v26  ;;  %v21994_v20 = vld [vmem:[#allocation83_spill] sm:$0xff]  ;;  %v22015_v41 = vld [vmem:[#allocation21_spill] sm:$0xff] }
 0x51a   :  { %v21995_v6 = vand.u32 4294901760, %v21994_v20  ;;  %v17296_v20 = vsub.f32 %v17232_v47, %v21364_v38 }
 0x51b   :  { %v14232_v33 = vpack.c.bf16 %v21991_v58, %v21989_v21  ;;  %v21360_v21 = vand.u32 4294901760, %v17209_v3  ;;  %v21358_v58 = vand.u32 4294901760, %v17220_v14 }
 0x51c   :  { %14205 = vmatpush1.bf16.msra.mxu0 %v14204_v4  ;;  %v14234_v63 = vpack.c.bf16 %v21995_v6, %v21993_v5  ;;  %v21996_v4 = vld [vmem:[#allocation84_spill] sm:$0xff]  ;;  %v17291_v5 = vsub.f32 %v17227_v9, %v21367_v23 }
 0x51d   :  { %14207 = vmatprep.subr.bf16.mxu0 %v14206_v56  ;;  %v21997_v29 = vand.u32 4294901760, %v21996_v4  ;;  %v17301_v6 = vld [vmem:[%s21122_s5 + $0x260] sm:$0xff] }
 0x51f   :  { %v14236_v56 = vpack.c.bf16 %v21999_v44, %v21997_v29 }
 0x520   :  { %14209 = vmatpush1.bf16.msra.mxu0 %v14208_v16  ;;  %v22004_v16 = vld [vmem:[#allocation9_spill] sm:$0xff] }
 0x521   :  { %14211 = vmatprep.subr.bf16.mxu0 %v14210_v10  ;;  %v22006_v10 = vld [vmem:[#allocation97_spill] sm:$0xff] }
 0x524   :  { %14213 = vmatpush1.bf16.msra.mxu0 %v14212_v2  ;;  %v21385_v2 = vand.u32 4294901760, %v17154_v61 }
 0x525   :  { %14215 = vmatprep.subr.bf16.mxu0 %v14214_v32  ;;  %v22009_v32 = vld [vmem:[#allocation98_spill] sm:$0xff] }
 0x528   :  { %14217 = vmatpush1.bf16.msra.mxu0 %v14216_v13  ;;  %v17197_v13 = vld [vmem:[%s21122_s5 + $0x230] sm:$0xff] }
 0x529   :  { %14219 = vmatprep.subr.bf16.mxu0 %v14218_v51  ;;  %v17204_v51 = vsub.f32 %v17154_v61, %v21385_v2  ;;  %v21368_v60 = vand.u32 4294901760, %v17197_v13 }
 0x52b   :  { %v17267_v27 = vsub.f32 %v17197_v13, %v21368_v60  ;;  %v21361_v8 = vand.u32 4294901760, %v17204_v51 }
 0x52c   :  { %14221 = vmatpush1.bf16.msra.mxu0 %v14220_v53  ;;  %v17215_v53 = vsub.f32 %v17166_v7, %v21382_v22 }
 0x52d   :  { %14223 = vmatprep.subr.bf16.mxu0 %v14222_v45  ;;  %v21375_v45 = vand.u32 4294901760, %v17184_v35  ;;  %v17312_v4 = vpack.c.bf16 %v21360_v21, %v21361_v8  ;;  %v21374_v21 = vand.u32 4294901760, %v17301_v6 }
 0x52e   :  { %v21359_v26 = vand.u32 4294901760, %v17215_v53 }
 0x52f   :  { %v17245_v43 = vsub.f32 %v17184_v35, %v21375_v45  ;;  %v17388_v23 = vsub.f32 %v17301_v6, %v21374_v21 }
 0x530   :  { %14225 = vmatpush1.bf16.msra.mxu0 %v14224_v57  ;;  %v21371_v57 = vand.u32 4294901760, %v17192_v25  ;;  %v17318_v29 = vpack.c.bf16 %v21358_v58, %v21359_v26  ;;  %v21372_v58 = vand.u32 4294901760, %v17267_v27 }
 0x531   :  { %14227 = vmatprep.subr.bf16.mxu0 %v14226_v37  ;;  %v17240_v37 = vsub.f32 %v17179_v18, %v21377_v15  ;;  %v21393_v17 = vand.u32 4294901760, %v17388_v23 }
 0x534   :  { %14229 = vmatpush1.bf16.msra.mxu0 %v14228_v48  ;;  %v17262_v48 = vsub.f32 %v17192_v25, %v21371_v57  ;;  %v22021_v57 = vld [vmem:[#allocation35_spill] sm:$0xff] }
 0x535   :  { %14231 = vmatprep.subr.bf16.mxu0 %v14230_v24  ;;  %v17280_v24 = vld [vmem:[%s21122_s5 + $0x278] sm:$0xff] }
 0x538   :  { %14233 = vmatpush1.bf16.msra.mxu0 %v14232_v33  ;;  %v21363_v33 = vand.u32 4294901760, %v17250_v0 }
 0x539   :  { %14235 = vmatprep.subr.bf16.mxu0 %v14234_v63  ;;  %v17306_v63 = vld [vmem:[%s21122_s5 + $0x270] sm:$0xff] }
 0x53a   :  { %v17324_v44 = vsub.f32 %v17250_v0, %v21363_v33  ;;  %v21376_v8 = vand.u32 4294901760, %v17306_v63 }
 0x53c   :  { %14237 = vmatpush1.bf16.msra.mxu0 %v14236_v56  ;;  %v17329_v56 = vsub.f32 %v17255_v19, %v21362_v55  ;;  %v17393_v60 = vsub.f32 %v17306_v63, %v21376_v8 }
 0x53d   :  { %14239 = vmatprep.subr.bf16.mxu0 %v22000_v31 }
 0x53e   :  { %v21388_v21 = vand.u32 4294901760, %v17329_v56  ;;  %v21392_v2 = vand.u32 4294901760, %v17393_v60 }
 0x53f   :  { %3439 = vmatmul.mubr.f32.vlgmr.msra.gmra.mrb[4].mxu0 %v22001_v40 }
 0x540   :  { %3445 = vmatprep.mubr.f32.mxu0 %v22002_v62  ;;  %14241 = vmatpush1.bf16.msra.mxu0 %v22003_v12  ;;  %v21365_v12 = vand.u32 4294901760, %v17280_v24 }
 0x541   :  { %14243 = vmatprep.subr.bf16.mxu0 %v22004_v16  ;;  %v17336_v16 = vld [vmem:[%s21122_s5 + $0x288] sm:$0xff] }
 0x542   :  { %v17366_v26 = vsub.f32 %v17280_v24, %v21365_v12  ;;  %v21378_v55 = vand.u32 4294901760, %v17336_v16 }
 0x543   :  { %3447 = vmatmul.mubr.f32.gmra.mrb[6].mxu0 %v22005_v46 }
 0x544   :  { %3453 = vmatprep.mubr.f32.mxu0 %v22006_v10  ;;  %14245 = vmatpush1.bf16.msra.mxu0 %v22007_v34  ;;  %v17341_v34 = vld [vmem:[%s21122_s5 + $0x298] sm:$0xff]  ;;  %v17405_v45 = vsub.f32 %v17336_v16, %v21378_v55 }
 0x545   :  { %14247 = vmatprep.subr.bf16.mxu0 %v22008_v28  ;;  %v22017_v28 = vld [vmem:[#allocation28_spill] sm:$0xff]  ;;  %v21379_v33 = vand.u32 4294901760, %v17341_v34 }
 0x547   :  { %3455 = vmatmul.mubr.f32.gmra.mrb[8].mxu0 %v22009_v32  ;;  %v17410_v8 = vsub.f32 %v17341_v34, %v21379_v33 }
 0x548   :  { %3461 = vmatprep.mubr.f32.mxu0 %v22010_v49  ;;  %14249 = vmatpush1.bf16.msra.mxu0 %v22011_v36  ;;  %v17347_v36 = vld [vmem:[%s21122_s5 + $0x280] sm:$0xff] }
 0x549   :  { %14251 = vmatprep.subr.bf16.mxu0 %v22012_v1  ;;  %v17352_v1 = vld [vmem:[%s21122_s5 + $0x290] sm:$0xff] }
 0x54b   :  { %3463 = vmatmul.mubr.f32.gmra.mrb[10].mxu0 %v22013_v52 }
 0x54c   :  { %14253 = vmatpush1.bf16.msra.mxu0 %v22014_v50  ;;  %3598 = vmatprep.mubr.f32.mxu0 %v21935_v39  ;;  %v17275_v39 = vld [vmem:[%s21122_s5 + $0x268] sm:$0xff]  ;;  %v21370_v50 = vand.u32 4294901760, %v17240_v37 }
 0x54d   :  { %14255 = vmatprep.subr.bf16.mxu0 %v22015_v41  ;;  %v21366_v31 = vand.u32 4294901760, %v17275_v39  ;;  %v21369_v41 = vand.u32 4294901760, %v17245_v43 }
 0x54f   :  { %v17376_v38 = vpack.c.bf16 %v21369_v41, %v21370_v50  ;;  %v21381_v41 = vand.u32 4294901760, %v17347_v36  ;;  %v21383_v50 = vand.u32 4294901760, %v17352_v1 }
 0x550   :  { %14257 = vmatpush1.bf16.msra.mxu0 %v22016_v54  ;;  %v21373_v54 = vand.u32 4294901760, %v17262_v48 }
 0x551   :  { %14259 = vmatprep.subr.bf16.mxu0 %v22017_v28  ;;  %v17361_v28 = vsub.f32 %v17275_v39, %v21366_v31  ;;  %22018 = vst [vmem:[#allocation52_spill] sm:$0xff] %v17376_v38  ;;  %v22020_v31 = vld [vmem:[#allocation31_spill] sm:$0xff]  ;;  %v17420_v15 = vsub.f32 %v17352_v1, %v21383_v50  ;;  %v21390_v50 = vand.u32 4294901760, %v17366_v26 }
 0x552   :  { %v17382_v12 = vpack.c.bf16 %v21372_v58, %v21373_v54  ;;  %v21387_v58 = vand.u32 4294901760, %v17291_v5  ;;  %v21389_v54 = vand.u32 4294901760, %v17324_v44 }
 0x553   :  { %v21391_v22 = vand.u32 4294901760, %v17361_v28 }
 0x554   :  { %22019 = vst [vmem:[#allocation56_spill] sm:$0xff] %v17382_v12  ;;  %14261 = vmatpush1.bf16.msra.mxu0 %v22020_v31  ;;  %v21386_v31 = vand.u32 4294901760, %v17296_v20  ;;  %v17432_v33 = vpack.c.bf16 %v21388_v21, %v21389_v54  ;;  %v22028_v54 = vld [vmem:[#allocation49_spill] sm:$0xff]  ;;  %v22030_v21 = vld [vmem:[#allocation50_spill] sm:$0xff]  ;;  %v22086_v12 = vand.u32 4294901760, %v17366_v26 }
 0x555   :  { %14263 = vmatprep.subr.bf16.mxu0 %v22021_v57  ;;  %v17415_v57 = vsub.f32 %v17347_v36, %v21381_v41  ;;  %v22025_v41 = vld [vmem:[#allocation42_spill] sm:$0xff] }
 0x556   :  { %v17426_v55 = vpack.c.bf16 %v21386_v31, %v21387_v58  ;;  %22023 = vst [vmem:[#allocation6_spill] sm:$0xff] %v17432_v33  ;;  %v21395_v31 = vand.u32 4294901760, %v17405_v45  ;;  %v21394_v58 = vand.u32 4294901760, %v17410_v8 }
 0x557   :  { %v22031_v33 = vand.u32 4294901760, %v17415_v57 }
 0x558   :  { %22022 = vst [vmem:[#allocation62_spill] sm:$0xff] %v17426_v55  ;;  %14265 = vmatpush1.bf16.msra.mxu0 %v22024_v30  ;;  %v17448_v30 = vpack.c.bf16 %v21390_v50, %v21391_v22  ;;  %v17461_v55 = vpack.c.bf16 %v21394_v58, %v21395_v31  ;;  %v22032_v50 = vand.u32 4294901760, %v17420_v15  ;;  %v22039_v58 = vld [vmem:[#allocation66_spill] sm:$0xff]  ;;  %v22040_v31 = vld [vmem:[#allocation67_spill] sm:$0xff] }
 0x559   :  { %14267 = vmatprep.subr.bf16.mxu0 %v22025_v41  ;;  %v17454_v41 = vpack.c.bf16 %v21392_v2, %v21393_v17  ;;  %v22035_v2 = vld [vmem:[#allocation60_spill] sm:$0xff]  ;;  %v22036_v17 = vld [vmem:[#allocation63_spill] sm:$0xff] }
 0x55a   :  { %22026 = vst [vmem:[#allocation7_spill] sm:$0xff] %v17448_v30  ;;  %22029 = vst [vmem:[#allocation15_spill] sm:$0xff] %v17461_v55  ;;  %v17468_v22 = vpack.c.bf16 %v22032_v50, %v22031_v33  ;;  %v22034_v30 = vld [vmem:[#allocation59_spill] sm:$0xff]  ;;  %v22042_v55 = vld [vmem:[#allocation69_spill] sm:$0xff] }
 0x55b   :  { %22027 = vst [vmem:[#allocation13_spill] sm:$0xff] %v17454_v41  ;;  %v22038_v41 = vld [vmem:[#allocation65_spill] sm:$0xff]  ;;  %v22043_v33 = vld [vmem:[#allocation70_spill] sm:$0xff]  ;;  %v22044_v50 = vld [vmem:[#allocation71_spill] sm:$0xff] }
 0x55c   :  { %14269 = vmatpush1.bf16.msra.mxu0 %v22028_v54  ;;  %22033 = vst [vmem:[#allocation16_spill] sm:$0xff] %v17468_v22  ;;  %v22037_v54 = vld [vmem:[#allocation64_spill] sm:$0xff]  ;;  %v22083_v22 = vand.u32 4294901760, %v17329_v56 }
 0x55d   :  { %14271 = vmatprep.subr.bf16.mxu0 %v22030_v21  ;;  %v22041_v21 = vld [vmem:[#allocation68_spill] sm:$0xff] }
 0x560   :  { %14273 = vmatpush1.bf16.msra.mxu0 %v22034_v30  ;;  %v22045_v30 = vld [vmem:[#allocation72_spill] sm:$0xff] }
 0x561   :  { %14275 = vmatprep.subr.bf16.mxu0 %v22035_v2  ;;  %v22046_v2 = vld [vmem:[#allocation73_spill] sm:$0xff] }
 0x564   :  { %14277 = vmatpush1.bf16.msra.mxu0 %v22036_v17  ;;  %v22047_v17 = vld [vmem:[#allocation74_spill] sm:$0xff] }
 0x565   :  { %14279 = vmatprep.subr.bf16.mxu0 %v22037_v54  ;;  %v22050_v54 = vld [vmem:[#allocation86_spill] sm:$0xff] }
 0x568   :  { %14281 = vmatpush1.bf16.msra.mxu0 %v22038_v41  ;;  %v22048_v41 = vand.u32 4294901760, %v17154_v61  ;;  %v22054_v61 = vand.u32 4294901760, %v17184_v35  ;;  %v22058_v35 = vand.u32 4294901760, %v17227_v9  ;;  %v22062_v9 = vand.u32 4294901760, %v17255_v19 }
 0x569   :  { %14283 = vmatprep.subr.bf16.mxu0 %v22039_v58  ;;  %v22049_v58 = vand.u32 4294901760, %v17159_v59 }
 0x56c   :  { %14285 = vmatpush1.bf16.msra.mxu0 %v22040_v31  ;;  %v17488_v31 = vpack.c.bf16 %v22049_v58, %v22048_v41  ;;  %v22059_v41 = vand.u32 4294901760, %v17232_v47 }
 0x56d   :  { %14287 = vmatprep.subr.bf16.mxu0 %v22041_v21  ;;  %v22051_v21 = vand.u32 4294901760, %v17166_v7  ;;  %v22056_v7 = vand.u32 4294901760, %v17192_v25 }
 0x570   :  { %14289 = vmatpush1.bf16.msra.mxu0 %v22042_v55  ;;  %v2152_v55 = vsel %vm2151_vm7, %v22050_v54, 0  ;;  %v22060_v54 = vld [vmem:[#allocation95_spill] sm:$0xff] }
 0x571   :  { %14291 = vmatprep.subr.bf16.mxu0 %v22043_v33  ;;  %v22052_v33 = vand.u32 4294901760, %v17171_v11  ;;  %v22057_v11 = vand.u32 4294901760, %v17197_v13  ;;  %v2156_v25 = vsel %vm2151_vm7, %v22060_v54, 0  ;;  %v22061_v13 = vand.u32 4294901760, %v17250_v0 }
 0x573   :  { %v17540_v47 = vpack.c.bf16 %v22062_v9, %v22061_v13  ;;  %v22072_v13 = vand.u32 4294901760, %v17215_v53 }
 0x574   :  { %14293 = vmatpush1.bf16.msra.mxu0 %v22044_v50  ;;  %v17497_v50 = vpack.c.bf16 %v22052_v33, %v22051_v21  ;;  %v22064_v21 = vand.u32 4294901760, %v17280_v24 }
 0x575   :  { %14295 = vmatprep.subr.bf16.mxu0 %v22045_v30  ;;  %v22053_v30 = vand.u32 4294901760, %v17179_v18  ;;  %v17517_v18 = vpack.c.bf16 %v22057_v11, %v22056_v7  ;;  %v22068_v7 = vand.u32 4294901760, %v17301_v6  ;;  %v22069_v11 = vand.u32 4294901760, %v17306_v63 }
 0x576   :  { %v22073_v6 = vand.u32 4294901760, %v17220_v14 }
 0x577   :  { %v17504_v59 = vpack.c.bf16 %v22054_v61, %v22053_v30  ;;  %v22066_v30 = vand.u32 4294901760, %v17209_v3  ;;  %v17555_v61 = vand.u32 4294901760, %v2156_v25 }
 0x578   :  { %14297 = vmatpush1.bf16.msra.mxu0 %v22046_v2  ;;  %v17506_v2 = vand.u32 4294901760, %v2152_v55  ;;  %v3780_v63 = vsub.f32 %v17220_v14, %v22073_v6 }
 0x579   :  { %14299 = vmatprep.subr.bf16.mxu0 %v22047_v17  ;;  %v22055_v17 = vld [vmem:[#allocation91_spill] sm:$0xff]  ;;  %v3774_v0 = vsub.f32 %v17209_v3, %v22066_v30 }
 0x57a   :  { %v17527_v58 = vsub.f32 %v2152_v55, %v17506_v2  ;;  %v22063_v55 = vand.u32 4294901760, %v17275_v39  ;;  %v22067_v39 = vld [vmem:[#allocation100_spill] sm:$0xff] }
 0x57b   :  { %v2158_v24 = vsel %vm2151_vm7, %v22067_v39, 0  ;;  %v22076_v39 = vand.u32 4294901760, %v17347_v36  ;;  %v3781_v36 = vand.u32 4294901760, %v3780_v63 }
 0x57c   :  { %14301 = vmatpush1.bf16.msra.mxu0 %v21911_v42  ;;  %v2154_v42 = vsel %vm2151_vm7, %v22055_v17, 0  ;;  %v17547_v33 = vpack.c.bf16 %v22064_v21, %v22063_v55  ;;  %v21398_v19 = vand.u32 4294901760, %v17527_v58  ;;  %v22074_v55 = vand.u32 4294901760, %v17240_v37 }
 0x57d   :  { %14303 = vmatprep.subr.bf16.mxu0 %v17488_v31  ;;  %v17594_v30 = vand.u32 4294901760, %v2158_v24 }
 0x57f   :  { %3600 = vmatmul.mubr.f32.vlgmr.msra.gmra.mrb[4].mxu0 %v22001_v40  ;;  %v17524_v40 = vpack.c.bf16 %v22059_v41, %v22058_v35  ;;  %v17568_v35 = vpack.c.bf16 %v22069_v11, %v22068_v7  ;;  %v22070_v41 = vand.u32 4294901760, %v17336_v16  ;;  %v3786_v16 = vsub.f32 %v17240_v37, %v22074_v55 }
 0x580   :  { %3606 = vmatprep.mubr.f32.mxu0 %v22002_v62  ;;  %14305 = vmatpush1.bf16.msra.mxu0 %v17497_v50  ;;  %v17529_v62 = vand.u32 4294901760, %v2154_v42  ;;  %v22078_v11 = vand.u32 4294901760, %v17262_v48  ;;  %v22081_v55 = vand.u32 4294901760, %v17296_v20  ;;  %v22082_v7 = vand.u32 4294901760, %v17324_v44 }
 0x581   :  { %14307 = vmatprep.subr.bf16.mxu0 %v17504_v59 }
 0x582   :  { %v17559_v17 = vsub.f32 %v2154_v42, %v17529_v62  ;;  %v22071_v42 = vand.u32 4294901760, %v17341_v34  ;;  %v22075_v34 = vand.u32 4294901760, %v17245_v43 }
 0x583   :  { %3608 = vmatmul.mubr.f32.gmra.mrb[6].mxu0 %v22005_v46  ;;  %v22065_v46 = vand.u32 4294901760, %v17204_v51 }
 0x584   :  { %3614 = vmatprep.mubr.f32.mxu0 %v22006_v10  ;;  %14309 = vmatpush1.bf16.msra.mxu0 %v17517_v18  ;;  %v17576_v54 = vpack.c.bf16 %v22071_v42, %v22070_v41  ;;  %v3798_v21 = vsub.f32 %v17245_v43, %v22075_v34  ;;  %v3792_v41 = vsub.f32 %v17262_v48, %v22078_v11  ;;  %v22079_v42 = vand.u32 4294901760, %v17267_v27 }
 0x585   :  { %14311 = vmatprep.subr.bf16.mxu0 %v17524_v40  ;;  %v3762_v10 = vsub.f32 %v17204_v51, %v22065_v46  ;;  %v17592_v46 = vsub.f32 %v2156_v25, %v17555_v61  ;;  %v3822_v34 = vsub.f32 %v17296_v20, %v22081_v55  ;;  %v3787_v11 = vand.u32 4294901760, %v3786_v16 }
 0x586   :  { %v3804_v25 = vsub.f32 %v17267_v27, %v22079_v42  ;;  %v3799_v42 = vand.u32 4294901760, %v3798_v21  ;;  %v3816_v55 = vsub.f32 %v17324_v44, %v22082_v7 }
 0x587   :  { %3616 = vmatmul.mubr.f32.gmra.mrb[8].mxu0 %v22009_v32  ;;  %v3768_v32 = vsub.f32 %v17215_v53, %v22072_v13  ;;  %v3763_v9 = vand.u32 4294901760, %v3762_v10  ;;  %v22077_v10 = vand.u32 4294901760, %v17352_v1  ;;  %v21396_v13 = vmov 0.0  }
 0x588   :  { %3622 = vmatprep.mubr.f32.mxu0 %v22010_v49  ;;  %14313 = vmatpush1.bf16.msra.mxu0 %v17540_v47  ;;  %v3775_v49 = vand.u32 4294901760, %v3774_v0  ;;  %v22080_v1 = vand.u32 4294901760, %v17291_v5  ;;  %v3823_v21 = vand.u32 4294901760, %v3822_v34  ;;  %v3817_v34 = vand.u32 4294901760, %v3816_v55 }
 0x589   :  { %14315 = vmatprep.subr.bf16.mxu0 %v17547_v33  ;;  %v17601_v0 = vpack.c.bf16 %v22077_v10, %v22076_v39  ;;  %v3718_v39 = vsub.f32 %v17527_v58, %v21398_v19  ;;  %v3828_v19 = vsub.f32 %v17329_v56, %v22083_v22  ;;  %v3846_v22 = vsub.f32 %v17366_v26, %v22086_v12 }
 0x58a   :  { %v3810_v6 = vsub.f32 %v17291_v5, %v22080_v1  ;;  %v14322_v10 = vpack.c.bf16 %v3775_v49, %v3763_v9  ;;  %v3805_v1 = vand.u32 4294901760, %v3804_v25  ;;  %v22084_v49 = vand.u32 4294901760, %v17559_v17 }
 0x58b   :  { %3624 = vmatmul.mubr.f32.gmra.mrb[10].mxu0 %v22013_v52  ;;  %v3769_v52 = vand.u32 4294901760, %v3768_v32  ;;  %v17623_v32 = vsub.f32 %v2158_v24, %v17594_v30  ;;  %v3719_v63 = vand.u32 4294901760, %v3718_v39  ;;  %v22085_v25 = vand.u32 4294901760, %v17361_v28 }
 0x58c   :  { %14317 = vmatpush1.bf16.msra.mxu0 %v17568_v35  ;;  %3714 = vmatprep.mubr.f32.mxu0 %v21396_v13  ;;  %v3793_v13 = vand.u32 4294901760, %v3792_v41  ;;  %v3729_v24 = vsub.f32 %v17559_v17, %v22084_v49  ;;  %v3811_v16 = vand.u32 4294901760, %v3810_v6  ;;  %v14326_v41 = vpack.c.bf16 %v3799_v42, %v3787_v11 }
 0x58d   :  { %14319 = vmatprep.subr.bf16.mxu0 %v17576_v54  ;;  %v14324_v9 = vpack.c.bf16 %v3781_v36, %v3769_v52  ;;  %v3834_v7 = vsub.f32 %v17361_v28, %v22085_v25  ;;  %v21399_v38 = vand.u32 4294901760, %v17623_v32  ;;  %v22087_v36 = vand.u32 4294901760, %v17592_v46 }
 0x58e   :  { %v14328_v52 = vpack.c.bf16 %v3805_v1, %v3793_v13  ;;  %v3829_v39 = vand.u32 4294901760, %v3828_v19  ;;  %v3730_v11 = vand.u32 4294901760, %v3729_v24  ;;  %v14330_v42 = vpack.c.bf16 %v3823_v21, %v3811_v16 }
 0x58f   :  { %v3740_v6 = vsub.f32 %v17592_v46, %v22087_v36  ;;  %v22089_v49 = vand.u32 4294901760, %v17388_v23  ;;  %v22090_v12 = vand.u32 4294901760, %v17393_v60  ;;  %v3835_v13 = vand.u32 4294901760, %v3834_v7 }
 0x590   :  { %14321 = vmatpush1.bf16.msra.mxu0 %v17601_v0  ;;  %v3847_v1 = vand.u32 4294901760, %v3846_v22  ;;  %v22091_v36 = vand.u32 4294901760, %v17405_v45  ;;  %v22092_v55 = vand.u32 4294901760, %v17410_v8  ;;  %v14332_v24 = vpack.c.bf16 %v3829_v39, %v3817_v34 }
 0x591   :  { %14323 = vmatprep.subr.bf16.mxu0 %v14322_v10  ;;  %v22088_v10 = vmov 0.0   ;;  %v3840_v25 = vsub.f32 %v17388_v23, %v22089_v49  ;;  %v3751_v16 = vsub.f32 %v17623_v32, %v21399_v38  ;;  %v22093_v7 = vand.u32 4294901760, %v17415_v57 }
 0x592   :  { %v3858_v19 = vsub.f32 %v17405_v45, %v22091_v36  ;;  %v22094_v49 = vand.u32 4294901760, %v17420_v15  ;;  %v3741_v36 = vand.u32 4294901760, %v3740_v6  ;;  %v14334_v34 = vpack.c.bf16 %v3847_v1, %v3835_v13 }
 0x593   :  { %3720 = vmatmul.mubr.f32.vlgmr.msra.gmra.mrb[4].mxu0 %v3719_v63  ;;  %v3852_v63 = vsub.f32 %v17393_v60, %v22090_v12  ;;  %v3841_v21 = vand.u32 4294901760, %v3840_v25  ;;  %v3864_v22 = vsub.f32 %v17415_v57, %v22093_v7  ;;  %v14342_v6 = vpack.c.bf16 %v17209_v3, %v17204_v51 }
 0x594   :  { %14325 = vmatpush1.bf16.msra.mxu0 %v14324_v9  ;;  %3725 = vmatprep.mubr.f32.mxu0 %v22088_v10  ;;  %v3870_v9 = vsub.f32 %v17410_v8, %v22092_v55  ;;  %v3876_v12 = vsub.f32 %v17420_v15, %v22094_v49  ;;  %v3859_v39 = vand.u32 4294901760, %v3858_v19  ;;  %v3752_v55 = vand.u32 4294901760, %v3751_v16 }
 0x595   :  { %14327 = vmatprep.subr.bf16.mxu0 %v14326_v41  ;;  %v3853_v41 = vand.u32 4294901760, %v3852_v63  ;;  %v3865_v25 = vand.u32 4294901760, %v3864_v22  ;;  %v14346_v13 = vpack.c.bf16 %v17245_v43, %v17240_v37  ;;  %v14348_v1 = vpack.c.bf16 %v17267_v27, %v17262_v48  ;;  %v22098_v48 = vld [vmem:[#allocation56_spill] sm:$0xff]  ;;  %v22099_v27 = vld [vmem:[#allocation62_spill] sm:$0xff] }
 0x596   :  { %v3877_v63 = vand.u32 4294901760, %v3876_v12  ;;  %v14350_v51 = vpack.c.bf16 %v17296_v20, %v17291_v5  ;;  %v14352_v3 = vpack.c.bf16 %v17329_v56, %v17324_v44  ;;  %v14358_v37 = vpack.c.bf16 %v17410_v8, %v17405_v45  ;;  %v22096_v45 = vld [vmem:[#allocation52_spill] sm:$0xff]  ;;  %v22102_v8 = vld [vmem:[#allocation7_spill] sm:$0xff]  ;;  %v22104_v5 = vld [vmem:[#allocation13_spill] sm:$0xff] }
 0x597   :  { %3731 = vmatmul.mubr.f32.gmra.mrb[6].mxu0 %v3730_v11  ;;  %v3871_v11 = vand.u32 4294901760, %v3870_v9  ;;  %v14360_v43 = vpack.c.bf16 %v17420_v15, %v17415_v57  ;;  %v22095_v15 = vand.u32 4294901760, %v17527_v58  ;;  %v22105_v20 = vld [vmem:[#allocation15_spill] sm:$0xff] }
 0x598   :  { %14329 = vmatpush1.bf16.msra.mxu0 %v14328_v52  ;;  %3736 = vmatprep.mubr.f32.mxu0 %v22088_v10  ;;  %v14336_v52 = vpack.c.bf16 %v3853_v41, %v3841_v21  ;;  %v14340_v7 = vpack.c.bf16 %v3877_v63, %v3865_v25 }
 0x599   :  { %14331 = vmatprep.subr.bf16.mxu0 %v14330_v42  ;;  %v14338_v38 = vpack.c.bf16 %v3871_v11, %v3859_v39  ;;  %v14344_v42 = vpack.c.bf16 %v17220_v14, %v17215_v53  ;;  %v14354_v53 = vpack.c.bf16 %v17366_v26, %v17361_v28  ;;  %v14356_v14 = vpack.c.bf16 %v17393_v60, %v17388_v23  ;;  %v2139_v28 = vld [vmem:[%s21123_s6] sm:$0x3] }
 0x59a   :  { %v22097_v60 = vand.u32 4294901760, %v17559_v17  ;;  %v22100_v23 = vand.u32 4294901760, %v17592_v46  ;;  %v22103_v26 = vand.u32 4294901760, %v17623_v32 }
 0x59b   :  { %3742 = vmatmul.mubr.f32.gmra.mrb[8].mxu0 %v3741_v36 }
 0x59c   :  { %14333 = vmatpush1.bf16.msra.mxu0 %v14332_v24  ;;  %3747 = vmatprep.mubr.f32.mxu0 %v22088_v10 }
 0x59d   :  { %14335 = vmatprep.subr.bf16.mxu0 %v14334_v34 }
 0x59f   :  { %3753 = vmatmul.mubr.f32.gmra.mrb[10].mxu0 %v3752_v55 }
 0x5a0   :  { %14337 = vmatpush1.bf16.msra.mxu0 %v14336_v52  ;;  %3923 = vmatprep.mubr.f32.mxu0 %v22088_v10 }
 0x5a1   :  { %14339 = vmatprep.subr.bf16.mxu0 %v14338_v38  ;;  %v22101_v38 = vld [vmem:[#allocation6_spill] sm:$0xff] }
 0x5a4   :  { %14341 = vmatpush1.bf16.msra.mxu0 %v14340_v7 }
 0x5a5   :  { %14343 = vmatprep.subr.bf16.mxu0 %v14342_v6 }
 0x5a7   :  { %3925 = vmatmul.mubr.f32.vlgmr.msra.gmra.mrb[4].mxu0 %v17506_v2 }
 0x5a8   :  { %14345 = vmatpush1.bf16.msra.mxu0 %v14344_v42  ;;  %3930 = vmatprep.mubr.f32.mxu0 %v22088_v10 }
 0x5a9   :  { %14347 = vmatprep.subr.bf16.mxu0 %v14346_v13 }
 0x5ab   :  { %3932 = vmatmul.mubr.f32.gmra.mrb[6].mxu0 %v17529_v62 }
 0x5ac   :  { %14349 = vmatpush1.bf16.msra.mxu0 %v14348_v1  ;;  %3937 = vmatprep.mubr.f32.mxu0 %v22088_v10 }
 0x5ad   :  { %14351 = vmatprep.subr.bf16.mxu0 %v14350_v51 }
 0x5af   :  { %3939 = vmatmul.mubr.f32.gmra.mrb[8].mxu0 %v17555_v61 }
 0x5b0   :  { %14353 = vmatpush1.bf16.msra.mxu0 %v14352_v3  ;;  %3944 = vmatprep.mubr.f32.mxu0 %v22088_v10 }
 0x5b1   :  { %14355 = vmatprep.subr.bf16.mxu0 %v14354_v53 }
 0x5b3   :  { %3946 = vmatmul.mubr.f32.gmra.mrb[10].mxu0 %v17594_v30 }
 0x5b4   :  { %14357 = vmatpush1.bf16.msra.mxu0 %v14356_v14  ;;  %4056 = vmatprep.mubr.f32.mxu0 %v22088_v10 }
 0x5b5   :  { %14359 = vmatprep.subr.bf16.mxu0 %v14358_v37 }
 0x5b8   :  { %14361 = vmatpush1.bf16.msra.mxu0 %v14360_v43 }
 0x5b9   :  { %14363 = vmatprep.subr.bf16.mxu0 %v17488_v31 }
 0x5bb   :  { %4059 = vmatmul.mubr.f32.vlgmr.msra.gmra.mrb[4].mxu0 %v17527_v58 }
 0x5bc   :  { %14365 = vmatpush1.bf16.msra.mxu0 %v17497_v50  ;;  %4064 = vmatprep.mubr.f32.mxu0 %v22088_v10 }
 0x5bd   :  { %14367 = vmatprep.subr.bf16.mxu0 %v17504_v59 }
 0x5bf   :  { %4067 = vmatmul.mubr.f32.gmra.mrb[6].mxu0 %v17559_v17 }
 0x5c0   :  { %14369 = vmatpush1.bf16.msra.mxu0 %v17517_v18  ;;  %4072 = vmatprep.mubr.f32.mxu0 %v22088_v10 }
 0x5c1   :  { %14371 = vmatprep.subr.bf16.mxu0 %v17524_v40 }
 0x5c3   :  { %4075 = vmatmul.mubr.f32.gmra.mrb[8].mxu0 %v17592_v46 }
 0x5c4   :  { %14373 = vmatpush1.bf16.msra.mxu0 %v17540_v47  ;;  %4080 = vmatprep.mubr.f32.mxu0 %v22088_v10 }
 0x5c5   :  { %14375 = vmatprep.subr.bf16.mxu0 %v17547_v33 }
 0x5c7   :  { %4083 = vmatmul.mubr.f32.gmra.mrb[10].mxu0 %v17623_v32 }
 0x5c8   :  { %14377 = vmatpush1.bf16.msra.mxu0 %v17568_v35  ;;  %4173 = vmatprep.mubr.f32.mxu0 %v22088_v10 }
 0x5c9   :  { %14379 = vmatprep.subr.bf16.mxu0 %v17576_v54 }
 0x5cc   :  { %14381 = vmatpush1.bf16.msra.mxu0 %v17601_v0 }
 0x5cd   :  { %14383 = vmatprep.subr.bf16.mxu0 %v17312_v4  ;;  %v22106_v4 = vld [vmem:[#allocation16_spill] sm:$0xff] }
 0x5cf   :  { %4177 = vmatmul.mubr.f32.vlgmr.msra.gmra.mrb[4].mxu0 %v22095_v15 }
 0x5d0   :  { %14385 = vmatpush1.bf16.msra.mxu0 %v17318_v29  ;;  %4182 = vmatprep.mubr.f32.mxu0 %v22088_v10  ;;  %v2141_v29 = vlaneseq }
 0x5d1   :  { %14387 = vmatprep.subr.bf16.mxu0 %v22096_v45 }
 0x5d2   :  { %v2142_v44 = vshrl.u32 %v2141_v29, 7 }
 0x5d3   :  { %4186 = vmatmul.mubr.f32.gmra.mrb[6].mxu0 %v22097_v60  ;;  %v4667_v60 = vld [vmem:[%s21124_s7 + $0x80] sm:$0xff] }
 0x5d4   :  { %14389 = vmatpush1.bf16.msra.mxu0 %v22098_v48  ;;  %4191 = vmatprep.mubr.f32.mxu0 %v22088_v10  ;;  %v2143_v56 = vsub.s32 0, %v2142_v44  ;;  %v2147_v57 = vsub.s32 1, %v2142_v44  ;;  %v4668_v48 = vld [vmem:[%s21124_s7 + $0x88] sm:$0xff] }
 0x5d5   :  { %14391 = vmatprep.subr.bf16.mxu0 %v22099_v27  ;;  %v4651_v27 = vld [vmem:[%s21124_s7] sm:$0xff] }
 0x5d7   :  { %4195 = vmatmul.mubr.f32.gmra.mrb[8].mxu0 %v22100_v23  ;;  %v4779_v23 = vand.u32 4294901760, %v4667_v60 }
 0x5d8   :  { %14393 = vmatpush1.bf16.msra.mxu0 %v22101_v38  ;;  %4200 = vmatprep.mubr.f32.mxu0 %v22088_v10  ;;  %v4782_v38 = vand.u32 4294901760, %v4668_v48 }
 0x5d9   :  { %14395 = vmatprep.subr.bf16.mxu0 %v22102_v8  ;;  %v4652_v8 = vld [vmem:[%s21124_s7 + $0x8] sm:$0xff] }
 0x5db   :  { %4204 = vmatmul.mubr.f32.gmra.mrb[10].mxu0 %v22103_v26  ;;  %v4731_v26 = vand.u32 4294901760, %v4651_v27 }
 0x5dc   :  { %14397 = vmatpush1.bf16.msra.mxu0 %v22104_v5  ;;  %4334 = vmatprep.mubr.f32.mxu0 %v22088_v10  ;;  %v4669_v5 = vld [vmem:[%s21124_s7 + $0x90] sm:$0xff] }
 0x5dd   :  { %14399 = vmatprep.subr.bf16.mxu0 %v22105_v20  ;;  %v4670_v20 = vld [vmem:[%s21124_s7 + $0x98] sm:$0xff]  ;;  %v4785_v29 = vand.u32 4294901760, %v4669_v5 }
 0x5de   :  { %v4788_v44 = vand.u32 4294901760, %v4670_v20 }
 0x5e0   :  { %14401 = vmatpush1.bf16.msra.mxu0 %v22106_v4  ;;  %v4734_v4 = vand.u32 4294901760, %v4652_v8 }
 0x5e1   :  { %14403 = vmatprep.subr.bf16.mxu0 %v17488_v31  ;;  %v2144_v31 = vrot.slane %v2139_v28, %v2143_v56  ;;  %v4653_v56 = vld [vmem:[%s21124_s7 + $0x10] sm:$0xff] }
 0x5e3   :  { %4336 = vmatmul.mubr.f32.vlgmr.msra.gmra.mrb[4].mxu0 %v17506_v2 }
 0x5e4   :  { %14405 = vmatpush1.bf16.msra.mxu0 %v17497_v50  ;;  %4341 = vmatprep.mubr.f32.mxu0 %v22088_v10  ;;  %v2148_v50 = vrot.slane %v2139_v28, %v2147_v57  ;;  %v4654_v28 = vld [vmem:[%s21124_s7 + $0x18] sm:$0xff]  ;;  %v4671_v57 = vld [vmem:[%s21124_s7 + $0xa0] sm:$0xff] }
 0x5e5   :  { %14407 = vmatprep.subr.bf16.mxu0 %v17504_v59 }
 0x5e7   :  { %4343 = vmatmul.mubr.f32.gmra.mrb[6].mxu0 %v17529_v62 }
 0x5e8   :  { %14409 = vmatpush1.bf16.msra.mxu0 %v17517_v18  ;;  %4348 = vmatprep.mubr.f32.mxu0 %v22088_v10 }
 0x5e9   :  { %14411 = vmatprep.subr.bf16.mxu0 %v17524_v40 }
 0x5eb   :  { %4350 = vmatmul.mubr.f32.gmra.mrb[8].mxu0 %v17555_v61 }
 0x5ec   :  { %14413 = vmatpush1.bf16.msra.mxu0 %v17540_v47  ;;  %4355 = vmatprep.mubr.f32.mxu0 %v22088_v10 }
 0x5ed   :  { %14415 = vmatprep.subr.bf16.mxu0 %v17547_v33 }
 0x5ef   :  { %4357 = vmatmul.mubr.f32.gmra.mrb[10].mxu0 %v17594_v30 }
 0x5f0   :  { %14417 = vmatpush1.bf16.msra.mxu0 %v17568_v35  ;;  %4447 = vmatprep.mubr.f32.mxu0 %v22088_v10 }
 0x5f1   :  { %14419 = vmatprep.subr.bf16.mxu0 %v17576_v54 }
 0x5f4   :  { %14421 = vmatpush1.bf16.msra.mxu0 %v17601_v0 }
 0x5f7   :  { %4449 = vmatmul.mubr.f32.vlgmr.msra.gmra.mrb[4].mxu0 %v17506_v2 }
 0x5f8   :  { %4454 = vmatprep.mubr.f32.mxu0 %v22088_v10 }
 0x5fb   :  { %4456 = vmatmul.mubr.f32.gmra.mrb[6].mxu0 %v17529_v62 }
 0x5fc   :  { %4461 = vmatprep.mubr.f32.mxu0 %v22088_v10 }
 0x5ff   :  { %4463 = vmatmul.mubr.f32.gmra.mrb[8].mxu0 %v17555_v61 }
 0x600   :  { %4468 = vmatprep.mubr.f32.mxu0 %v22088_v10  ;;  %v4682_v10 = vld [vmem:[%s21124_s7 + $0xf8] sm:$0xff] }
 0x603   :  { %4470 = vmatmul.mubr.f32.gmra.mrb[10].mxu0 %v17594_v30 }
 0x6ca   :  { %v4450_v59 = vpop.f32.mrb[4].mxu0 }
 0x6cb   :  { %v15348_v2 = vadd.f32 %v4450_v59, %v2144_v31  ;;  %v4452_v18 = vpop.f32.mrb[5].mxu0  ;;  %v17836_v59 = vsub.f32 %v4668_v48, %v4782_v38 }
 0x6cc   :  { %v15349_v40 = vadd.f32 %v4452_v18, %v2148_v50  ;;  %v4672_v18 = vld [vmem:[%s21124_s7 + $0xa8] sm:$0xff] }
 0x6cd   :  { %v4476_v62 = vmax.f32 %v15348_v2, 0.0  ;;  %v17838_v2 = vsub.f32 %v4651_v27, %v4731_v26 }
 0x6ce   :  { %v4457_v58 = vpop.f32.mrb[6].mxu0  ;;  %v4477_v61 = vmax.f32 %v15349_v40, 0.0  ;;  %v4655_v40 = vld [vmem:[%s21124_s7 + $0x20] sm:$0xff] }
 0x6cf   :  { %v15350_v47 = vadd.f32 %v4457_v58, %v2144_v31  ;;  %v4459_v33 = vpop.f32.mrb[7].mxu0  ;;  %v4492_v30 = vrot.slane %v4476_v62, 1  ;;  %v4656_v58 = vld [vmem:[%s21124_s7 + $0x28] sm:$0xff] }
 0x6d0   :  { %v15351_v17 = vadd.f32 %v4459_v33, %v2148_v50  ;;  %v4495_v9 = vrot.slane %v4477_v61, 1  ;;  %v17853_v33 = vpack.c.bf16 %v4788_v44, %v4785_v29 }
 0x6d1   :  { %v4478_v35 = vmax.f32 %v15350_v47, 0.0  ;;  %v17851_v47 = vsub.f32 %v4652_v8, %v4734_v4 }
 0x6d2   :  { %v4479_v54 = vmax.f32 %v15351_v17, 0.0  ;;  %v4464_v46 = vpop.f32.mrb[8].mxu0  ;;  %22109 = vst [vmem:[#allocation18_spill] sm:$0xff] %v17853_v33  ;;  %v4673_v17 = vld [vmem:[%s21124_s7 + $0xb0] sm:$0xff] }
 0x6d3   :  { %v4493_v0 = vrot.slane %v4478_v35, 1  ;;  %v15352_v32 = vadd.f32 %v4464_v46, %v2144_v31  ;;  %v4466_v19 = vpop.f32.mrb[9].mxu0  ;;  %v4740_v46 = vand.u32 4294901760, %v4654_v28 }
 0x6d4   :  { %v4496_v24 = vrot.slane %v4479_v54, 1  ;;  %v15353_v16 = vadd.f32 %v4466_v19, %v2148_v50  ;;  %v4743_v19 = vand.u32 4294901760, %v4655_v40 }
 0x6d5   :  { %v4480_v21 = vmax.f32 %v15352_v32, 0.0  ;;  %v4494_v41 = vsel %vm1284_vm2, %v4492_v30, %v4493_v0  ;;  %v4791_v30 = vand.u32 4294901760, %v4671_v57  ;;  %v4794_v32 = vand.u32 4294901760, %v4672_v18 }
 0x6d6   :  { %v4481_v22 = vmax.f32 %v15353_v16, 0.0  ;;  %v4471_v49 = vpop.f32.mrb[10].mxu0  ;;  %v17768_v12 = vmax.f32 %v4476_v62, %v4494_v41  ;;  %v4497_v36 = vsel %vm1284_vm2, %v4495_v9, %v4496_v24  ;;  %v17849_v62 = vpack.c.bf16 %v4734_v4, %v4731_v26  ;;  %v4657_v16 = vld [vmem:[%s21124_s7 + $0x30] sm:$0xff] }
 0x6d7   :  { %v4498_v34 = vrot.slane %v4480_v21, 1  ;;  %v15354_v39 = vadd.f32 %v4471_v49, %v2144_v31  ;;  %v4473_v11 = vpop.f32.mrb[11].mxu0  ;;  %v17771_v52 = vmax.f32 %v4477_v61, %v4497_v36  ;;  %v17832_v31 = vpack.c.bf16 %v4782_v38, %v4779_v23 }
 0x6d8   :  { %v4500_v25 = vrot.slane %v4481_v22, 1  ;;  %v15355_v63 = vadd.f32 %v4473_v11, %v2148_v50  ;;  %4530 = vrot.lane.b32.xlu0 %v17768_v12, %s15676_s29  ;;  %v17834_v50 = vsub.f32 %v4667_v60, %v4779_v23  ;;  %22108 = vst [vmem:[#allocation89_spill] sm:$0xff] %v17849_v62  ;;  %v17855_v61 = vsub.f32 %v4669_v5, %v4785_v29  ;;  %v4659_v11 = vld [vmem:[%s21124_s7 + $0x40] sm:$0xff]  ;;  %v4677_v5 = vld [vmem:[%s21124_s7 + $0xd0] sm:$0xff] }
 0x6d9   :  { %v4482_v55 = vmax.f32 %v15354_v39, 0.0  ;;  %4532 = vrot.lane.b32.xlu1 %v17771_v52, %s15676_s29  ;;  %v4499_v7 = vsel %vm1284_vm2, %v4493_v0, %v4498_v34  ;;  %22107 = vst [vmem:[#allocation17_spill] sm:$0xff] %v17832_v31  ;;  %14423 = vmatprep.subr.bf16.mxu1 %v17832_v31  ;;  %v4674_v0 = vld [vmem:[%s21124_s7 + $0xb8] sm:$0xff]  ;;  %v4746_v9 = vand.u32 4294901760, %v4656_v58  ;;  %v17878_v49 = vsub.f32 %v4654_v28, %v4740_v46  ;;  %v4676_v39 = vld [vmem:[%s21124_s7 + $0xc8] sm:$0xff] }
 0x6da   :  { %v4483_v6 = vmax.f32 %v15355_v63, 0.0  ;;  %v17778_v42 = vmax.f32 %v4478_v35, %v4499_v7  ;;  %v4501_v13 = vsel %vm1284_vm2, %v4496_v24, %v4500_v25  ;;  %v17861_v35 = vsub.f32 %v4670_v20, %v4788_v44  ;;  %14425 = vmatpush3.bf16.msra.mxu1 %v17849_v62  ;;  %v4678_v20 = vld [vmem:[%s21124_s7 + $0xd8] sm:$0xff] }
 0x6db   :  { %v4502_v1 = vrot.slane %v4482_v55, 1  ;;  %v17781_v51 = vmax.f32 %v4479_v54, %v4501_v13  ;;  %v4737_v54 = vand.u32 4294901760, %v4653_v56  ;;  %v4797_v24 = vand.u32 4294901760, %v4673_v17  ;;  %14427 = vmatprep.subr.bf16.mxu1 %v17853_v33 }
 0x6dc   :  { %v4504_v3 = vrot.slane %v4483_v6, 1  ;;  %4534 = vrot.lane.b32.xlu0 %v17778_v42, %s15676_s29  ;;  %v17880_v36 = vsub.f32 %v4671_v57, %v4791_v30  ;;  %v17893_v63 = vsub.f32 %v4672_v18, %v4794_v32  ;;  %v17897_v7 = vsub.f32 %v4655_v40, %v4743_v19 }
 0x6dd   :  { %4536 = vrot.lane.b32.xlu1 %v17781_v51, %s15676_s29  ;;  %v4503_v53 = vsel %vm1284_vm2, %v4498_v34, %v4502_v1  ;;  %v17797_v15 = vmax.f32 %v4482_v55, %v4502_v1  ;;  %v17874_v41 = vpack.c.bf16 %v4740_v46, %v4737_v54  ;;  %v4675_v34 = vld [vmem:[%s21124_s7 + $0xc0] sm:$0xff]  ;;  %v17895_v55 = vpack.c.bf16 %v4746_v9, %v4743_v19 }
 0x6de   :  { %v17788_v14 = vmax.f32 %v4480_v21, %v4503_v53  ;;  %v4505_v37 = vsel %vm1284_vm2, %v4500_v25, %v4504_v3  ;;  %v17799_v45 = vmax.f32 %v4483_v6, %v4504_v3  ;;  %v4658_v21 = vld [vmem:[%s21124_s7 + $0x38] sm:$0xff]  ;;  %v17891_v25 = vpack.c.bf16 %v4794_v32, %v4791_v30  ;;  %v4660_v6 = vld [vmem:[%s21124_s7 + $0x48] sm:$0xff] }
 0x6df   :  { %v17791_v43 = vmax.f32 %v4481_v22, %v4505_v37  ;;  %22110 = vst [vmem:[#allocation19_spill] sm:$0xff] %v17874_v41  ;;  %v17876_v22 = vsub.f32 %v4653_v56, %v4737_v54  ;;  %22112 = vst [vmem:[#allocation23_spill] sm:$0xff] %v17895_v55  ;;  %v17902_v13 = vsub.f32 %v4656_v58, %v4746_v9  ;;  %v4800_v1 = vand.u32 4294901760, %v4674_v0  ;;  %v4662_v32 = vld [vmem:[%s21124_s7 + $0x58] sm:$0xff] }
 0x6e0   :  { %4538 = vrot.lane.b32.xlu0 %v17788_v14, %s15676_s29  ;;  %22111 = vst [vmem:[#allocation22_spill] sm:$0xff] %v17891_v25  ;;  %v17904_v3 = vsub.f32 %v4673_v17, %v4797_v24  ;;  %v4749_v53 = vand.u32 4294901760, %v4657_v16  ;;  %14429 = vmatpush3.bf16.msra.mxu1 %v17874_v41  ;;  %v4752_v37 = vand.u32 4294901760, %v4658_v21  ;;  %v4803_v60 = vand.u32 4294901760, %v4675_v34 }
 0x6e1   :  { %4540 = vrot.lane.b32.xlu1 %v17791_v43, %s15676_s29  ;;  %v4806_v48 = vand.u32 4294901760, %v4676_v39  ;;  %v4755_v27 = vand.u32 4294901760, %v4659_v11  ;;  %14431 = vmatprep.subr.bf16.mxu1 %v17891_v25  ;;  %v17908_v23 = vpack.c.bf16 %v4800_v1, %v4797_v24  ;;  %v17910_v38 = vsub.f32 %v4674_v0, %v4800_v1  ;;  %v4661_v0 = vld [vmem:[%s21124_s7 + $0x50] sm:$0xff]  ;;  %v4664_v1 = vld [vmem:[%s21124_s7 + $0x68] sm:$0xff] }
 0x6e2   :  { %v17912_v8 = vsub.f32 %v4657_v16, %v4749_v53  ;;  %v4758_v26 = vand.u32 4294901760, %v4660_v6  ;;  %v17920_v4 = vsub.f32 %v4658_v21, %v4752_v37  ;;  %v17922_v29 = vsub.f32 %v4675_v34, %v4803_v60  ;;  %v4679_v16 = vld [vmem:[%s21124_s7 + $0xe0] sm:$0xff]  ;;  %v4680_v21 = vld [vmem:[%s21124_s7 + $0xe8] sm:$0xff] }
 0x6e3   :  { %22113 = vst [vmem:[#allocation25_spill] sm:$0xff] %v17908_v23  ;;  %v17924_v44 = vsub.f32 %v4676_v39, %v4806_v48  ;;  %v17926_v56 = vsub.f32 %v4659_v11, %v4755_v27  ;;  %v17931_v57 = vpack.c.bf16 %v4752_v37, %v4749_v53  ;;  %v4809_v18 = vand.u32 4294901760, %v4677_v5 }
 0x6e4   :  { %4542 = vrot.lane.b32.xlu0 %v17797_v15, %s15676_s29  ;;  %v17928_v28 = vsub.f32 %v4660_v6, %v4758_v26  ;;  %14433 = vmatpush3.bf16.msra.mxu1 %v17895_v55  ;;  %v4812_v40 = vand.u32 4294901760, %v4678_v20  ;;  %v17934_v58 = vpack.c.bf16 %v4806_v48, %v4803_v60  ;;  %v17941_v46 = vpack.c.bf16 %v4758_v26, %v4755_v27  ;;  %v4663_v6 = vld [vmem:[%s21124_s7 + $0x60] sm:$0xff] }
 0x6e5   :  { %4544 = vrot.lane.b32.xlu1 %v17799_v45, %s15676_s29  ;;  %22114 = vst [vmem:[#allocation26_spill] sm:$0xff] %v17931_v57  ;;  %14435 = vmatprep.subr.bf16.mxu1 %v17908_v23  ;;  %v17936_v17 = vsub.f32 %v4677_v5, %v4809_v18  ;;  %v4761_v19 = vand.u32 4294901760, %v4661_v0  ;;  %v4764_v9 = vand.u32 4294901760, %v4662_v32  ;;  %v4815_v39 = vand.u32 4294901760, %v4679_v16 }
 0x6e6   :  { %22115 = vst [vmem:[#allocation27_spill] sm:$0xff] %v17934_v58  ;;  %v17938_v54 = vsub.f32 %v4678_v20, %v4812_v40  ;;  %22116 = vst [vmem:[#allocation29_spill] sm:$0xff] %v17941_v46  ;;  %v17944_v30 = vpack.c.bf16 %v4812_v40, %v4809_v18  ;;  %v4818_v11 = vand.u32 4294901760, %v4680_v21  ;;  %v4767_v37 = vand.u32 4294901760, %v4663_v6  ;;  %v4681_v40 = vld [vmem:[%s21124_s7 + $0xf0] sm:$0xff] }
 0x6e7   :  { %v17954_v24 = vpack.c.bf16 %v4764_v9, %v4761_v19  ;;  %v4770_v60 = vand.u32 4294901760, %v4664_v1  ;;  %v17970_v27 = vsub.f32 %v4661_v0, %v4761_v19  ;;  %v17972_v26 = vsub.f32 %v4662_v32, %v4764_v9 }
 0x6e8   :  { %14437 = vmatpush3.bf16.msra.mxu1 %v17931_v57  ;;  %22117 = vst [vmem:[#allocation30_spill] sm:$0xff] %v17944_v30  ;;  %v17974_v5 = vpack.c.bf16 %v4818_v11, %v4815_v39  ;;  %v17976_v20 = vsub.f32 %v4679_v16, %v4815_v39  ;;  %v17978_v18 = vsub.f32 %v4680_v21, %v4818_v11  ;;  %v4821_v0 = vand.u32 4294901760, %v4681_v40  ;;  %v4665_v16 = vld [vmem:[%s21124_s7 + $0x70] sm:$0xff] }
 0x6e9   :  { %14439 = vmatprep.subr.bf16.mxu1 %v17934_v58  ;;  %22118 = vst [vmem:[#allocation32_spill] sm:$0xff] %v17954_v24  ;;  %v4824_v9 = vand.u32 4294901760, %v4682_v10  ;;  %v17997_v39 = vsub.f32 %v4663_v6, %v4767_v37  ;;  %v17999_v11 = vsub.f32 %v4664_v1, %v4770_v60  ;;  %v4773_v6 = vand.u32 4294901760, %v4665_v16 }
 0x6ea   :  { %22119 = vst [vmem:[#allocation33_spill] sm:$0xff] %v17974_v5  ;;  %v21430_v57 = vand.u32 4294901760, %v17836_v59  ;;  %v21431_v23 = vand.u32 4294901760, %v17838_v2  ;;  %v21432_v33 = vand.u32 4294901760, %v17851_v47 }
 0x6ec   :  { %14441 = vmatpush3.bf16.msra.mxu1 %v17941_v46 }
 0x6ed   :  { %14443 = vmatprep.subr.bf16.mxu1 %v17944_v30  ;;  %v18009_v30 = vsub.f32 %v4681_v40, %v4821_v0 }
 0x6ef   :  { %22122 = vst [vmem:[#allocation45_spill] sm:$0xff] %v18009_v30 }
 0x6f0   :  { %14445 = vmatpush3.bf16.msra.mxu1 %v17954_v24 }
 0x6f1   :  { %14447 = vmatprep.subr.bf16.mxu1 %v17974_v5  ;;  %v18007_v5 = vpack.c.bf16 %v4824_v9, %v4821_v0 }
 0x6f3   :  { %22121 = vst [vmem:[#allocation40_spill] sm:$0xff] %v18007_v5 }
 0x74a   :  { %v4531_v34 = vpop.permute.xlu0 %4530 }
 0x74b   :  { %v4533_v53 = vpop.permute.xlu1 %4532 }
 0x74c   :  { %v4546_v48 = vsel %vm2045_vm5, %v4531_v34, %v4533_v53  ;;  %v17986_v34 = vpack.c.bf16 %v4770_v60, %v4767_v37 }
 0x74d   :  { %v17989_v32 = vmax.f32 %v17768_v12, %v4546_v48  ;;  %v4666_v12 = vld [vmem:[%s21124_s7 + $0x78] sm:$0xff] }
 0x74e   :  { %v4535_v24 = vpop.permute.xlu0 %4534  ;;  %22120 = vst [vmem:[#allocation34_spill] sm:$0xff] %v17986_v34  ;;  %14449 = vmatpush3.bf16.msra.mxu1 %v17986_v34  ;;  %v18014_v34 = vsub.f32 %v4682_v10, %v4824_v9 }
 0x74f   :  { %v4537_v19 = vpop.permute.xlu1 %4536  ;;  %v4574_v37 = vrot.slane %v17989_v32, 2  ;;  %14451 = vmatprep.subr.bf16.mxu1 %v18007_v5 }
 0x750   :  { %v4547_v21 = vsel %vm2045_vm5, %v4535_v24, %v4537_v19  ;;  %v18012_v46 = vmax.f32 %v17781_v51, %v4537_v19  ;;  %22124 = vst [vmem:[#allocation51_spill] sm:$0xff] %v18014_v34 }
 0x751   :  { %v18005_v48 = vmax.f32 %v17778_v42, %v4547_v21  ;;  %v4776_v42 = vand.u32 4294901760, %v4666_v12  ;;  %v18020_v21 = vmax.f32 %v17771_v52, %v4533_v53  ;;  %v18034_v52 = vsub.f32 %v4665_v16, %v4773_v6 }
 0x752   :  { %22123 = vst [vmem:[#allocation47_spill] sm:$0xff] %v18012_v46  ;;  %v4539_v24 = vpop.permute.xlu0 %4538  ;;  %v4578_v5 = vrot.slane %v18012_v46, 2 }
 0x753   :  { %v4541_v1 = vpop.permute.xlu1 %4540  ;;  %v4575_v60 = vrot.slane %v18005_v48, 2  ;;  %v18027_v0 = vpack.c.bf16 %v4776_v42, %v4773_v6  ;;  %22127 = vst [vmem:[#allocation55_spill] sm:$0xff] %v18034_v52  ;;  %v18036_v53 = vsub.f32 %v4666_v12, %v4776_v42  ;;  %v4613_v6 = vrot.slane %v18020_v21, 4 }
 0x754   :  { %v4548_v40 = vsel %vm2045_vm5, %v4539_v24, %v4541_v1  ;;  %v18030_v19 = vmax.f32 %v17791_v43, %v4541_v1  ;;  %v21421_v43 = vand.u32 4294901760, %v17834_v50 }
 0x755   :  { %v18024_v51 = vmax.f32 %v17788_v14, %v4548_v40  ;;  %v4576_v10 = vsel %vm1304_vm1, %v4574_v37, %v4575_v60  ;;  %22125 = vst [vmem:[#allocation53_spill] sm:$0xff] %v18027_v0  ;;  %22128 = vst [vmem:[#allocation57_spill] sm:$0xff] %v18036_v53  ;;  %v4614_v37 = vrot.slane %v18012_v46, 4  ;;  %14453 = vmatpush3.bf16.msra.mxu1 %v18027_v0  ;;  %v4577_v40 = vrot.slane %v18020_v21, 2 }
 0x756   :  { %22126 = vst [vmem:[#allocation54_spill] sm:$0xff] %v18030_v19  ;;  %4588 = vrot.lane.b32.xlu0 %v4576_v10, %s15678_s19  ;;  %v4543_v9 = vpop.permute.xlu0 %4542  ;;  %v4611_v10 = vrot.slane %v18005_v48, 4  ;;  %v4988_v42 = vsub.f32 %v17834_v50, %v21421_v43  ;;  %v4610_v0 = vrot.slane %v17989_v32, 4  ;;  %v4582_v58 = vrot.slane %v18030_v19, 2 }
 0x757   :  { %v4545_v24 = vpop.permute.xlu1 %4544  ;;  %v4580_v14 = vrot.slane %v18024_v51, 2 }
 0x758   :  { %v4549_v1 = vsel %vm2045_vm5, %v4543_v9, %v4545_v24  ;;  %v4579_v9 = vsel %vm1304_vm1, %v4577_v40, %v4578_v5  ;;  %v4612_v43 = vsel %vm4609_vm8, %v4610_v0, %v4611_v10  ;;  %v4989_v55 = vand.u32 4294901760, %v4988_v42 }
 0x759   :  { %v18046_v16 = vmax.f32 %v17797_v15, %v4549_v1  ;;  %v4581_v12 = vsel %vm1304_vm1, %v4575_v60, %v4580_v14  ;;  %v4615_v60 = vsel %vm4609_vm8, %v4613_v6, %v4614_v37  ;;  %v4618_v1 = vrot.slane %v18030_v19, 4 }
 0x75a   :  { %4592 = vrot.lane.b32.xlu1 %v4581_v12, %s15678_s19  ;;  %v4995_v40 = vsub.f32 %v17836_v59, %v21430_v57  ;;  %v4565_v25 = vmax.f32 %v17799_v45, %v4545_v24  ;;  %v4876_v6 = vsub.f32 %v17838_v2, %v21431_v23  ;;  %v4583_v0 = vsel %vm1304_vm1, %v4578_v5, %v4582_v58 }
 0x75b   :  { %v4584_v15 = vrot.slane %v18046_v16, 2  ;;  %v21434_v12 = vand.u32 4294901760, %v17855_v61  ;;  %v21433_v57 = vand.u32 4294901760, %v17861_v35  ;;  %v4619_v45 = vsel %vm4609_vm8, %v4614_v37, %v4618_v1 }
 0x75c   :  { %v4996_v42 = vand.u32 4294901760, %v4995_v40  ;;  %v4877_v24 = vand.u32 4294901760, %v4876_v6  ;;  %v4586_v40 = vrot.slane %v4565_v25, 2 }
 0x75d   :  { %v4585_v41 = vsel %vm1304_vm1, %v4580_v14, %v4584_v15  ;;  %v4883_v14 = vsub.f32 %v17851_v47, %v21432_v33  ;;  %v21437_v15 = vand.u32 4294901760, %v17876_v22  ;;  %v5009_v5 = vsub.f32 %v17861_v35, %v21433_v57 }
 0x75e   :  { %4590 = vrot.lane.b32.xlu1 %v4579_v9, %s15678_s19  ;;  %4596 = vrot.lane.b32.xlu0 %v4585_v41, %s15678_s19  ;;  %v14454_v23 = vpack.c.bf16 %v4996_v42, %v4989_v55  ;;  %v5002_v41 = vsub.f32 %v17855_v61, %v21434_v12  ;;  %v21440_v9 = vand.u32 4294901760, %v17878_v49  ;;  %v21461_v12 = vand.u32 4294901760, %v17893_v63 }
 0x75f   :  { %v4884_v37 = vand.u32 4294901760, %v4883_v14  ;;  %v4890_v6 = vsub.f32 %v17876_v22, %v21437_v15  ;;  %v5010_v42 = vand.u32 4294901760, %v5009_v5  ;;  %v22129_v14 = vrot.slane %v18024_v51, 4 }
 0x760   :  { %v5003_v55 = vand.u32 4294901760, %v5002_v41  ;;  %v4897_v57 = vsub.f32 %v17878_v49, %v21440_v9  ;;  %14455 = vmatprep.subr.bf16.mxu1 %v14454_v23  ;;  %v4622_v41 = vrot.slane %v4565_v25, 4  ;;  %v5023_v9 = vsub.f32 %v17893_v63, %v21461_v12 }
 0x761   :  { %v4617_v62 = vsel %vm4609_vm8, %v4611_v10, %v22129_v14  ;;  %v18103_v15 = vpack.c.bf16 %v4884_v37, %v4877_v24  ;;  %v4891_v33 = vand.u32 4294901760, %v4890_v6  ;;  %v4587_v19 = vsel %vm1304_vm1, %v4582_v58, %v4586_v40 }
 0x762   :  { %4626 = vrot.lane.b32.xlu1 %v4615_v60, %s15675_s0  ;;  %4624 = vrot.lane.b32.xlu0 %v4612_v43, %s15675_s0  ;;  %v22130_v60 = vand.u32 4294901760, %v17880_v36  ;;  %v18108_v5 = vpack.c.bf16 %v5010_v42, %v5003_v55  ;;  %v4898_v31 = vand.u32 4294901760, %v4897_v57  ;;  %v21458_v23 = vand.u32 4294901760, %v17897_v7 }
 0x763   :  { %v21457_v10 = vand.u32 4294901760, %v17902_v13  ;;  %v4620_v24 = vrot.slane %v18046_v16, 4  ;;  %v5024_v57 = vand.u32 4294901760, %v5023_v9  ;;  %v21456_v37 = vand.u32 4294901760, %v17904_v3 }
 0x764   :  { %v5016_v43 = vsub.f32 %v17880_v36, %v22130_v60  ;;  %v18119_v25 = vpack.c.bf16 %v4898_v31, %v4891_v33  ;;  %v4904_v58 = vsub.f32 %v17897_v7, %v21458_v23  ;;  %v21450_v6 = vand.u32 4294901760, %v17910_v38 }
 0x765   :  { %v4911_v40 = vsub.f32 %v17902_v13, %v21457_v10  ;;  %v21443_v16 = vand.u32 4294901760, %v17912_v8  ;;  %v5030_v31 = vsub.f32 %v17904_v3, %v21456_v37  ;;  %v21447_v33 = vand.u32 4294901760, %v17920_v4 }
 0x766   :  { %v5017_v46 = vand.u32 4294901760, %v5016_v43  ;;  %4598 = vrot.lane.b32.xlu1 %v4587_v19, %s15678_s19  ;;  %4594 = vrot.lane.b32.xlu0 %v4583_v0, %s15678_s19  ;;  %v4623_v19 = vsel %vm4609_vm8, %v4618_v1, %v4622_v41  ;;  %v4905_v9 = vand.u32 4294901760, %v4904_v58  ;;  %v5037_v42 = vsub.f32 %v17910_v38, %v21450_v6 }
 0x767   :  { %v4912_v55 = vand.u32 4294901760, %v4911_v40  ;;  %v4918_v14 = vsub.f32 %v17912_v8, %v21443_v16  ;;  %v5031_v60 = vand.u32 4294901760, %v5030_v31  ;;  %v4925_v43 = vsub.f32 %v17920_v4, %v21447_v33 }
 0x768   :  { %v18131_v0 = vpack.c.bf16 %v5024_v57, %v5017_v46  ;;  %v22131_v46 = vrot.slane %v18024_v51, 4  ;;  %v21445_v41 = vand.u32 4294901760, %v17922_v29  ;;  %v5038_v58 = vand.u32 4294901760, %v5037_v42 }
 0x769   :  { %v18152_v57 = vpack.c.bf16 %v4912_v55, %v4905_v9  ;;  %v4919_v40 = vand.u32 4294901760, %v4918_v14  ;;  %v21444_v16 = vand.u32 4294901760, %v17924_v44  ;;  %v21448_v31 = vand.u32 4294901760, %v17928_v28 }
 0x76a   :  { %4628 = vrot.lane.b32.xlu1 %v4617_v62, %s15675_s0  ;;  %4630 = vrot.lane.b32.xlu0 %v4619_v45, %s15675_s0  ;;  %v4621_v1 = vsel %vm4609_vm8, %v22131_v46, %v4620_v24  ;;  %v4926_v62 = vand.u32 4294901760, %v4925_v43  ;;  %v5044_v45 = vsub.f32 %v17922_v29, %v21445_v41  ;;  %v21446_v24 = vand.u32 4294901760, %v17926_v56 }
 0x76b   :  { %v18160_v46 = vpack.c.bf16 %v5038_v58, %v5031_v60  ;;  %v5051_v9 = vsub.f32 %v17924_v44, %v21444_v16  ;;  %v21449_v55 = vand.u32 4294901760, %v17936_v17  ;;  %v21451_v42 = vand.u32 4294901760, %v17938_v54 }
 0x76c   :  { %v18169_v14 = vpack.c.bf16 %v4926_v62, %v4919_v40  ;;  %v5045_v43 = vand.u32 4294901760, %v5044_v45  ;;  %v4932_v60 = vsub.f32 %v17926_v56, %v21446_v24  ;;  %v4939_v58 = vsub.f32 %v17928_v28, %v21448_v31 }
 0x76d   :  { %v5052_v16 = vand.u32 4294901760, %v5051_v9  ;;  %v5058_v41 = vsub.f32 %v17936_v17, %v21449_v55  ;;  %v21453_v45 = vand.u32 4294901760, %v17972_v26  ;;  %v21454_v24 = vand.u32 4294901760, %v17976_v20 }
 0x76e   :  { %4634 = vrot.lane.b32.xlu1 %v4623_v19, %s15675_s0  ;;  %4632 = vrot.lane.b32.xlu0 %v4621_v1, %s15675_s0  ;;  %v5065_v19 = vsub.f32 %v17938_v54, %v21451_v42  ;;  %v21452_v1 = vand.u32 4294901760, %v17970_v27  ;;  %v4933_v40 = vand.u32 4294901760, %v4932_v60  ;;  %v4940_v62 = vand.u32 4294901760, %v4939_v58 }
 0x76f   :  { %v18186_v33 = vpack.c.bf16 %v5052_v16, %v5045_v43  ;;  %v5059_v31 = vand.u32 4294901760, %v5058_v41  ;;  %v4953_v42 = vsub.f32 %v17972_v26, %v21453_v45  ;;  %v5072_v60 = vsub.f32 %v17976_v20, %v21454_v24 }
 0x770   :  { %v5066_v9 = vand.u32 4294901760, %v5065_v19  ;;  %v4946_v55 = vsub.f32 %v17970_v27, %v21452_v1  ;;  %v18191_v6 = vpack.c.bf16 %v4940_v62, %v4933_v40  ;;  %v21455_v58 = vand.u32 4294901760, %v17978_v18 }
 0x771   :  { %v21459_v43 = vand.u32 4294901760, %v17997_v39  ;;  %v21460_v19 = vand.u32 4294901760, %v17999_v11  ;;  %v4954_v1 = vand.u32 4294901760, %v4953_v42  ;;  %v5073_v40 = vand.u32 4294901760, %v5072_v60 }
 0x772   :  { %v18200_v16 = vpack.c.bf16 %v5066_v9, %v5059_v31  ;;  %v4947_v41 = vand.u32 4294901760, %v4946_v55  ;;  %v5079_v62 = vsub.f32 %v17978_v18, %v21455_v58  ;;  %v21462_v45 = vand.u32 4294901760, %v18009_v30 }
 0x773   :  { %v4960_v24 = vsub.f32 %v17997_v39, %v21459_v43  ;;  %v4967_v31 = vsub.f32 %v17999_v11, %v21460_v19  ;;  %v21463_v55 = vand.u32 4294901760, %v18014_v34  ;;  %v21465_v9 = vand.u32 4294901760, %v18034_v52 }
 0x774   :  { %v18216_v42 = vpack.c.bf16 %v4954_v1, %v4947_v41  ;;  %v5080_v60 = vand.u32 4294901760, %v5079_v62  ;;  %v5086_v58 = vsub.f32 %v18009_v30, %v21462_v45  ;;  %v21464_v37 = vand.u32 4294901760, %v18036_v53 }
 0x775   :  { %v4961_v10 = vand.u32 4294901760, %v4960_v24  ;;  %v4968_v23 = vand.u32 4294901760, %v4967_v31  ;;  %v5093_v43 = vsub.f32 %v18014_v34, %v21463_v55  ;;  %v4974_v19 = vsub.f32 %v18034_v52, %v21465_v9 }
 0x776   :  { %22132 = vst [vmem:[#allocation58_spill] sm:$0xff] %v18216_v42  ;;  %v18228_v12 = vpack.c.bf16 %v5080_v60, %v5073_v40  ;;  %v5087_v1 = vand.u32 4294901760, %v5086_v58  ;;  %v4981_v41 = vsub.f32 %v18036_v53, %v21464_v37  ;;  %v22136_v58 = vld [vmem:[#allocation47_spill] sm:$0xff] }
 0x777   :  { %v18235_v24 = vpack.c.bf16 %v4968_v23, %v4961_v10  ;;  %v5094_v31 = vand.u32 4294901760, %v5093_v43  ;;  %v4975_v45 = vand.u32 4294901760, %v4974_v19 }
 0x778   :  { %v4982_v42 = vand.u32 4294901760, %v4981_v41  ;;  %v18272_v41 = vand.u32 4294901760, %v17989_v32 }
 0x779   :  { %v18241_v60 = vpack.c.bf16 %v5094_v31, %v5087_v1 }
 0x77a   :  { %v18245_v37 = vpack.c.bf16 %v4982_v42, %v4975_v45  ;;  %v18276_v45 = vsub.f32 %v17989_v32, %v18272_v41  ;;  %v18279_v42 = vand.u32 4294901760, %v18005_v48  ;;  %v18294_v32 = vand.u32 4294901760, %v18024_v51 }
 0x77c   :  { %22133 = vst [vmem:[#allocation61_spill] sm:$0xff] %v18276_v45  ;;  %v21472_v1 = vand.u32 4294901760, %v18276_v45  ;;  %v18291_v43 = vsub.f32 %v18005_v48, %v18279_v42 }
 0x77e   :  { %v4835_v48 = vsub.f32 %v18276_v45, %v21472_v1  ;;  %v22139_v30 = vand.u32 4294901760, %v18291_v43 }
 0x780   :  { %v4836_v45 = vand.u32 4294901760, %v4835_v48  ;;  %v4850_v34 = vsub.f32 %v18291_v43, %v22139_v30 }
 0x782   :  { %v4851_v48 = vand.u32 4294901760, %v4850_v34  ;;  %v22140_v34 = vld [vmem:[#allocation58_spill] sm:$0xff] }
 0x7c8   :  { %v18281_v31 = vpop.permute.xlu0 %4588 }
 0x7c9   :  { %22134 = vst [vmem:[#allocation90_spill] sm:$0xff] %v18281_v31  ;;  %v4645_v9 = vsel %vm1346_vm4, %v18020_v21, %v18281_v31 }
 0x7ca   :  { %v18286_v19 = vand.u32 4294901760, %v4645_v9 }
 0x7cc   :  { %v18297_v10 = vsub.f32 %v4645_v9, %v18286_v19  ;;  %v18299_v23 = vpop.permute.xlu1 %4592 }
 0x7cd   :  { %22135 = vst [vmem:[#allocation94_spill] sm:$0xff] %v18299_v23  ;;  %v4646_v21 = vsel %vm1346_vm4, %v22136_v58, %v18299_v23  ;;  %v18321_v58 = vsub.f32 %v18024_v51, %v18294_v32  ;;  %v22138_v23 = vld [vmem:[#allocation54_spill] sm:$0xff] }
 0x7ce   :  { %v18304_v40 = vand.u32 4294901760, %v4646_v21  ;;  %v21479_v55 = vand.u32 4294901760, %v18297_v10 }
 0x7d0   :  { %v18312_v31 = vsub.f32 %v4646_v21, %v18304_v40  ;;  %v18314_v9 = vpop.permute.xlu0 %4596  ;;  %v4829_v52 = vsub.f32 %v18297_v10, %v21479_v55 }
 0x7d1   :  { %22137 = vst [vmem:[#allocation96_spill] sm:$0xff] %v18314_v9  ;;  %v4647_v53 = vsel %vm1346_vm4, %v22138_v23, %v18314_v9  ;;  %v21481_v23 = vand.u32 4294901760, %v18321_v58 }
 0x7d2   :  { %v18326_v1 = vand.u32 4294901760, %v4647_v53  ;;  %v4830_v62 = vand.u32 4294901760, %v4829_v52  ;;  %v21483_v21 = vand.u32 4294901760, %v18312_v31 }
 0x7d3   :  { %v4865_v30 = vsub.f32 %v18321_v58, %v21481_v23  ;;  %v22180_v23 = vld [vmem:[#allocation53_spill] sm:$0xff] }
 0x7d4   :  { %v18333_v55 = vsub.f32 %v4647_v53, %v18326_v1  ;;  %4831 = vmatprep.mubr.f32.mxu1 %v4830_v62  ;;  %v4844_v51 = vsub.f32 %v18312_v31, %v21483_v21  ;;  %v22182_v21 = vand.u32 4294901760, %v17851_v47 }
 0x7d5   :  { %4837 = vmatmul.mubr.f32.vlgmr.msra.gmra.mrb[12].mxu1 %v4836_v45  ;;  %v22154_v45 = vpack.c.bf16 %v17999_v11, %v17997_v39 }
 0x7d6   :  { %14457 = vmatpush3.bf16.msra.mxu1 %v18103_v15  ;;  %v4845_v52 = vand.u32 4294901760, %v4844_v51  ;;  %v21482_v9 = vand.u32 4294901760, %v18333_v55  ;;  %v4866_v15 = vand.u32 4294901760, %v4865_v30  ;;  %v22155_v51 = vld [vmem:[#allocation51_spill] sm:$0xff]  ;;  %v22158_v30 = vld [vmem:[#allocation57_spill] sm:$0xff] }
 0x7d7   :  { %14459 = vmatprep.subr.bf16.mxu1 %v18108_v5  ;;  %v22141_v5 = vpack.c.bf16 %v17836_v59, %v17834_v50 }
 0x7d8   :  { %4846 = vmatprep.mubr.f32.mxu1 %v4845_v52  ;;  %v4859_v53 = vsub.f32 %v18333_v55, %v21482_v9  ;;  %v22156_v52 = vld [vmem:[#allocation45_spill] sm:$0xff]  ;;  %v22181_v9 = vand.u32 4294901760, %v17838_v2 }
 0x7d9   :  { %4852 = vmatmul.mubr.f32.gmra.mrb[14].mxu1 %v4851_v48  ;;  %v22157_v48 = vpack.c.bf16 %v22155_v51, %v22156_v52 }
 0x7da   :  { %14461 = vmatpush3.bf16.msra.mxu1 %v18119_v25  ;;  %v4860_v62 = vand.u32 4294901760, %v4859_v53  ;;  %v22142_v25 = vpack.c.bf16 %v17851_v47, %v17838_v2  ;;  %v22159_v53 = vld [vmem:[#allocation55_spill] sm:$0xff]  ;;  %v22188_v2 = vand.u32 4294901760, %v17878_v49  ;;  %v22189_v47 = vand.u32 4294901760, %v17880_v36 }
 0x7db   :  { %14463 = vmatprep.subr.bf16.mxu1 %v18131_v0  ;;  %v22146_v0 = vpack.c.bf16 %v17902_v13, %v17897_v7 }
 0x7dc   :  { %4861 = vmatprep.mubr.f32.mxu1 %v4860_v62  ;;  %v22160_v62 = vpack.c.bf16 %v22158_v30, %v22159_v53 }
 0x7dd   :  { %4867 = vmatmul.mubr.f32.gmra.mrb[16].mxu1 %v4866_v15  ;;  %v22161_v15 = vld [vmem:[#allocation17_spill] sm:$0xff] }
 0x7de   :  { %14465 = vmatpush3.bf16.msra.mxu1 %v18152_v57  ;;  %5097 = vmatprep.mubr.f32.mxu1 %v18286_v19  ;;  %v22148_v57 = vpack.c.bf16 %v17920_v4, %v17912_v8 }
 0x7df   :  { %14467 = vmatprep.subr.bf16.mxu1 %v18160_v46  ;;  %v22149_v46 = vpack.c.bf16 %v17924_v44, %v17922_v29 }
 0x7e2   :  { %14469 = vmatpush3.bf16.msra.mxu1 %v18169_v14  ;;  %v22150_v14 = vpack.c.bf16 %v17928_v28, %v17926_v56 }
 0x7e3   :  { %14471 = vmatprep.subr.bf16.mxu1 %v18186_v33  ;;  %v22147_v33 = vpack.c.bf16 %v17910_v38, %v17904_v3 }
 0x7e6   :  { %14473 = vmatpush3.bf16.msra.mxu1 %v18191_v6  ;;  %v22145_v6 = vpack.c.bf16 %v17893_v63, %v17880_v36  ;;  %v22196_v36 = vand.u32 4294901760, %v17910_v38  ;;  %v22202_v38 = vand.u32 4294901760, %v17926_v56  ;;  %v22209_v56 = vand.u32 4294901760, %v17978_v18 }
 0x7e7   :  { %14475 = vmatprep.subr.bf16.mxu1 %v18200_v16  ;;  %v22151_v16 = vpack.c.bf16 %v17938_v54, %v17936_v17 }
 0x7ea   :  { %14477 = vmatpush3.bf16.msra.mxu1 %v22140_v34  ;;  %v22162_v34 = vld [vmem:[#allocation61_spill] sm:$0xff] }
 0x7eb   :  { %14479 = vmatprep.subr.bf16.mxu1 %v18228_v12  ;;  %v22143_v12 = vpack.c.bf16 %v17861_v35, %v17855_v61 }
 0x7ee   :  { %14481 = vmatpush3.bf16.msra.mxu1 %v18235_v24  ;;  %v22152_v24 = vpack.c.bf16 %v17972_v26, %v17970_v27 }
 0x7ef   :  { %14483 = vmatprep.subr.bf16.mxu1 %v18241_v60  ;;  %v22153_v60 = vpack.c.bf16 %v17978_v18, %v17976_v20 }
 0x7f2   :  { %14485 = vmatpush3.bf16.msra.mxu1 %v18245_v37  ;;  %v22144_v37 = vpack.c.bf16 %v17878_v49, %v17876_v22  ;;  %v22195_v49 = vand.u32 4294901760, %v17904_v3 }
 0x7f3   :  { %14487 = vmatprep.subr.bf16.mxu1 %v22141_v5  ;;  %v22163_v5 = vld [vmem:[#allocation89_spill] sm:$0xff] }
 0x7f5   :  { %5099 = vmatmul.mubr.f32.vlgmr.msra.gmra.mrb[18].mxu1 %v18272_v41 }
 0x7f6   :  { %5104 = vmatprep.mubr.f32.mxu1 %v18304_v40  ;;  %14489 = vmatpush3.bf16.msra.mxu1 %v22142_v25  ;;  %v22164_v25 = vld [vmem:[#allocation18_spill] sm:$0xff] }
 0x7f7   :  { %14491 = vmatprep.subr.bf16.mxu1 %v22143_v12  ;;  %v22165_v12 = vld [vmem:[#allocation19_spill] sm:$0xff] }
 0x7f9   :  { %5106 = vmatmul.mubr.f32.gmra.mrb[20].mxu1 %v18279_v42 }
 0x7fa   :  { %5111 = vmatprep.mubr.f32.mxu1 %v18326_v1  ;;  %14493 = vmatpush3.bf16.msra.mxu1 %v22144_v37  ;;  %v22166_v37 = vld [vmem:[#allocation22_spill] sm:$0xff] }
 0x7fb   :  { %14495 = vmatprep.subr.bf16.mxu1 %v22145_v6  ;;  %v22167_v6 = vld [vmem:[#allocation23_spill] sm:$0xff] }
 0x7fd   :  { %5113 = vmatmul.mubr.f32.gmra.mrb[22].mxu1 %v18294_v32 }
 0x7fe   :  { %14497 = vmatpush3.bf16.msra.mxu1 %v22146_v0  ;;  %5248 = vmatprep.mubr.f32.mxu1 %v18297_v10  ;;  %v22168_v0 = vand.u32 4294901760, %v18297_v10  ;;  %v22178_v10 = vand.u32 4294901760, %v17834_v50  ;;  %v22186_v50 = vand.u32 4294901760, %v18312_v31 }
 0x7ff   :  { %14499 = vmatprep.subr.bf16.mxu1 %v22147_v33  ;;  %v22169_v33 = vld [vmem:[#allocation25_spill] sm:$0xff] }
 0x802   :  { %14501 = vmatpush3.bf16.msra.mxu1 %v22148_v57  ;;  %v22170_v57 = vld [vmem:[#allocation26_spill] sm:$0xff] }
 0x803   :  { %14503 = vmatprep.subr.bf16.mxu1 %v22149_v46  ;;  %v22171_v46 = vld [vmem:[#allocation27_spill] sm:$0xff] }
 0x806   :  { %14505 = vmatpush3.bf16.msra.mxu1 %v22150_v14  ;;  %v22172_v14 = vld [vmem:[#allocation29_spill] sm:$0xff] }
 0x807   :  { %14507 = vmatprep.subr.bf16.mxu1 %v22151_v16  ;;  %v22173_v16 = vld [vmem:[#allocation30_spill] sm:$0xff] }
 0x80a   :  { %14509 = vmatpush3.bf16.msra.mxu1 %v22152_v24  ;;  %v22174_v24 = vld [vmem:[#allocation32_spill] sm:$0xff] }
 0x80b   :  { %14511 = vmatprep.subr.bf16.mxu1 %v22153_v60  ;;  %v22175_v60 = vld [vmem:[#allocation33_spill] sm:$0xff] }
 0x80e   :  { %14513 = vmatpush3.bf16.msra.mxu1 %v22154_v45  ;;  %v22176_v45 = vld [vmem:[#allocation34_spill] sm:$0xff] }
 0x80f   :  { %14515 = vmatprep.subr.bf16.mxu1 %v22157_v48  ;;  %v22177_v48 = vld [vmem:[#allocation40_spill] sm:$0xff] }
 0x812   :  { %14517 = vmatpush3.bf16.msra.mxu1 %v22160_v62  ;;  %v22179_v62 = vand.u32 4294901760, %v17836_v59  ;;  %v22187_v59 = vand.u32 4294901760, %v17876_v22  ;;  %v22194_v22 = vand.u32 4294901760, %v17902_v13  ;;  %v22200_v13 = vand.u32 4294901760, %v17922_v29 }
 0x813   :  { %14519 = vmatprep.subr.bf16.mxu1 %v22161_v15  ;;  %v22207_v29 = vand.u32 4294901760, %v17972_v26  ;;  %v4591_v26 = vpop.permute.xlu1 %4590 }
 0x815   :  { %5251 = vmatmul.mubr.f32.vlgmr.msra.gmra.mrb[24].mxu1 %v22162_v34 }
 0x816   :  { %5257 = vmatprep.mubr.f32.mxu1 %v18312_v31  ;;  %14521 = vmatpush3.bf16.msra.mxu1 %v22163_v5  ;;  %v22193_v31 = vand.u32 4294901760, %v17897_v7 }
 0x817   :  { %14523 = vmatprep.subr.bf16.mxu1 %v22164_v25 }
 0x819   :  { %5260 = vmatmul.mubr.f32.gmra.mrb[26].mxu1 %v18291_v43 }
 0x81a   :  { %5266 = vmatprep.mubr.f32.mxu1 %v18333_v55  ;;  %14525 = vmatpush3.bf16.msra.mxu1 %v22165_v12 }
 0x81b   :  { %14527 = vmatprep.subr.bf16.mxu1 %v22166_v37 }
 0x81d   :  { %5269 = vmatmul.mubr.f32.gmra.mrb[28].mxu1 %v18321_v58 }
 0x81e   :  { %14529 = vmatpush3.bf16.msra.mxu1 %v22167_v6  ;;  %5373 = vmatprep.mubr.f32.mxu1 %v22168_v0  ;;  %v14550_v0 = vpack.c.bf16 %v22179_v62, %v22178_v10  ;;  %v14556_v10 = vpack.c.bf16 %v22188_v2, %v22187_v59  ;;  %v22214_v2 = vand.u32 4294901760, %v22159_v53 }
 0x81f   :  { %14531 = vmatprep.subr.bf16.mxu1 %v22169_v33 }
 0x822   :  { %14533 = vmatpush3.bf16.msra.mxu1 %v22170_v57 }
 0x823   :  { %14535 = vmatprep.subr.bf16.mxu1 %v22171_v46 }
 0x826   :  { %14537 = vmatpush3.bf16.msra.mxu1 %v22172_v14 }
 0x827   :  { %14539 = vmatprep.subr.bf16.mxu1 %v22173_v16  ;;  %v14552_v16 = vpack.c.bf16 %v22182_v21, %v22181_v9  ;;  %v22192_v21 = vand.u32 4294901760, %v18333_v55  ;;  %v22198_v55 = vand.u32 4294901760, %v17912_v8  ;;  %v22205_v8 = vand.u32 4294901760, %v17938_v54 }
 0x828   :  { %v22212_v54 = vand.u32 4294901760, %v22156_v52 }
 0x82a   :  { %14541 = vmatpush3.bf16.msra.mxu1 %v22174_v24  ;;  %v22183_v24 = vand.u32 4294901760, %v17855_v61  ;;  %v22190_v61 = vand.u32 4294901760, %v17893_v63  ;;  %v22197_v63 = vand.u32 4294901760, %v18321_v58  ;;  %v22203_v58 = vand.u32 4294901760, %v17928_v28 }
 0x82b   :  { %14543 = vmatprep.subr.bf16.mxu1 %v22175_v60  ;;  %v22184_v60 = vand.u32 4294901760, %v17861_v35  ;;  %v22191_v35 = vand.u32 4294901760, %v18291_v43  ;;  %v22199_v43 = vand.u32 4294901760, %v17920_v4  ;;  %v22206_v4 = vand.u32 4294901760, %v17970_v27 }
 0x82c   :  { %v14558_v9 = vpack.c.bf16 %v22190_v61, %v22189_v47  ;;  %v22210_v28 = vand.u32 4294901760, %v17997_v39  ;;  %v22213_v27 = vand.u32 4294901760, %v22155_v51  ;;  %v18515_v39 = vpop.permute.xlu1 %4626  ;;  %v18550_v47 = vld [vmem:[%s21124_s7 + $0x180] sm:$0xff]  ;;  %v18555_v61 = vld [vmem:[%s21124_s7 + $0x188] sm:$0xff] }
 0x82d   :  { %v14564_v7 = vpack.c.bf16 %v22199_v43, %v22198_v55  ;;  %v14572_v62 = vpack.c.bf16 %v22207_v29, %v22206_v4  ;;  %22216 = vst [vmem:[#allocation99_spill] sm:$0xff] %v18515_v39  ;;  %v18576_v55 = vld [vmem:[%s21124_s7 + $0x100] sm:$0xff]  ;;  %v18581_v43 = vld [vmem:[%s21124_s7 + $0x108] sm:$0xff] }
 0x82e   :  { %14545 = vmatpush3.bf16.msra.mxu1 %v22176_v45  ;;  %v14554_v45 = vpack.c.bf16 %v22184_v60, %v22183_v24  ;;  %v22201_v24 = vand.u32 4294901760, %v17924_v44  ;;  %v14568_v60 = vpack.c.bf16 %v22203_v58, %v22202_v38  ;;  %v22208_v44 = vand.u32 4294901760, %v17976_v20 }
 0x82f   :  { %14547 = vmatprep.subr.bf16.mxu1 %v22177_v48  ;;  %v22185_v48 = vand.u32 4294901760, %v22162_v34  ;;  %v14560_v34 = vpack.c.bf16 %v22194_v22, %v22193_v31  ;;  %v14578_v59 = vpack.c.bf16 %v22213_v27, %v22212_v54  ;;  %v22215_v20 = vand.u32 4294901760, %v22158_v30  ;;  %v22222_v22 = vld [vmem:[#allocation32_spill] sm:$0xff]  ;;  %v18643_v27 = vld [vmem:[%s21124_s7 + $0x1a8] sm:$0xff] }
 0x830   :  { %v14566_v3 = vpack.c.bf16 %v22201_v24, %v22200_v13  ;;  %v4599_v51 = vpop.permute.xlu1 %4598  ;;  %v18589_v24 = vld [vmem:[%s21124_s7 + $0x190] sm:$0xff]  ;;  %v21492_v4 = vand.u32 4294901760, %v18581_v43  ;;  %v18638_v54 = vld [vmem:[%s21124_s7 + $0x1a0] sm:$0xff] }
 0x831   :  { %v14580_v18 = vpack.c.bf16 %v22215_v20, %v22214_v2 }
 0x832   :  { %14549 = vmatpush3.bf16.msra.mxu1 %v22180_v23 }
 0x833   :  { %14551 = vmatprep.subr.bf16.mxu1 %v14550_v0  ;;  %v14574_v0 = vpack.c.bf16 %v22209_v56, %v22208_v44  ;;  %v21491_v56 = vand.u32 4294901760, %v18589_v24 }
 0x834   :  { %v4629_v30 = vpop.permute.xlu1 %4628 }
 0x835   :  { %5377 = vmatmul.mubr.f32.vlgmr.msra.gmra.mrb[30].mxu1 %v22185_v48 }
 0x836   :  { %5384 = vmatprep.mubr.f32.mxu1 %v22186_v50  ;;  %14553 = vmatpush3.bf16.msra.mxu1 %v14552_v16  ;;  %v14562_v16 = vpack.c.bf16 %v22196_v36, %v22195_v49  ;;  %v22224_v36 = vld [vmem:[#allocation33_spill] sm:$0xff] }
 0x837   :  { %14555 = vmatprep.subr.bf16.mxu1 %v14554_v45  ;;  %v22204_v45 = vand.u32 4294901760, %v17936_v17  ;;  %v22211_v17 = vand.u32 4294901760, %v17999_v11  ;;  %v4625_v11 = vpop.permute.xlu0 %4624 }
 0x839   :  { %5388 = vmatmul.mubr.f32.gmra.mrb[32].mxu1 %v22191_v35  ;;  %v14570_v48 = vpack.c.bf16 %v22205_v8, %v22204_v45  ;;  %v14576_v50 = vpack.c.bf16 %v22211_v17, %v22210_v28  ;;  %v22230_v8 = vld [vmem:[#allocation34_spill] sm:$0xff]  ;;  %v18630_v17 = vld [vmem:[%s21124_s7 + $0x118] sm:$0xff] }
 0x83a   :  { %5395 = vmatprep.mubr.f32.mxu1 %v22192_v21  ;;  %14557 = vmatpush3.bf16.msra.mxu1 %v14556_v10  ;;  %v18625_v28 = vld [vmem:[%s21124_s7 + $0x110] sm:$0xff] }
 0x83b   :  { %14559 = vmatprep.subr.bf16.mxu1 %v14558_v9  ;;  %v4595_v52 = vpop.permute.xlu0 %4594 }
 0x83d   :  { %5399 = vmatmul.mubr.f32.gmra.mrb[34].mxu1 %v22197_v63  ;;  %v5756_v63 = vand.u32 4294901760, %v18555_v61 }
 0x83e   :  { %14561 = vmatpush3.bf16.msra.mxu1 %v14560_v34  ;;  %5565 = vmatprep.mubr.f32.mxu1 %v18286_v19  ;;  %v22223_v34 = vld [vmem:[#allocation96_spill] sm:$0xff] }
 0x83f   :  { %14563 = vmatprep.subr.bf16.mxu1 %v14562_v16  ;;  %v18529_v53 = vpop.permute.xlu0 %4630  ;;  %v4602_v49 = vsel %vm1346_vm4, %v22223_v34, %v4599_v51  ;;  %v5753_v16 = vand.u32 4294901760, %v18550_v47 }
 0x840   :  { %22217 = vst [vmem:[#allocation101_spill] sm:$0xff] %v18529_v53 }
 0x841   :  { %v18618_v44 = vpack.c.bf16 %v5756_v63, %v5753_v16 }
 0x842   :  { %14565 = vmatpush3.bf16.msra.mxu1 %v14564_v7 }
 0x843   :  { %14567 = vmatprep.subr.bf16.mxu1 %v14566_v3  ;;  %v4633_v10 = vpop.permute.xlu0 %4632  ;;  %v18594_v3 = vld [vmem:[%s21124_s7 + $0x198] sm:$0xff]  ;;  %22233 = vst [vmem:[#allocation41_spill] sm:$0xff] %v18618_v44 }
 0x844   :  { %v4650_v7 = vsel %vm2050_vm6, %v4602_v49, %v4633_v10 }
 0x845   :  { %v18611_v29 = vand.u32 4294901760, %v4650_v7 }
 0x846   :  { %14569 = vmatpush3.bf16.msra.mxu1 %v14568_v60 }
 0x847   :  { %14571 = vmatprep.subr.bf16.mxu1 %v14570_v48  ;;  %v21494_v48 = vand.u32 4294901760, %v18576_v55  ;;  %22231 = vst [vmem:[#allocation38_spill] sm:$0xff] %v18611_v29 }
 0x849   :  { %v18653_v20 = vpack.c.bf16 %v21492_v4, %v21494_v48  ;;  %v18771_v4 = vsub.f32 %v18550_v47, %v5753_v16  ;;  %v18776_v48 = vsub.f32 %v18555_v61, %v5756_v63  ;;  %v22243_v16 = vand.u32 4294901760, %v18581_v43 }
 0x84a   :  { %14573 = vmatpush3.bf16.msra.mxu1 %v14572_v62  ;;  %v22232_v62 = vld [vmem:[#allocation40_spill] sm:$0xff]  ;;  %v22244_v63 = vand.u32 4294901760, %v18589_v24 }
 0x84b   :  { %14575 = vmatprep.subr.bf16.mxu1 %v14574_v0  ;;  %v21490_v0 = vand.u32 4294901760, %v18594_v3  ;;  %22235 = vst [vmem:[#allocation44_spill] sm:$0xff] %v18653_v20  ;;  %v18795_v61 = vsub.f32 %v18581_v43, %v22243_v16 }
 0x84e   :  { %14577 = vmatpush3.bf16.msra.mxu1 %v14576_v50 }
 0x84f   :  { %14579 = vmatprep.subr.bf16.mxu1 %v14578_v59 }
 0x852   :  { %14581 = vmatpush3.bf16.msra.mxu1 %v14580_v18  ;;  %v5711_v18 = vand.u32 4294901760, %v18625_v28 }
 0x853   :  { %14583 = vmatprep.subr.bf16.mxu1 %v22161_v15  ;;  %v22218_v15 = vld [vmem:[#allocation90_spill] sm:$0xff] }
 0x855   :  { %5567 = vmatmul.mubr.f32.vlgmr.msra.gmra.mrb[36].mxu1 %v18272_v41 }
 0x856   :  { %5572 = vmatprep.mubr.f32.mxu1 %v18304_v40  ;;  %14585 = vmatpush3.bf16.msra.mxu1 %v22163_v5  ;;  %v4600_v5 = vsel %vm1346_vm4, %v22218_v15, %v4591_v26  ;;  %v21488_v15 = vand.u32 4294901760, %v18643_v27 }
 0x857   :  { %14587 = vmatprep.subr.bf16.mxu1 %v22164_v25  ;;  %v4636_v25 = vsel %vm2050_vm6, %v4625_v11, %v18515_v39  ;;  %v18789_v39 = vld [vmem:[%s21124_s7 + $0x1d8] sm:$0xff] }
 0x858   :  { %v18557_v9 = vand.u32 4294901760, %v4636_v25 }
 0x859   :  { %5574 = vmatmul.mubr.f32.gmra.mrb[38].mxu1 %v18279_v42 }
 0x85a   :  { %5579 = vmatprep.mubr.f32.mxu1 %v18326_v1  ;;  %14589 = vmatpush3.bf16.msra.mxu1 %v22165_v12  ;;  %v4648_v12 = vsel %vm2050_vm6, %v4600_v5, %v4625_v11  ;;  %v18597_v38 = vsub.f32 %v4636_v25, %v18557_v9  ;;  %v5714_v11 = vand.u32 4294901760, %v18630_v17  ;;  %v18673_v5 = vld [vmem:[%s21124_s7 + $0x120] sm:$0xff]  ;;  %v18678_v25 = vld [vmem:[%s21124_s7 + $0x128] sm:$0xff] }
 0x85b   :  { %14591 = vmatprep.subr.bf16.mxu1 %v22166_v37  ;;  %v22219_v37 = vld [vmem:[#allocation94_spill] sm:$0xff]  ;;  %v18559_v35 = vand.u32 4294901760, %v4648_v12 }
 0x85c   :  { %22226 = vst [vmem:[#allocation75_spill] sm:$0xff] %v18597_v38  ;;  %v21487_v26 = vand.u32 4294901760, %v18597_v38  ;;  %v18812_v47 = vsub.f32 %v18630_v17, %v5714_v11 }
 0x85d   :  { %5581 = vmatmul.mubr.f32.gmra.mrb[40].mxu1 %v18294_v32  ;;  %v18600_v58 = vsub.f32 %v4648_v12, %v18559_v35  ;;  %v18683_v12 = vld [vmem:[%s21124_s7 + $0x1b0] sm:$0xff] }
 0x85e   :  { %14593 = vmatpush3.bf16.msra.mxu1 %v22167_v6  ;;  %5683 = vmatprep.mubr.f32.mxu1 %v18286_v19  ;;  %v4601_v19 = vsel %vm1346_vm4, %v22219_v37, %v4595_v52  ;;  %v4637_v6 = vsel %vm2050_vm6, %v4629_v30, %v18529_v53  ;;  %v18659_v52 = vsub.f32 %v4650_v7, %v18611_v29  ;;  %v18688_v37 = vld [vmem:[%s21124_s7 + $0x1b8] sm:$0xff]  ;;  %v5771_v34 = vand.u32 4294901760, %v18683_v12 }
 0x85f   :  { %14595 = vmatprep.subr.bf16.mxu1 %v22169_v33  ;;  %v18542_v33 = vpop.permute.xlu1 %4634  ;;  %v18561_v21 = vand.u32 4294901760, %v4637_v6  ;;  %22227 = vst [vmem:[#allocation87_spill] sm:$0xff] %v18600_v58  ;;  %v21486_v59 = vand.u32 4294901760, %v18600_v58  ;;  %v5774_v49 = vand.u32 4294901760, %v18688_v37  ;;  %v4690_v7 = vld [vmem:[%s21124_s7 + $0x138] sm:$0xff] }
 0x860   :  { %22220 = vst [vmem:[#allocation105_spill] sm:$0xff] %v18542_v33  ;;  %22236 = vst [vmem:[#allocation46_spill] sm:$0xff] %v18659_v52 }
 0x861   :  { %v18603_v60 = vsub.f32 %v4637_v6, %v18561_v21  ;;  %v18694_v6 = vsub.f32 %v18600_v58, %v21486_v59 }
 0x862   :  { %14597 = vmatpush3.bf16.msra.mxu1 %v22170_v57  ;;  %v4649_v57 = vsel %vm2050_vm6, %v4601_v19, %v4629_v30  ;;  %v21489_v30 = vand.u32 4294901760, %v18638_v54 }
 0x863   :  { %14599 = vmatprep.subr.bf16.mxu1 %v22171_v46  ;;  %v22221_v46 = vld [vmem:[#allocation30_spill] sm:$0xff]  ;;  %v18565_v31 = vand.u32 4294901760, %v4649_v57  ;;  %22228 = vst [vmem:[#allocation36_spill] sm:$0xff] %v18603_v60  ;;  %v21485_v2 = vand.u32 4294901760, %v18603_v60 }
 0x865   :  { %v18606_v45 = vsub.f32 %v4649_v57, %v18565_v31  ;;  %v18703_v57 = vsub.f32 %v18603_v60, %v21485_v2 }
 0x866   :  { %14601 = vmatpush3.bf16.msra.mxu1 %v22172_v14  ;;  %v4638_v14 = vsel %vm2050_vm6, %v4633_v10, %v18542_v33  ;;  %v5803_v10 = vsub.f32 %v18597_v38, %v21487_v26  ;;  %v22242_v33 = vand.u32 4294901760, %v18576_v55 }
 0x867   :  { %14603 = vmatprep.subr.bf16.mxu1 %v22221_v46  ;;  %v18584_v13 = vand.u32 4294901760, %v4638_v14  ;;  %22229 = vst [vmem:[#allocation37_spill] sm:$0xff] %v18606_v45  ;;  %v21484_v51 = vand.u32 4294901760, %v18606_v45  ;;  %v18707_v46 = vpack.c.bf16 %v5714_v11, %v5711_v18  ;;  %v5786_v11 = vand.u32 4294901760, %v18789_v39 }
 0x868   :  { %v5804_v26 = vand.u32 4294901760, %v5803_v10  ;;  %v4691_v10 = vld [vmem:[%s21124_s7 + $0x140] sm:$0xff]  ;;  %v18781_v53 = vsub.f32 %v18576_v55, %v22242_v33  ;;  %v18800_v33 = vsub.f32 %v18589_v24, %v22244_v63  ;;  %v22245_v55 = vand.u32 4294901760, %v18594_v3 }
 0x869   :  { %22225 = vst [vmem:[#allocation104_spill] sm:$0xff] %v18584_v13  ;;  %v18633_v50 = vsub.f32 %v4638_v14, %v18584_v13  ;;  %22238 = vst [vmem:[#allocation76_spill] sm:$0xff] %v18707_v46  ;;  %v5717_v14 = vand.u32 4294901760, %v18673_v5  ;;  %v5729_v24 = vand.u32 4294901760, %v4691_v10  ;;  %v22249_v63 = vand.u32 4294901760, %v18643_v27 }
 0x86a   :  { %14605 = vmatpush3.bf16.msra.mxu1 %v22222_v22  ;;  %v5720_v22 = vand.u32 4294901760, %v18678_v25 }
 0x86b   :  { %14607 = vmatprep.subr.bf16.mxu1 %v22224_v36  ;;  %22234 = vst [vmem:[#allocation43_spill] sm:$0xff] %v18633_v50  ;;  %v21493_v19 = vand.u32 4294901760, %v18633_v50  ;;  %v4689_v36 = vld [vmem:[%s21124_s7 + $0x130] sm:$0xff] }
 0x86d   :  { %v18743_v2 = vsub.f32 %v18633_v50, %v21493_v19  ;;  %v18754_v19 = vpack.c.bf16 %v5774_v49, %v5771_v34 }
 0x86e   :  { %14609 = vmatpush3.bf16.msra.mxu1 %v22230_v8  ;;  %v21497_v8 = vand.u32 4294901760, %v18659_v52 }
 0x86f   :  { %14611 = vmatprep.subr.bf16.mxu1 %v22232_v62  ;;  %v4707_v62 = vld [vmem:[%s21124_s7 + $0x1c0] sm:$0xff]  ;;  %22241 = vst [vmem:[#allocation79_spill] sm:$0xff] %v18754_v19 }
 0x870   :  { %v5777_v59 = vand.u32 4294901760, %v4707_v62 }
 0x872   :  { %14613 = vmatpush3.bf16.msra.mxu1 %v22180_v23  ;;  %v18666_v23 = vpack.c.bf16 %v21490_v0, %v21491_v56  ;;  %v5723_v0 = vand.u32 4294901760, %v4689_v36  ;;  %v5726_v56 = vand.u32 4294901760, %v4690_v7 }
 0x873   :  { %14615 = vmatprep.subr.bf16.mxu1 %v18618_v44 }
 0x874   :  { %22237 = vst [vmem:[#allocation48_spill] sm:$0xff] %v18666_v23  ;;  %v18815_v43 = vpack.c.bf16 %v5726_v56, %v5723_v0 }
 0x875   :  { %5685 = vmatmul.mubr.f32.vlgmr.msra.gmra.mrb[42].mxu1 %v18272_v41  ;;  %v18714_v41 = vsub.f32 %v18606_v45, %v21484_v51  ;;  %v18738_v51 = vld [vmem:[%s21124_s7 + $0x1c8] sm:$0xff] }
 0x876   :  { %5690 = vmatprep.mubr.f32.mxu1 %v18304_v40  ;;  %14617 = vmatpush3.bf16.msra.mxu1 %v18653_v20  ;;  %v18721_v40 = vpack.c.bf16 %v21488_v15, %v21489_v30  ;;  %v18750_v30 = vpack.c.bf16 %v5720_v22, %v5717_v14  ;;  %v18766_v15 = vsub.f32 %v18659_v52, %v21497_v8  ;;  %v4709_v8 = vld [vmem:[%s21124_s7 + $0x1d0] sm:$0xff]  ;;  %v22261_v20 = vand.u32 4294901760, %v18800_v33 }
 0x877   :  { %14619 = vmatprep.subr.bf16.mxu1 %v18666_v23  ;;  %v18805_v52 = vsub.f32 %v18594_v3, %v22245_v55  ;;  %22246 = vst [vmem:[#allocation80_spill] sm:$0xff] %v18815_v43  ;;  %v18820_v3 = vld [vmem:[%s21124_s7 + $0x150] sm:$0xff]  ;;  %v18839_v55 = vsub.f32 %v18643_v27, %v22249_v63  ;;  %v18859_v27 = vsub.f32 %v18688_v37, %v5774_v49 }
 0x878   :  { %22239 = vst [vmem:[#allocation77_spill] sm:$0xff] %v18721_v40  ;;  %22240 = vst [vmem:[#allocation78_spill] sm:$0xff] %v18750_v30  ;;  %v18876_v37 = vsub.f32 %v4690_v7, %v5726_v56  ;;  %v18891_v56 = vsub.f32 %v4691_v10, %v5729_v24  ;;  %v18898_v49 = vld [vmem:[%s21124_s7 + $0x1f0] sm:$0xff]  ;;  %v18917_v10 = vld [vmem:[%s21124_s7 + $0x178] sm:$0xff]  ;;  %v5976_v60 = vsub.f32 %v18800_v33, %v22261_v20 }
 0x879   :  { %5692 = vmatmul.mubr.f32.gmra.mrb[44].mxu1 %v18279_v42  ;;  %v5780_v42 = vand.u32 4294901760, %v18738_v51  ;;  %v22262_v38 = vand.u32 4294901760, %v18805_v52 }
 0x87a   :  { %5697 = vmatprep.mubr.f32.mxu1 %v18326_v1  ;;  %14621 = vmatpush3.bf16.msra.mxu1 %v18707_v46  ;;  %v4692_v1 = vld [vmem:[%s21124_s7 + $0x148] sm:$0xff]  ;;  %v18845_v46 = vsub.f32 %v18678_v25, %v5720_v22  ;;  %v5735_v25 = vand.u32 4294901760, %v18820_v3 }
 0x87b   :  { %14623 = vmatprep.subr.bf16.mxu1 %v18721_v40  ;;  %v18808_v40 = vsub.f32 %v18625_v28, %v5711_v18  ;;  %v5732_v16 = vand.u32 4294901760, %v4692_v1  ;;  %v18825_v28 = vld [vmem:[%s21124_s7 + $0x158] sm:$0xff]  ;;  %v5783_v18 = vand.u32 4294901760, %v4709_v8  ;;  %v18873_v22 = vld [vmem:[%s21124_s7 + $0x168] sm:$0xff]  ;;  %v18889_v23 = vsub.f32 %v18738_v51, %v5780_v42 }
 0x87c   :  { %v22257_v44 = vand.u32 4294901760, %v18873_v22  ;;  %v18962_v29 = vsub.f32 %v18820_v3, %v5735_v25  ;;  %v5977_v3 = vand.u32 4294901760, %v5976_v60 }
 0x87d   :  { %5699 = vmatmul.mubr.f32.gmra.mrb[46].mxu1 %v18294_v32  ;;  %v22247_v32 = vand.u32 4294901760, %v18638_v54  ;;  %v18885_v63 = vpack.c.bf16 %v5786_v11, %v5783_v18  ;;  %v18931_v58 = vsub.f32 %v4709_v8, %v5783_v18  ;;  %v22259_v8 = vand.u32 4294901760, %v18781_v53 }
 0x87e   :  { %14625 = vmatpush3.bf16.msra.mxu1 %v18750_v30  ;;  %5805 = vmatprep.mubr.f32.mxu1 %v5804_v26  ;;  %v18833_v26 = vpack.c.bf16 %v5780_v42, %v5777_v59  ;;  %v18842_v30 = vsub.f32 %v18673_v5, %v5717_v14  ;;  %v18861_v5 = vsub.f32 %v4689_v36, %v5723_v0  ;;  %v5738_v14 = vand.u32 4294901760, %v18825_v28  ;;  %v18912_v42 = vld [vmem:[%s21124_s7 + $0x170] sm:$0xff] }
 0x87f   :  { %v18830_v17 = vsub.f32 %v18638_v54, %v22247_v32  ;;  %14627 = vmatprep.subr.bf16.mxu1 %v18754_v19  ;;  %v18848_v54 = vsub.f32 %v18683_v12, %v5771_v34  ;;  %v4711_v32 = vld [vmem:[%s21124_s7 + $0x1e0] sm:$0xff]  ;;  %v18856_v19 = vld [vmem:[%s21124_s7 + $0x1e8] sm:$0xff]  ;;  %v18878_v0 = vpack.c.bf16 %v5732_v16, %v5729_v24  ;;  %v18883_v36 = vsub.f32 %v4707_v62, %v5777_v59  ;;  %v18903_v59 = vld [vmem:[%s21124_s7 + $0x1f8] sm:$0xff] }
 0x880   :  { %22248 = vst [vmem:[#allocation81_spill] sm:$0xff] %v18833_v26  ;;  %22250 = vst [vmem:[#allocation82_spill] sm:$0xff] %v18842_v30  ;;  %v18868_v12 = vld [vmem:[%s21124_s7 + $0x160] sm:$0xff]  ;;  %v5789_v50 = vand.u32 4294901760, %v4711_v32  ;;  %v5792_v45 = vand.u32 4294901760, %v18856_v19  ;;  %v18905_v62 = vsub.f32 %v4692_v1, %v5732_v16  ;;  %v18907_v51 = vpack.c.bf16 %v5738_v14, %v5735_v25 }
 0x881   :  { %22251 = vst [vmem:[#allocation83_spill] sm:$0xff] %v18878_v0  ;;  %22252 = vst [vmem:[#allocation84_spill] sm:$0xff] %v18885_v63  ;;  %v5741_v7 = vand.u32 4294901760, %v18868_v12  ;;  %v22254_v1 = vand.u32 4294901760, %v18771_v4  ;;  %v5850_v18 = vsub.f32 %v18781_v53, %v22259_v8  ;;  %v5983_v8 = vsub.f32 %v18805_v52, %v22262_v38 }
 0x882   :  { %14629 = vmatpush3.bf16.msra.mxu1 %v18815_v43  ;;  %22253 = vst [vmem:[#allocation85_spill] sm:$0xff] %v18907_v51  ;;  %v18933_v24 = vpack.c.bf16 %v5792_v45, %v5789_v50  ;;  %v18974_v20 = vsub.f32 %v18825_v28, %v5738_v14  ;;  %v22266_v13 = vand.u32 4294901760, %v18808_v40  ;;  %v22268_v28 = vand.u32 4294901760, %v18912_v42 }
 0x883   :  { %14631 = vmatprep.subr.bf16.mxu1 %v18833_v26  ;;  %v5962_v16 = vsub.f32 %v18771_v4, %v22254_v1  ;;  %v22255_v26 = vand.u32 4294901760, %v18776_v48  ;;  %v18938_v1 = vsub.f32 %v18789_v39, %v5786_v11  ;;  %v22264_v39 = vand.u32 4294901760, %v18903_v59 }
 0x884   :  { %22256 = vst [vmem:[#allocation5_spill] sm:$0xff] %v18933_v24  ;;  %v5851_v25 = vand.u32 4294901760, %v5850_v18  ;;  %v5984_v18 = vand.u32 4294901760, %v5983_v8  ;;  %v19006_v60 = vsub.f32 %v18868_v12, %v5741_v7  ;;  %v22272_v8 = vand.u32 4294901760, %v18845_v46 }
 0x885   :  { %v5969_v43 = vsub.f32 %v18776_v48, %v22255_v26  ;;  %v18942_v26 = vpack.c.bf16 %v22257_v44, %v5741_v7  ;;  %v5963_v44 = vand.u32 4294901760, %v5962_v16  ;;  %v21543_v16 = vand.u32 4294901760, %v18839_v55 }
 0x886   :  { %14633 = vmatpush3.bf16.msra.mxu1 %v18878_v0  ;;  %v21548_v38 = vand.u32 4294901760, %v18861_v5  ;;  %v21550_v7 = vand.u32 4294901760, %v18889_v23  ;;  %v22275_v12 = vand.u32 4294901760, %v18694_v6 }
 0x887   :  { %14635 = vmatprep.subr.bf16.mxu1 %v18885_v63  ;;  %22258 = vst [vmem:[#allocation88_spill] sm:$0xff] %v18942_v26  ;;  %v22260_v63 = vand.u32 4294901760, %v18795_v61  ;;  %v5970_v11 = vand.u32 4294901760, %v5969_v43 }
 0x889   :  { %v5857_v34 = vsub.f32 %v18795_v61, %v22260_v63  ;;  %v22263_v63 = vand.u32 4294901760, %v18898_v49  ;;  %v14646_v14 = vpack.c.bf16 %v5970_v11, %v5963_v44  ;;  %v22271_v44 = vand.u32 4294901760, %v18842_v30 }
 0x88a   :  { %14637 = vmatpush3.bf16.msra.mxu1 %v18907_v51  ;;  %v18976_v51 = vsub.f32 %v4711_v32, %v5789_v50  ;;  %v22269_v50 = vand.u32 4294901760, %v18917_v10 }
 0x88b   :  { %14639 = vmatprep.subr.bf16.mxu1 %v18933_v24  ;;  %v18969_v0 = vpack.c.bf16 %v22264_v39, %v22263_v63  ;;  %v5858_v24 = vand.u32 4294901760, %v5857_v34  ;;  %v5864_v39 = vsub.f32 %v18808_v40, %v22266_v13  ;;  %v22267_v63 = vand.u32 4294901760, %v18812_v47 }
 0x88c   :  { %v18991_v32 = vpack.c.bf16 %v22269_v50, %v22268_v28  ;;  %v22270_v34 = vand.u32 4294901760, %v18830_v17  ;;  %v19003_v28 = vsub.f32 %v18856_v19, %v5792_v45  ;;  %v5878_v11 = vsub.f32 %v18842_v30, %v22271_v44 }
 0x88d   :  { %22265 = vst [vmem:[#allocation92_spill] sm:$0xff] %v18969_v0  ;;  %v5871_v43 = vsub.f32 %v18812_v47, %v22267_v63  ;;  %v5997_v63 = vsub.f32 %v18839_v55, %v21543_v16  ;;  %v5885_v50 = vsub.f32 %v18845_v46, %v22272_v8  ;;  %v5865_v16 = vand.u32 4294901760, %v5864_v39 }
 0x88e   :  { %14641 = vmatpush3.bf16.msra.mxu1 %v18942_v26  ;;  %v5990_v13 = vsub.f32 %v18830_v17, %v22270_v34  ;;  %v14648_v34 = vpack.c.bf16 %v5858_v24, %v5851_v25  ;;  %v14650_v45 = vpack.c.bf16 %v5984_v18, %v5977_v3  ;;  %v21549_v19 = vand.u32 4294901760, %v18876_v37 }
 0x88f   :  { %14643 = vmatprep.subr.bf16.mxu1 %v18969_v0  ;;  %v5872_v0 = vand.u32 4294901760, %v5871_v43  ;;  %v5998_v26 = vand.u32 4294901760, %v5997_v63  ;;  %v22273_v30 = vand.u32 4294901760, %v18848_v54  ;;  %v22274_v43 = vand.u32 4294901760, %v18859_v27 }
 0x890   :  { %v5991_v44 = vand.u32 4294901760, %v5990_v13  ;;  %v5879_v39 = vand.u32 4294901760, %v5878_v11  ;;  %v5886_v8 = vand.u32 4294901760, %v5885_v50  ;;  %v21553_v3 = vand.u32 4294901760, %v18891_v56 }
 0x891   :  { %v6004_v24 = vsub.f32 %v18848_v54, %v22273_v30  ;;  %v6011_v25 = vsub.f32 %v18859_v27, %v22274_v43  ;;  %v21552_v18 = vand.u32 4294901760, %v18905_v62  ;;  %v5892_v13 = vsub.f32 %v18861_v5, %v21548_v38 }
 0x892   :  { %14645 = vmatpush3.bf16.msra.mxu1 %v18991_v32  ;;  %v21551_v30 = vand.u32 4294901760, %v18931_v58  ;;  %v22276_v43 = vand.u32 4294901760, %v18703_v57  ;;  %v5840_v11 = vand.u32 4294901760, %v18766_v15  ;;  %v5899_v6 = vsub.f32 %v18876_v37, %v21549_v19 }
 0x893   :  { %14647 = vmatprep.subr.bf16.mxu1 %v14646_v14  ;;  %v14652_v14 = vpack.c.bf16 %v5872_v0, %v5865_v16  ;;  %v22277_v0 = vand.u32 4294901760, %v18883_v36  ;;  %v6025_v50 = vsub.f32 %v18889_v23, %v21550_v7  ;;  %v6005_v15 = vand.u32 4294901760, %v6004_v24 }
 0x894   :  { %v22279_v38 = vand.u32 4294901760, %v18898_v49  ;;  %v14656_v63 = vpack.c.bf16 %v5886_v8, %v5879_v39  ;;  %v5913_v7 = vsub.f32 %v18905_v62, %v21552_v18  ;;  %v22282_v24 = vand.u32 4294901760, %v18743_v2 }
 0x895   :  { %5811 = vmatmul.mubr.f32.vlgmr.msra.gmra.mrb[48].mxu1 %v22275_v12  ;;  %v6018_v16 = vsub.f32 %v18883_v36, %v22277_v0  ;;  %v22278_v12 = vand.u32 4294901760, %v18873_v22  ;;  %v5906_v0 = vsub.f32 %v18891_v56, %v21553_v3  ;;  %v5900_v39 = vand.u32 4294901760, %v5899_v6 }
 0x896   :  { %5820 = vmatprep.mubr.f32.mxu1 %v22276_v43  ;;  %14649 = vmatpush3.bf16.msra.mxu1 %v14648_v34  ;;  %v14654_v34 = vpack.c.bf16 %v5998_v26, %v5991_v44  ;;  %v6012_v43 = vand.u32 4294901760, %v6011_v25  ;;  %v19054_v19 = vsub.f32 %v18898_v49, %v22279_v38  ;;  %v6032_v26 = vsub.f32 %v18931_v58, %v21551_v30 }
 0x897   :  { %v19049_v57 = vsub.f32 %v18873_v22, %v22278_v12  ;;  %14651 = vmatprep.subr.bf16.mxu1 %v14650_v45  ;;  %v22280_v22 = vand.u32 4294901760, %v18714_v41  ;;  %v22281_v45 = vand.u32 4294901760, %v18938_v1  ;;  %v21563_v38 = vand.u32 4294901760, %v18962_v29 }
 0x898   :  { %v21562_v44 = vand.u32 4294901760, %v18974_v20  ;;  %v5893_v25 = vand.u32 4294901760, %v5892_v13  ;;  %v6019_v41 = vand.u32 4294901760, %v6018_v16  ;;  %v6026_v8 = vand.u32 4294901760, %v6025_v50 }
 0x899   :  { %5826 = vmatmul.mubr.f32.gmra.mrb[50].mxu1 %v22280_v22  ;;  %v6039_v49 = vsub.f32 %v18938_v1, %v22281_v45  ;;  %v22283_v12 = vand.u32 4294901760, %v18903_v59  ;;  %v14658_v30 = vpack.c.bf16 %v6012_v43, %v6005_v15  ;;  %v21561_v45 = vand.u32 4294901760, %v18976_v51 }
 0x89a   :  { %5835 = vmatprep.mubr.f32.mxu1 %v22282_v24  ;;  %14653 = vmatpush3.bf16.msra.mxu1 %v14652_v14  ;;  %v21559_v18 = vand.u32 4294901760, %v19003_v28  ;;  %v22284_v3 = vand.u32 4294901760, %v18912_v42  ;;  %v22285_v14 = vand.u32 4294901760, %v18917_v10  ;;  %v5907_v6 = vand.u32 4294901760, %v5906_v0 }
 0x89b   :  { %v19077_v22 = vsub.f32 %v18903_v59, %v22283_v12  ;;  %14655 = vmatprep.subr.bf16.mxu1 %v14654_v34  ;;  %v5914_v16 = vand.u32 4294901760, %v5913_v7  ;;  %v6033_v59 = vand.u32 4294901760, %v6032_v26  ;;  %v6040_v50 = vand.u32 4294901760, %v6039_v49 }
 0x89c   :  { %v19084_v2 = vsub.f32 %v18912_v42, %v22284_v3  ;;  %v19089_v13 = vsub.f32 %v18917_v10, %v22285_v14  ;;  %v5920_v34 = vsub.f32 %v18962_v29, %v21563_v38  ;;  %v5927_v15 = vsub.f32 %v18974_v20, %v21562_v44  ;;  %v22307_v38 = vld [vmem:[#allocation85_spill] sm:$0xff] }
 0x89d   :  { %5841 = vmatmul.mubr.f32.gmra.mrb[52].mxu1 %v5840_v11  ;;  %v14660_v42 = vpack.c.bf16 %v5900_v39, %v5893_v25  ;;  %v14662_v3 = vpack.c.bf16 %v6026_v8, %v6019_v41  ;;  %v21556_v10 = vand.u32 4294901760, %v19006_v60  ;;  %v21555_v7 = vand.u32 4294901760, %v19049_v57 }
 0x89e   :  { %14657 = vmatpush3.bf16.msra.mxu1 %v14656_v63  ;;  %6071 = vmatprep.mubr.f32.mxu1 %v18557_v9  ;;  %v6046_v11 = vsub.f32 %v18976_v51, %v21561_v45  ;;  %v6053_v43 = vsub.f32 %v19003_v28, %v21559_v18  ;;  %v21554_v0 = vand.u32 4294901760, %v19054_v19  ;;  %v21557_v63 = vand.u32 4294901760, %v19077_v22 }
 0x89f   :  { %14659 = vmatprep.subr.bf16.mxu1 %v14658_v30  ;;  %v14664_v26 = vpack.c.bf16 %v5914_v16, %v5907_v6  ;;  %v14666_v49 = vpack.c.bf16 %v6040_v50, %v6033_v59  ;;  %v5921_v24 = vand.u32 4294901760, %v5920_v34  ;;  %v5928_v25 = vand.u32 4294901760, %v5927_v15 }
 0x8a0   :  { %v5934_v30 = vsub.f32 %v19006_v60, %v21556_v10  ;;  %v5941_v39 = vsub.f32 %v19049_v57, %v21555_v7  ;;  %v21558_v41 = vand.u32 4294901760, %v19084_v2  ;;  %v21560_v8 = vand.u32 4294901760, %v19089_v13 }
 0x8a1   :  { %v6047_v12 = vand.u32 4294901760, %v6046_v11  ;;  %v6054_v14 = vand.u32 4294901760, %v6053_v43  ;;  %v6060_v6 = vsub.f32 %v19054_v19, %v21554_v0  ;;  %v6067_v16 = vsub.f32 %v19077_v22, %v21557_v63 }
 0x8a2   :  { %14661 = vmatpush3.bf16.msra.mxu1 %v14660_v42  ;;  %v14668_v59 = vpack.c.bf16 %v5928_v25, %v5921_v24  ;;  %v5935_v50 = vand.u32 4294901760, %v5934_v30  ;;  %v5942_v34 = vand.u32 4294901760, %v5941_v39  ;;  %v5948_v15 = vsub.f32 %v19084_v2, %v21558_v41 }
 0x8a3   :  { %14663 = vmatprep.subr.bf16.mxu1 %v14662_v3  ;;  %v5955_v42 = vsub.f32 %v19089_v13, %v21560_v8  ;;  %v14670_v11 = vpack.c.bf16 %v6054_v14, %v6047_v12  ;;  %v6061_v43 = vand.u32 4294901760, %v6060_v6  ;;  %v6068_v0 = vand.u32 4294901760, %v6067_v16  ;;  %v22291_v8 = vld [vmem:[#allocation87_spill] sm:$0xff] }
 0x8a4   :  { %v14672_v24 = vpack.c.bf16 %v5942_v34, %v5935_v50  ;;  %v14682_v16 = vpack.c.bf16 %v18805_v52, %v18800_v33  ;;  %v14690_v34 = vpack.c.bf16 %v18859_v27, %v18848_v54 }
 0x8a5   :  { %v5956_v25 = vand.u32 4294901760, %v5955_v42  ;;  %v14674_v39 = vpack.c.bf16 %v6068_v0, %v6061_v43  ;;  %v14684_v0 = vpack.c.bf16 %v18812_v47, %v18808_v40  ;;  %v22289_v42 = vld [vmem:[#allocation75_spill] sm:$0xff]  ;;  %v14696_v43 = vpack.c.bf16 %v18905_v62, %v18891_v56 }
 0x8a6   :  { %14665 = vmatpush3.bf16.msra.mxu1 %v14664_v26  ;;  %v5949_v26 = vand.u32 4294901760, %v5948_v15  ;;  %v22288_v15 = vld [vmem:[#allocation38_spill] sm:$0xff] }
 0x8a7   :  { %14667 = vmatprep.subr.bf16.mxu1 %v14666_v49  ;;  %v14678_v49 = vpack.c.bf16 %v18776_v48, %v18771_v4 }
 0x8a8   :  { %v11880_v3 = vpop.f32.mrb[12].mxu1  ;;  %v14676_v18 = vpack.c.bf16 %v5956_v25, %v5949_v26  ;;  %v14700_v26 = vpack.c.bf16 %v18974_v20, %v18962_v29  ;;  %v11708_v25 = vld [vmem:[%s21125_s8] ss:$0 sm:$0xff] }
 0x8a9   :  { %v11881_v7 = vpop.f32.mrb[13].mxu1 }
 0x8aa   :  { %v11882_v10 = vadd.f32 %v11881_v7, %v11880_v3  ;;  %14669 = vmatpush3.bf16.msra.mxu1 %v14668_v59  ;;  %v14680_v7 = vpack.c.bf16 %v18795_v61, %v18781_v53  ;;  %v22287_v59 = vld [vmem:[#allocation82_spill] sm:$0xff]  ;;  %v14692_v3 = vpack.c.bf16 %v18876_v37, %v18861_v5 }
 0x8ab   :  { %14671 = vmatprep.subr.bf16.mxu1 %v14670_v11  ;;  %v14688_v50 = vpack.c.bf16 %v18845_v46, %v22287_v59  ;;  %v14694_v11 = vpack.c.bf16 %v18889_v23, %v18883_v36 }
 0x8ac   :  { %v11883_v30 = vpop.f32.mrb[14].mxu1 }
 0x8ad   :  { %v11884_v63 = vpop.f32.mrb[15].mxu1 }
 0x8ae   :  { %v11885_v41 = vadd.f32 %v11884_v63, %v11883_v30  ;;  %14673 = vmatpush3.bf16.msra.mxu1 %v14672_v24  ;;  %v14686_v63 = vpack.c.bf16 %v18839_v55, %v18830_v17  ;;  %v14698_v24 = vpack.c.bf16 %v18938_v1, %v18931_v58  ;;  %v14702_v30 = vpack.c.bf16 %v19003_v28, %v18976_v51 }
 0x8af   :  { %14675 = vmatprep.subr.bf16.mxu1 %v14674_v39 }
 0x8b0   :  { %v11886_v12 = vpop.f32.mrb[16].mxu1 }
 0x8b1   :  { %v11887_v14 = vpop.f32.mrb[17].mxu1 }
 0x8b2   :  { %v11888_v6 = vadd.f32 %v11887_v14, %v11886_v12  ;;  %14677 = vmatpush3.bf16.msra.mxu1 %v14676_v18  ;;  %v22286_v18 = vld [vmem:[#allocation104_spill] sm:$0xff]  ;;  %v4839_v12 = vadd.f32 %v11882_v10, %v11708_v25 }
 0x8b3   :  { %14679 = vmatprep.subr.bf16.mxu1 %v14678_v49 }
 0x8b5   :  { %6073 = vmatmul.mubr.f32.vlgmr.msra.gmra.mrb[54].mxu1 %v18559_v35 }
 0x8b6   :  { %6078 = vmatprep.mubr.f32.mxu1 %v18561_v21  ;;  %14681 = vmatpush3.bf16.msra.mxu1 %v14680_v7  ;;  %v14704_v7 = vpack.c.bf16 %v19049_v57, %v19006_v60 }
 0x8b7   :  { %14683 = vmatprep.subr.bf16.mxu1 %v14682_v16  ;;  %v14706_v16 = vpack.c.bf16 %v19077_v22, %v19054_v19 }
 0x8b9   :  { %6080 = vmatmul.mubr.f32.gmra.mrb[56].mxu1 %v18565_v31 }
 0x8ba   :  { %6085 = vmatprep.mubr.f32.mxu1 %v22286_v18  ;;  %14685 = vmatpush3.bf16.msra.mxu1 %v14684_v0 }
 0x8bb   :  { %14687 = vmatprep.subr.bf16.mxu1 %v14686_v63 }
 0x8bd   :  { %6087 = vmatmul.mubr.f32.gmra.mrb[58].mxu1 %v22288_v15  ;;  %v22308_v15 = vld [vmem:[#allocation5_spill] sm:$0xff] }
 0x8be   :  { %14689 = vmatpush3.bf16.msra.mxu1 %v14688_v50  ;;  %6222 = vmatprep.mubr.f32.mxu1 %v22289_v42 }
 0x8bf   :  { %14691 = vmatprep.subr.bf16.mxu1 %v14690_v34  ;;  %v4854_v34 = vadd.f32 %v11885_v41, %v11708_v25  ;;  %v22293_v41 = vld [vmem:[#allocation44_spill] sm:$0xff] }
 0x8c2   :  { %14693 = vmatpush3.bf16.msra.mxu1 %v14692_v3 }
 0x8c3   :  { %14695 = vmatprep.subr.bf16.mxu1 %v14694_v11  ;;  %v14708_v11 = vpack.c.bf16 %v19089_v13, %v19084_v2 }
 0x8c6   :  { %14697 = vmatpush3.bf16.msra.mxu1 %v14696_v43 }
 0x8c7   :  { %14699 = vmatprep.subr.bf16.mxu1 %v14698_v24 }
 0x8c8   :  { %v11921_v39 = vpop.f32.mrb[18].mxu1 }
 0x8c9   :  { %v11922_v49 = vpop.f32.mrb[19].mxu1 }
 0x8ca   :  { %v11923_v14 = vadd.f32 %v11922_v49, %v11921_v39  ;;  %14701 = vmatpush3.bf16.msra.mxu1 %v14700_v26  ;;  %v4869_v26 = vadd.f32 %v11888_v6, %v11708_v25  ;;  %v22298_v6 = vld [vmem:[#allocation77_spill] sm:$0xff]  ;;  %v22299_v25 = vld [vmem:[#allocation46_spill] sm:$0xff] }
 0x8cb   :  { %14703 = vmatprep.subr.bf16.mxu1 %v14702_v30  ;;  %v22290_v30 = vld [vmem:[#allocation41_spill] sm:$0xff] }
 0x8cc   :  { %v5101_v0 = vadd.f32 %v11923_v14, %v4839_v12  ;;  %v11924_v63 = vpop.f32.mrb[20].mxu1  ;;  %v22292_v12 = vld [vmem:[#allocation36_spill] sm:$0xff] }
 0x8cd   :  { %v11925_v50 = vpop.f32.mrb[21].mxu1  ;;  %v22294_v14 = vld [vmem:[#allocation48_spill] sm:$0xff] }
 0x8ce   :  { %v11926_v3 = vadd.f32 %v11925_v50, %v11924_v63  ;;  %14705 = vmatpush3.bf16.msra.mxu1 %v14704_v7  ;;  %v22295_v7 = vld [vmem:[#allocation37_spill] sm:$0xff]  ;;  %v22297_v63 = vld [vmem:[#allocation76_spill] sm:$0xff]  ;;  %v22300_v50 = vld [vmem:[#allocation78_spill] sm:$0xff] }
 0x8cf   :  { %14707 = vmatprep.subr.bf16.mxu1 %v14706_v16  ;;  %v22296_v16 = vld [vmem:[#allocation43_spill] sm:$0xff] }
 0x8d0   :  { %v5108_v10 = vadd.f32 %v11926_v3, %v4854_v34  ;;  %v11927_v43 = vpop.f32.mrb[22].mxu1  ;;  %v22301_v34 = vand.u32 4294901760, %v22289_v42  ;;  %v22302_v3 = vld [vmem:[#allocation79_spill] sm:$0xff] }
 0x8d1   :  { %v11928_v24 = vpop.f32.mrb[23].mxu1 }
 0x8d2   :  { %v11929_v39 = vadd.f32 %v11928_v24, %v11927_v43  ;;  %14709 = vmatpush3.bf16.msra.mxu1 %v14708_v11  ;;  %v22303_v11 = vld [vmem:[#allocation80_spill] sm:$0xff]  ;;  %v22304_v43 = vld [vmem:[#allocation81_spill] sm:$0xff]  ;;  %v22305_v24 = vld [vmem:[#allocation83_spill] sm:$0xff] }
 0x8d3   :  { %14711 = vmatprep.subr.bf16.mxu1 %v22290_v30 }
 0x8d4   :  { %v5115_v49 = vadd.f32 %v11929_v39, %v4869_v26  ;;  %v22306_v26 = vld [vmem:[#allocation84_spill] sm:$0xff] }
 0x8d5   :  { %6225 = vmatmul.mubr.f32.vlgmr.msra.gmra.mrb[60].mxu1 %v22291_v8 }
 0x8d6   :  { %6231 = vmatprep.mubr.f32.mxu1 %v22292_v12  ;;  %14713 = vmatpush3.bf16.msra.mxu1 %v22293_v41 }
 0x8d7   :  { %14715 = vmatprep.subr.bf16.mxu1 %v22294_v14 }
 0x8d9   :  { %6234 = vmatmul.mubr.f32.gmra.mrb[62].mxu1 %v22295_v7 }
 0x8da   :  { %6240 = vmatprep.mubr.f32.mxu1 %v22296_v16  ;;  %14717 = vmatpush3.bf16.msra.mxu1 %v22297_v63 }
 0x8db   :  { %14719 = vmatprep.subr.bf16.mxu1 %v22298_v6 }
 0x8dd   :  { %6243 = vmatmul.mubr.f32.gmra.mrb[64].mxu1 %v22299_v25 }
 0x8de   :  { %14721 = vmatpush3.bf16.msra.mxu1 %v22300_v50  ;;  %6347 = vmatprep.mubr.f32.mxu1 %v22301_v34 }
 0x8df   :  { %14723 = vmatprep.subr.bf16.mxu1 %v22302_v3  ;;  %v22309_v3 = vld [vmem:[#allocation88_spill] sm:$0xff] }
 0x8e2   :  { %14725 = vmatpush3.bf16.msra.mxu1 %v22303_v11  ;;  %v22310_v11 = vld [vmem:[#allocation92_spill] sm:$0xff] }
 0x8e3   :  { %14727 = vmatprep.subr.bf16.mxu1 %v22304_v43  ;;  %v22311_v43 = vand.u32 4294901760, %v18771_v4 }
 0x8e6   :  { %14729 = vmatpush3.bf16.msra.mxu1 %v22305_v24  ;;  %v22312_v24 = vand.u32 4294901760, %v18776_v48  ;;  %v22317_v48 = vand.u32 4294901760, %v22291_v8  ;;  %v22324_v8 = vand.u32 4294901760, %v22296_v16  ;;  %v22331_v16 = vand.u32 4294901760, %v18876_v37 }
 0x8e7   :  { %14731 = vmatprep.subr.bf16.mxu1 %v22306_v26  ;;  %v22338_v37 = vand.u32 4294901760, %v18962_v29  ;;  %v22344_v29 = vand.u32 4294901760, %v19054_v19 }
 0x8e8   :  { %v11962_v39 = vpop.f32.mrb[24].mxu1  ;;  %v14742_v26 = vpack.c.bf16 %v22312_v24, %v22311_v43  ;;  %v22333_v24 = vand.u32 4294901760, %v18889_v23  ;;  %v22340_v23 = vand.u32 4294901760, %v18976_v51 }
 0x8e9   :  { %v11963_v45 = vpop.f32.mrb[25].mxu1 }
 0x8ea   :  { %v11964_v44 = vadd.f32 %v11963_v45, %v11962_v39  ;;  %14733 = vmatpush3.bf16.msra.mxu1 %v22307_v38 }
 0x8eb   :  { %14735 = vmatprep.subr.bf16.mxu1 %v22308_v15 }
 0x8ec   :  { %v5253_v50 = vadd.f32 %v11964_v44, %v5101_v0  ;;  %v11965_v42 = vpop.f32.mrb[26].mxu1  ;;  %v22313_v44 = vand.u32 4294901760, %v18781_v53  ;;  %v22314_v0 = vand.u32 4294901760, %v18795_v61  ;;  %v22320_v53 = vand.u32 4294901760, %v18812_v47 }
 0x8ed   :  { %v11966_v34 = vpop.f32.mrb[27].mxu1  ;;  %v22327_v47 = vand.u32 4294901760, %v18848_v54 }
 0x8ee   :  { %v11967_v6 = vadd.f32 %v11966_v34, %v11965_v42  ;;  %14737 = vmatpush3.bf16.msra.mxu1 %v22309_v3  ;;  %v14744_v42 = vpack.c.bf16 %v22314_v0, %v22313_v44  ;;  %v22315_v34 = vand.u32 4294901760, %v18800_v33  ;;  %v22322_v33 = vand.u32 4294901760, %v18839_v55 }
 0x8ef   :  { %14739 = vmatprep.subr.bf16.mxu1 %v22310_v11  ;;  %v22316_v11 = vand.u32 4294901760, %v18805_v52  ;;  %v22329_v55 = vand.u32 4294901760, %v22299_v25  ;;  %v22335_v25 = vand.u32 4294901760, %v18905_v62 }
 0x8f0   :  { %v5262_v63 = vadd.f32 %v11967_v6, %v5108_v10  ;;  %v11968_v18 = vpop.f32.mrb[28].mxu1  ;;  %v22318_v10 = vand.u32 4294901760, %v22292_v12  ;;  %v22321_v6 = vand.u32 4294901760, %v18830_v17  ;;  %v22325_v12 = vand.u32 4294901760, %v22287_v59 }
 0x8f1   :  { %v11969_v45 = vpop.f32.mrb[29].mxu1  ;;  %v14746_v4 = vpack.c.bf16 %v22316_v11, %v22315_v34  ;;  %v22328_v17 = vand.u32 4294901760, %v18859_v27  ;;  %v22334_v27 = vand.u32 4294901760, %v18891_v56  ;;  %v22341_v56 = vand.u32 4294901760, %v19003_v28 }
 0x8f2   :  { %v11970_v39 = vadd.f32 %v11969_v45, %v11968_v18  ;;  %14741 = vmatpush3.bf16.msra.mxu1 %v18991_v32  ;;  %v22319_v18 = vand.u32 4294901760, %v18808_v40  ;;  %v14750_v52 = vpack.c.bf16 %v22322_v33, %v22321_v6  ;;  %v22326_v40 = vand.u32 4294901760, %v18845_v46 }
 0x8f3   :  { %14743 = vmatprep.subr.bf16.mxu1 %v14742_v26  ;;  %v14754_v43 = vpack.c.bf16 %v22328_v17, %v22327_v47  ;;  %v22332_v46 = vand.u32 4294901760, %v18883_v36  ;;  %v14760_v26 = vpack.c.bf16 %v22335_v25, %v22334_v27  ;;  %v22336_v45 = vand.u32 4294901760, %v18931_v58  ;;  %v22358_v47 = vld [vmem:[#allocation99_spill] sm:$0xff] }
 0x8f4   :  { %v5271_v3 = vadd.f32 %v11970_v39, %v5115_v49  ;;  %v14748_v61 = vpack.c.bf16 %v22320_v53, %v22319_v18  ;;  %v22323_v49 = vand.u32 4294901760, %v22295_v7  ;;  %v14752_v11 = vpack.c.bf16 %v22326_v40, %v22325_v12  ;;  %v4715_v40 = vld [vmem:[%s21124_s7 + $0x200] sm:$0xff] }
 0x8f5   :  { %6351 = vmatmul.mubr.f32.vlgmr.msra.gmra.mrb[66].mxu1 %v22317_v48  ;;  %v22330_v7 = vand.u32 4294901760, %v18861_v5  ;;  %v14758_v54 = vpack.c.bf16 %v22333_v24, %v22332_v46  ;;  %v22337_v5 = vand.u32 4294901760, %v18938_v1  ;;  %v22339_v36 = vand.u32 4294901760, %v18974_v20  ;;  %v22359_v24 = vld [vmem:[#allocation88_spill] sm:$0xff] }
 0x8f6   :  { %6358 = vmatprep.mubr.f32.mxu1 %v22318_v10  ;;  %14745 = vmatpush3.bf16.msra.mxu1 %v14744_v42  ;;  %v14766_v0 = vpack.c.bf16 %v22341_v56, %v22340_v23  ;;  %v22342_v58 = vand.u32 4294901760, %v19006_v60  ;;  %v22343_v1 = vand.u32 4294901760, %v19049_v57  ;;  %v22345_v20 = vand.u32 4294901760, %v19077_v22  ;;  %v22348_v22 = vld [vmem:[#allocation104_spill] sm:$0xff] }
 0x8f7   :  { %14747 = vmatprep.subr.bf16.mxu1 %v14746_v4  ;;  %v14756_v59 = vpack.c.bf16 %v22331_v16, %v22330_v7  ;;  %v14762_v39 = vpack.c.bf16 %v22337_v5, %v22336_v45  ;;  %v14764_v44 = vpack.c.bf16 %v22339_v36, %v22338_v37  ;;  %v22346_v53 = vand.u32 4294901760, %v19084_v2  ;;  %v22349_v2 = vld [vmem:[#allocation76_spill] sm:$0xff] }
 0x8f8   :  { %v14768_v4 = vpack.c.bf16 %v22343_v1, %v22342_v58  ;;  %v14770_v48 = vpack.c.bf16 %v22345_v20, %v22344_v29  ;;  %v4724_v17 = vsel %vm61_vm0, %v22358_v47, 0  ;;  %v6679_v7 = vand.u32 4294901760, %v4715_v40 }
 0x8f9   :  { %6362 = vmatmul.mubr.f32.gmra.mrb[68].mxu1 %v22323_v49  ;;  %v22357_v49 = vld [vmem:[#allocation84_spill] sm:$0xff]  ;;  %v19301_v25 = vand.u32 4294901760, %v4724_v17 }
 0x8fa   :  { %6369 = vmatprep.mubr.f32.mxu1 %v22324_v8  ;;  %14749 = vmatpush3.bf16.msra.mxu1 %v14748_v61  ;;  %v22347_v61 = vand.u32 4294901760, %v19089_v13  ;;  %v22350_v13 = vld [vmem:[#allocation77_spill] sm:$0xff] }
 0x8fb   :  { %14751 = vmatprep.subr.bf16.mxu1 %v14750_v52  ;;  %v19312_v56 = vsub.f32 %v4724_v17, %v19301_v25 }
 0x8fc   :  { %v14772_v6 = vpack.c.bf16 %v22347_v61, %v22346_v53 }
 0x8fd   :  { %6373 = vmatmul.mubr.f32.gmra.mrb[70].mxu1 %v22329_v55 }
 0x8fe   :  { %14753 = vmatpush3.bf16.msra.mxu1 %v14752_v11  ;;  %6539 = vmatprep.mubr.f32.mxu1 %v18557_v9 }
 0x8ff   :  { %14755 = vmatprep.subr.bf16.mxu1 %v14754_v43 }
 0x902   :  { %14757 = vmatpush3.bf16.msra.mxu1 %v14756_v59 }
 0x903   :  { %14759 = vmatprep.subr.bf16.mxu1 %v14758_v54  ;;  %v19297_v54 = vsub.f32 %v4715_v40, %v6679_v7 }
 0x906   :  { %14761 = vmatpush3.bf16.msra.mxu1 %v14760_v26 }
 0x907   :  { %14763 = vmatprep.subr.bf16.mxu1 %v14762_v39 }
 0x908   :  { %v12003_v62 = vpop.f32.mrb[30].mxu1 }
 0x909   :  { %v12004_v42 = vpop.f32.mrb[31].mxu1 }
 0x90a   :  { %v12005_v34 = vadd.f32 %v12004_v42, %v12003_v62  ;;  %14765 = vmatpush3.bf16.msra.mxu1 %v14764_v44  ;;  %v6778_v44 = vand.u32 4294901760, %v19297_v54  ;;  %v21564_v62 = vmov 0.0|0.0   ;;  %v22362_v42 = vld [vmem:[#allocation105_spill] sm:$0xff] }
 0x90b   :  { %14767 = vmatprep.subr.bf16.mxu1 %v14766_v0 }
 0x90c   :  { %v5379_v10 = vadd.f32 %v12005_v34, %v5253_v50  ;;  %v12006_v51 = vpop.f32.mrb[32].mxu1  ;;  %v22353_v50 = vld [vmem:[#allocation79_spill] sm:$0xff]  ;;  %v4728_v34 = vsel %vm61_vm0, %v22362_v42, 0  ;;  %v7246_v42 = vld [vmem:[%s21126_s9 + $0x8] sm:$0xff] }
 0x90d   :  { %v12007_v18 = vpop.f32.mrb[33].mxu1  ;;  %v19332_v20 = vand.u32 4294901760, %v4728_v34 }
 0x90e   :  { %v12008_v28 = vadd.f32 %v12007_v18, %v12006_v51  ;;  %14769 = vmatpush3.bf16.msra.mxu1 %v14768_v4  ;;  %v6747_v4 = vand.u32 4294901760, %v19312_v56  ;;  %v22363_v18 = vmov 0.0  }
 0x90f   :  { %14771 = vmatprep.subr.bf16.mxu1 %v14770_v48 }
 0x910   :  { %v5390_v60 = vadd.f32 %v12008_v28, %v5262_v63  ;;  %v12009_v57 = vpop.f32.mrb[34].mxu1  ;;  %v22351_v63 = vld [vmem:[#allocation38_spill] sm:$0xff]  ;;  %v6748_v48 = vsub.f32 %v19312_v56, %v6747_v4 }
 0x911   :  { %v12010_v33 = vpop.f32.mrb[35].mxu1 }
 0x912   :  { %v12011_v52 = vadd.f32 %v12010_v33, %v12009_v57  ;;  %14773 = vmatpush3.bf16.msra.mxu1 %v14772_v6  ;;  %v6749_v53 = vand.u32 4294901760, %v6748_v48 }
 0x913   :  { %14775 = vmatprep.subr.bf16.mxu1 %v22290_v30  ;;  %v22352_v30 = vld [vmem:[#allocation78_spill] sm:$0xff] }
 0x914   :  { %v5401_v19 = vadd.f32 %v12011_v52, %v5271_v3  ;;  %v22354_v3 = vld [vmem:[#allocation80_spill] sm:$0xff] }
 0x915   :  { %6541 = vmatmul.mubr.f32.vlgmr.msra.gmra.mrb[72].mxu1 %v18559_v35 }
 0x916   :  { %6546 = vmatprep.mubr.f32.mxu1 %v18561_v21  ;;  %14777 = vmatpush3.bf16.msra.mxu1 %v22293_v41  ;;  %v22355_v41 = vld [vmem:[#allocation81_spill] sm:$0xff] }
 0x917   :  { %14779 = vmatprep.subr.bf16.mxu1 %v22294_v14  ;;  %v22356_v14 = vld [vmem:[#allocation83_spill] sm:$0xff] }
 0x919   :  { %6548 = vmatmul.mubr.f32.gmra.mrb[74].mxu1 %v18565_v31 }
 0x91a   :  { %6553 = vmatprep.mubr.f32.mxu1 %v22348_v22  ;;  %14781 = vmatpush3.bf16.msra.mxu1 %v22349_v2 }
 0x91b   :  { %14783 = vmatprep.subr.bf16.mxu1 %v22350_v13 }
 0x91d   :  { %6555 = vmatmul.mubr.f32.gmra.mrb[76].mxu1 %v22351_v63 }
 0x91e   :  { %14785 = vmatpush3.bf16.msra.mxu1 %v22352_v30  ;;  %6657 = vmatprep.mubr.f32.mxu1 %v18557_v9  ;;  %v4716_v9 = vld [vmem:[%s21124_s7 + $0x208] sm:$0xff] }
 0x91f   :  { %14787 = vmatprep.subr.bf16.mxu1 %v22353_v50  ;;  %v6682_v16 = vand.u32 4294901760, %v4716_v9 }
 0x921   :  { %v19299_v27 = vsub.f32 %v4716_v9, %v6682_v16  ;;  %v19307_v36 = vpack.c.bf16 %v6682_v16, %v6679_v7 }
 0x922   :  { %14789 = vmatpush3.bf16.msra.mxu1 %v22354_v3 }
 0x923   :  { %14791 = vmatprep.subr.bf16.mxu1 %v22355_v41  ;;  %v6785_v23 = vand.u32 4294901760, %v19299_v27 }
 0x925   :  { %v6786_v1 = vsub.f32 %v19299_v27, %v6785_v23 }
 0x926   :  { %14793 = vmatpush3.bf16.msra.mxu1 %v22356_v14 }
 0x927   :  { %14795 = vmatprep.subr.bf16.mxu1 %v22357_v49 }
 0x928   :  { %v12044_v8 = vpop.f32.mrb[36].mxu1 }
 0x929   :  { %v12045_v12 = vpop.f32.mrb[37].mxu1 }
 0x92a   :  { %v12046_v11 = vadd.f32 %v12045_v12, %v12044_v8  ;;  %14797 = vmatpush3.bf16.msra.mxu1 %v22307_v38  ;;  %v22360_v38 = vld [vmem:[#allocation92_spill] sm:$0xff]  ;;  %v14819_v8 = vpack.c.bf16 %v6785_v23, %v6778_v44 }
 0x92b   :  { %14799 = vmatprep.subr.bf16.mxu1 %v22308_v15  ;;  %v22361_v15 = vld [vmem:[#allocation101_spill] sm:$0xff] }
 0x92c   :  { %v19294_v43 = vadd.f32 %v12046_v11, %v5379_v10  ;;  %v12047_v55 = vpop.f32.mrb[38].mxu1  ;;  %v4726_v26 = vsel %vm61_vm0, %v22361_v15, 0  ;;  %v6766_v10 = vsub.f32 %v4728_v34, %v19332_v20  ;;  %v19415_v23 = vld [vmem:[%s21126_s9] sm:$0xff] }
 0x92d   :  { %v12048_v59 = vpop.f32.mrb[39].mxu1  ;;  %v19314_v0 = vand.u32 4294901760, %v4726_v26  ;;  %v7301_v34 = vand.u32 4294901760, %v19415_v23 }
 0x92e   :  { %v12049_v46 = vadd.f32 %v12048_v59, %v12047_v55  ;;  %14801 = vmatpush3.bf16.msra.mxu1 %v22359_v24  ;;  %v6767_v61 = vand.u32 4294901760, %v6766_v10 }
 0x92f   :  { %14803 = vmatprep.subr.bf16.mxu1 %v22360_v38  ;;  %v19330_v29 = vsub.f32 %v4726_v26, %v19314_v0 }
 0x930   :  { %v5576_v45 = vadd.f32 %v12049_v46, %v5390_v60  ;;  %v12050_v5 = vpop.f32.mrb[40].mxu1  ;;  %v6768_v60 = vsub.f32 %v6766_v10, %v6767_v61 }
 0x931   :  { %v12051_v39 = vpop.f32.mrb[41].mxu1  ;;  %v6757_v51 = vand.u32 4294901760, %v19330_v29 }
 0x932   :  { %v12052_v37 = vadd.f32 %v12051_v39, %v12050_v5  ;;  %14805 = vmatpush3.bf16.msra.mxu1 %v18991_v32  ;;  %v6779_v32 = vsub.f32 %v19297_v54, %v6778_v44  ;;  %v6769_v57 = vand.u32 4294901760, %v6768_v60  ;;  %v7262_v44 = vld [vmem:[%s21126_s9 + $0x88] sm:$0xff] }
 0x933   :  { %14806 = vmatprep.subr.bf16.mxu1 %v21564_v62 }
 0x934   :  { %v5583_v58 = vadd.f32 %v12052_v37, %v5401_v19 }
 0x935   :  { %6659 = vmatmul.mubr.f32.vlgmr.msra.gmra.mrb[78].mxu1 %v18559_v35  ;;  %v6780_v35 = vand.u32 4294901760, %v6779_v32  ;;  %v19429_v32 = vld [vmem:[%s21126_s9 + $0x98] sm:$0xff] }
 0x936   :  { %6664 = vmatprep.mubr.f32.mxu1 %v18561_v21  ;;  %14808 = vmatpush3.bf16.msra.mxu1 %v19307_v36  ;;  %v6787_v21 = vand.u32 4294901760, %v6786_v1 }
 0x937   :  { %14809 = vmatprep.subr.bf16.mxu1 %v21564_v62 }
 0x938   :  { %v14810_v28 = vpack.c.bf16 %v6787_v21, %v6780_v35  ;;  %v19438_v35 = vld [vmem:[%s21126_s9 + $0x10] sm:$0xff]  ;;  %v19443_v21 = vld [vmem:[%s21126_s9 + $0x18] sm:$0xff] }
 0x939   :  { %6666 = vmatmul.mubr.f32.gmra.mrb[80].mxu1 %v18565_v31  ;;  %v6758_v31 = vsub.f32 %v19330_v29, %v6757_v51 }
 0x93a   :  { %6671 = vmatprep.mubr.f32.mxu1 %v22348_v22  ;;  %v14813_v22 = vpack.c.bf16 %v19299_v27, %v19297_v54 }
 0x93b   :  { %v6759_v6 = vand.u32 4294901760, %v6758_v31 }
 0x93d   :  { %6673 = vmatmul.mubr.f32.gmra.mrb[82].mxu1 %v22351_v63 }
 0x93e   :  { %13124 = vmatprep.mubr.msk.f32.mxu1 %vm15680_vm9, %v22363_v18 }
 0x941   :  { %13125 = vmatmul.mubr.f32.vlgmr.msra.gmra.mrb[84].mxu1 %v6749_v53 }
 0x942   :  { %13127 = vmatprep.mubr.msk.f32.mxu1 %vm15680_vm9, %v22363_v18  ;;  %14811 = vmatpush3.bf16.msra.mxu1 %v14810_v28  ;;  %v7307_v28 = vand.u32 4294901760, %v19438_v35 }
 0x943   :  { %14812 = vmatprep.subr.bf16.mxu1 %v21564_v62 }
 0x945   :  { %13128 = vmatmul.mubr.f32.gmra.mrb[86].mxu1 %v6759_v6  ;;  %v7310_v6 = vand.u32 4294901760, %v19443_v21 }
 0x946   :  { %13130 = vmatprep.mubr.msk.f32.mxu1 %vm15680_vm9, %v22363_v18 }
 0x948   :  { %v12085_v33 = vpop.f32.mrb[42].mxu1 }
 0x949   :  { %v12086_v52 = vpop.f32.mrb[43].mxu1  ;;  %13131 = vmatmul.mubr.f32.gmra.mrb[88].mxu1 %v6769_v57 }
 0x94a   :  { %v12087_v19 = vadd.f32 %v12086_v52, %v12085_v33  ;;  %13137 = vmatprep.mubr.msk.f32.mxu1 %vm15680_vm9, %v22363_v18  ;;  %v19468_v52 = vsub.f32 %v19438_v35, %v7307_v28 }
 0x94c   :  { %v5687_v2 = vadd.f32 %v12087_v19, %v19294_v43  ;;  %v12088_v13 = vpop.f32.mrb[44].mxu1 }
 0x94d   :  { %v12089_v63 = vpop.f32.mrb[45].mxu1  ;;  %13138 = vmatmul.mubr.f32.vlgmr.msra.gmra.mrb[84].mxu1 %v19301_v25 }
 0x94e   :  { %v12090_v30 = vadd.f32 %v12089_v63, %v12088_v13  ;;  %13140 = vmatprep.mubr.msk.f32.mxu1 %vm15680_vm9, %v22363_v18  ;;  %14814 = vmatpush3.bf16.msra.mxu1 %v14813_v22  ;;  %v19474_v13 = vsub.f32 %v19443_v21, %v7310_v6 }
 0x94f   :  { %14815 = vmatprep.subr.bf16.mxu1 %v21564_v62 }
 0x950   :  { %v5694_v50 = vadd.f32 %v12090_v30, %v5576_v45  ;;  %v12091_v3 = vpop.f32.mrb[46].mxu1 }
 0x951   :  { %v12092_v41 = vpop.f32.mrb[47].mxu1  ;;  %13141 = vmatmul.mubr.f32.gmra.mrb[86].mxu1 %v19314_v0 }
 0x952   :  { %v12093_v14 = vadd.f32 %v12092_v41, %v12091_v3  ;;  %13143 = vmatprep.mubr.msk.f32.mxu1 %vm15680_vm9, %v22363_v18  ;;  %v21575_v3 = vand.u32 4294901760, %v19468_v52 }
 0x954   :  { %v5701_v49 = vadd.f32 %v12093_v14, %v5583_v58  ;;  %v19424_v58 = vld [vmem:[%s21126_s9 + $0x90] sm:$0xff] }
 0x955   :  { %13144 = vmatmul.mubr.f32.gmra.mrb[88].mxu1 %v19332_v20 }
 0x956   :  { %13150 = vmatprep.mubr.msk.f32.mxu1 %vm15680_vm9, %v22363_v18 }
 0x959   :  { %13151 = vmatmul.mubr.f32.vlgmr.msra.gmra.mrb[84].mxu1 %v19312_v56 }
 0x95a   :  { %13153 = vmatprep.mubr.msk.f32.mxu1 %vm15680_vm9, %v22363_v18  ;;  %14817 = vmatpush3.bf16.msra.mxu1 %v19307_v36 }
 0x95b   :  { %14818 = vmatprep.subr.bf16.mxu1 %v21564_v62 }
 0x95d   :  { %13154 = vmatmul.mubr.f32.gmra.mrb[86].mxu1 %v19330_v29  ;;  %v7355_v29 = vand.u32 4294901760, %v19424_v58 }
 0x95e   :  { %13156 = vmatprep.mubr.msk.f32.mxu1 %vm15680_vm9, %v22363_v18 }
 0x961   :  { %13157 = vmatmul.mubr.f32.gmra.mrb[88].mxu1 %v6766_v10 }
 0x962   :  { %13163 = vmatprep.mubr.msk.f32.mxu1 %vm15680_vm9, %v22363_v18 }
 0x965   :  { %13164 = vmatmul.mubr.f32.vlgmr.msra.gmra.mrb[84].mxu1 %v6747_v4  ;;  %v7304_v4 = vand.u32 4294901760, %v7246_v42 }
 0x966   :  { %13166 = vmatprep.mubr.msk.f32.mxu1 %vm15680_vm9, %v22363_v18  ;;  %14820 = vmatpush3.bf16.msra.mxu1 %v14819_v8  ;;  %v21574_v8 = vand.u32 4294901760, %v19474_v13 }
 0x967   :  { %14821 = vmatprep.subr.bf16.mxu1 %v21564_v62  ;;  %v19453_v53 = vsub.f32 %v7246_v42, %v7304_v4  ;;  %v19547_v42 = vld [vmem:[%s21126_s9 + $0x30] sm:$0xff] }
 0x968   :  { %v12126_v12 = vpop.f32.mrb[48].mxu1 }
 0x969   :  { %v12127_v40 = vpop.f32.mrb[49].mxu1  ;;  %13167 = vmatmul.mubr.f32.gmra.mrb[86].mxu1 %v6757_v51  ;;  %v19450_v51 = vsub.f32 %v19415_v23, %v7301_v34  ;;  %v21580_v19 = vand.u32 4294901760, %v19453_v53  ;;  %v19540_v23 = vpack.c.bf16 %v7304_v4, %v7301_v34 }
 0x96a   :  { %v12128_v9 = vadd.f32 %v12127_v40, %v12126_v12  ;;  %13169 = vmatprep.mubr.msk.f32.mxu1 %vm15680_vm9, %v22363_v18  ;;  %v19499_v12 = vld [vmem:[%s21126_s9 + $0xa0] sm:$0xff] }
 0x96b   :  { %v21581_v33 = vand.u32 4294901760, %v19450_v51  ;;  %v7453_v41 = vsub.f32 %v19453_v53, %v21580_v19 }
 0x96c   :  { %v5813_v11 = vadd.f32 %v12128_v9, %v5687_v2  ;;  %v12129_v47 = vpop.f32.mrb[50].mxu1 }
 0x96d   :  { %v12130_v17 = vpop.f32.mrb[51].mxu1  ;;  %13170 = vmatmul.mubr.f32.gmra.mrb[88].mxu1 %v6767_v61  ;;  %v19456_v61 = vsub.f32 %v19424_v58, %v7355_v29 }
 0x96e   :  { %v12131_v43 = vadd.f32 %v12130_v17, %v12129_v47  ;;  %13176 = vmatprep.mubr.msk.f32.mxu1 %vm15680_vm9, %v22363_v18  ;;  %v7460_v47 = vsub.f32 %v19468_v52, %v21575_v3  ;;  %v19507_v17 = vld [vmem:[%s21126_s9 + $0xa8] sm:$0xff] }
 0x96f   :  { %v21577_v22 = vand.u32 4294901760, %v19456_v61 }
 0x970   :  { %v5828_v55 = vadd.f32 %v12131_v43, %v5694_v50  ;;  %v12132_v7 = vpop.f32.mrb[52].mxu1  ;;  %v7446_v50 = vsub.f32 %v19450_v51, %v21581_v33  ;;  %v7454_v43 = vand.u32 4294901760, %v7453_v41 }
 0x971   :  { %v12133_v16 = vpop.f32.mrb[53].mxu1  ;;  %13177 = vmatmul.mubr.f32.vlgmr.msra.gmra.mrb[84].mxu1 %v19301_v25  ;;  %v7572_v14 = vsub.f32 %v19456_v61, %v21577_v22 }
 0x972   :  { %v12134_v59 = vadd.f32 %v12133_v16, %v12132_v7  ;;  %13179 = vmatprep.mubr.msk.f32.mxu1 %vm15680_vm9, %v22363_v18  ;;  %14823 = vmatpush3.bf16.msra.mxu1 %v19307_v36  ;;  %v7261_v36 = vld [vmem:[%s21126_s9 + $0x80] sm:$0xff]  ;;  %v7467_v16 = vsub.f32 %v19474_v13, %v21574_v8 }
 0x973   :  { %v7349_v56 = vand.u32 4294901760, %v7261_v36 }
 0x974   :  { %v5843_v46 = vadd.f32 %v12134_v59, %v5701_v49  ;;  %v19515_v59 = vld [vmem:[%s21126_s9 + $0x20] sm:$0xff] }
 0x975   :  { %13180 = vmatmul.mubr.f32.gmra.mrb[86].mxu1 %v19314_v0  ;;  %v19445_v48 = vsub.f32 %v7261_v36, %v7349_v56  ;;  %v19534_v36 = vld [vmem:[%s21126_s9 + $0xb8] sm:$0xff] }
 0x976   :  { %13182 = vmatprep.mubr.msk.f32.mxu1 %vm15680_vm9, %v22363_v18 }
 0x977   :  { %v21583_v60 = vand.u32 4294901760, %v19445_v48 }
 0x979   :  { %13183 = vmatmul.mubr.f32.gmra.mrb[88].mxu1 %v19332_v20  ;;  %v7558_v63 = vsub.f32 %v19445_v48, %v21583_v60 }
 0x97a   :  { %13189 = vmatprep.mubr.msk.f32.mxu1 %vm15680_vm9, %v22363_v18 }
 0x97b   :  { %v7559_v40 = vand.u32 4294901760, %v7558_v63 }
 0x97d   :  { %13190 = vmatmul.mubr.f32.vlgmr.msra.gmra.mrb[84].mxu1 %v19301_v25 }
 0x97e   :  { %13192 = vmatprep.mubr.msk.f32.mxu1 %vm15680_vm9, %v22363_v18 }
 0x981   :  { %13193 = vmatmul.mubr.f32.gmra.mrb[86].mxu1 %v19314_v0  ;;  %v7352_v0 = vand.u32 4294901760, %v7262_v44 }
 0x982   :  { %13195 = vmatprep.mubr.msk.f32.mxu1 %vm15680_vm9, %v22363_v18  ;;  %v22376_v18 = vand.u32 4294901760, %v19547_v42 }
 0x983   :  { %v19447_v10 = vsub.f32 %v7262_v44, %v7352_v0 }
 0x985   :  { %13196 = vmatmul.mubr.f32.gmra.mrb[88].mxu1 %v19332_v20  ;;  %v7358_v20 = vand.u32 4294901760, %v19429_v32  ;;  %v21582_v57 = vand.u32 4294901760, %v19447_v10 }
 0x987   :  { %v19459_v31 = vsub.f32 %v19429_v32, %v7358_v20  ;;  %v7565_v30 = vsub.f32 %v19447_v10, %v21582_v57  ;;  %v19552_v21 = vpack.c.bf16 %v7358_v20, %v7355_v29  ;;  %v19567_v29 = vld [vmem:[%s21126_s9 + $0x38] sm:$0xff] }
 0x988   :  { %v12167_v24 = vpop.f32.mrb[54].mxu1 }
 0x989   :  { %v12168_v54 = vpop.f32.mrb[55].mxu1  ;;  %v21576_v2 = vand.u32 4294901760, %v19459_v31  ;;  %v7566_v9 = vand.u32 4294901760, %v7565_v30 }
 0x98a   :  { %v12169_v27 = vadd.f32 %v12168_v54, %v12167_v24  ;;  %v7461_v54 = vand.u32 4294901760, %v7460_v47 }
 0x98b   :  { %v7579_v49 = vsub.f32 %v19459_v31, %v21576_v2  ;;  %v14856_v24 = vpack.c.bf16 %v7566_v9, %v7559_v40 }
 0x98c   :  { %v19402_v38 = vadd.f32 %v12169_v27, %v5813_v11  ;;  %v12170_v15 = vpop.f32.mrb[56].mxu1  ;;  %v7447_v11 = vand.u32 4294901760, %v7446_v50  ;;  %v19522_v27 = vpack.c.bf16 %v7352_v0, %v7349_v56  ;;  %v7313_v56 = vand.u32 4294901760, %v19515_v59 }
 0x98d   :  { %v12171_v26 = vpop.f32.mrb[57].mxu1  ;;  %v7580_v7 = vand.u32 4294901760, %v7579_v49  ;;  %14857 = vmatprep.subr.bf16.mxu1 %v14856_v24  ;;  %v21599_v50 = vand.u32 4294901760, %v19534_v36  ;;  %v21595_v49 = vand.u32 4294901760, %v19547_v42 }
 0x98e   :  { %v12172_v45 = vadd.f32 %v12171_v26, %v12170_v15  ;;  %v7361_v15 = vand.u32 4294901760, %v19499_v12  ;;  %v19528_v26 = vld [vmem:[%s21126_s9 + $0xb0] sm:$0xff]  ;;  %14825 = vmatprep.subr.bf16.mxu0 %v19522_v27  ;;  %v19558_v4 = vsub.f32 %v19515_v59, %v7313_v56 }
 0x98f   :  { %v21600_v63 = vand.u32 4294901760, %v19528_v26  ;;  %14827 = vmatpush3.bf16.msra.mxu0 %v19540_v23  ;;  %v19599_v47 = vsub.f32 %v19547_v42, %v21595_v49 }
 0x990   :  { %v19404_v5 = vadd.f32 %v12172_v45, %v5828_v55  ;;  %v12173_v25 = vpop.f32.mrb[58].mxu1  ;;  %v7573_v55 = vand.u32 4294901760, %v7572_v14  ;;  %v14858_v45 = vpack.c.bf16 %v7454_v43, %v7447_v11  ;;  %v19538_v44 = vsub.f32 %v19499_v12, %v7361_v15  ;;  %22364 = vst [vmem:[#allocation8_spill] sm:$0xff] %v19558_v4  ;;  %14829 = vmatprep.subr.bf16.mxu0 %v19552_v21 }
 0x991   :  { %v12174_v39 = vpop.f32.mrb[59].mxu1  ;;  %v19574_v41 = vsub.f32 %v19528_v26, %v21600_v63  ;;  %v19578_v14 = vpack.c.bf16 %v7310_v6, %v7307_v28  ;;  %v21568_v40 = vand.u32 4294901760, %v19558_v4  ;;  %v19589_v11 = vsub.f32 %v19534_v36, %v21599_v50  ;;  %22368 = vst [vmem:[#allocation10_spill] sm:$0xff] %v19599_v47 }
 0x992   :  { %v12175_v37 = vadd.f32 %v12174_v39, %v12173_v25  ;;  %v14860_v25 = vpack.c.bf16 %v7580_v7, %v7573_v55  ;;  %v7468_v39 = vand.u32 4294901760, %v7467_v16  ;;  %14859 = vmatpush3.bf16.msra.mxu1 %v14858_v45  ;;  %v21570_v34 = vand.u32 4294901760, %v19538_v44  ;;  %v19626_v45 = vld [vmem:[%s21126_s9 + $0xc8] sm:$0xff] }
 0x993   :  { %22366 = vst [vmem:[#allocation93_spill] sm:$0xff] %v19574_v41  ;;  %22367 = vst [vmem:[#allocation97_spill] sm:$0xff] %v19589_v11  ;;  %v21566_v28 = vand.u32 4294901760, %v19574_v41  ;;  %v21594_v6 = vand.u32 4294901760, %v19567_v29  ;;  %v7474_v43 = vsub.f32 %v19558_v4, %v21568_v40  ;;  %v21572_v7 = vand.u32 4294901760, %v19589_v11  ;;  %14831 = vmatpush3.bf16.msra.mxu0 %v19578_v14 }
 0x994   :  { %v19431_v1 = vadd.f32 %v12175_v37, %v5843_v46  ;;  %v19520_v46 = vld [vmem:[%s21126_s9 + $0x28] sm:$0xff]  ;;  %v7364_v37 = vand.u32 4294901760, %v19507_v17  ;;  %v14862_v58 = vpack.c.bf16 %v7468_v39, %v7461_v54  ;;  %14861 = vmatprep.subr.bf16.mxu1 %v14860_v25  ;;  %v7586_v12 = vsub.f32 %v19538_v44, %v21570_v34  ;;  %v19621_v54 = vld [vmem:[%s21126_s9 + $0xc0] sm:$0xff] }
 0x995   :  { %v7316_v0 = vand.u32 4294901760, %v19520_v46  ;;  %v7600_v59 = vsub.f32 %v19574_v41, %v21566_v28  ;;  %v19616_v24 = vsub.f32 %v19567_v29, %v21594_v6  ;;  %v7475_v25 = vand.u32 4294901760, %v7474_v43  ;;  %v19640_v43 = vld [vmem:[%s21126_s9 + $0x40] sm:$0xff] }
 0x996   :  { %v19550_v32 = vsub.f32 %v19507_v17, %v7364_v37  ;;  %14863 = vmatpush3.bf16.msra.mxu1 %v14862_v58  ;;  %v7587_v17 = vand.u32 4294901760, %v7586_v12  ;;  %v7607_v58 = vsub.f32 %v19589_v11, %v21572_v7  ;;  %v19631_v12 = vpack.c.bf16 %v7364_v37, %v7361_v15 }
 0x997   :  { %v19561_v30 = vsub.f32 %v19520_v46, %v7316_v0  ;;  %v21571_v46 = vand.u32 4294901760, %v19599_v47  ;;  %22369 = vst [vmem:[#allocation11_spill] sm:$0xff] %v19616_v24  ;;  %v7601_v28 = vand.u32 4294901760, %v7600_v59  ;;  %v21573_v40 = vand.u32 4294901760, %v19616_v24 }
 0x998   :  { %v21569_v20 = vand.u32 4294901760, %v19550_v32  ;;  %v7608_v34 = vand.u32 4294901760, %v7607_v58  ;;  %14833 = vmatprep.subr.bf16.mxu0 %v19631_v12  ;;  %v21593_v15 = vand.u32 4294901760, %v19621_v54  ;;  %v21592_v37 = vand.u32 4294901760, %v19626_v45 }
 0x999   :  { %22365 = vst [vmem:[#allocation9_spill] sm:$0xff] %v19561_v30  ;;  %v21567_v9 = vand.u32 4294901760, %v19561_v30  ;;  %v22383_v11 = vand.u32 4294901760, %v19626_v45 }
 0x99a   :  { %v7593_v35 = vsub.f32 %v19550_v32, %v21569_v20  ;;  %v19658_v58 = vsub.f32 %v19621_v54, %v21593_v15  ;;  %v19663_v7 = vsub.f32 %v19626_v45, %v21592_v37 }
 0x99b   :  { %v7481_v55 = vsub.f32 %v19561_v30, %v21567_v9  ;;  %v7488_v9 = vsub.f32 %v19599_v47, %v21571_v46  ;;  %v7495_v46 = vsub.f32 %v19616_v24, %v21573_v40  ;;  %v7260_v47 = vld [vmem:[%s21126_s9 + $0x78] sm:$0xff] }
 0x99c   :  { %v7594_v16 = vand.u32 4294901760, %v7593_v35  ;;  %22370 = vst [vmem:[#allocation98_spill] sm:$0xff] %v19658_v58  ;;  %22371 = vst [vmem:[#allocation103_spill] sm:$0xff] %v19663_v7 }
 0x99d   :  { %v7482_v39 = vand.u32 4294901760, %v7481_v55  ;;  %v7489_v59 = vand.u32 4294901760, %v7488_v9 }
 0x99e   :  { %v14864_v62 = vpack.c.bf16 %v7594_v16, %v7587_v17  ;;  %v19648_v17 = vld [vmem:[%s21126_s9 + $0x48] sm:$0xff] }
 0x99f   :  { %v14866_v20 = vpack.c.bf16 %v7482_v39, %v7475_v25  ;;  %v19653_v25 = vpack.c.bf16 %v7316_v0, %v7313_v56  ;;  %v14868_v39 = vpack.c.bf16 %v7608_v34, %v7601_v28  ;;  %v21584_v56 = vand.u32 4294901760, %v19648_v17 }
 0x9a0   :  { %14865 = vmatprep.subr.bf16.mxu1 %v14864_v62  ;;  %v21591_v62 = vand.u32 4294901760, %v19640_v43  ;;  %v21578_v34 = vand.u32 4294901760, %v19658_v58 }
 0x9a1   :  { %14867 = vmatpush3.bf16.msra.mxu1 %v14866_v20  ;;  %14835 = vmatpush3.bf16.msra.mxu0 %v19653_v25  ;;  %v21579_v20 = vand.u32 4294901760, %v19663_v7 }
 0x9a2   :  { %14869 = vmatprep.subr.bf16.mxu1 %v14868_v39  ;;  %v19674_v28 = vsub.f32 %v19640_v43, %v21591_v62 }
 0x9a4   :  { %22372 = vst [vmem:[#allocation12_spill] sm:$0xff] %v19674_v28  ;;  %v21585_v39 = vand.u32 4294901760, %v19674_v28 }
 0x9a6   :  { %v7502_v22 = vsub.f32 %v19674_v28, %v21585_v39 }
 0x9a8   :  { %v12208_v35 = vpop.f32.mrb[60].mxu1  ;;  %v7503_v33 = vand.u32 4294901760, %v7502_v22  ;;  %v19719_v22 = vld [vmem:[%s21126_s9 + $0x58] sm:$0xff] }
 0x9a9   :  { %v12209_v55 = vpop.f32.mrb[61].mxu1 }
 0x9aa   :  { %v12210_v16 = vadd.f32 %v12209_v55, %v12208_v35  ;;  %v7496_v55 = vand.u32 4294901760, %v7495_v46  ;;  %v7614_v46 = vsub.f32 %v19658_v58, %v21578_v34 }
 0x9ac   :  { %v6227_v9 = vadd.f32 %v12210_v16, %v19402_v38  ;;  %v12211_v35 = vpop.f32.mrb[62].mxu1  ;;  %v14870_v8 = vpack.c.bf16 %v7496_v55, %v7489_v59  ;;  %v19679_v38 = vsub.f32 %v19648_v17, %v21584_v56  ;;  %v7621_v16 = vsub.f32 %v19663_v7, %v21579_v20 }
 0x9ad   :  { %v12212_v0 = vpop.f32.mrb[63].mxu1  ;;  %v7615_v55 = vand.u32 4294901760, %v7614_v46 }
 0x9ae   :  { %v12213_v40 = vadd.f32 %v12212_v0, %v12211_v35  ;;  %22373 = vst [vmem:[#allocation14_spill] sm:$0xff] %v19679_v38  ;;  %14871 = vmatpush3.bf16.msra.mxu1 %v14870_v8  ;;  %v21586_v59 = vand.u32 4294901760, %v19679_v38  ;;  %v7622_v0 = vand.u32 4294901760, %v7621_v16 }
 0x9b0   :  { %v6236_v3 = vadd.f32 %v12213_v40, %v19404_v5  ;;  %v12214_v2 = vpop.f32.mrb[64].mxu1  ;;  %v7509_v20 = vsub.f32 %v19679_v38, %v21586_v59  ;;  %v14872_v19 = vpack.c.bf16 %v7622_v0, %v7615_v55 }
 0x9b1   :  { %v12215_v35 = vpop.f32.mrb[65].mxu1 }
 0x9b2   :  { %v12216_v34 = vadd.f32 %v12215_v35, %v12214_v2  ;;  %v7510_v40 = vand.u32 4294901760, %v7509_v20  ;;  %14873 = vmatprep.subr.bf16.mxu1 %v14872_v19  ;;  %v19702_v35 = vld [vmem:[%s21126_s9 + $0xd0] sm:$0xff]  ;;  %v21587_v20 = vand.u32 4294901760, %v19719_v22 }
 0x9b4   :  { %v6245_v5 = vadd.f32 %v12216_v34, %v19431_v1  ;;  %v14874_v8 = vpack.c.bf16 %v7510_v40, %v7503_v33  ;;  %v19707_v1 = vld [vmem:[%s21126_s9 + $0xd8] sm:$0xff]  ;;  %v21590_v33 = vand.u32 4294901760, %v19702_v35 }
 0x9b5   :  { %v21589_v19 = vand.u32 4294901760, %v19707_v1 }
 0x9b6   :  { %14875 = vmatpush3.bf16.msra.mxu1 %v14874_v8  ;;  %v19728_v55 = vsub.f32 %v19702_v35, %v21590_v33  ;;  %v19743_v8 = vsub.f32 %v19719_v22, %v21587_v20  ;;  %v19762_v20 = vld [vmem:[%s21126_s9 + $0x60] sm:$0xff] }
 0x9b7   :  { %v19733_v0 = vsub.f32 %v19707_v1, %v21589_v19  ;;  %v21609_v37 = vand.u32 4294901760, %v19762_v20 }
 0x9b8   :  { %v21608_v62 = vand.u32 4294901760, %v19743_v8 }
 0x9c8   :  { %v12249_v57 = vpop.f32.mrb[66].mxu1 }
 0x9c9   :  { %v12250_v46 = vpop.f32.mrb[67].mxu1 }
 0x9ca   :  { %v12251_v16 = vadd.f32 %v12250_v46, %v12249_v57  ;;  %v19714_v57 = vld [vmem:[%s21126_s9 + $0x50] sm:$0xff]  ;;  %v19748_v46 = vld [vmem:[%s21126_s9 + $0xe0] sm:$0xff] }
 0x9cb   :  { %v21588_v34 = vand.u32 4294901760, %v19714_v57 }
 0x9cc   :  { %v19697_v60 = vadd.f32 %v12251_v16, %v6227_v9  ;;  %v12252_v56 = vpop.f32.mrb[68].mxu1  ;;  %v19753_v16 = vld [vmem:[%s21126_s9 + $0xe8] sm:$0xff] }
 0x9cd   :  { %v12253_v39 = vpop.f32.mrb[69].mxu1  ;;  %v21601_v59 = vand.u32 4294901760, %v19753_v16 }
 0x9ce   :  { %v12254_v2 = vadd.f32 %v12253_v39, %v12252_v56 }
 0x9d0   :  { %v19721_v9 = vadd.f32 %v12254_v2, %v6236_v3  ;;  %v12255_v56 = vpop.f32.mrb[70].mxu1  ;;  %v19738_v3 = vsub.f32 %v19714_v57, %v21588_v34  ;;  %v21596_v2 = vand.u32 4294901760, %v19728_v55  ;;  %v19767_v34 = vld [vmem:[%s21126_s9 + $0x68] sm:$0xff] }
 0x9d1   :  { %v12256_v39 = vpop.f32.mrb[71].mxu1 }
 0x9d2   :  { %v12257_v40 = vadd.f32 %v12256_v39, %v12255_v56  ;;  %v21597_v56 = vand.u32 4294901760, %v19733_v0  ;;  %v21598_v39 = vand.u32 4294901760, %v19748_v46  ;;  %v21607_v33 = vand.u32 4294901760, %v19738_v3 }
 0x9d3   :  { %v7628_v15 = vsub.f32 %v19728_v55, %v21596_v2  ;;  %v7523_v2 = vsub.f32 %v19743_v8, %v21608_v62 }
 0x9d4   :  { %v19769_v19 = vadd.f32 %v12257_v40, %v6245_v5  ;;  %v7635_v6 = vsub.f32 %v19733_v0, %v21597_v56  ;;  %v19783_v49 = vsub.f32 %v19748_v46, %v21598_v39  ;;  %v19788_v5 = vsub.f32 %v19753_v16, %v21601_v59 }
 0x9d5   :  { %v7516_v40 = vsub.f32 %v19738_v3, %v21607_v33  ;;  %v21610_v56 = vand.u32 4294901760, %v19767_v34  ;;  %v19800_v39 = vsub.f32 %v19762_v20, %v21609_v37  ;;  %v7629_v50 = vand.u32 4294901760, %v7628_v15  ;;  %v7275_v37 = vld [vmem:[%s21126_s9 + $0xf0] sm:$0xff] }
 0x9d6   :  { %v7636_v63 = vand.u32 4294901760, %v7635_v6  ;;  %v7524_v28 = vand.u32 4294901760, %v7523_v2  ;;  %v7276_v6 = vld [vmem:[%s21126_s9 + $0xf8] sm:$0xff]  ;;  %v7259_v15 = vld [vmem:[%s21126_s9 + $0x70] sm:$0xff]  ;;  %v22374_v2 = vand.u32 4294901760, %v19528_v26  ;;  %v22377_v59 = vand.u32 4294901760, %v19567_v29 }
 0x9d7   :  { %v7517_v38 = vand.u32 4294901760, %v7516_v40  ;;  %v19808_v62 = vsub.f32 %v19767_v34, %v21610_v56  ;;  %v22375_v40 = vand.u32 4294901760, %v19534_v36  ;;  %v22379_v58 = vand.u32 4294901760, %v19783_v49 }
 0x9d8   :  { %v14876_v56 = vpack.c.bf16 %v7636_v63, %v7629_v50  ;;  %v19829_v7 = vpack.c.bf16 %v22377_v59, %v22376_v18  ;;  %v22380_v36 = vand.u32 4294901760, %v19788_v5  ;;  %v22381_v63 = vand.u32 4294901760, %v19800_v39 }
 0x9d9   :  { %v19823_v33 = vpack.c.bf16 %v22375_v40, %v22374_v2  ;;  %v7642_v24 = vsub.f32 %v19783_v49, %v22379_v58  ;;  %v14878_v26 = vpack.c.bf16 %v7524_v28, %v7517_v38  ;;  %v21627_v18 = vand.u32 4294901760, %v19808_v62 }
 0x9da   :  { %22378 = vst [vmem:[#allocation102_spill] sm:$0xff] %v19829_v7  ;;  %v7649_v2 = vsub.f32 %v19788_v5, %v22380_v36  ;;  %v7530_v42 = vsub.f32 %v19800_v39, %v22381_v63  ;;  %14877 = vmatprep.subr.bf16.mxu1 %v14876_v56  ;;  %v7391_v29 = vand.u32 4294901760, %v7275_v37  ;;  %v7394_v58 = vand.u32 4294901760, %v7276_v6 }
 0x9db   :  { %14837 = vmatprep.subr.bf16.mxu0 %v19823_v33  ;;  %v7643_v50 = vand.u32 4294901760, %v7642_v24  ;;  %v7343_v59 = vand.u32 4294901760, %v7259_v15  ;;  %14879 = vmatpush3.bf16.msra.mxu1 %v14878_v26  ;;  %v7537_v40 = vsub.f32 %v19808_v62, %v21627_v18  ;;  %v7346_v36 = vand.u32 4294901760, %v7260_v47 }
 0x9dc   :  { %14839 = vmatpush3.bf16.msra.mxu0 %v19829_v7  ;;  %v7650_v28 = vand.u32 4294901760, %v7649_v2  ;;  %v7531_v38 = vand.u32 4294901760, %v7530_v42  ;;  %v22382_v63 = vand.u32 4294901760, %v19621_v54  ;;  %v19855_v24 = vsub.f32 %v7275_v37, %v7391_v29 }
 0x9dd   :  { %v19857_v56 = vsub.f32 %v7276_v6, %v7394_v58  ;;  %v19859_v30 = vsub.f32 %v7259_v15, %v7343_v59  ;;  %v22384_v2 = vand.u32 4294901760, %v19640_v43  ;;  %v22385_v42 = vand.u32 4294901760, %v19648_v17 }
 0x9de   :  { %v19853_v41 = vpack.c.bf16 %v22383_v11, %v22382_v63  ;;  %v14880_v26 = vpack.c.bf16 %v7650_v28, %v7643_v50  ;;  %v7538_v18 = vand.u32 4294901760, %v7537_v40  ;;  %v19867_v7 = vsub.f32 %v7260_v47, %v7346_v36 }
 0x9df   :  { %v19865_v4 = vpack.c.bf16 %v22385_v42, %v22384_v2  ;;  %v22386_v11 = vand.u32 4294901760, %v19702_v35  ;;  %v22387_v54 = vand.u32 4294901760, %v19707_v1  ;;  %v7655_v37 = vand.u32 4294901760, %v19855_v24 }
 0x9e0   :  { %14841 = vmatprep.subr.bf16.mxu0 %v19853_v41  ;;  %v7662_v6 = vand.u32 4294901760, %v19857_v56  ;;  %14881 = vmatprep.subr.bf16.mxu1 %v14880_v26  ;;  %v14882_v43 = vpack.c.bf16 %v7538_v18, %v7531_v38  ;;  %v22388_v17 = vand.u32 4294901760, %v19714_v57  ;;  %v22389_v47 = vand.u32 4294901760, %v19719_v22 }
 0x9e1   :  { %v19874_v45 = vpack.c.bf16 %v22387_v54, %v22386_v11  ;;  %14843 = vmatpush3.bf16.msra.mxu0 %v19865_v4  ;;  %v21631_v35 = vand.u32 4294901760, %v19859_v30  ;;  %v21630_v1 = vand.u32 4294901760, %v19867_v7  ;;  %v7656_v50 = vsub.f32 %v19855_v24, %v7655_v37 }
 0x9e2   :  { %v19883_v15 = vpack.c.bf16 %v22389_v47, %v22388_v17  ;;  %v7663_v18 = vsub.f32 %v19857_v56, %v7662_v6  ;;  %v22390_v57 = vand.u32 4294901760, %v19748_v46  ;;  %v22391_v22 = vand.u32 4294901760, %v19753_v16  ;;  %14883 = vmatpush3.bf16.msra.mxu1 %v14882_v43 }
 0x9e3   :  { %14845 = vmatprep.subr.bf16.mxu0 %v19874_v45  ;;  %v7544_v38 = vsub.f32 %v19859_v30, %v21631_v35  ;;  %v7551_v40 = vsub.f32 %v19867_v7, %v21630_v1  ;;  %v7657_v63 = vand.u32 4294901760, %v7656_v50  ;;  %v22392_v46 = vand.u32 4294901760, %v19762_v20 }
 0x9e4   :  { %v19898_v28 = vpack.c.bf16 %v22391_v22, %v22390_v57  ;;  %v7664_v26 = vand.u32 4294901760, %v7663_v18  ;;  %v22393_v16 = vand.u32 4294901760, %v19767_v34  ;;  %v19914_v43 = vpack.c.bf16 %v7394_v58, %v7391_v29 }
 0x9e5   :  { %14847 = vmatpush3.bf16.msra.mxu0 %v19883_v15  ;;  %v7545_v2 = vand.u32 4294901760, %v7544_v38  ;;  %v7552_v42 = vand.u32 4294901760, %v7551_v40  ;;  %v19917_v50 = vpack.c.bf16 %v7346_v36, %v7343_v59  ;;  %v14888_v34 = vpack.c.bf16 %v19447_v10, %v19445_v48 }
 0x9e6   :  { %v19911_v11 = vpack.c.bf16 %v22393_v16, %v22392_v46  ;;  %v14884_v54 = vpack.c.bf16 %v7664_v26, %v7657_v63  ;;  %14849 = vmatprep.subr.bf16.mxu0 %v19898_v28 }
 0x9e7   :  { %v14886_v17 = vpack.c.bf16 %v7552_v42, %v7545_v2 }
 0x9e8   :  { %14885 = vmatprep.subr.bf16.mxu1 %v14884_v54  ;;  %v12290_v47 = vpop.f32.mrb[72].mxu1 }
 0x9e9   :  { %14887 = vmatpush3.bf16.msra.mxu1 %v14886_v17  ;;  %14851 = vmatpush3.bf16.msra.mxu0 %v19911_v11  ;;  %v12291_v18 = vpop.f32.mrb[73].mxu1 }
 0x9ea   :  { %14921 = vmatprep.subr.bf16.mxu1 %v19522_v27  ;;  %14853 = vmatprep.subr.bf16.mxu0 %v19914_v43  ;;  %v12292_v20 = vadd.f32 %v12291_v18, %v12290_v47 }
 0x9ec   :  { %v6543_v29 = vadd.f32 %v12292_v20, %v19697_v60  ;;  %v12293_v58 = vpop.f32.mrb[74].mxu1 }
 0x9ed   :  { %14855 = vmatpush3.bf16.msra.mxu0 %v19917_v50  ;;  %v12294_v57 = vpop.f32.mrb[75].mxu1 }
 0x9ee   :  { %14889 = vmatprep.subr.bf16.mxu0 %v14888_v34  ;;  %v12295_v22 = vadd.f32 %v12294_v57, %v12293_v58 }
 0x9f0   :  { %v6550_v59 = vadd.f32 %v12295_v22, %v19721_v9  ;;  %v12296_v36 = vpop.f32.mrb[76].mxu1 }
 0x9f1   :  { %v12297_v38 = vpop.f32.mrb[77].mxu1 }
 0x9f2   :  { %v12298_v40 = vadd.f32 %v12297_v38, %v12296_v36  ;;  %v19943_v38 = vpack.c.bf16 %v7662_v6, %v7655_v37 }
 0x9f4   :  { %v6557_v63 = vadd.f32 %v12298_v40, %v19769_v19  ;;  %22394 = vst [vmem:[#allocation20_spill] sm:$0xff] %v19943_v38 }
 0xa08   :  { %v12331_v16 = vpop.f32.mrb[78].mxu1 }
 0xa09   :  { %v12332_v19 = vpop.f32.mrb[79].mxu1 }
 0xa0a   :  { %v12333_v54 = vadd.f32 %v12332_v19, %v12331_v16 }
 0xa0c   :  { %v12334_v17 = vpop.f32.mrb[80].mxu1  ;;  %v6661_v47 = vadd.f32 %v12333_v54, %v6543_v29 }
 0xa0d   :  { %v12335_v18 = vpop.f32.mrb[81].mxu1 }
 0xa0e   :  { %v12336_v34 = vadd.f32 %v12335_v18, %v12334_v17 }
 0xa10   :  { %v12337_v20 = vpop.f32.mrb[82].mxu1  ;;  %v6668_v58 = vadd.f32 %v12336_v34, %v6550_v59 }
 0xa11   :  { %v12338_v57 = vpop.f32.mrb[83].mxu1 }
 0xa12   :  { %v12339_v22 = vadd.f32 %v12338_v57, %v12337_v20 }
 0xa14   :  { %v6675_v36 = vadd.f32 %v12339_v22, %v6557_v63 }
 0xa50   :  { %v7207_v40 = vpop.f32.mrb[84].mxu1 }
 0xa51   :  { %v15356_v1 = vadd.f32 %v7207_v40, %v6661_v47  ;;  %v13191_v35 = vpop.f32.mrb[85].mxu1 }
 0xa53   :  { %v7223_v46 = vmax.f32 %v15356_v1, 0.0 }
 0xa54   :  { %v7213_v16 = vpop.f32.mrb[86].mxu1 }
 0xa55   :  { %v19945_v19 = vand.u32 4294901760, %v7223_v46  ;;  %v15357_v29 = vadd.f32 %v7213_v16, %v6668_v58  ;;  %v13194_v54 = vpop.f32.mrb[87].mxu1  ;;  %v7229_v59 = vrot.slane %v7223_v46, 2  ;;  %v7237_v34 = vrot.slane %v7223_v46, 4 }
 0xa57   :  { %v7224_v17 = vmax.f32 %v15357_v29, 0.0  ;;  %v19948_v18 = vsub.f32 %v7223_v46, %v19945_v19 }
 0xa58   :  { %v7219_v63 = vpop.f32.mrb[88].mxu1 }
 0xa59   :  { %v7230_v20 = vrot.slane %v7224_v17, 2  ;;  %v7238_v57 = vrot.slane %v7224_v17, 4  ;;  %v15358_v37 = vadd.f32 %v7219_v63, %v6675_v36  ;;  %v13197_v6 = vpop.f32.mrb[89].mxu1  ;;  %v19950_v22 = vand.u32 4294901760, %v7224_v17 }
 0xa5a   :  { %v21632_v58 = vand.u32 4294901760, %v19948_v18 }
 0xa5b   :  { %22395 = vst [vmem:[#allocation21_spill] sm:$0xff] %v19950_v22  ;;  %v19953_v35 = vsel %vm4609_vm8, %v7237_v34, %v7238_v57  ;;  %v7225_v1 = vmax.f32 %v15358_v37, 0.0  ;;  %v7231_v47 = vsel %vm1304_vm1, %v7229_v59, %v7230_v20  ;;  %v19964_v36 = vsub.f32 %v7224_v17, %v19950_v22 }
 0xa5c   :  { %22396 = vst [vmem:[#allocation24_spill] sm:$0xff] %v19953_v35  ;;  %v19957_v40 = vand.u32 4294901760, %v7231_v47  ;;  %v7405_v17 = vsub.f32 %v19948_v18, %v21632_v58  ;;  %v14894_v35 = vpack.c.bf16 %v19474_v13, %v19468_v52 }
 0xa5d   :  { %v7232_v16 = vrot.slane %v7225_v1, 2  ;;  %v19959_v29 = vrot.slane %v7225_v1, 4  ;;  %v19961_v46 = vand.u32 4294901760, %v7225_v1  ;;  %v21637_v6 = vand.u32 4294901760, %v19964_v36 }
 0xa5e   :  { %7667 = vmatprep.mubr.f32.mxu1 %v19957_v40  ;;  %v7397_v54 = vsub.f32 %v7231_v47, %v19957_v40  ;;  %v7406_v2 = vand.u32 4294901760, %v7405_v17 }
 0xa5f   :  { %22397 = vst [vmem:[#allocation28_spill] sm:$0xff] %v19959_v29  ;;  %22398 = vst [vmem:[#allocation31_spill] sm:$0xff] %v19961_v46  ;;  %7669 = vmatmul.mubr.f32.vlgmr.msra.gmra.mrb[90].mxu1 %v19945_v19  ;;  %v7233_v59 = vsel %vm1304_vm1, %v7230_v20, %v7232_v16  ;;  %v19970_v63 = vand.u32 4294901760, %v7232_v16  ;;  %v19984_v20 = vsub.f32 %v7225_v1, %v19961_v46 }
 0xa60   :  { %14923 = vmatpush3.bf16.msra.mxu1 %v19540_v23  ;;  %v19973_v34 = vand.u32 4294901760, %v7233_v59  ;;  %v7398_v37 = vand.u32 4294901760, %v7397_v54  ;;  %v19988_v9 = vsel %vm4609_vm8, %v7238_v57, %v19959_v29  ;;  %v7420_v26 = vsub.f32 %v19964_v36, %v21637_v6 }
 0xa61   :  { %22399 = vst [vmem:[#allocation35_spill] sm:$0xff] %v19970_v63  ;;  %14925 = vmatprep.subr.bf16.mxu1 %v19552_v21  ;;  %v19981_v47 = vsub.f32 %v7232_v16, %v19970_v63  ;;  %22400 = vst [vmem:[#allocation39_spill] sm:$0xff] %v19988_v9  ;;  %v14890_v16 = vpack.c.bf16 %v19453_v53, %v19450_v51  ;;  %v21644_v58 = vand.u32 4294901760, %v19984_v20 }
 0xa62   :  { %7674 = vmatprep.mubr.f32.mxu1 %v19973_v34  ;;  %v7399_v42 = vsub.f32 %v7397_v54, %v7398_v37  ;;  %v19992_v60 = vsub.f32 %v7233_v59, %v19973_v34  ;;  %v14892_v59 = vpack.c.bf16 %v19459_v31, %v19456_v61  ;;  %v7421_v6 = vand.u32 4294901760, %v7420_v26 }
 0xa63   :  { %7676 = vmatmul.mubr.f32.gmra.mrb[92].mxu1 %v19950_v22  ;;  %v22401_v29 = vand.u32 4294901760, %v19981_v47 }
 0xa64   :  { %14927 = vmatpush3.bf16.msra.mxu1 %v19578_v14  ;;  %7681 = vmatprep.mubr.f32.mxu1 %v19970_v63  ;;  %v7400_v1 = vand.u32 4294901760, %v7399_v42  ;;  %v7413_v57 = vand.u32 4294901760, %v19992_v60  ;;  %v22406_v63 = vld [vmem:[#allocation97_spill] sm:$0xff] }
 0xa65   :  { %14929 = vmatprep.subr.bf16.mxu1 %v19631_v12  ;;  %v7429_v9 = vsub.f32 %v19981_v47, %v22401_v29 }
 0xa66   :  { %7401 = vmatprep.mubr.f32.mxu0 %v7400_v1  ;;  %v7414_v42 = vsub.f32 %v19992_v60, %v7413_v57  ;;  %v14896_v1 = vpack.c.bf16 %v19550_v32, %v19538_v44 }
 0xa67   :  { %7407 = vmatmul.mubr.f32.vlgmr.msra.gmra.mrb[12].mxu0 %v7406_v2  ;;  %7683 = vmatmul.mubr.f32.gmra.mrb[94].mxu1 %v19961_v46  ;;  %v7435_v2 = vsub.f32 %v19984_v20, %v21644_v58  ;;  %v7430_v29 = vand.u32 4294901760, %v7429_v9  ;;  %v22404_v46 = vld [vmem:[#allocation9_spill] sm:$0xff]  ;;  %v22408_v9 = vld [vmem:[#allocation11_spill] sm:$0xff] }
 0xa68   :  { %14891 = vmatpush3.bf16.msra.mxu0 %v14890_v16  ;;  %14931 = vmatpush3.bf16.msra.mxu1 %v19653_v25  ;;  %v7415_v17 = vand.u32 4294901760, %v7414_v42  ;;  %v22402_v16 = vld [vmem:[#allocation102_spill] sm:$0xff]  ;;  %v22403_v42 = vld [vmem:[#allocation8_spill] sm:$0xff]  ;;  %v22410_v58 = vld [vmem:[#allocation103_spill] sm:$0xff] }
 0xa69   :  { %7943 = vmatprep.mubr.f32.mxu1 %v7398_v37  ;;  %14893 = vmatprep.subr.bf16.mxu0 %v14892_v59  ;;  %v14898_v37 = vpack.c.bf16 %v22404_v46, %v22403_v42  ;;  %v7436_v26 = vand.u32 4294901760, %v7435_v2  ;;  %v22405_v59 = vld [vmem:[#allocation93_spill] sm:$0xff]  ;;  %v22412_v2 = vld [vmem:[#allocation14_spill] sm:$0xff] }
 0xa6a   :  { %7416 = vmatprep.mubr.f32.mxu0 %v7415_v17  ;;  %14933 = vmatprep.subr.bf16.mxu1 %v19823_v33  ;;  %v14900_v22 = vpack.c.bf16 %v22406_v63, %v22405_v59  ;;  %v22409_v17 = vld [vmem:[#allocation98_spill] sm:$0xff] }
 0xa6b   :  { %7422 = vmatmul.mubr.f32.gmra.mrb[14].mxu0 %v7421_v6  ;;  %v22407_v6 = vld [vmem:[#allocation10_spill] sm:$0xff]  ;;  %v14904_v38 = vpack.c.bf16 %v22410_v58, %v22409_v17 }
 0xa6c   :  { %14895 = vmatpush3.bf16.msra.mxu0 %v14894_v35  ;;  %14935 = vmatpush3.bf16.msra.mxu1 %v22402_v16  ;;  %v14902_v35 = vpack.c.bf16 %v22408_v9, %v22407_v6 }
 0xa6d   :  { %7431 = vmatprep.mubr.f32.mxu0 %v7430_v29  ;;  %14897 = vmatprep.subr.bf16.mxu0 %v14896_v1  ;;  %v22411_v1 = vld [vmem:[#allocation12_spill] sm:$0xff] }
 0xa6e   :  { %14937 = vmatprep.subr.bf16.mxu1 %v19853_v41  ;;  %v14906_v29 = vpack.c.bf16 %v22412_v2, %v22411_v1 }
 0xa6f   :  { %7437 = vmatmul.mubr.f32.gmra.mrb[16].mxu0 %v7436_v26  ;;  %v22417_v26 = vpack.c.bf16 %v19808_v62, %v19800_v39 }
 0xa70   :  { %14899 = vmatpush3.bf16.msra.mxu0 %v14898_v37  ;;  %14939 = vmatpush3.bf16.msra.mxu1 %v19865_v4  ;;  %v22416_v37 = vand.u32 4294901760, %v19948_v18 }
 0xa71   :  { %7818 = vmatprep.mubr.f32.mxu0 %v7397_v54  ;;  %14901 = vmatprep.subr.bf16.mxu0 %v14900_v22  ;;  %v22413_v22 = vpack.c.bf16 %v19733_v0, %v19728_v55  ;;  %v22414_v54 = vpack.c.bf16 %v19743_v8, %v19738_v3 }
 0xa72   :  { %14941 = vmatprep.subr.bf16.mxu1 %v19874_v45 }
 0xa74   :  { %14903 = vmatpush3.bf16.msra.mxu0 %v14902_v35  ;;  %14943 = vmatpush3.bf16.msra.mxu1 %v19883_v15  ;;  %v22418_v35 = vpack.c.bf16 %v19857_v56, %v19855_v24  ;;  %v22424_v24 = vand.u32 4294901760, %v19450_v51  ;;  %v22425_v56 = vand.u32 4294901760, %v19453_v53  ;;  %v22429_v51 = vand.u32 4294901760, %v19468_v52 }
 0xa75   :  { %14905 = vmatprep.subr.bf16.mxu0 %v14904_v38  ;;  %14945 = vmatprep.subr.bf16.mxu1 %v19898_v28  ;;  %v22415_v38 = vpack.c.bf16 %v19788_v5, %v19783_v49  ;;  %v22430_v53 = vand.u32 4294901760, %v19474_v13  ;;  %v22433_v52 = vand.u32 4294901760, %v22403_v42  ;;  %v22434_v13 = vand.u32 4294901760, %v22404_v46 }
 0xa78   :  { %14907 = vmatpush3.bf16.msra.mxu0 %v14906_v29  ;;  %14947 = vmatpush3.bf16.msra.mxu1 %v19911_v11  ;;  %v22419_v29 = vand.u32 4294901760, %v19445_v48  ;;  %v14954_v48 = vpack.c.bf16 %v22425_v56, %v22424_v24  ;;  %v22458_v24 = vmov 0.0   ;;  %v7283_v56 = vld [vmem:[%s21126_s9 + $0x130] sm:$0xff] }
 0xa79   :  { %14909 = vmatprep.subr.bf16.mxu0 %v22413_v22  ;;  %14949 = vmatprep.subr.bf16.mxu1 %v19914_v43  ;;  %v22420_v22 = vand.u32 4294901760, %v19447_v10  ;;  %v22426_v10 = vand.u32 4294901760, %v19456_v61  ;;  %v22431_v61 = vand.u32 4294901760, %v19538_v44  ;;  %v22435_v44 = vand.u32 4294901760, %v22405_v59 }
 0xa7c   :  { %14911 = vmatpush3.bf16.msra.mxu0 %v22414_v54  ;;  %14951 = vmatpush3.bf16.msra.mxu1 %v19917_v50  ;;  %v14952_v54 = vpack.c.bf16 %v22420_v22, %v22419_v29  ;;  %v7281_v29 = vld [vmem:[%s21126_s9 + $0x120] sm:$0xff]  ;;  %v7282_v22 = vld [vmem:[%s21126_s9 + $0x128] sm:$0xff] }
 0xa7d   :  { %14913 = vmatprep.subr.bf16.mxu0 %v22415_v38  ;;  %14985 = vmatprep.subr.bf16.mxu1 %v19522_v27  ;;  %v22421_v27 = vand.u32 4294901760, %v19964_v36  ;;  %v22422_v38 = vpack.c.bf16 %v19867_v7, %v19859_v30 }
 0xa7f   :  { %7947 = vmatmul.mubr.f32.vlgmr.msra.gmra.mrb[96].mxu1 %v22416_v37  ;;  %v22428_v37 = vand.u32 4294901760, %v19984_v20 }
 0xa80   :  { %14915 = vmatpush3.bf16.msra.mxu0 %v22417_v26  ;;  %7954 = vmatprep.mubr.f32.mxu1 %v7413_v57 }
 0xa81   :  { %14987 = vmatpush3.bf16.msra.mxu1 %v19540_v23  ;;  %14917 = vmatprep.subr.bf16.mxu0 %v22418_v35  ;;  %v22423_v23 = vand.u32 4294901760, %v19981_v47 }
 0xa82   :  { %14989 = vmatprep.subr.bf16.mxu1 %v19552_v21  ;;  %v22427_v21 = vand.u32 4294901760, %v19459_v31  ;;  %v22432_v31 = vand.u32 4294901760, %v19550_v32  ;;  %v22436_v32 = vand.u32 4294901760, %v22406_v63  ;;  %v22440_v63 = vand.u32 4294901760, %v22410_v58 }
 0xa83   :  { %7958 = vmatmul.mubr.f32.gmra.mrb[98].mxu1 %v22421_v27  ;;  %v22445_v58 = vand.u32 4294901760, %v19738_v3  ;;  %v7277_v3 = vld [vmem:[%s21126_s9 + $0x100] sm:$0xff] }
 0xa84   :  { %14919 = vmatpush3.bf16.msra.mxu0 %v22422_v38  ;;  %7965 = vmatprep.mubr.f32.mxu1 %v22423_v23  ;;  %v14956_v57 = vpack.c.bf16 %v22427_v21, %v22426_v10  ;;  %v8287_v38 = vand.u32 4294901760, %v7281_v29  ;;  %v8290_v23 = vand.u32 4294901760, %v7282_v22  ;;  %v7285_v21 = vld [vmem:[%s21126_s9 + $0x140] sm:$0xff] }
 0xa85   :  { %14991 = vmatpush3.bf16.msra.mxu1 %v19578_v14  ;;  %14953 = vmatprep.subr.bf16.mxu0 %v14952_v54  ;;  %v14958_v14 = vpack.c.bf16 %v22430_v53, %v22429_v51  ;;  %v22457_v54 = vld [vmem:[#allocation31_spill] sm:$0xff]  ;;  %v8299_v51 = vand.u32 4294901760, %v7285_v21 }
 0xa86   :  { %14993 = vmatprep.subr.bf16.mxu1 %v19631_v12  ;;  %v14960_v12 = vpack.c.bf16 %v22432_v31, %v22431_v61  ;;  %v20219_v61 = vld [vmem:[%s21126_s9 + $0x158] sm:$0xff] }
 0xa87   :  { %7821 = vmatmul.mubr.f32.vlgmr.msra.gmra.mrb[18].mxu0 %v19948_v18  ;;  %7969 = vmatmul.mubr.f32.gmra.mrb[100].mxu1 %v22428_v37  ;;  %v22438_v18 = vand.u32 4294901760, %v22408_v9 }
 0xa88   :  { %7827 = vmatprep.mubr.f32.mxu0 %v19992_v60  ;;  %14955 = vmatpush3.bf16.msra.mxu0 %v14954_v48  ;;  %v14964_v60 = vpack.c.bf16 %v22436_v32, %v22435_v44  ;;  %v8293_v48 = vand.u32 4294901760, %v7283_v56  ;;  %v22459_v44 = vld [vmem:[#allocation24_spill] sm:$0xff] }
 0xa89   :  { %14995 = vmatpush3.bf16.msra.mxu1 %v19653_v25  ;;  %8253 = vmatprep.mubr.f32.mxu1 %v19957_v40  ;;  %v14962_v25 = vpack.c.bf16 %v22434_v13, %v22433_v52  ;;  %v20231_v32 = vand.u32 4294901760, %v22459_v44 }
 0xa8a   :  { %14957 = vmatprep.subr.bf16.mxu0 %v14956_v57  ;;  %14997 = vmatprep.subr.bf16.mxu1 %v19823_v33  ;;  %v22437_v33 = vand.u32 4294901760, %v22407_v6  ;;  %v22447_v6 = vand.u32 4294901760, %v19783_v49  ;;  %v7278_v49 = vld [vmem:[%s21126_s9 + $0x108] sm:$0xff] }
 0xa8b   :  { %7830 = vmatmul.mubr.f32.gmra.mrb[20].mxu0 %v19964_v36  ;;  %v22439_v36 = vand.u32 4294901760, %v22409_v17  ;;  %v7279_v17 = vld [vmem:[%s21126_s9 + $0x110] sm:$0xff]  ;;  %v7286_v57 = vld [vmem:[%s21126_s9 + $0x148] sm:$0xff] }
 0xa8c   :  { %7836 = vmatprep.mubr.f32.mxu0 %v19981_v47  ;;  %14959 = vmatpush3.bf16.msra.mxu0 %v14958_v14  ;;  %v14966_v46 = vpack.c.bf16 %v22438_v18, %v22437_v33  ;;  %v8281_v26 = vand.u32 4294901760, %v7279_v17  ;;  %v8302_v53 = vand.u32 4294901760, %v7286_v57  ;;  %v20214_v14 = vld [vmem:[%s21126_s9 + $0x150] sm:$0xff]  ;;  %v20242_v33 = vld [vmem:[%s21126_s9 + $0x168] sm:$0xff] }
 0xa8d   :  { %14999 = vmatpush3.bf16.msra.mxu1 %v22402_v16  ;;  %14961 = vmatprep.subr.bf16.mxu0 %v14960_v12  ;;  %v14968_v47 = vpack.c.bf16 %v22440_v63, %v22439_v36  ;;  %v22443_v16 = vand.u32 4294901760, %v19728_v55  ;;  %v22449_v55 = vand.u32 4294901760, %v19800_v39  ;;  %v22452_v39 = vand.u32 4294901760, %v19859_v30  ;;  %v22456_v30 = vld [vmem:[#allocation35_spill] sm:$0xff] }
 0xa8e   :  { %15001 = vmatprep.subr.bf16.mxu1 %v19853_v41  ;;  %v22441_v41 = vand.u32 4294901760, %v22411_v1  ;;  %v7280_v1 = vld [vmem:[%s21126_s9 + $0x118] sm:$0xff]  ;;  %v20226_v52 = vpack.c.bf16 %v8302_v53, %v8299_v51  ;;  %v8305_v13 = vand.u32 4294901760, %v20214_v14  ;;  %v20244_v18 = vsub.f32 %v7279_v17, %v8281_v26 }
 0xa8f   :  { %7839 = vmatmul.mubr.f32.gmra.mrb[22].mxu0 %v19984_v20  ;;  %v8284_v35 = vand.u32 4294901760, %v7280_v1 }
 0xa90   :  { %14963 = vmatpush3.bf16.msra.mxu0 %v14962_v25  ;;  %8135 = vmatprep.mubr.f32.mxu0 %v19957_v40  ;;  %v22442_v40 = vand.u32 4294901760, %v22412_v2  ;;  %v22455_v2 = vld [vmem:[#allocation21_spill] sm:$0xff]  ;;  %v8308_v25 = vand.u32 4294901760, %v20219_v61 }
 0xa91   :  { %15003 = vmatpush3.bf16.msra.mxu1 %v19865_v4  ;;  %14965 = vmatprep.subr.bf16.mxu0 %v14964_v60  ;;  %v22444_v4 = vand.u32 4294901760, %v19733_v0  ;;  %v22450_v0 = vand.u32 4294901760, %v19808_v62  ;;  %v22453_v62 = vand.u32 4294901760, %v19867_v7  ;;  %v20181_v27 = vpack.c.bf16 %v8284_v35, %v8281_v26  ;;  %v20237_v60 = vld [vmem:[%s21126_s9 + $0x160] sm:$0xff] }
 0xa92   :  { %15005 = vmatprep.subr.bf16.mxu1 %v19874_v45  ;;  %v14970_v20 = vpack.c.bf16 %v22442_v40, %v22441_v41  ;;  %v22446_v45 = vand.u32 4294901760, %v19743_v8  ;;  %v22451_v8 = vmov 0.0|0.0   ;;  %v8311_v41 = vand.u32 4294901760, %v20237_v60 }
 0xa93   :  { %v14972_v42 = vpack.c.bf16 %v22444_v4, %v22443_v16  ;;  %v8314_v40 = vand.u32 4294901760, %v20242_v33  ;;  %v20263_v16 = vld [vmem:[%s21126_s9 + $0x170] sm:$0xff]  ;;  %v20268_v4 = vld [vmem:[%s21126_s9 + $0x178] sm:$0xff] }
 0xa94   :  { %14967 = vmatpush3.bf16.msra.mxu0 %v14966_v46  ;;  %v14974_v59 = vpack.c.bf16 %v22446_v45, %v22445_v58  ;;  %v20246_v46 = vsub.f32 %v7280_v1, %v8284_v35  ;;  %v20273_v45 = vsub.f32 %v7281_v29, %v8287_v38 }
 0xa95   :  { %15007 = vmatpush3.bf16.msra.mxu1 %v19883_v15  ;;  %14969 = vmatprep.subr.bf16.mxu0 %v14968_v47  ;;  %v22448_v15 = vand.u32 4294901760, %v19788_v5  ;;  %v14982_v5 = vpack.c.bf16 %v22453_v62, %v22452_v39  ;;  %v20251_v47 = vpack.c.bf16 %v8308_v25, %v8305_v13 }
 0xa96   :  { %15009 = vmatprep.subr.bf16.mxu1 %v19898_v28  ;;  %v14978_v28 = vpack.c.bf16 %v22450_v0, %v22449_v55  ;;  %v20283_v55 = vsub.f32 %v7282_v22, %v8290_v23  ;;  %v20290_v0 = vpack.c.bf16 %v8314_v40, %v8311_v41  ;;  %v8416_v26 = vand.u32 4294901760, %v20273_v45 }
 0xa97   :  { %v14976_v9 = vpack.c.bf16 %v22448_v15, %v22447_v6  ;;  %v8402_v15 = vand.u32 4294901760, %v20244_v18 }
 0xa98   :  { %14971 = vmatpush3.bf16.msra.mxu0 %v14970_v20  ;;  %v20257_v20 = vsub.f32 %v22459_v44, %v20231_v32  ;;  %v21656_v35 = vand.u32 4294901760, %v20283_v55 }
 0xa99   :  { %15011 = vmatpush3.bf16.msra.mxu1 %v19911_v11  ;;  %14973 = vmatprep.subr.bf16.mxu0 %v14972_v42  ;;  %v22454_v11 = vld [vmem:[#allocation20_spill] sm:$0xff]  ;;  %v22460_v42 = vld [vmem:[#allocation39_spill] sm:$0xff]  ;;  %v8403_v17 = vsub.f32 %v20244_v18, %v8402_v15 }
 0xa9a   :  { %15013 = vmatprep.subr.bf16.mxu1 %v19914_v43  ;;  %v8275_v43 = vand.u32 4294901760, %v7277_v3  ;;  %v20271_v58 = vand.u32 4294901760, %v22460_v42  ;;  %v8357_v62 = vand.u32 4294901760, %v20257_v20  ;;  %v8424_v44 = vsub.f32 %v20283_v55, %v21656_v35 }
 0xa9c   :  { %14975 = vmatpush3.bf16.msra.mxu0 %v14974_v59  ;;  %v20221_v31 = vsub.f32 %v7277_v3, %v8275_v43  ;;  %v8320_v3 = vand.u32 4294901760, %v20268_v4  ;;  %v8358_v29 = vsub.f32 %v20257_v20, %v8357_v62 }
 0xa9d   :  { %15015 = vmatpush3.bf16.msra.mxu1 %v19917_v50  ;;  %14977 = vmatprep.subr.bf16.mxu0 %v14976_v9  ;;  %v8278_v50 = vand.u32 4294901760, %v7278_v49  ;;  %v8409_v9 = vand.u32 4294901760, %v20246_v46 }
 0xa9e   :  { %15160 = vmatprep.subr.bf16.mxu1 %v22451_v8  ;;  %v8388_v36 = vand.u32 4294901760, %v20221_v31 }
 0xa9f   :  { %v20169_v7 = vpack.c.bf16 %v8278_v50, %v8275_v43  ;;  %v20223_v12 = vsub.f32 %v7278_v49, %v8278_v50  ;;  %v22461_v49 = vld [vmem:[#allocation28_spill] sm:$0xff]  ;;  %v8410_v1 = vsub.f32 %v20246_v46, %v8409_v9 }
 0xaa0   :  { %8255 = vmatmul.mubr.f32.vlgmr.msra.gmra.mrb[102].mxu1 %v19945_v19  ;;  %14979 = vmatpush3.bf16.msra.mxu0 %v14978_v28  ;;  %v8389_v59 = vsub.f32 %v20221_v31, %v8388_v36  ;;  %v8317_v28 = vand.u32 4294901760, %v20263_v16  ;;  %v20295_v39 = vand.u32 4294901760, %v22461_v49 }
 0xaa1   :  { %8260 = vmatprep.mubr.f32.mxu1 %v19973_v34  ;;  %14981 = vmatprep.subr.bf16.mxu0 %v22454_v11  ;;  %v8395_v63 = vand.u32 4294901760, %v20223_v12  ;;  %v20303_v11 = vsub.f32 %v7283_v56, %v8293_v48 }
 0xaa2   :  { %v8390_v43 = vand.u32 4294901760, %v8389_v59  ;;  %v20350_v59 = vsub.f32 %v20214_v14, %v8305_v13 }
 0xaa3   :  { %v8396_v6 = vsub.f32 %v20223_v12, %v8395_v63 }
 0xaa4   :  { %8262 = vmatmul.mubr.f32.gmra.mrb[104].mxu1 %v22455_v2  ;;  %14983 = vmatpush3.bf16.msra.mxu0 %v14982_v5  ;;  %v20301_v5 = vsub.f32 %v22460_v42, %v20271_v58  ;;  %v21654_v42 = vand.u32 4294901760, %v20303_v11 }
 0xaa5   :  { %8267 = vmatprep.mubr.f32.mxu1 %v22456_v30  ;;  %15016 = vmatprep.subr.bf16.mxu0 %v22451_v8  ;;  %v8397_v50 = vand.u32 4294901760, %v8396_v6  ;;  %v20353_v6 = vsub.f32 %v20219_v61, %v8308_v25 }
 0xaa6   :  { %v8367_v22 = vand.u32 4294901760, %v20301_v5  ;;  %v8431_v14 = vsub.f32 %v20303_v11, %v21654_v42 }
 0xaa7   :  { %8137 = vmatmul.mubr.f32.vlgmr.msra.gmra.mrb[24].mxu0 %v19945_v19  ;;  %v7284_v19 = vld [vmem:[%s21126_s9 + $0x138] sm:$0xff]  ;;  %v15041_v56 = vpack.c.bf16 %v8397_v50, %v8390_v43 }
 0xaa8   :  { %8269 = vmatmul.mubr.f32.gmra.mrb[106].mxu1 %v22457_v54  ;;  %8142 = vmatprep.mubr.f32.mxu0 %v19973_v34  ;;  %v20195_v34 = vpack.c.bf16 %v8290_v23, %v8287_v38  ;;  %v8296_v10 = vand.u32 4294901760, %v7284_v19  ;;  %v20331_v38 = vsub.f32 %v7285_v21, %v8299_v51  ;;  %v20333_v23 = vsub.f32 %v7286_v57, %v8302_v53 }
 0xaa9   :  { %15018 = vmatpush3.bf16.msra.mxu0 %v20169_v7  ;;  %13476 = vmatprep.mubr.msk.f32.mxu1 %vm15680_vm9, %v22458_v24  ;;  %v8359_v51 = vand.u32 4294901760, %v8358_v29  ;;  %v8368_v57 = vsub.f32 %v20301_v5, %v8367_v22  ;;  %v20372_v29 = vsub.f32 %v20237_v60, %v8311_v41  ;;  %v8432_v41 = vand.u32 4294901760, %v8431_v14 }
 0xaaa   :  { %15019 = vmatprep.subr.bf16.mxu0 %v22451_v8  ;;  %v20208_v37 = vpack.c.bf16 %v8296_v10, %v8293_v48  ;;  %v8411_v48 = vand.u32 4294901760, %v8410_v1  ;;  %v21652_v43 = vand.u32 4294901760, %v20331_v38  ;;  %v21651_v50 = vand.u32 4294901760, %v20333_v23 }
 0xaab   :  { %8144 = vmatmul.mubr.f32.gmra.mrb[26].mxu0 %v22455_v2  ;;  %v20311_v2 = vsub.f32 %v7284_v19, %v8296_v10  ;;  %v8404_v19 = vand.u32 4294901760, %v8403_v17  ;;  %v8417_v10 = vsub.f32 %v20273_v45, %v8416_v26  ;;  %v8425_v1 = vand.u32 4294901760, %v8424_v44 }
 0xaac   :  { %8149 = vmatprep.mubr.f32.mxu0 %v22456_v30  ;;  %v20318_v30 = vpack.c.bf16 %v8320_v3, %v8317_v28  ;;  %v8369_v13 = vand.u32 4294901760, %v8368_v57 }
 0xaad   :  { %15021 = vmatpush3.bf16.msra.mxu0 %v20181_v27  ;;  %v21653_v21 = vand.u32 4294901760, %v20311_v2  ;;  %v8418_v17 = vand.u32 4294901760, %v8417_v10  ;;  %v21650_v10 = vand.u32 4294901760, %v20350_v59 }
 0xaae   :  { %15022 = vmatprep.subr.bf16.mxu0 %v22451_v8 }
 0xaaf   :  { %8151 = vmatmul.mubr.f32.gmra.mrb[28].mxu0 %v22457_v54  ;;  %v20329_v54 = vsub.f32 %v22461_v49, %v20295_v39  ;;  %v15044_v49 = vpack.c.bf16 %v8411_v48, %v8404_v19  ;;  %v8438_v61 = vsub.f32 %v20311_v2, %v21653_v21  ;;  %v8445_v19 = vsub.f32 %v20331_v38, %v21652_v43 }
 0xab0   :  { %13230 = vmatprep.mubr.msk.f32.mxu0 %vm15680_vm9, %v22458_v24  ;;  %v8452_v48 = vsub.f32 %v20333_v23, %v21651_v50  ;;  %v15047_v60 = vpack.c.bf16 %v8425_v1, %v8418_v17  ;;  %v21648_v17 = vand.u32 4294901760, %v20372_v29  ;;  %v20402_v1 = vsub.f32 %v20268_v4, %v8320_v3  ;;  %v9013_v50 = vld [vmem:[%s21128_s11 + $0x48] sm:$0xff] }
 0xab1   :  { %15024 = vmatpush3.bf16.msra.mxu0 %v20195_v34  ;;  %v21655_v53 = vand.u32 4294901760, %v20329_v54  ;;  %v8439_v44 = vand.u32 4294901760, %v8438_v61  ;;  %v8446_v57 = vand.u32 4294901760, %v8445_v19  ;;  %v9048_v35 = vand.u32 4294901760, %v9013_v50 }
 0xab2   :  { %15025 = vmatprep.subr.bf16.mxu0 %v22451_v8  ;;  %v8473_v4 = vsub.f32 %v20372_v29, %v21648_v17 }
 0xab3   :  { %v8378_v25 = vsub.f32 %v20329_v54, %v21655_v53  ;;  %v15050_v14 = vpack.c.bf16 %v8439_v44, %v8432_v41 }
 0xab4   :  { %v8474_v41 = vand.u32 4294901760, %v8473_v4  ;;  %v15068_v4 = vpack.c.bf16 %v20246_v46, %v20244_v18  ;;  %v22463_v18 = vand.u32 4294901760, %v20329_v54  ;;  %v22464_v46 = vand.u32 4294901760, %v20303_v11 }
 0xab5   :  { %15027 = vmatpush3.bf16.msra.mxu0 %v20208_v37 }
 0xab6   :  { %15028 = vmatprep.subr.bf16.mxu0 %v22451_v8 }
 0xab9   :  { %15030 = vmatpush3.bf16.msra.mxu0 %v20226_v52 }
 0xaba   :  { %15031 = vmatprep.subr.bf16.mxu0 %v22451_v8 }
 0xabd   :  { %15033 = vmatpush3.bf16.msra.mxu0 %v20251_v47 }
 0xabe   :  { %15034 = vmatprep.subr.bf16.mxu0 %v22451_v8 }
 0xac1   :  { %15036 = vmatpush3.bf16.msra.mxu0 %v20290_v0 }
 0xac2   :  { %15037 = vmatprep.subr.bf16.mxu0 %v22451_v8 }
 0xac5   :  { %15039 = vmatpush3.bf16.msra.mxu0 %v20318_v30 }
 0xac6   :  { %15040 = vmatprep.subr.bf16.mxu0 %v22451_v8 }
 0xac8   :  { %13231 = vmatmul.mubr.f32.vlgmr.msra.gmra.mrb[30].mxu0 %v8359_v51  ;;  %v20393_v51 = vsub.f32 %v20263_v16, %v8317_v28 }
 0xac9   :  { %15042 = vmatpush3.bf16.msra.mxu0 %v15041_v56  ;;  %13233 = vmatprep.mubr.msk.f32.mxu0 %vm15680_vm9, %v22458_v24  ;;  %v20377_v56 = vsub.f32 %v20242_v33, %v8314_v40  ;;  %v21649_v33 = vand.u32 4294901760, %v20353_v6  ;;  %v8379_v40 = vand.u32 4294901760, %v8378_v25 }
 0xaca   :  { %15043 = vmatprep.subr.bf16.mxu0 %v22451_v8 }
 0xacb   :  { %v8466_v16 = vsub.f32 %v20353_v6, %v21649_v33  ;;  %v21647_v28 = vand.u32 4294901760, %v20377_v56 }
 0xacc   :  { %13234 = vmatmul.mubr.f32.gmra.mrb[32].mxu0 %v8369_v13  ;;  %v8453_v13 = vand.u32 4294901760, %v8452_v48  ;;  %v21646_v48 = vand.u32 4294901760, %v20393_v51 }
 0xacd   :  { %15045 = vmatpush3.bf16.msra.mxu0 %v15044_v49  ;;  %13236 = vmatprep.mubr.msk.f32.mxu0 %vm15680_vm9, %v22458_v24  ;;  %v8459_v49 = vsub.f32 %v20350_v59, %v21650_v10  ;;  %v8467_v3 = vand.u32 4294901760, %v8466_v16  ;;  %v8480_v19 = vsub.f32 %v20377_v56, %v21647_v28  ;;  %v9012_v10 = vld [vmem:[%s21128_s11 + $0x40] sm:$0xff] }
 0xace   :  { %15046 = vmatprep.subr.bf16.mxu0 %v22451_v8  ;;  %v15053_v61 = vpack.c.bf16 %v8453_v13, %v8446_v57  ;;  %v8487_v57 = vsub.f32 %v20393_v51, %v21646_v48  ;;  %v9045_v53 = vand.u32 4294901760, %v9012_v10 }
 0xacf   :  { %v8460_v25 = vand.u32 4294901760, %v8459_v49 }
 0xad0   :  { %13237 = vmatmul.mubr.f32.gmra.mrb[34].mxu0 %v8379_v40  ;;  %v8481_v40 = vand.u32 4294901760, %v8480_v19  ;;  %v15074_v19 = vpack.c.bf16 %v20311_v2, %v20303_v11 }
 0xad1   :  { %15048 = vmatpush3.bf16.msra.mxu0 %v15047_v60  ;;  %13271 = vmatprep.mubr.msk.f32.mxu0 %vm15680_vm9, %v22458_v24  ;;  %v21645_v60 = vand.u32 4294901760, %v20402_v1  ;;  %v15056_v44 = vpack.c.bf16 %v8467_v3, %v8460_v25  ;;  %v15065_v25 = vpack.c.bf16 %v20223_v12, %v20221_v31  ;;  %v15071_v3 = vpack.c.bf16 %v20283_v55, %v20273_v45 }
 0xad2   :  { %15049 = vmatprep.subr.bf16.mxu0 %v22451_v8  ;;  %v15059_v49 = vpack.c.bf16 %v8481_v40, %v8474_v41  ;;  %v15077_v41 = vpack.c.bf16 %v20333_v23, %v20331_v38  ;;  %v15083_v40 = vpack.c.bf16 %v20377_v56, %v20372_v29  ;;  %v22462_v31 = vand.u32 4294901760, %v20283_v55 }
 0xad3   :  { %v8494_v13 = vsub.f32 %v20402_v1, %v21645_v60  ;;  %v9011_v60 = vld [vmem:[%s21128_s11 + $0x38] sm:$0xff]  ;;  %v22467_v55 = vand.u32 4294901760, %v20333_v23 }
 0xad4   :  { %v15119_v12 = vpack.c.bf16 %v22462_v31, %v8416_v26  ;;  %v22468_v26 = vand.u32 4294901760, %v20350_v59 }
 0xad5   :  { %15051 = vmatpush3.bf16.msra.mxu0 %v15050_v14  ;;  %v8488_v14 = vand.u32 4294901760, %v8487_v57  ;;  %v8495_v16 = vand.u32 4294901760, %v8494_v13  ;;  %v15086_v57 = vpack.c.bf16 %v20402_v1, %v20393_v51  ;;  %v9004_v13 = vld [vmem:[%s21128_s11] sm:$0xff] }
 0xad6   :  { %15052 = vmatprep.subr.bf16.mxu0 %v22451_v8 }
 0xad9   :  { %15054 = vmatpush3.bf16.msra.mxu0 %v15053_v61  ;;  %v15062_v61 = vpack.c.bf16 %v8495_v16, %v8488_v14  ;;  %v9006_v14 = vld [vmem:[%s21128_s11 + $0x10] sm:$0xff]  ;;  %v9021_v16 = vand.u32 4294901760, %v9004_v13 }
 0xada   :  { %15055 = vmatprep.subr.bf16.mxu0 %v22451_v8 }
 0xadb   :  { %v20493_v28 = vsub.f32 %v9004_v13, %v9021_v16 }
 0xadd   :  { %15057 = vmatpush3.bf16.msra.mxu0 %v15056_v44  ;;  %v15080_v44 = vpack.c.bf16 %v20353_v6, %v20350_v59  ;;  %v22471_v59 = vand.u32 4294901760, %v20377_v56 }
 0xade   :  { %15058 = vmatprep.subr.bf16.mxu0 %v22451_v8 }
 0xae1   :  { %15060 = vmatpush3.bf16.msra.mxu0 %v15059_v49  ;;  %v9005_v49 = vld [vmem:[%s21128_s11 + $0x8] sm:$0xff] }
 0xae2   :  { %15061 = vmatprep.subr.bf16.mxu0 %v22451_v8 }
 0xae5   :  { %15063 = vmatpush3.bf16.msra.mxu0 %v15062_v61  ;;  %v9024_v61 = vand.u32 4294901760, %v9005_v49 }
 0xae6   :  { %15064 = vmatprep.subr.bf16.mxu0 %v22451_v8 }
 0xae7   :  { %v20491_v48 = vpack.c.bf16 %v9024_v61, %v9021_v16  ;;  %v20495_v17 = vsub.f32 %v9005_v49, %v9024_v61  ;;  %v9042_v16 = vand.u32 4294901760, %v9011_v60 }
 0xae8   :  { %13272 = vmatmul.mubr.f32.vlgmr.msra.gmra.mrb[30].mxu0 %v20231_v32 }
 0xae9   :  { %15066 = vmatpush3.bf16.msra.mxu0 %v15065_v25  ;;  %13274 = vmatprep.mubr.msk.f32.mxu0 %vm15680_vm9, %v22458_v24  ;;  %v9007_v25 = vld [vmem:[%s21128_s11 + $0x18] sm:$0xff] }
 0xaea   :  { %15067 = vmatprep.subr.bf16.mxu0 %v22451_v8  ;;  %15162 = vmatpush3.bf16.msra.mxu1 %v20491_v48 }
 0xaeb   :  { %15163 = vmatprep.subr.bf16.mxu1 %v22451_v8 }
 0xaec   :  { %13275 = vmatmul.mubr.f32.gmra.mrb[32].mxu0 %v20271_v58 }
 0xaed   :  { %15069 = vmatpush3.bf16.msra.mxu0 %v15068_v4  ;;  %13277 = vmatprep.mubr.msk.f32.mxu0 %vm15680_vm9, %v22458_v24  ;;  %v9027_v4 = vand.u32 4294901760, %v9006_v14 }
 0xaee   :  { %15070 = vmatprep.subr.bf16.mxu0 %v22451_v8 }
 0xaef   :  { %v20506_v21 = vsub.f32 %v9006_v14, %v9027_v4  ;;  %v20522_v14 = vsub.f32 %v9011_v60, %v9042_v16 }
 0xaf0   :  { %13278 = vmatmul.mubr.f32.gmra.mrb[34].mxu0 %v20295_v39 }
 0xaf1   :  { %15072 = vmatpush3.bf16.msra.mxu0 %v15071_v3  ;;  %13312 = vmatprep.mubr.msk.f32.mxu0 %vm15680_vm9, %v22458_v24  ;;  %v9008_v3 = vld [vmem:[%s21128_s11 + $0x20] sm:$0xff] }
 0xaf2   :  { %15073 = vmatprep.subr.bf16.mxu0 %v22451_v8 }
 0xaf5   :  { %15075 = vmatpush3.bf16.msra.mxu0 %v15074_v19  ;;  %v9009_v19 = vld [vmem:[%s21128_s11 + $0x28] sm:$0xff] }
 0xaf6   :  { %15076 = vmatprep.subr.bf16.mxu0 %v22451_v8 }
 0xaf9   :  { %15078 = vmatpush3.bf16.msra.mxu0 %v15077_v41  ;;  %v9030_v41 = vand.u32 4294901760, %v9007_v25 }
 0xafa   :  { %15079 = vmatprep.subr.bf16.mxu0 %v22451_v8 }
 0xafb   :  { %v20504_v43 = vpack.c.bf16 %v9030_v41, %v9027_v4  ;;  %v20508_v42 = vsub.f32 %v9007_v25, %v9030_v41  ;;  %v20525_v25 = vsub.f32 %v9012_v10, %v9045_v53  ;;  %v20527_v4 = vsub.f32 %v9013_v50, %v9048_v35 }
 0xafc   :  { %v20545_v50 = vpack.c.bf16 %v9048_v35, %v9045_v53  ;;  %v15113_v35 = vpack.c.bf16 %v8395_v63, %v8388_v36  ;;  %v15116_v53 = vpack.c.bf16 %v8409_v9, %v8402_v15  ;;  %v22465_v36 = vand.u32 4294901760, %v20311_v2 }
 0xafd   :  { %15081 = vmatpush3.bf16.msra.mxu0 %v15080_v44  ;;  %v9033_v44 = vand.u32 4294901760, %v9008_v3  ;;  %15165 = vmatpush3.bf16.msra.mxu1 %v20504_v43  ;;  %v22466_v9 = vand.u32 4294901760, %v20331_v38  ;;  %v11709_v38 = vld [vmem:[%s21127_s10] ss:$0 sm:$0xff] }
 0xafe   :  { %15082 = vmatprep.subr.bf16.mxu0 %v22451_v8  ;;  %15166 = vmatprep.subr.bf16.mxu1 %v22451_v8  ;;  %v15122_v63 = vpack.c.bf16 %v22465_v36, %v22464_v46 }
 0xaff   :  { %v20511_v13 = vsub.f32 %v9008_v3, %v9033_v44 }
 0xb01   :  { %15084 = vmatpush3.bf16.msra.mxu0 %v15083_v40  ;;  %v9036_v40 = vand.u32 4294901760, %v9009_v19 }
 0xb02   :  { %15085 = vmatprep.subr.bf16.mxu0 %v22451_v8 }
 0xb03   :  { %v20513_v49 = vsub.f32 %v9009_v19, %v9036_v40  ;;  %v20530_v3 = vpack.c.bf16 %v9036_v40, %v9033_v44  ;;  %v22470_v40 = vand.u32 4294901760, %v20372_v29 }
 0xb05   :  { %15087 = vmatpush3.bf16.msra.mxu0 %v15086_v57  ;;  %v9010_v57 = vld [vmem:[%s21128_s11 + $0x30] sm:$0xff]  ;;  %15168 = vmatpush3.bf16.msra.mxu1 %v20530_v3 }
 0xb06   :  { %15088 = vmatprep.subr.bf16.mxu0 %v22451_v8  ;;  %v9039_v33 = vand.u32 4294901760, %v9010_v57  ;;  %15169 = vmatprep.subr.bf16.mxu1 %v22451_v8 }
 0xb08   :  { %13313 = vmatmul.mubr.f32.vlgmr.msra.gmra.mrb[30].mxu0 %v20257_v20  ;;  %v20515_v61 = vsub.f32 %v9010_v57, %v9039_v33  ;;  %v20539_v10 = vpack.c.bf16 %v9042_v16, %v9039_v33  ;;  %v15131_v57 = vpack.c.bf16 %v22471_v59, %v22470_v40 }
 0xb09   :  { %15090 = vmatpush3.bf16.msra.mxu0 %v20169_v7  ;;  %13315 = vmatprep.mubr.msk.f32.mxu0 %vm15680_vm9, %v22458_v24 }
 0xb0a   :  { %15091 = vmatprep.subr.bf16.mxu0 %v22451_v8  ;;  %15171 = vmatpush3.bf16.msra.mxu1 %v20539_v10 }
 0xb0b   :  { %15172 = vmatprep.subr.bf16.mxu1 %v22451_v8 }
 0xb0c   :  { %13316 = vmatmul.mubr.f32.gmra.mrb[32].mxu0 %v20301_v5 }
 0xb0d   :  { %15093 = vmatpush3.bf16.msra.mxu0 %v20181_v27  ;;  %13318 = vmatprep.mubr.msk.f32.mxu0 %vm15680_vm9, %v22458_v24 }
 0xb0e   :  { %15094 = vmatprep.subr.bf16.mxu0 %v22451_v8  ;;  %15174 = vmatpush3.bf16.msra.mxu1 %v20545_v50 }
 0xb0f   :  { %15175 = vmatprep.subr.bf16.mxu1 %v22451_v8 }
 0xb10   :  { %13319 = vmatmul.mubr.f32.gmra.mrb[34].mxu0 %v20329_v54 }
 0xb11   :  { %15096 = vmatpush3.bf16.msra.mxu0 %v20195_v34  ;;  %13353 = vmatprep.mubr.msk.f32.mxu0 %vm15680_vm9, %v22458_v24 }
 0xb12   :  { %15097 = vmatprep.subr.bf16.mxu0 %v22451_v8 }
 0xb15   :  { %15099 = vmatpush3.bf16.msra.mxu0 %v20208_v37 }
 0xb16   :  { %15100 = vmatprep.subr.bf16.mxu0 %v22451_v8 }
 0xb19   :  { %15102 = vmatpush3.bf16.msra.mxu0 %v20226_v52 }
 0xb1a   :  { %15103 = vmatprep.subr.bf16.mxu0 %v22451_v8 }
 0xb1d   :  { %15105 = vmatpush3.bf16.msra.mxu0 %v20251_v47 }
 0xb1e   :  { %15106 = vmatprep.subr.bf16.mxu0 %v22451_v8 }
 0xb21   :  { %15108 = vmatpush3.bf16.msra.mxu0 %v20290_v0 }
 0xb22   :  { %15109 = vmatprep.subr.bf16.mxu0 %v22451_v8 }
 0xb25   :  { %15111 = vmatpush3.bf16.msra.mxu0 %v20318_v30 }
 0xb26   :  { %15112 = vmatprep.subr.bf16.mxu0 %v22451_v8 }
 0xb28   :  { %13354 = vmatmul.mubr.f32.vlgmr.msra.gmra.mrb[30].mxu0 %v8357_v62  ;;  %v15125_v62 = vpack.c.bf16 %v22467_v55, %v22466_v9 }
 0xb29   :  { %15114 = vmatpush3.bf16.msra.mxu0 %v15113_v35  ;;  %13356 = vmatprep.mubr.msk.f32.mxu0 %vm15680_vm9, %v22458_v24 }
 0xb2a   :  { %15115 = vmatprep.subr.bf16.mxu0 %v22451_v8 }
 0xb2c   :  { %13357 = vmatmul.mubr.f32.gmra.mrb[32].mxu0 %v8367_v22  ;;  %v22469_v22 = vand.u32 4294901760, %v20353_v6 }
 0xb2d   :  { %15117 = vmatpush3.bf16.msra.mxu0 %v15116_v53  ;;  %13359 = vmatprep.mubr.msk.f32.mxu0 %vm15680_vm9, %v22458_v24 }
 0xb2e   :  { %15118 = vmatprep.subr.bf16.mxu0 %v22451_v8  ;;  %v15128_v54 = vpack.c.bf16 %v22469_v22, %v22468_v26 }
 0xb30   :  { %13360 = vmatmul.mubr.f32.gmra.mrb[34].mxu0 %v22463_v18  ;;  %v22473_v18 = vand.u32 4294901760, %v20402_v1 }
 0xb31   :  { %15120 = vmatpush3.bf16.msra.mxu0 %v15119_v12  ;;  %13394 = vmatprep.mubr.msk.f32.mxu0 %vm15680_vm9, %v22458_v24  ;;  %v22472_v12 = vand.u32 4294901760, %v20393_v51 }
 0xb32   :  { %v12443_v20 = vpop.f32.mrb[90].mxu1  ;;  %15121 = vmatprep.subr.bf16.mxu0 %v22451_v8 }
 0xb33   :  { %v12444_v45 = vpop.f32.mrb[91].mxu1  ;;  %v15134_v46 = vpack.c.bf16 %v22473_v18, %v22472_v12 }
 0xb34   :  { %v12445_v15 = vadd.f32 %v12444_v45, %v12443_v20 }
 0xb35   :  { %15123 = vmatpush3.bf16.msra.mxu0 %v15122_v63 }
 0xb36   :  { %v12446_v5 = vpop.f32.mrb[92].mxu1  ;;  %15124 = vmatprep.subr.bf16.mxu0 %v22451_v8 }
 0xb37   :  { %v12447_v11 = vpop.f32.mrb[93].mxu1 }
 0xb38   :  { %v12448_v2 = vadd.f32 %v12447_v11, %v12446_v5 }
 0xb39   :  { %15126 = vmatpush3.bf16.msra.mxu0 %v15125_v62 }
 0xb3a   :  { %v12402_v33 = vpop.f32.mrb[12].mxu0  ;;  %v12449_v60 = vpop.f32.mrb[94].mxu1  ;;  %15127 = vmatprep.subr.bf16.mxu0 %v22451_v8 }
 0xb3b   :  { %v12403_v23 = vpop.f32.mrb[13].mxu0  ;;  %v12450_v19 = vpop.f32.mrb[95].mxu1 }
 0xb3c   :  { %v12404_v41 = vadd.f32 %v12403_v23, %v12402_v33  ;;  %v12451_v44 = vadd.f32 %v12450_v19, %v12449_v60 }
 0xb3d   :  { %15129 = vmatpush3.bf16.msra.mxu0 %v15128_v54 }
 0xb3e   :  { %v7409_v6 = vadd.f32 %v12404_v41, %v11709_v38  ;;  %v12405_v16 = vpop.f32.mrb[14].mxu0  ;;  %15130 = vmatprep.subr.bf16.mxu0 %v22451_v8 }
 0xb3f   :  { %v12406_v35 = vpop.f32.mrb[15].mxu0 }
 0xb40   :  { %v12407_v53 = vadd.f32 %v12406_v35, %v12405_v16  ;;  %v7671_v31 = vadd.f32 %v12445_v15, %v7409_v6 }
 0xb41   :  { %15132 = vmatpush3.bf16.msra.mxu0 %v15131_v57 }
 0xb42   :  { %v7424_v36 = vadd.f32 %v12407_v53, %v11709_v38  ;;  %v12408_v63 = vpop.f32.mrb[16].mxu0  ;;  %15133 = vmatprep.subr.bf16.mxu0 %v22451_v8 }
 0xb43   :  { %v12409_v29 = vpop.f32.mrb[17].mxu0 }
 0xb44   :  { %v12410_v56 = vadd.f32 %v12409_v29, %v12408_v63  ;;  %v7678_v20 = vadd.f32 %v12448_v2, %v7424_v36 }
 0xb45   :  { %15135 = vmatpush3.bf16.msra.mxu0 %v15134_v46 }
 0xb46   :  { %v7439_v45 = vadd.f32 %v12410_v56, %v11709_v38  ;;  %15136 = vmatprep.subr.bf16.mxu0 %v22451_v8 }
 0xb48   :  { %13395 = vmatmul.mubr.f32.vlgmr.msra.gmra.mrb[30].mxu0 %v20231_v32  ;;  %v7685_v15 = vadd.f32 %v12451_v44, %v7439_v45 }
 0xb49   :  { %15138 = vmatpush3.bf16.msra.mxu0 %v20169_v7  ;;  %13397 = vmatprep.mubr.msk.f32.mxu0 %vm15680_vm9, %v22458_v24 }
 0xb4a   :  { %15139 = vmatprep.subr.bf16.mxu0 %v22451_v8 }
 0xb4c   :  { %13398 = vmatmul.mubr.f32.gmra.mrb[32].mxu0 %v20271_v58 }
 0xb4d   :  { %15141 = vmatpush3.bf16.msra.mxu0 %v20181_v27  ;;  %13400 = vmatprep.mubr.msk.f32.mxu0 %vm15680_vm9, %v22458_v24 }
 0xb4e   :  { %15142 = vmatprep.subr.bf16.mxu0 %v22451_v8 }
 0xb50   :  { %13401 = vmatmul.mubr.f32.gmra.mrb[34].mxu0 %v20295_v39 }
 0xb51   :  { %15144 = vmatpush3.bf16.msra.mxu0 %v20195_v34  ;;  %13435 = vmatprep.mubr.msk.f32.mxu0 %vm15680_vm9, %v22458_v24 }
 0xb52   :  { %v12525_v7 = vpop.f32.mrb[96].mxu1  ;;  %15145 = vmatprep.subr.bf16.mxu0 %v22451_v8 }
 0xb53   :  { %v12526_v51 = vpop.f32.mrb[97].mxu1 }
 0xb54   :  { %v12527_v1 = vadd.f32 %v12526_v51, %v12525_v7  ;;  %v9014_v51 = vld [vmem:[%s21128_s11 + $0x50] sm:$0xff] }
 0xb55   :  { %15147 = vmatpush3.bf16.msra.mxu0 %v20208_v37 }
 0xb56   :  { %v12528_v27 = vpop.f32.mrb[98].mxu1  ;;  %15148 = vmatprep.subr.bf16.mxu0 %v22451_v8 }
 0xb57   :  { %v12529_v9 = vpop.f32.mrb[99].mxu1 }
 0xb58   :  { %v12530_v55 = vadd.f32 %v12529_v9, %v12528_v27  ;;  %v9051_v27 = vand.u32 4294901760, %v9014_v51 }
 0xb59   :  { %15150 = vmatpush3.bf16.msra.mxu0 %v20226_v52 }
 0xb5a   :  { %v12484_v62 = vpop.f32.mrb[18].mxu0  ;;  %v12531_v5 = vpop.f32.mrb[100].mxu1  ;;  %15151 = vmatprep.subr.bf16.mxu0 %v22451_v8 }
 0xb5b   :  { %v12485_v34 = vpop.f32.mrb[19].mxu0  ;;  %v12532_v11 = vpop.f32.mrb[101].mxu1 }
 0xb5c   :  { %v12486_v2 = vadd.f32 %v12485_v34, %v12484_v62  ;;  %v12533_v26 = vadd.f32 %v12532_v11, %v12531_v5  ;;  %v9016_v62 = vld [vmem:[%s21128_s11 + $0x60] sm:$0xff]  ;;  %v9017_v5 = vld [vmem:[%s21128_s11 + $0x68] sm:$0xff] }
 0xb5d   :  { %15153 = vmatpush3.bf16.msra.mxu0 %v20251_v47  ;;  %v9057_v34 = vand.u32 4294901760, %v9016_v62  ;;  %v9060_v11 = vand.u32 4294901760, %v9017_v5 }
 0xb5e   :  { %v7823_v22 = vadd.f32 %v12486_v2, %v7671_v31  ;;  %v12487_v54 = vpop.f32.mrb[20].mxu0  ;;  %15154 = vmatprep.subr.bf16.mxu0 %v22451_v8 }
 0xb5f   :  { %v12488_v37 = vpop.f32.mrb[21].mxu0  ;;  %v20669_v2 = vpack.c.bf16 %v9060_v11, %v9057_v34 }
 0xb60   :  { %v12489_v33 = vadd.f32 %v12488_v37, %v12487_v54  ;;  %v7949_v60 = vadd.f32 %v12527_v1, %v7823_v22  ;;  %v9015_v1 = vld [vmem:[%s21128_s11 + $0x58] sm:$0xff]  ;;  %v20675_v54 = vsub.f32 %v9016_v62, %v9057_v34  ;;  %v20677_v37 = vsub.f32 %v9017_v5, %v9060_v11 }
 0xb61   :  { %15156 = vmatpush3.bf16.msra.mxu0 %v20290_v0  ;;  %v9054_v9 = vand.u32 4294901760, %v9015_v1  ;;  %v21664_v62 = vand.u32 4294901760, %v20525_v25  ;;  %v21663_v5 = vand.u32 4294901760, %v20527_v4 }
 0xb62   :  { %v7832_v52 = vadd.f32 %v12489_v33, %v7678_v20  ;;  %v12490_v38 = vpop.f32.mrb[22].mxu0  ;;  %15157 = vmatprep.subr.bf16.mxu0 %v22451_v8  ;;  %v9018_v33 = vld [vmem:[%s21128_s11 + $0x70] sm:$0xff] }
 0xb63   :  { %v12491_v23 = vpop.f32.mrb[23].mxu0  ;;  %v20673_v22 = vsub.f32 %v9015_v1, %v9054_v9  ;;  %v9191_v11 = vsub.f32 %v20525_v25, %v21664_v62 }
 0xb64   :  { %v12492_v19 = vadd.f32 %v12491_v23, %v12490_v38  ;;  %v7960_v41 = vadd.f32 %v12530_v55, %v7832_v52  ;;  %v20659_v55 = vpack.c.bf16 %v9054_v9, %v9051_v27  ;;  %v9063_v52 = vand.u32 4294901760, %v9018_v33 }
 0xb65   :  { %15159 = vmatpush3.bf16.msra.mxu0 %v20318_v30  ;;  %v9134_v23 = vand.u32 4294901760, %v20493_v28 }
 0xb66   :  { %v7841_v44 = vadd.f32 %v12492_v19, %v7685_v15  ;;  %15304 = vmatprep.subr.bf16.mxu0 %v22451_v8  ;;  %15177 = vmatpush3.bf16.msra.mxu1 %v20659_v55  ;;  %v9141_v19 = vand.u32 4294901760, %v20495_v17 }
 0xb67   :  { %15178 = vmatprep.subr.bf16.mxu1 %v22451_v8 }
 0xb68   :  { %13436 = vmatmul.mubr.f32.vlgmr.msra.gmra.mrb[30].mxu0 %v20231_v32  ;;  %v7971_v47 = vadd.f32 %v12533_v26, %v7841_v44  ;;  %v20671_v26 = vsub.f32 %v9014_v51, %v9051_v27  ;;  %v20691_v44 = vsub.f32 %v9018_v33, %v9063_v52  ;;  %v9198_v33 = vsub.f32 %v20527_v4, %v21663_v5 }
 0xb69   :  { %13438 = vmatprep.mubr.msk.f32.mxu0 %vm15680_vm9, %v22458_v24 }
 0xb6a   :  { %15180 = vmatpush3.bf16.msra.mxu1 %v20669_v2 }
 0xb6b   :  { %15181 = vmatprep.subr.bf16.mxu1 %v22451_v8 }
 0xb6c   :  { %13439 = vmatmul.mubr.f32.gmra.mrb[32].mxu0 %v20271_v58 }
 0xb6d   :  { %13441 = vmatprep.mubr.msk.f32.mxu0 %vm15680_vm9, %v22458_v24 }
 0xb70   :  { %13442 = vmatmul.mubr.f32.gmra.mrb[34].mxu0 %v20295_v39 }
 0xb71   :  { %13696 = vmatprep.mubr.msk.f32.mxu0 %vm15680_vm9, %v22458_v24 }
 0xb73   :  { %v12607_v0 = vpop.f32.mrb[102].mxu1 }
 0xb74   :  { %v12608_v30 = vpop.f32.mrb[103].mxu1 }
 0xb75   :  { %v12609_v40 = vadd.f32 %v12608_v30, %v12607_v0  ;;  %v9135_v0 = vsub.f32 %v20493_v28, %v9134_v23  ;;  %v9142_v30 = vsub.f32 %v20495_v17, %v9141_v19 }
 0xb77   :  { %v12610_v59 = vpop.f32.mrb[104].mxu1 }
 0xb78   :  { %v12611_v57 = vpop.f32.mrb[105].mxu1 }
 0xb79   :  { %v12612_v32 = vadd.f32 %v12611_v57, %v12610_v59  ;;  %v9148_v59 = vand.u32 4294901760, %v20506_v21  ;;  %v9155_v57 = vand.u32 4294901760, %v20508_v42 }
 0xb7a   :  { %v12566_v6 = vpop.f32.mrb[24].mxu0 }
 0xb7b   :  { %v12613_v16 = vpop.f32.mrb[106].mxu1  ;;  %v12567_v35 = vpop.f32.mrb[25].mxu0 }
 0xb7c   :  { %v12568_v53 = vadd.f32 %v12567_v35, %v12566_v6  ;;  %v12614_v31 = vpop.f32.mrb[107].mxu1  ;;  %v9149_v6 = vsub.f32 %v20506_v21, %v9148_v59 }
 0xb7d   :  { %v12615_v58 = vadd.f32 %v12614_v31, %v12613_v16  ;;  %v9156_v16 = vsub.f32 %v20508_v42, %v9155_v57 }
 0xb7e   :  { %v8139_v12 = vadd.f32 %v12568_v53, %v7949_v60  ;;  %v12569_v18 = vpop.f32.mrb[26].mxu0  ;;  %v9019_v60 = vld [vmem:[%s21128_s11 + $0x78] sm:$0xff]  ;;  %v9150_v53 = vand.u32 4294901760, %v9149_v6 }
 0xb7f   :  { %v12570_v46 = vpop.f32.mrb[27].mxu0  ;;  %v9066_v38 = vand.u32 4294901760, %v9019_v60  ;;  %v9157_v31 = vand.u32 4294901760, %v9156_v16 }
 0xb80   :  { %v12571_v36 = vadd.f32 %v12570_v46, %v12569_v18  ;;  %v20647_v39 = vadd.f32 %v12609_v40, %v8139_v12  ;;  %v9136_v40 = vand.u32 4294901760, %v9135_v0  ;;  %v21667_v12 = vand.u32 4294901760, %v20513_v49 }
 0xb81   :  { %v20715_v18 = vpack.c.bf16 %v9157_v31, %v9150_v53  ;;  %v21661_v0 = vand.u32 4294901760, %v20673_v22  ;;  %v21660_v53 = vand.u32 4294901760, %v20675_v54  ;;  %v21659_v31 = vand.u32 4294901760, %v20677_v37 }
 0xb82   :  { %v8146_v63 = vadd.f32 %v12571_v36, %v7960_v41  ;;  %v12572_v29 = vpop.f32.mrb[28].mxu0  ;;  %v20689_v41 = vpack.c.bf16 %v9066_v38, %v9063_v52  ;;  %v9170_v36 = vsub.f32 %v20513_v49, %v21667_v12  ;;  %v9199_v52 = vand.u32 4294901760, %v9198_v33 }
 0xb83   :  { %v12573_v56 = vpop.f32.mrb[29].mxu0 }
 0xb84   :  { %v12574_v20 = vadd.f32 %v12573_v56, %v12572_v29  ;;  %v20649_v45 = vadd.f32 %v12612_v32, %v8146_v63  ;;  %15183 = vmatpush3.bf16.msra.mxu1 %v20689_v41  ;;  %v9143_v32 = vand.u32 4294901760, %v9142_v30  ;;  %v21666_v63 = vand.u32 4294901760, %v20515_v61 }
 0xb85   :  { %15184 = vmatprep.subr.bf16.mxu1 %v22451_v8  ;;  %v21665_v29 = vand.u32 4294901760, %v20522_v14 }
 0xb86   :  { %v8153_v15 = vadd.f32 %v12574_v20, %v7971_v47  ;;  %v20693_v47 = vsub.f32 %v9019_v60, %v9066_v38  ;;  %v20711_v35 = vpack.c.bf16 %v9143_v32, %v9136_v40  ;;  %v9171_v20 = vand.u32 4294901760, %v9170_v36 }
 0xb87   :  { %v9184_v51 = vsub.f32 %v20522_v14, %v21665_v29  ;;  %v9192_v60 = vand.u32 4294901760, %v9191_v11  ;;  %v21662_v38 = vand.u32 4294901760, %v20671_v26  ;;  %v9212_v32 = vsub.f32 %v20673_v22, %v21661_v0 }
 0xb88   :  { %v20651_v7 = vadd.f32 %v12615_v58, %v8153_v15  ;;  %v9162_v58 = vand.u32 4294901760, %v20511_v13  ;;  %v9177_v15 = vsub.f32 %v20515_v61, %v21666_v63  ;;  %v9219_v36 = vsub.f32 %v20675_v54, %v21660_v53 }
 0xb89   :  { %v9185_v9 = vand.u32 4294901760, %v9184_v51  ;;  %v20745_v30 = vpack.c.bf16 %v9199_v52, %v9192_v60  ;;  %v9205_v40 = vsub.f32 %v20671_v26, %v21662_v38  ;;  %v9213_v16 = vand.u32 4294901760, %v9212_v32 }
 0xb8a   :  { %v9163_v46 = vsub.f32 %v20511_v13, %v9162_v58  ;;  %v9178_v27 = vand.u32 4294901760, %v9177_v15  ;;  %v21658_v51 = vand.u32 4294901760, %v20691_v44  ;;  %v15209_v32 = vpack.c.bf16 %v20495_v17, %v20493_v28 }
 0xb8b   :  { %v9206_v6 = vand.u32 4294901760, %v9205_v40  ;;  %v22474_v17 = vand.u32 4294901760, %v20513_v49 }
 0xb8c   :  { %v9164_v56 = vand.u32 4294901760, %v9163_v46  ;;  %v20735_v34 = vpack.c.bf16 %v9185_v9, %v9178_v27  ;;  %v21657_v27 = vand.u32 4294901760, %v20693_v47  ;;  %v9233_v11 = vsub.f32 %v20691_v44, %v21658_v51 }
 0xb8d   :  { %v20755_v46 = vpack.c.bf16 %v9213_v16, %v9206_v6  ;;  %v15212_v6 = vpack.c.bf16 %v20508_v42, %v20506_v21  ;;  %v15215_v16 = vpack.c.bf16 %v20513_v49, %v20511_v13  ;;  %v15263_v28 = vpack.c.bf16 %v22474_v17, %v9162_v58 }
 0xb8e   :  { %v20731_v1 = vpack.c.bf16 %v9171_v20, %v9164_v56  ;;  %v9226_v56 = vsub.f32 %v20677_v37, %v21659_v31  ;;  %v9220_v20 = vand.u32 4294901760, %v9219_v36  ;;  %v9240_v33 = vsub.f32 %v20693_v47, %v21657_v27 }
 0xb8f   :  { %v9234_v60 = vand.u32 4294901760, %v9233_v11  ;;  %v15218_v36 = vpack.c.bf16 %v20522_v14, %v20515_v61  ;;  %v15230_v11 = vpack.c.bf16 %v20693_v47, %v20691_v44  ;;  %v22475_v42 = vand.u32 4294901760, %v20515_v61 }
 0xb90   :  { %v9227_v15 = vand.u32 4294901760, %v9226_v56  ;;  %v9241_v52 = vand.u32 4294901760, %v9240_v33  ;;  %v15221_v56 = vpack.c.bf16 %v20527_v4, %v20525_v25  ;;  %v22476_v21 = vand.u32 4294901760, %v20522_v14 }
 0xb91   :  { %v22477_v13 = vand.u32 4294901760, %v20525_v25  ;;  %v22478_v49 = vand.u32 4294901760, %v20527_v4  ;;  %v22480_v61 = vand.u32 4294901760, %v20673_v22  ;;  %v22482_v58 = vand.u32 4294901760, %v20677_v37 }
 0xb92   :  { %v15203_v9 = vpack.c.bf16 %v9227_v15, %v9220_v20  ;;  %v15206_v40 = vpack.c.bf16 %v9241_v52, %v9234_v60  ;;  %v15224_v20 = vpack.c.bf16 %v20673_v22, %v20671_v26  ;;  %v15227_v15 = vpack.c.bf16 %v20677_v37, %v20675_v54 }
 0xb93   :  { %v22483_v25 = vand.u32 4294901760, %v20691_v44  ;;  %v22484_v4 = vand.u32 4294901760, %v20693_v47 }
 0xc3b   :  { %v8985_v33 = vpop.f32.mrb[30].mxu0 }
 0xc3c   :  { %v15359_v60 = vadd.f32 %v8985_v33, %v20647_v39  ;;  %v13437_v52 = vpop.f32.mrb[31].mxu0 }
 0xc3e   :  { %v9001_v27 = vmax.f32 %v15359_v60, 0.0 }
 0xc3f   :  { %v8991_v51 = vpop.f32.mrb[32].mxu0 }
 0xc40   :  { %v20788_v31 = vand.u32 4294901760, %v9001_v27  ;;  %v15360_v53 = vadd.f32 %v8991_v51, %v20649_v45  ;;  %v13440_v0 = vpop.f32.mrb[33].mxu0 }
 0xc42   :  { %v20792_v38 = vsub.f32 %v9001_v27, %v20788_v31  ;;  %v9002_v5 = vmax.f32 %v15360_v53, 0.0 }
 0xc43   :  { %v8997_v62 = vpop.f32.mrb[34].mxu0 }
 0xc44   :  { %v9103_v29 = vand.u32 4294901760, %v20792_v38  ;;  %v20795_v63 = vand.u32 4294901760, %v9002_v5  ;;  %v15361_v12 = vadd.f32 %v8997_v62, %v20651_v7  ;;  %v13443_v39 = vpop.f32.mrb[35].mxu0 }
 0xc46   :  { %v9104_v33 = vsub.f32 %v20792_v38, %v9103_v29  ;;  %v20802_v60 = vsub.f32 %v9002_v5, %v20795_v63  ;;  %v9003_v45 = vmax.f32 %v15361_v12, 0.0 }
 0xc48   :  { %v9105_v0 = vand.u32 4294901760, %v9104_v33  ;;  %v20804_v51 = vand.u32 4294901760, %v9003_v45  ;;  %v9113_v53 = vand.u32 4294901760, %v20802_v60 }
 0xc4a   :  { %v20808_v27 = vsub.f32 %v9003_v45, %v20804_v51  ;;  %13477 = vmatmul.mubr.f32.vlgmr.msra.gmra.mrb[108].mxu1 %v9105_v0  ;;  %v9114_v7 = vsub.f32 %v20802_v60, %v9113_v53 }
 0xc4b   :  { %15186 = vmatpush3.bf16.msra.mxu1 %v20711_v35  ;;  %13479 = vmatprep.mubr.msk.f32.mxu1 %vm15680_vm9, %v22458_v24 }
 0xc4c   :  { %15187 = vmatprep.subr.bf16.mxu1 %v22451_v8  ;;  %v9115_v12 = vand.u32 4294901760, %v9114_v7  ;;  %v9123_v62 = vand.u32 4294901760, %v20808_v27 }
 0xc4e   :  { %13480 = vmatmul.mubr.f32.gmra.mrb[110].mxu1 %v9115_v12  ;;  %v9124_v5 = vsub.f32 %v20808_v27, %v9123_v62 }
 0xc4f   :  { %15189 = vmatpush3.bf16.msra.mxu1 %v20715_v18  ;;  %13482 = vmatprep.mubr.msk.f32.mxu1 %vm15680_vm9, %v22458_v24  ;;  %v15257_v18 = vpack.c.bf16 %v9141_v19, %v9134_v23  ;;  %v15266_v23 = vpack.c.bf16 %v22476_v21, %v22475_v42  ;;  %v15269_v19 = vpack.c.bf16 %v22478_v49, %v22477_v13 }
 0xc50   :  { %15190 = vmatprep.subr.bf16.mxu1 %v22451_v8  ;;  %v9125_v35 = vand.u32 4294901760, %v9124_v5 }
 0xc52   :  { %13483 = vmatmul.mubr.f32.gmra.mrb[112].mxu1 %v9125_v35 }
 0xc53   :  { %15192 = vmatpush3.bf16.msra.mxu1 %v20731_v1  ;;  %13517 = vmatprep.mubr.msk.f32.mxu1 %vm15680_vm9, %v22458_v24  ;;  %v15260_v1 = vpack.c.bf16 %v9155_v57, %v9148_v59  ;;  %v22479_v59 = vand.u32 4294901760, %v20671_v26  ;;  %v22481_v57 = vand.u32 4294901760, %v20675_v54 }
 0xc54   :  { %15193 = vmatprep.subr.bf16.mxu1 %v22451_v8 }
 0xc55   :  { %v15272_v14 = vpack.c.bf16 %v22480_v61, %v22479_v59  ;;  %v11710_v59 = vld [vmem:[%s21129_s12] ss:$0 sm:$0xff] }
 0xc57   :  { %15195 = vmatpush3.bf16.msra.mxu1 %v20735_v34  ;;  %v15278_v34 = vpack.c.bf16 %v22484_v4, %v22483_v25 }
 0xc58   :  { %15196 = vmatprep.subr.bf16.mxu1 %v22451_v8 }
 0xc5b   :  { %15198 = vmatpush3.bf16.msra.mxu1 %v20745_v30 }
 0xc5c   :  { %15199 = vmatprep.subr.bf16.mxu1 %v22451_v8 }
 0xc5f   :  { %15201 = vmatpush3.bf16.msra.mxu1 %v20755_v46 }
 0xc60   :  { %15202 = vmatprep.subr.bf16.mxu1 %v22451_v8 }
 0xc63   :  { %15204 = vmatpush3.bf16.msra.mxu1 %v15203_v9 }
 0xc64   :  { %15205 = vmatprep.subr.bf16.mxu1 %v22451_v8 }
 0xc67   :  { %15207 = vmatpush3.bf16.msra.mxu1 %v15206_v40 }
 0xc68   :  { %15208 = vmatprep.subr.bf16.mxu1 %v22451_v8 }
 0xc6a   :  { %13518 = vmatmul.mubr.f32.vlgmr.msra.gmra.mrb[108].mxu1 %v20788_v31 }
 0xc6b   :  { %15210 = vmatpush3.bf16.msra.mxu1 %v15209_v32  ;;  %13520 = vmatprep.mubr.msk.f32.mxu1 %vm15680_vm9, %v22458_v24 }
 0xc6c   :  { %15211 = vmatprep.subr.bf16.mxu1 %v22451_v8 }
 0xc6e   :  { %13521 = vmatmul.mubr.f32.gmra.mrb[110].mxu1 %v20795_v63 }
 0xc6f   :  { %15213 = vmatpush3.bf16.msra.mxu1 %v15212_v6  ;;  %13523 = vmatprep.mubr.msk.f32.mxu1 %vm15680_vm9, %v22458_v24 }
 0xc70   :  { %15214 = vmatprep.subr.bf16.mxu1 %v22451_v8 }
 0xc72   :  { %13524 = vmatmul.mubr.f32.gmra.mrb[112].mxu1 %v20804_v51 }
 0xc73   :  { %15216 = vmatpush3.bf16.msra.mxu1 %v15215_v16  ;;  %13558 = vmatprep.mubr.msk.f32.mxu1 %vm15680_vm9, %v22458_v24 }
 0xc74   :  { %15217 = vmatprep.subr.bf16.mxu1 %v22451_v8 }
 0xc77   :  { %15219 = vmatpush3.bf16.msra.mxu1 %v15218_v36 }
 0xc78   :  { %15220 = vmatprep.subr.bf16.mxu1 %v22451_v8 }
 0xc7b   :  { %15222 = vmatpush3.bf16.msra.mxu1 %v15221_v56 }
 0xc7c   :  { %15223 = vmatprep.subr.bf16.mxu1 %v22451_v8 }
 0xc7f   :  { %15225 = vmatpush3.bf16.msra.mxu1 %v15224_v20 }
 0xc80   :  { %15226 = vmatprep.subr.bf16.mxu1 %v22451_v8 }
 0xc83   :  { %15228 = vmatpush3.bf16.msra.mxu1 %v15227_v15 }
 0xc84   :  { %15229 = vmatprep.subr.bf16.mxu1 %v22451_v8 }
 0xc87   :  { %15231 = vmatpush3.bf16.msra.mxu1 %v15230_v11 }
 0xc88   :  { %15232 = vmatprep.subr.bf16.mxu1 %v22451_v8 }
 0xc8a   :  { %13559 = vmatmul.mubr.f32.vlgmr.msra.gmra.mrb[108].mxu1 %v20792_v38 }
 0xc8b   :  { %15234 = vmatpush3.bf16.msra.mxu1 %v20491_v48  ;;  %13561 = vmatprep.mubr.msk.f32.mxu1 %vm15680_vm9, %v22458_v24 }
 0xc8c   :  { %15235 = vmatprep.subr.bf16.mxu1 %v22451_v8 }
 0xc8e   :  { %13562 = vmatmul.mubr.f32.gmra.mrb[110].mxu1 %v20802_v60 }
 0xc8f   :  { %15237 = vmatpush3.bf16.msra.mxu1 %v20504_v43  ;;  %13564 = vmatprep.mubr.msk.f32.mxu1 %vm15680_vm9, %v22458_v24 }
 0xc90   :  { %15238 = vmatprep.subr.bf16.mxu1 %v22451_v8 }
 0xc92   :  { %13565 = vmatmul.mubr.f32.gmra.mrb[112].mxu1 %v20808_v27 }
 0xc93   :  { %15240 = vmatpush3.bf16.msra.mxu1 %v20530_v3  ;;  %13599 = vmatprep.mubr.msk.f32.mxu1 %vm15680_vm9, %v22458_v24 }
 0xc94   :  { %15241 = vmatprep.subr.bf16.mxu1 %v22451_v8 }
 0xc97   :  { %15243 = vmatpush3.bf16.msra.mxu1 %v20539_v10 }
 0xc98   :  { %15244 = vmatprep.subr.bf16.mxu1 %v22451_v8 }
 0xc9b   :  { %15246 = vmatpush3.bf16.msra.mxu1 %v20545_v50 }
 0xc9c   :  { %15247 = vmatprep.subr.bf16.mxu1 %v22451_v8 }
 0xc9f   :  { %15249 = vmatpush3.bf16.msra.mxu1 %v20659_v55 }
 0xca0   :  { %15250 = vmatprep.subr.bf16.mxu1 %v22451_v8 }
 0xca3   :  { %15252 = vmatpush3.bf16.msra.mxu1 %v20669_v2 }
 0xca4   :  { %15253 = vmatprep.subr.bf16.mxu1 %v22451_v8 }
 0xca7   :  { %15255 = vmatpush3.bf16.msra.mxu1 %v20689_v41 }
 0xca8   :  { %15256 = vmatprep.subr.bf16.mxu1 %v22451_v8 }
 0xcaa   :  { %13600 = vmatmul.mubr.f32.vlgmr.msra.gmra.mrb[108].mxu1 %v9103_v29  ;;  %v15275_v29 = vpack.c.bf16 %v22482_v58, %v22481_v57 }
 0xcab   :  { %15258 = vmatpush3.bf16.msra.mxu1 %v15257_v18  ;;  %13602 = vmatprep.mubr.msk.f32.mxu1 %vm15680_vm9, %v22458_v24 }
 0xcac   :  { %15259 = vmatprep.subr.bf16.mxu1 %v22451_v8 }
 0xcae   :  { %13603 = vmatmul.mubr.f32.gmra.mrb[110].mxu1 %v9113_v53 }
 0xcaf   :  { %15261 = vmatpush3.bf16.msra.mxu1 %v15260_v1  ;;  %13605 = vmatprep.mubr.msk.f32.mxu1 %vm15680_vm9, %v22458_v24 }
 0xcb0   :  { %15262 = vmatprep.subr.bf16.mxu1 %v22451_v8 }
 0xcb2   :  { %13606 = vmatmul.mubr.f32.gmra.mrb[112].mxu1 %v9123_v62 }
 0xcb3   :  { %15264 = vmatpush3.bf16.msra.mxu1 %v15263_v28  ;;  %13640 = vmatprep.mubr.msk.f32.mxu1 %vm15680_vm9, %v22458_v24 }
 0xcb4   :  { %15265 = vmatprep.subr.bf16.mxu1 %v22451_v8 }
 0xcb7   :  { %15267 = vmatpush3.bf16.msra.mxu1 %v15266_v23 }
 0xcb8   :  { %15268 = vmatprep.subr.bf16.mxu1 %v22451_v8 }
 0xcbb   :  { %15270 = vmatpush3.bf16.msra.mxu1 %v15269_v19 }
 0xcbc   :  { %15271 = vmatprep.subr.bf16.mxu1 %v22451_v8 }
 0xcbf   :  { %15273 = vmatpush3.bf16.msra.mxu1 %v15272_v14 }
 0xcc0   :  { %15274 = vmatprep.subr.bf16.mxu1 %v22451_v8 }
 0xcc3   :  { %15276 = vmatpush3.bf16.msra.mxu1 %v15275_v29 }
 0xcc4   :  { %15277 = vmatprep.subr.bf16.mxu1 %v22451_v8 }
 0xcc7   :  { %15279 = vmatpush3.bf16.msra.mxu1 %v15278_v34 }
 0xcc8   :  { %15280 = vmatprep.subr.bf16.mxu1 %v22451_v8 }
 0xcca   :  { %13641 = vmatmul.mubr.f32.vlgmr.msra.gmra.mrb[108].mxu1 %v20788_v31 }
 0xccb   :  { %15282 = vmatpush3.bf16.msra.mxu1 %v20491_v48  ;;  %13643 = vmatprep.mubr.msk.f32.mxu1 %vm15680_vm9, %v22458_v24  ;;  %v11711_v48 = vld [vmem:[%s21130_s13 + $0x2] sm:$0x3] }
 0xccc   :  { %15283 = vmatprep.subr.bf16.mxu1 %v22451_v8 }
 0xcce   :  { %13644 = vmatmul.mubr.f32.gmra.mrb[110].mxu1 %v20795_v63 }
 0xccf   :  { %15285 = vmatpush3.bf16.msra.mxu1 %v20504_v43  ;;  %13646 = vmatprep.mubr.msk.f32.mxu1 %vm15680_vm9, %v22458_v24  ;;  %v9747_v43 = vld [vmem:[%s21130_s13] sm:$0x3] }
 0xcd0   :  { %15286 = vmatprep.subr.bf16.mxu1 %v22451_v8 }
 0xcd2   :  { %13647 = vmatmul.mubr.f32.gmra.mrb[112].mxu1 %v20804_v51 }
 0xcd3   :  { %15288 = vmatpush3.bf16.msra.mxu1 %v20530_v3  ;;  %13681 = vmatprep.mubr.msk.f32.mxu1 %vm15680_vm9, %v22458_v24  ;;  %v9757_v3 = vsel %vm9755_vm10, %v9747_v43, 0 }
 0xcd4   :  { %15289 = vmatprep.subr.bf16.mxu1 %v22451_v8 }
 0xcd7   :  { %15291 = vmatpush3.bf16.msra.mxu1 %v20539_v10  ;;  %v10240_v10 = vsel %vm9755_vm10, %v11711_v48, 0 }
 0xcd8   :  { %15292 = vmatprep.subr.bf16.mxu1 %v22451_v8 }
 0xcdb   :  { %15294 = vmatpush3.bf16.msra.mxu1 %v20545_v50  ;;  %v20989_v50 = vand.u32 4294901760, %v9757_v3 }
 0xcdc   :  { %15295 = vmatprep.subr.bf16.mxu1 %v22451_v8 }
 0xcdf   :  { %15297 = vmatpush3.bf16.msra.mxu1 %v20659_v55  ;;  %v20991_v55 = vand.u32 4294901760, %v10240_v10 }
 0xce0   :  { %15298 = vmatprep.subr.bf16.mxu1 %v22451_v8 }
 0xce1   :  { %v20997_v26 = vsub.f32 %v10240_v10, %v20991_v55  ;;  %v11714_v10 = vld.sshfl [vmem:[%s21131_s14] sm:$0x33 pattern:$0x76325410] }
 0xce3   :  { %15300 = vmatpush3.bf16.msra.mxu1 %v20669_v2  ;;  %v20994_v2 = vsub.f32 %v9757_v3, %v20989_v50  ;;  %v10312_v44 = vand.u32 4294901760, %v20997_v26 }
 0xce4   :  { %15301 = vmatprep.subr.bf16.mxu1 %v22451_v8 }
 0xce5   :  { %v10313_v9 = vsub.f32 %v20997_v26, %v10312_v44 }
 0xce7   :  { %15303 = vmatpush3.bf16.msra.mxu1 %v20689_v41  ;;  %v9833_v41 = vand.u32 4294901760, %v20994_v2  ;;  %v10314_v39 = vand.u32 4294901760, %v10313_v9 }
 0xce8   :  { %15322 = vmatprep.subr.bf16.mxu1 %v22451_v8 }
 0xce9   :  { %v9834_v46 = vsub.f32 %v20994_v2, %v9833_v41 }
 0xcea   :  { %13682 = vmatmul.mubr.f32.vlgmr.msra.gmra.mrb[108].mxu1 %v20788_v31 }
 0xceb   :  { %13684 = vmatprep.mubr.msk.f32.mxu1 %vm15680_vm9, %v22458_v24  ;;  %v9835_v52 = vand.u32 4294901760, %v9834_v46 }
 0xcee   :  { %13685 = vmatmul.mubr.f32.gmra.mrb[110].mxu1 %v20795_v63 }
 0xcef   :  { %13687 = vmatprep.mubr.msk.f32.mxu1 %vm15680_vm9, %v22458_v24 }
 0xcf2   :  { %13688 = vmatmul.mubr.f32.gmra.mrb[112].mxu1 %v20804_v51 }
 0xcf3   :  { %13750 = vmatprep.mubr.msk.f32.mxu1 %vm15680_vm9, %v22458_v24 }
 0xdbd   :  { %v9731_v22 = vpop.f32.mrb[108].mxu1 }
 0xdbe   :  { %v9764_v54 = vand.u32 4294901760, %v9731_v22  ;;  %v13683_v37 = vpop.f32.mrb[109].mxu1 }
 0xdbf   :  { %v11212_v37 = vsel %vm10730_vm12, %v11714_v10, 0 }
 0xdc0   :  { %v9843_v47 = vsub.f32 %v9731_v22, %v9764_v54 }
 0xdc1   :  { %v9737_v63 = vpop.f32.mrb[110].mxu1 }
 0xdc2   :  { %v9844_v38 = vand.u32 4294901760, %v9843_v47  ;;  %v9767_v30 = vand.u32 4294901760, %v9737_v63  ;;  %v13686_v31 = vpop.f32.mrb[111].mxu1 }
 0xdc4   :  { %v21007_v40 = vpack.c.bf16 %v9767_v30, %v9764_v54  ;;  %v9850_v32 = vsub.f32 %v9737_v63, %v9767_v30  ;;  %v9845_v16 = vsub.f32 %v9843_v47, %v9844_v38 }
 0xdc5   :  { %v9743_v6 = vpop.f32.mrb[112].mxu1 }
 0xdc6   :  { %v9851_v36 = vand.u32 4294901760, %v9850_v32  ;;  %v15311_v56 = vpack.c.bf16 %v9850_v32, %v9843_v47  ;;  %v9761_v20 = vsel %vm9759_vm11, %v9743_v6, 0  ;;  %v13689_v15 = vpop.f32.mrb[113].mxu1  ;;  %15306 = vmatpush3.bf16.msra.mxu0 %v21007_v40  ;;  %15324 = vmatpush3.bf16.msra.mxu1 %v21007_v40  ;;  %v9846_v0 = vand.u32 4294901760, %v9845_v16 }
 0xdc7   :  { %v21011_v11 = vand.u32 4294901760, %v9761_v20  ;;  %13694 = vmatprep.subr.mxu0 %v22458_v24  ;;  %13748 = vmatprep.subr.mxu1 %v22458_v24  ;;  %v11218_v47 = vand.u32 4294901760, %v11212_v37 }
 0xdc8   :  { %v9852_v33 = vsub.f32 %v9850_v32, %v9851_v36  ;;  %v15317_v60 = vpack.c.bf16 %v9851_v36, %v9844_v38 }
 0xdc9   :  { %v9857_v45 = vsub.f32 %v9761_v20, %v21011_v11  ;;  %v11301_v30 = vsub.f32 %v11212_v37, %v11218_v47 }
 0xdca   :  { %v9853_v51 = vand.u32 4294901760, %v9852_v33  ;;  %13695 = vmatpush3.msra.mxu0 %v21011_v11  ;;  %13749 = vmatpush3.msra.mxu1 %v21011_v11 }
 0xdcb   :  { %v9858_v53 = vand.u32 4294901760, %v9857_v45  ;;  %13697 = vmatmul.mubr.f32.vlgmr.msra.gmra.mrb[36].mxu0 %v9835_v52  ;;  %13751 = vmatmul.mubr.f32.vlgmr.msra.gmra.mrb[114].mxu1 %v10314_v39  ;;  %v11302_v9 = vand.u32 4294901760, %v11301_v30 }
 0xdcc   :  { %15307 = vmatprep.subr.bf16.mxu0 %v22451_v8  ;;  %15325 = vmatprep.subr.bf16.mxu1 %v22451_v8  ;;  %v15308_v27 = vpack.c.bf16 %v9853_v51, %v9846_v0 }
 0xdcd   :  { %v9859_v7 = vsub.f32 %v9857_v45, %v9858_v53  ;;  %13705 = vmatprep.mubr.msk.f32.mxu0 %vm15680_vm9, %v22458_v24  ;;  %13759 = vmatprep.mubr.msk.f32.mxu1 %vm15680_vm9, %v22458_v24  ;;  %v11303_v6 = vsub.f32 %v11301_v30, %v11302_v9 }
 0xdce   :  { %15309 = vmatpush3.bf16.msra.mxu0 %v15308_v27  ;;  %15327 = vmatpush3.bf16.msra.mxu1 %v15308_v27 }
 0xdcf   :  { %13703 = vmatprep.subr.mxu0 %v22458_v24  ;;  %13757 = vmatprep.subr.mxu1 %v22458_v24  ;;  %v9860_v12 = vand.u32 4294901760, %v9859_v7  ;;  %v11304_v36 = vand.u32 4294901760, %v11303_v6 }
 0xdd2   :  { %13704 = vmatpush3.msra.mxu0 %v9860_v12  ;;  %13758 = vmatpush3.msra.mxu1 %v9860_v12 }
 0xdd3   :  { %13706 = vmatmul.mubr.f32.vlgmr.msra.gmra.mrb[36].mxu0 %v20989_v50  ;;  %15310 = vmatprep.subr.bf16.mxu0 %v22451_v8 }
 0xdd4   :  { %13760 = vmatmul.mubr.f32.vlgmr.msra.gmra.mrb[114].mxu1 %v20991_v55  ;;  %15328 = vmatprep.subr.bf16.mxu1 %v22451_v8 }
 0xdd5   :  { %15312 = vmatpush3.bf16.msra.mxu0 %v15311_v56  ;;  %15330 = vmatpush3.bf16.msra.mxu1 %v15311_v56 }
 0xdd6   :  { %13712 = vmatprep.subr.mxu0 %v22458_v24  ;;  %13766 = vmatprep.subr.mxu1 %v22458_v24 }
 0xdd7   :  { %13714 = vmatprep.mubr.msk.f32.mxu0 %vm15680_vm9, %v22458_v24  ;;  %13768 = vmatprep.mubr.msk.f32.mxu1 %vm15680_vm9, %v22458_v24 }
 0xdd9   :  { %13713 = vmatpush3.msra.mxu0 %v9857_v45  ;;  %13767 = vmatpush3.msra.mxu1 %v9857_v45 }
 0xdda   :  { %15313 = vmatprep.subr.bf16.mxu0 %v22451_v8  ;;  %15331 = vmatprep.subr.bf16.mxu1 %v22451_v8 }
 0xddb   :  { %13715 = vmatmul.mubr.f32.vlgmr.msra.gmra.mrb[36].mxu0 %v20994_v2 }
 0xddc   :  { %15315 = vmatpush3.bf16.msra.mxu0 %v21007_v40  ;;  %13769 = vmatmul.mubr.f32.vlgmr.msra.gmra.mrb[114].mxu1 %v20997_v26 }
 0xddd   :  { %15333 = vmatpush3.bf16.msra.mxu1 %v21007_v40  ;;  %13721 = vmatprep.subr.mxu0 %v22458_v24 }
 0xdde   :  { %13775 = vmatprep.subr.mxu1 %v22458_v24  ;;  %13723 = vmatprep.mubr.msk.f32.mxu0 %vm15680_vm9, %v22458_v24 }
 0xddf   :  { %13777 = vmatprep.mubr.msk.f32.mxu1 %vm15680_vm9, %v22458_v24 }
 0xde0   :  { %13722 = vmatpush3.msra.mxu0 %v21011_v11 }
 0xde1   :  { %13776 = vmatpush3.msra.mxu1 %v21011_v11  ;;  %15316 = vmatprep.subr.bf16.mxu0 %v22451_v8 }
 0xde2   :  { %15334 = vmatprep.subr.bf16.mxu1 %v22451_v8 }
 0xde3   :  { %13724 = vmatmul.mubr.f32.vlgmr.msra.gmra.mrb[36].mxu0 %v9833_v41 }
 0xde4   :  { %15318 = vmatpush3.bf16.msra.mxu0 %v15317_v60  ;;  %13778 = vmatmul.mubr.f32.vlgmr.msra.gmra.mrb[114].mxu1 %v10312_v44 }
 0xde5   :  { %15336 = vmatpush3.bf16.msra.mxu1 %v15317_v60  ;;  %13730 = vmatprep.subr.mxu0 %v22458_v24 }
 0xde6   :  { %13784 = vmatprep.subr.mxu1 %v22458_v24  ;;  %13732 = vmatprep.mubr.msk.f32.mxu0 %vm15680_vm9, %v22458_v24 }
 0xde7   :  { %13786 = vmatprep.mubr.msk.f32.mxu1 %vm15680_vm9, %v22458_v24 }
 0xde8   :  { %13731 = vmatpush3.msra.mxu0 %v9858_v53 }
 0xde9   :  { %13785 = vmatpush3.msra.mxu1 %v9858_v53  ;;  %15319 = vmatprep.subr.bf16.mxu0 %v22451_v8 }
 0xdea   :  { %15337 = vmatprep.subr.bf16.mxu1 %v22451_v8  ;;  %v11713_v8 = vld.sshfl [vmem:[%s21131_s14 + $0x4] sm:$0x33 pattern:$0x76325410]  ;;  %s15681_s14 = smov [#allocation2]  }
 0xdeb   :  { %13733 = vmatmul.mubr.f32.vlgmr.msra.gmra.mrb[36].mxu0 %v20989_v50  ;;  %v10725_v62 = vcombine.high %v11713_v8, %v11713_v8  ;;  %v10731_v18 = vsel %vm10730_vm12, %v11713_v8, 0  ;;  %s11699_s16 = sshll.u32 %s15681_s14, 4  ;;  %s11700_s16 = int_to_ptr.vmem [resolvable:$true] %s11699_s16 }
 0xdec   :  { %15321 = vmatpush3.bf16.msra.mxu0 %v21007_v40  ;;  %13787 = vmatmul.mubr.f32.vlgmr.msra.gmra.mrb[114].mxu1 %v20991_v55  ;;  %v10737_v1 = vand.u32 4294901760, %v10731_v18  ;;  %s15649_s17 = scalar_lea.vmem %s11700_s16, 64  ;;  %p15654_p1 = scmp.lt.s32.totalorder %s11700_s16, %s11700_s16 }
 0xded   :  { %15339 = vmatpush3.bf16.msra.mxu1 %v21007_v40  ;;  %13739 = vmatprep.subr.mxu0 %v22458_v24  ;;  %v10733_v5 = vsel %vm10730_vm12, %v10725_v62, 0  ;;  %p15650_p0 = scmp.ne.s32.totalorder %s11700_s16, %s15649_s17  ;;  %p15655_p2 = scmp.lt.s32.totalorder %s15649_s17, %s15649_s17 }
 0xdee   :  { %13793 = vmatprep.subr.mxu1 %v22458_v24  ;;  %13741 = vmatprep.mubr.msk.f32.mxu0 %vm15680_vm9, %v22458_v24  ;;  %v10735_v35 = vand.u32 4294901760, %v10733_v5  ;;  %v10820_v28 = vsub.f32 %v10731_v18, %v10737_v1 }
 0xdef   :  { %13795 = vmatprep.mubr.msk.f32.mxu1 %vm15680_vm9, %v22458_v24  ;;  %p15656_p3 = por %p15655_p2, %p15654_p1 }
 0xdf0   :  { %13740 = vmatpush3.msra.mxu0 %v21011_v11  ;;  %v10814_v17 = vsub.f32 %v10733_v5, %v10735_v35  ;;  %v10821_v21 = vand.u32 4294901760, %v10820_v28 }
 0xdf1   :  { %13794 = vmatpush3.msra.mxu1 %v21011_v11  ;;  %p15657_p4 = pnand %p15656_p3, %p15650_p0 }
 0xdf2   :  { %10736 = vmatprep.subr.mxu1 %v10735_v35  ;;  %v10815_v42 = vand.u32 4294901760, %v10814_v17  ;;  %v10822_v13 = vsub.f32 %v10820_v28, %v10821_v21 }
 0xdf3   :  { %13742 = vmatmul.mubr.f32.vlgmr.msra.gmra.mrb[36].mxu0 %v20989_v50 }
 0xdf4   :  { %13796 = vmatmul.mubr.f32.vlgmr.msra.gmra.mrb[114].mxu1 %v20991_v55  ;;  %10887 = vmatprep.mubr.f32.mxu0 %v22458_v24  ;;  %v10816_v23 = vsub.f32 %v10814_v17, %v10815_v42  ;;  %v10823_v19 = vand.u32 4294901760, %v10822_v13  ;;  %v11208_v55 = vcombine.high %v11714_v10, %v11714_v10 }
 0xdf5   :  { %10801 = vmatprep.mubr.f32.mxu1 %v22458_v24  ;;  %10738 = vmatpush1.msra.mxu1 %v10737_v1 }
 0xdf6   :  { %v10817_v49 = vand.u32 4294901760, %v10816_v23  ;;  %v11214_v26 = vsel %vm10730_vm12, %v11208_v55, 0 }
 0xdf7   :  { %v11216_v22 = vand.u32 4294901760, %v11214_v26 }
 0xdf8   :  { %10818 = vmatprep.subr.mxu0 %v10817_v49 }
 0xdf9   :  { %10824 = vmatpush1.msra.mxu0 %v10823_v19  ;;  %v11295_v41 = vsub.f32 %v11214_v26, %v11216_v22 }
 0xdfa   :  { %10897 = vmatprep.subr.mxu0 %v10814_v17 }
 0xdfb   :  { %v11296_v38 = vand.u32 4294901760, %v11295_v41 }
 0xdfd   :  { %v11297_v46 = vsub.f32 %v11295_v41, %v11296_v38 }
 0xdff   :  { %v11298_v32 = vand.u32 4294901760, %v11297_v46 }
 0xec6   :  { %v10231_v61 = vpop.f32.mrb[36].mxu0 }
 0xec7   :  { %v10710_v14 = vpop.f32.mrb[114].mxu1  ;;  %v13743_v57 = vpop.f32.mrb[37].mxu0  ;;  %v15362_v2 = vadd.f32 %v11710_v59, %v10231_v61 }
 0xec8   :  { %v15363_v58 = vadd.f32 %v11710_v59, %v10710_v14  ;;  %v13797_v29 = vpop.f32.mrb[115].mxu1 }
 0xec9   :  { %v10235_v54 = vmax.f32 %v15362_v2, 0.0 }
 0xeca   :  { %v10714_v25 = vmax.f32 %v15363_v58, 0.0 }
 0xecb   :  { %v11210_v44 = vsel %vm10726_vm13, %v10235_v54, 0 }
 0xecc   :  { %v10728_v4 = vsel %vm10726_vm13, %v10714_v25, 0  ;;  %v11283_v63 = vand.u32 4294901760, %v11210_v44 }
 0xecd   :  { %v10802_v34 = vand.u32 4294901760, %v10728_v4 }
 0xece   :  { %v11284_v31 = vsub.f32 %v11210_v44, %v11283_v63 }
 0xecf   :  { %v10803_v43 = vsub.f32 %v10728_v4, %v10802_v34  ;;  %10889 = vmatmul.mubr.f32.vlgmr.msra.gmra.mrb[38].mxu0 %v10802_v34 }
 0xed0   :  { %10900 = vmatpush1.msra.mxu0 %v10820_v28  ;;  %10963 = vmatprep.mubr.f32.mxu0 %v22458_v24  ;;  %v11285_v40 = vand.u32 4294901760, %v11284_v31 }
 0xed1   :  { %v10804_v48 = vand.u32 4294901760, %v10803_v43  ;;  %10973 = vmatprep.subr.mxu0 %v10735_v35 }
 0xed2   :  { %v11286_v16 = vsub.f32 %v11284_v31, %v11285_v40 }
 0xed3   :  { %v10805_v3 = vsub.f32 %v10803_v43, %v10804_v48 }
 0xed4   :  { %v11287_v56 = vand.u32 4294901760, %v11286_v16 }
 0xed5   :  { %v10806_v50 = vand.u32 4294901760, %v10805_v3 }
 0xed7   :  { %10807 = vmatmul.mubr.f32.vlgmr.msra.gmra.mrb[116].mxu1 %v10806_v50  ;;  %10966 = vmatmul.mubr.f32.vlgmr.msra.gmra.mrb[38].mxu0 %v10803_v43 }
 0xed8   :  { %10975 = vmatpush1.msra.mxu0 %v10737_v1  ;;  %11038 = vmatprep.mubr.f32.mxu0 %v22458_v24 }
 0xed9   :  { %11051 = vmatprep.subr.mxu0 %v10815_v42 }
 0xedf   :  { %11042 = vmatmul.mubr.f32.vlgmr.msra.gmra.mrb[38].mxu0 %v10804_v48 }
 0xee0   :  { %11055 = vmatpush1.msra.mxu0 %v10821_v21  ;;  %11118 = vmatprep.mubr.f32.mxu0 %v22458_v24 }
 0xee1   :  { %11127 = vmatprep.subr.mxu0 %v10735_v35 }
 0xee7   :  { %11120 = vmatmul.mubr.f32.vlgmr.msra.gmra.mrb[38].mxu0 %v10802_v34 }
 0xee8   :  { %11129 = vmatpush1.msra.mxu0 %v10737_v1  ;;  %11192 = vmatprep.mubr.f32.mxu0 %v22458_v24 }
 0xee9   :  { %11217 = vmatprep.subr.mxu0 %v11216_v22 }
 0xeef   :  { %11194 = vmatmul.mubr.f32.vlgmr.msra.gmra.mrb[38].mxu0 %v10802_v34 }
 0xef0   :  { %11219 = vmatpush1.msra.mxu0 %v11218_v47  ;;  %11282 = vmatprep.mubr.f32.mxu0 %v22458_v24 }
 0xef1   :  { %11299 = vmatprep.subr.mxu0 %v11298_v32 }
 0xef7   :  { %11288 = vmatmul.mubr.f32.vlgmr.msra.gmra.mrb[38].mxu0 %v11287_v56 }
 0xef8   :  { %11305 = vmatpush1.msra.mxu0 %v11304_v36  ;;  %11368 = vmatprep.mubr.f32.mxu0 %v22458_v24 }
 0xef9   :  { %11378 = vmatprep.subr.mxu0 %v11295_v41 }
 0xeff   :  { %11370 = vmatmul.mubr.f32.vlgmr.msra.gmra.mrb[38].mxu0 %v11283_v63 }
 0xf00   :  { %11381 = vmatpush1.msra.mxu0 %v11301_v30  ;;  %11444 = vmatprep.mubr.f32.mxu0 %v22458_v24 }
 0xf01   :  { %11454 = vmatprep.subr.mxu0 %v11216_v22 }
 0xf07   :  { %11447 = vmatmul.mubr.f32.vlgmr.msra.gmra.mrb[38].mxu0 %v11284_v31 }
 0xf08   :  { %11456 = vmatpush1.msra.mxu0 %v11218_v47  ;;  %11519 = vmatprep.mubr.f32.mxu0 %v22458_v24 }
 0xf09   :  { %11532 = vmatprep.subr.mxu0 %v11296_v38 }
 0xf0f   :  { %11523 = vmatmul.mubr.f32.vlgmr.msra.gmra.mrb[38].mxu0 %v11285_v40 }
 0xf10   :  { %11536 = vmatpush1.msra.mxu0 %v11302_v9  ;;  %11599 = vmatprep.mubr.f32.mxu0 %v22458_v24 }
 0xf11   :  { %11608 = vmatprep.subr.mxu0 %v11216_v22 }
 0xf17   :  { %11601 = vmatmul.mubr.f32.vlgmr.msra.gmra.mrb[38].mxu0 %v11283_v63 }
 0xf18   :  { %11610 = vmatpush1.msra.mxu0 %v11218_v47  ;;  %11673 = vmatprep.mubr.f32.mxu0 %v22458_v24 }
 0xf1f   :  { %11675 = vmatmul.mubr.f32.vlgmr.msra.gmra.mrb[38].mxu0 %v11283_v63 }
 0xfaa   :  { %v10808_v20 = vpop.f32.mrb[116].mxu1 }
 0xfab   :  { %v10810_v15 = vpop.f32.mrb[117].mxu1 }
 0xff2   :  { %v11676_v11 = vpop.f32.mrb[38].mxu0 }
 0xff3   :  { %v15364_v52 = vadd.f32 %v11676_v11, %v10808_v20  ;;  %v11678_v39 = vpop.f32.mrb[39].mxu0 }
 0xff4   :  { %v15365_v33 = vadd.f32 %v11678_v39, %v10810_v15 }
 0xff6   :  { %v11683_v60 = vcombine.low %v15364_v52, %v15365_v33 }
 0xff8   :  { %11715 = vst.sshfl [vmem:[#allocation2] sm:$0x33 pattern:$0x76325410] %v11683_v60 }
 0xff9   :  { %15660 = shalt.err (!%p15657_p4)
}
 0xffa   :  { %s15661_s6 = scalar_lea.hbm %s21132_s15, 64 }
 0xffb   :  { %p15662_p5 = scmp.ne.s32.totalorder %s21132_s15, %s15661_s6  ;;  %p15665_p6 = scmp.lt.u32.totalorder %s15661_s6, %s21132_s15 }
 0xffd   :  { %p15667_p7 = pnand %p15665_p6, %p15662_p5 }
 0xfff   :  { %15670 = shalt.err (!%p15667_p7)
}
0x1000   :  { %11702 = dma.vmem_to_hbm [thread:$0]  %s11700_s16, 64, %s21132_s15, [#allocation3]  }
0x1001   :  { %15671 = dma.done.wait [#allocation3], 64  }
0x1002   :  { %15672 = vsyncadd [#allocation3], 4294967232 }
0x1003   :  { %11706 = vsyncpa [#allocation3], 1 }

</bundles_post_ra>
